<compile_context>
chip_gen: v5e
topology: v5e:2x2
jax: 0.10.0
libtpu: 0.0.40
codegen_flags: <defaults>
</compile_context>

<pallas_src>
import jax
import jax.numpy as jnp
from jax.experimental import pallas as pl
from jax.experimental.pallas import tpu as pltpu


def _encoder_kernel(x_ref, Wy_ref, Ah_ref, Ac_ref, brep_ref, Ve_ref,
                    Whh_ref, Wih_ref, bias_ref, out_ref):
    # x_ref   : (T*N, Bt) f32   inputs, row t*N+n = x[b, t, n], batch on lanes
    # Wy      : (N*T, T*N) bf16 block-diagonal U_e (y = Wy @ x)
    # Ah, Ac  : (N*T, H)  bf16  W_e split for h / c, rows pre-tiled over N
    # brep    : (N*T, 1)  f32   W_e bias, rows pre-tiled over N
    # Ve      : (N, N*T)  bf16  v_e reduction as a matmul
    # Whh     : (4H, H)   bf16  LSTM hidden weight, gate rows [i, f, o, g]
    # Wih     : (4H, N)   bf16  LSTM input  weight, gate rows [i, f, o, g]
    # bias    : (4H, 1)   f32   b_ih + b_hh, same row order
    # out_ref : (T*H, Bt) f32   rows [t*H:(t+1)*H] = h_t (lane-dense stores)
    TN, Bt = x_ref.shape
    H4 = Whh_ref.shape[0]
    H = H4 // 4
    N = Wih_ref.shape[1]
    T = TN // N

    # ---- hoisted loads / casts: everything here is read exactly once -------
    x = x_ref[...]                               # (T*N, Bt) f32
    x_bf = x.astype(jnp.bfloat16)
    Wy = Wy_ref[...]
    Ah = Ah_ref[...]
    Ac = Ac_ref[...]
    Ve = Ve_ref[...]
    Whh = Whh_ref[...]
    Wih = Wih_ref[...]
    # Hoist the lane-broadcasts of the biases (JAX does not CSE broadcasts).
    brep_b = jnp.broadcast_to(brep_ref[...], (N * T, Bt))
    bias_b = jnp.broadcast_to(bias_ref[...], (4 * H, Bt))

    # y = U_e(inputs.permute(0,2,1)) is invariant over t: one matmul per tile.
    # y[n*T+u, b] = sum_t Ue_w[u, t] * x[b, t, n]
    y = jnp.dot(Wy, x_bf, preferred_element_type=jnp.float32)     # (N*T, Bt)

    # h_0 = c_0 = 0 (stateful=False); state stays register-resident.
    h = jnp.zeros((H, Bt), jnp.float32)
    c = jnp.zeros((H, Bt), jnp.float32)

    # T is a small compile-time constant -> fully unrolled recurrence.
    # TODO(synk): for large T switch to lax.fori_loop(..., unroll=k) to bound
    # code size / vreg live ranges.
    for t in range(T):
        h_bf = h.astype(jnp.bfloat16)
        c_bf = c.astype(jnp.bfloat16)

        # input attention: e = v_e( tanh(W_e [h;c] + U_e x^perm) )
        # W_e projection already broadcast over N via the row-tiled Ah/Ac.
        xw = (jnp.dot(Ah, h_bf, preferred_element_type=jnp.float32)
              + jnp.dot(Ac, c_bf, preferred_element_type=jnp.float32)
              + brep_b)                                           # (N*T, Bt)
        z = jnp.tanh(xw + y)                                      # (N*T, Bt)
        # sum over the T sub-rows of each feature group, fused with * v_e
        e = jnp.dot(Ve, z.astype(jnp.bfloat16),
                    preferred_element_type=jnp.float32)           # (N, Bt)

        # softmax over the feature axis (sublanes)
        e_max = jnp.max(e, axis=0, keepdims=True)
        p = jnp.exp(e - e_max)
        alpha = p * pl.reciprocal(jnp.sum(p, axis=0, keepdims=True),
                                  approx=True)                    # (N, Bt)

        w_in = alpha * x[t * N:(t + 1) * N, :]                    # (N, Bt) f32

        # LSTM cell: gates = W_hh @ h + W_ih @ w_in + b  (rows [i | f | o | g])
        gates = (jnp.dot(Whh, h_bf, preferred_element_type=jnp.float32)
                 + jnp.dot(Wih, w_in.astype(jnp.bfloat16),
                           preferred_element_type=jnp.float32)
                 + bias_b)                                        # (4H, Bt)

        sg = jax.nn.sigmoid(gates[:3 * H, :])    # one sigmoid slab (i, f, o)
        i_g = sg[:H]
        f_g = sg[H:2 * H]
        o_g = sg[2 * H:]
        g_g = jnp.tanh(gates[3 * H:, :])

        c = f_g * c + i_g * g_g
        h = o_g * jnp.tanh(c)

        # per-step lane-dense store (rows sublane-aligned, full lanes)
        out_ref[t * H:(t + 1) * H, :] = h


def _round_up(v, m):
    return -(-v // m) * m


def input_attention_encoder(inputs, params):
    """inputs: (B, T, N) float32.  Returns (B, T, H) float32."""
    B, T, N = inputs.shape
    H = params["W_hh"].shape[1]

    # ---- layout plumbing in plain JAX (pure glue, no per-step math) --------
    # Single input layout, batch on the lane axis: row t*N+n = x[b, t, n].
    xT = jnp.transpose(inputs, (1, 2, 0)).reshape(T * N, B)

    # Batch tile: lane axis -> must be a multiple of 128; cap at 256 (fills the
    # v6e/v7x MXU). Always use >=2 grid steps so the "parallel" axis shards
    # across v7x's two TensorCores.  Working set per tile is <1 MiB, far under
    # every generation's VMEM, so bigger tiles are pure win.
    b_tile = min(256, _round_up(max(1, -(-B // 2)), 128))
    num_tiles = max(2, -(-B // b_tile))
    B_pad = num_tiles * b_tile
    if B_pad != B:
        xT = jnp.pad(xT, ((0, 0), (0, B_pad - B)))

    # W_e split for h / c, rows pre-tiled over N (folds the repeat over the
    # feature axis into the matmul -> no per-step broadcast/tile op).
    We_w = params["We_w"]                                        # (T, 2H)
    Ah = jnp.tile(We_w[:, :H], (N, 1)).astype(jnp.bfloat16)      # (N*T, H)
    Ac = jnp.tile(We_w[:, H:], (N, 1)).astype(jnp.bfloat16)      # (N*T, H)
    brep = jnp.tile(params["We_b"].reshape(T, 1), (N, 1))        # (N*T, 1) f32

    # Block-diagonal U_e so y is one matmul over the (T*N, B) input layout:
    # Wy[n*T+u, t*N+m] = Ue_w[u, t] * (n == m)
    eyeN = jnp.eye(N, dtype=jnp.float32)
    Wy = jnp.einsum("ut,nm->nutm", params["Ue_w"], eyeN) \
            .reshape(N * T, T * N).astype(jnp.bfloat16)

    # v_e reduction as a matmul: Ve[p, m*T+u] = ve[u] * (p == m)
    ve = params["ve_w"].reshape(T)
    Ve = jnp.einsum("pm,u->pmu", eyeN, ve) \
            .reshape(N, N * T).astype(jnp.bfloat16)

    # LSTM weights: no zero block; gate rows reordered [i,f,g,o] -> [i,f,o,g]
    # so one contiguous sigmoid slab + one tanh slab suffice in the kernel.
    def reorder_rows(w):
        return jnp.concatenate([w[:2 * H], w[3 * H:], w[2 * H:3 * H]], axis=0)

    Whh = reorder_rows(params["W_hh"]).astype(jnp.bfloat16)      # (4H, H)
    Wih = reorder_rows(params["W_ih"]).astype(jnp.bfloat16)      # (4H, N)
    bias_col = reorder_rows(
        (params["b_ih"] + params["b_hh"]).reshape(4 * H, 1))     # (4H, 1) f32

    def wspec(shape):
        return pl.BlockSpec(shape, lambda i: (0,) * len(shape))

    grid_spec = pltpu.PrefetchScalarGridSpec(
        num_scalar_prefetch=0,
        grid=(B_pad // b_tile,),
        in_specs=[
            pl.BlockSpec((T * N, b_tile), lambda i: (0, i)),     # inputs
            wspec((N * T, T * N)),                               # Wy
            wspec((N * T, H)),                                   # Ah
            wspec((N * T, H)),                                   # Ac
            wspec((N * T, 1)),                                   # brep
            wspec((N, N * T)),                                   # Ve
            wspec((4 * H, H)),                                   # Whh
            wspec((4 * H, N)),                                   # Wih
            wspec((4 * H, 1)),                                   # bias
        ],
        out_specs=pl.BlockSpec((T * H, b_tile), lambda i: (0, i)),
    )

    out = pl.pallas_call(
        _encoder_kernel,
        out_shape=jax.ShapeDtypeStruct((T * H, B_pad), jnp.float32),
        grid_spec=grid_spec,
        compiler_params=pltpu.CompilerParams(
            dimension_semantics=("parallel",)),
    )(xT, Wy, Ah, Ac, brep, Ve, Whh, Wih, bias_col)

    # (T*H, B_pad) -> (B, T, H): drop batch padding, transpose, split T/H.
    return jnp.transpose(out[:, :B]).reshape(B, T, H)


def reference_encoder(inputs, params):
    """Pure-JAX f32 reference mirroring the PyTorch forward exactly."""
    B, T, N = inputs.shape
    H = params["W_hh"].shape[1]
    h = jnp.zeros((B, H), jnp.float32)
    s = jnp.zeros((B, H), jnp.float32)
    outs = []
    xperm = jnp.transpose(inputs, (0, 2, 1))                     # (B, N, T)
    for t in range(T):
        hc = jnp.concatenate([h, s], axis=1)
        x = (hc @ params["We_w"].T + params["We_b"])[:, None, :]  # (B, 1, T)
        y = xperm @ params["Ue_w"].T                             # (B, N, T)
        z = jnp.tanh(x + y)
        e = (z @ params["ve_w"].T)[..., 0]                       # (B, N)
        alpha = jax.nn.softmax(e, axis=1)
        w_in = alpha * inputs[:, t, :]
        gates = (w_in @ params["W_ih"].T + params["b_ih"]
                 + h @ params["W_hh"].T + params["b_hh"])
        i_g = jax.nn.sigmoid(gates[:, 0:H])
        f_g = jax.nn.sigmoid(gates[:, H:2 * H])
        g_g = jnp.tanh(gates[:, 2 * H:3 * H])
        o_g = jax.nn.sigmoid(gates[:, 3 * H:4 * H])
        s = f_g * s + i_g * g_g
        h = o_g * jnp.tanh(s)
        outs.append(h)
    return jnp.stack(outs, axis=1)


def init_params(key, input_size, hidden_size, timestep):
    N, H, T = input_size, hidden_size, timestep
    ks = jax.random.split(key, 8)

    def u(k, shape, fan_in):
        bound = 1.0 / jnp.sqrt(jnp.float32(fan_in))
        return jax.random.uniform(k, shape, jnp.float32, -bound, bound)

    return {
        "We_w": u(ks[0], (T, 2 * H), 2 * H),   # nn.Linear(2H, T).weight
        "We_b": u(ks[1], (T,), 2 * H),         # nn.Linear(2H, T).bias
        "Ue_w": u(ks[2], (T, T), T),           # nn.Linear(T, T, bias=False).weight
        "ve_w": u(ks[3], (1, T), T),           # nn.Linear(T, 1, bias=False).weight
        "W_ih": u(ks[4], (4 * H, N), H),       # LSTMCell.weight_ih
        "W_hh": u(ks[5], (4 * H, H), H),       # LSTMCell.weight_hh
        "b_ih": u(ks[6], (4 * H,), H),
        "b_hh": u(ks[7], (4 * H,), H),
    }


if __name__ == "__main__":
    B, T, N, H = 4, 8, 8, 32   # batch, timestep, input_size, encoder_hidden_size

    key = jax.random.PRNGKey(0)
    k_x, k_p = jax.random.split(key)
    inputs = jax.random.normal(k_x, (B, T, N), jnp.float32)
    params = init_params(k_p, N, H, T)

    out = jax.block_until_ready(input_attention_encoder(inputs, params))
    ref = jax.block_until_ready(reference_encoder(inputs, params))

    max_diff = float(jnp.max(jnp.abs(out - ref)))
    assert out.shape == (B, T, H)
    # bf16 matmuls (f32 accumulation) + approx reciprocal compound over the
    # T-step recurrence; real bugs would produce O(0.1+) errors.
    assert max_diff < 5e-2, f"mismatch vs reference: {max_diff}"

    print("KERNEL_OK")
</pallas_src>

<mosaic_0001>
module attributes {stable_mosaic.version = 11 : i64} {
  func.func @_encoder_kernel(%arg0: i32, %arg1: memref<64x128xf32, #tpu.memory_space<vmem>>, %arg2: memref<64x64xbf16, #tpu.memory_space<vmem>>, %arg3: memref<64x32xbf16, #tpu.memory_space<vmem>>, %arg4: memref<64x32xbf16, #tpu.memory_space<vmem>>, %arg5: memref<64x1xf32, #tpu.memory_space<vmem>>, %arg6: memref<8x64xbf16, #tpu.memory_space<vmem>>, %arg7: memref<128x32xbf16, #tpu.memory_space<vmem>>, %arg8: memref<128x8xbf16, #tpu.memory_space<vmem>>, %arg9: memref<128x1xf32, #tpu.memory_space<vmem>>, %arg10: memref<256x128xf32, #tpu.memory_space<vmem>>) attributes {dimension_semantics = [#tpu.dimension_semantics<parallel>], iteration_bounds = array<i64: 2>, scalar_prefetch = 0 : i64, scratch_operands = 0 : i64, tpu.core_type = #tpu.core_type<tc>, window_params = [{transform_indices = @transform_0, window_bounds = array<i64: 64, 128>}, {pipeline_mode = #tpu.pipeline_mode<synchronous>, transform_indices = @transform_1, window_bounds = array<i64: 64, 64>}, {pipeline_mode = #tpu.pipeline_mode<synchronous>, transform_indices = @transform_2, window_bounds = array<i64: 64, 32>}, {pipeline_mode = #tpu.pipeline_mode<synchronous>, transform_indices = @transform_3, window_bounds = array<i64: 64, 32>}, {pipeline_mode = #tpu.pipeline_mode<synchronous>, transform_indices = @transform_4, window_bounds = array<i64: 64, 1>}, {pipeline_mode = #tpu.pipeline_mode<synchronous>, transform_indices = @transform_5, window_bounds = array<i64: 8, 64>}, {pipeline_mode = #tpu.pipeline_mode<synchronous>, transform_indices = @transform_6, window_bounds = array<i64: 128, 32>}, {pipeline_mode = #tpu.pipeline_mode<synchronous>, transform_indices = @transform_7, window_bounds = array<i64: 128, 8>}, {pipeline_mode = #tpu.pipeline_mode<synchronous>, transform_indices = @transform_8, window_bounds = array<i64: 128, 1>}, {transform_indices = @transform_9, window_bounds = array<i64: 256, 128>}]} {
    %c0 = arith.constant 0 : index
    %c0_0 = arith.constant 0 : index
    %0 = vector.load %arg1[%c0, %c0_0] : memref<64x128xf32, #tpu.memory_space<vmem>>, vector<64x128xf32>
    %1 = arith.truncf %0 : vector<64x128xf32> to vector<64x128xbf16>
    %c0_1 = arith.constant 0 : index
    %c0_2 = arith.constant 0 : index
    %2 = vector.load %arg2[%c0_1, %c0_2] : memref<64x64xbf16, #tpu.memory_space<vmem>>, vector<64x64xbf16>
    %c0_3 = arith.constant 0 : index
    %c0_4 = arith.constant 0 : index
    %3 = vector.load %arg3[%c0_3, %c0_4] : memref<64x32xbf16, #tpu.memory_space<vmem>>, vector<64x32xbf16>
    %c0_5 = arith.constant 0 : index
    %c0_6 = arith.constant 0 : index
    %4 = vector.load %arg4[%c0_5, %c0_6] : memref<64x32xbf16, #tpu.memory_space<vmem>>, vector<64x32xbf16>
    %c0_7 = arith.constant 0 : index
    %c0_8 = arith.constant 0 : index
    %5 = vector.load %arg6[%c0_7, %c0_8] : memref<8x64xbf16, #tpu.memory_space<vmem>>, vector<8x64xbf16>
    %c0_9 = arith.constant 0 : index
    %c0_10 = arith.constant 0 : index
    %6 = vector.load %arg7[%c0_9, %c0_10] : memref<128x32xbf16, #tpu.memory_space<vmem>>, vector<128x32xbf16>
    %c0_11 = arith.constant 0 : index
    %c0_12 = arith.constant 0 : index
    %7 = vector.load %arg8[%c0_11, %c0_12] : memref<128x8xbf16, #tpu.memory_space<vmem>>, vector<128x8xbf16>
    %c0_13 = arith.constant 0 : index
    %c0_14 = arith.constant 0 : index
    %8 = vector.load %arg5[%c0_13, %c0_14] : memref<64x1xf32, #tpu.memory_space<vmem>>, vector<64x1xf32>
    %9 = vector.shape_cast %8 : vector<64x1xf32> to vector<64x1xf32>
    %10 = vector.broadcast %9 : vector<64x1xf32> to vector<64x128xf32>
    %c0_15 = arith.constant 0 : index
    %c0_16 = arith.constant 0 : index
    %11 = vector.load %arg9[%c0_15, %c0_16] : memref<128x1xf32, #tpu.memory_space<vmem>>, vector<128x1xf32>
    %12 = vector.shape_cast %11 : vector<128x1xf32> to vector<128x1xf32>
    %13 = vector.broadcast %12 : vector<128x1xf32> to vector<128x128xf32>
    %cst = arith.constant dense<0.000000e+00> : vector<64x128xf32>
    %14 = tpu.matmul %2, %1, %cst {dimension_numbers = #tpu.dot_dimension_numbers<[1], [0], [0], [1], [0, 0, 1, 1], [], []>} : vector<64x64xbf16>, vector<64x128xbf16>, vector<64x128xf32> -> vector<64x128xf32>
    %cst_17 = arith.constant 0.000000e+00 : f32
    %15 = vector.broadcast %cst_17 : f32 to vector<32x128xf32>
    %cst_18 = arith.constant 0.000000e+00 : f32
    %16 = vector.broadcast %cst_18 : f32 to vector<32x128xf32>
    %17 = arith.truncf %15 : vector<32x128xf32> to vector<32x128xbf16>
    %18 = arith.truncf %16 : vector<32x128xf32> to vector<32x128xbf16>
    %cst_19 = arith.constant dense<0.000000e+00> : vector<64x128xf32>
    %19 = tpu.matmul %3, %17, %cst_19 {dimension_numbers = #tpu.dot_dimension_numbers<[1], [0], [0], [1], [0, 0, 1, 1], [], []>} : vector<64x32xbf16>, vector<32x128xbf16>, vector<64x128xf32> -> vector<64x128xf32>
    %cst_20 = arith.constant dense<0.000000e+00> : vector<64x128xf32>
    %20 = tpu.matmul %4, %18, %cst_20 {dimension_numbers = #tpu.dot_dimension_numbers<[1], [0], [0], [1], [0, 0, 1, 1], [], []>} : vector<64x32xbf16>, vector<32x128xbf16>, vector<64x128xf32> -> vector<64x128xf32>
    %21 = arith.addf %19, %20 : vector<64x128xf32>
    %22 = arith.addf %21, %10 : vector<64x128xf32>
    %23 = arith.addf %22, %14 : vector<64x128xf32>
    %24 = math.tanh %23 : vector<64x128xf32>
    %25 = arith.truncf %24 : vector<64x128xf32> to vector<64x128xbf16>
    %cst_21 = arith.constant dense<0.000000e+00> : vector<8x128xf32>
    %26 = tpu.matmul %5, %25, %cst_21 {dimension_numbers = #tpu.dot_dimension_numbers<[1], [0], [0], [1], [0, 0, 1, 1], [], []>} : vector<8x64xbf16>, vector<64x128xbf16>, vector<8x128xf32> -> vector<8x128xf32>
    %cst_22 = arith.constant dense<0xFF800000> : vector<128xf32>
    %27 = vector.multi_reduction <maximumf>, %26, %cst_22 [0] : vector<8x128xf32> to vector<128xf32>
    %28 = vector.shape_cast %27 : vector<128xf32> to vector<1x128xf32>
    %29 = vector.broadcast %28 : vector<1x128xf32> to vector<8x128xf32>
    %30 = arith.subf %26, %29 : vector<8x128xf32>
    %31 = math.exp %30 : vector<8x128xf32>
    %cst_23 = arith.constant dense<0.000000e+00> : vector<128xf32>
    %32 = vector.multi_reduction <add>, %31, %cst_23 [0] : vector<8x128xf32> to vector<128xf32>
    %33 = vector.shape_cast %32 : vector<128xf32> to vector<1x128xf32>
    %34 = tpu.reciprocal %33 {approx = true} : vector<1x128xf32> -> vector<1x128xf32>
    %35 = vector.broadcast %34 : vector<1x128xf32> to vector<8x128xf32>
    %36 = arith.mulf %31, %35 : vector<8x128xf32>
    %37 = vector.extract_strided_slice %0 {offsets = [0, 0], sizes = [8, 128], strides = [1, 1]} : vector<64x128xf32> to vector<8x128xf32>
    %38 = arith.mulf %36, %37 : vector<8x128xf32>
    %cst_24 = arith.constant dense<0.000000e+00> : vector<128x128xf32>
    %39 = tpu.matmul %6, %17, %cst_24 {dimension_numbers = #tpu.dot_dimension_numbers<[1], [0], [0], [1], [0, 0, 1, 1], [], []>} : vector<128x32xbf16>, vector<32x128xbf16>, vector<128x128xf32> -> vector<128x128xf32>
    %40 = arith.truncf %38 : vector<8x128xf32> to vector<8x128xbf16>
    %cst_25 = arith.constant dense<0.000000e+00> : vector<128x128xf32>
    %41 = tpu.matmul %7, %40, %cst_25 {dimension_numbers = #tpu.dot_dimension_numbers<[1], [0], [0], [1], [0, 0, 1, 1], [], []>} : vector<128x8xbf16>, vector<8x128xbf16>, vector<128x128xf32> -> vector<128x128xf32>
    %42 = arith.addf %39, %41 : vector<128x128xf32>
    %43 = arith.addf %42, %13 : vector<128x128xf32>
    %44 = vector.extract_strided_slice %43 {offsets = [0, 0], sizes = [96, 128], strides = [1, 1]} : vector<128x128xf32> to vector<96x128xf32>
    %45 = arith.negf %44 : vector<96x128xf32>
    %46 = math.exp %45 : vector<96x128xf32>
    %cst_26 = arith.constant 1.000000e+00 : f32
    %47 = vector.broadcast %cst_26 : f32 to vector<96x128xf32>
    %48 = arith.addf %47, %46 : vector<96x128xf32>
    %49 = arith.divf %47, %48 : vector<96x128xf32>
    %50 = vector.extract_strided_slice %49 {offsets = [0, 0], sizes = [32, 128], strides = [1, 1]} : vector<96x128xf32> to vector<32x128xf32>
    %51 = vector.extract_strided_slice %49 {offsets = [32, 0], sizes = [32, 128], strides = [1, 1]} : vector<96x128xf32> to vector<32x128xf32>
    %52 = vector.extract_strided_slice %49 {offsets = [64, 0], sizes = [32, 128], strides = [1, 1]} : vector<96x128xf32> to vector<32x128xf32>
    %53 = vector.extract_strided_slice %43 {offsets = [96, 0], sizes = [32, 128], strides = [1, 1]} : vector<128x128xf32> to vector<32x128xf32>
    %54 = math.tanh %53 : vector<32x128xf32>
    %55 = arith.mulf %51, %16 : vector<32x128xf32>
    %56 = arith.mulf %50, %54 : vector<32x128xf32>
    %57 = arith.addf %55, %56 : vector<32x128xf32>
    %58 = math.tanh %57 : vector<32x128xf32>
    %59 = arith.mulf %52, %58 : vector<32x128xf32>
    %c0_27 = arith.constant 0 : index
    %c0_28 = arith.constant 0 : index
    %60 = vector.load %arg10[%c0_27, %c0_28] : memref<256x128xf32, #tpu.memory_space<vmem>>, vector<32x128xf32>
    tpu.vector_store %arg10[%c0_27, %c0_28], %59 {strides = array<i32>} : memref<256x128xf32, #tpu.memory_space<vmem>>, vector<32x128xf32>,
    %61 = arith.truncf %59 : vector<32x128xf32> to vector<32x128xbf16>
    %62 = arith.truncf %57 : vector<32x128xf32> to vector<32x128xbf16>
    %cst_29 = arith.constant dense<0.000000e+00> : vector<64x128xf32>
    %63 = tpu.matmul %3, %61, %cst_29 {dimension_numbers = #tpu.dot_dimension_numbers<[1], [0], [0], [1], [0, 0, 1, 1], [], []>} : vector<64x32xbf16>, vector<32x128xbf16>, vector<64x128xf32> -> vector<64x128xf32>
    %cst_30 = arith.constant dense<0.000000e+00> : vector<64x128xf32>
    %64 = tpu.matmul %4, %62, %cst_30 {dimension_numbers = #tpu.dot_dimension_numbers<[1], [0], [0], [1], [0, 0, 1, 1], [], []>} : vector<64x32xbf16>, vector<32x128xbf16>, vector<64x128xf32> -> vector<64x128xf32>
    %65 = arith.addf %63, %64 : vector<64x128xf32>
    %66 = arith.addf %65, %10 : vector<64x128xf32>
    %67 = arith.addf %66, %14 : vector<64x128xf32>
    %68 = math.tanh %67 : vector<64x128xf32>
    %69 = arith.truncf %68 : vector<64x128xf32> to vector<64x128xbf16>
    %cst_31 = arith.constant dense<0.000000e+00> : vector<8x128xf32>
    %70 = tpu.matmul %5, %69, %cst_31 {dimension_numbers = #tpu.dot_dimension_numbers<[1], [0], [0], [1], [0, 0, 1, 1], [], []>} : vector<8x64xbf16>, vector<64x128xbf16>, vector<8x128xf32> -> vector<8x128xf32>
    %cst_32 = arith.constant dense<0xFF800000> : vector<128xf32>
    %71 = vector.multi_reduction <maximumf>, %70, %cst_32 [0] : vector<8x128xf32> to vector<128xf32>
    %72 = vector.shape_cast %71 : vector<128xf32> to vector<1x128xf32>
    %73 = vector.broadcast %72 : vector<1x128xf32> to vector<8x128xf32>
    %74 = arith.subf %70, %73 : vector<8x128xf32>
    %75 = math.exp %74 : vector<8x128xf32>
    %cst_33 = arith.constant dense<0.000000e+00> : vector<128xf32>
    %76 = vector.multi_reduction <add>, %75, %cst_33 [0] : vector<8x128xf32> to vector<128xf32>
    %77 = vector.shape_cast %76 : vector<128xf32> to vector<1x128xf32>
    %78 = tpu.reciprocal %77 {approx = true} : vector<1x128xf32> -> vector<1x128xf32>
    %79 = vector.broadcast %78 : vector<1x128xf32> to vector<8x128xf32>
    %80 = arith.mulf %75, %79 : vector<8x128xf32>
    %81 = vector.extract_strided_slice %0 {offsets = [8, 0], sizes = [8, 128], strides = [1, 1]} : vector<64x128xf32> to vector<8x128xf32>
    %82 = arith.mulf %80, %81 : vector<8x128xf32>
    %cst_34 = arith.constant dense<0.000000e+00> : vector<128x128xf32>
    %83 = tpu.matmul %6, %61, %cst_34 {dimension_numbers = #tpu.dot_dimension_numbers<[1], [0], [0], [1], [0, 0, 1, 1], [], []>} : vector<128x32xbf16>, vector<32x128xbf16>, vector<128x128xf32> -> vector<128x128xf32>
    %84 = arith.truncf %82 : vector<8x128xf32> to vector<8x128xbf16>
    %cst_35 = arith.constant dense<0.000000e+00> : vector<128x128xf32>
    %85 = tpu.matmul %7, %84, %cst_35 {dimension_numbers = #tpu.dot_dimension_numbers<[1], [0], [0], [1], [0, 0, 1, 1], [], []>} : vector<128x8xbf16>, vector<8x128xbf16>, vector<128x128xf32> -> vector<128x128xf32>
    %86 = arith.addf %83, %85 : vector<128x128xf32>
    %87 = arith.addf %86, %13 : vector<128x128xf32>
    %88 = vector.extract_strided_slice %87 {offsets = [0, 0], sizes = [96, 128], strides = [1, 1]} : vector<128x128xf32> to vector<96x128xf32>
    %89 = arith.negf %88 : vector<96x128xf32>
    %90 = math.exp %89 : vector<96x128xf32>
    %cst_36 = arith.constant 1.000000e+00 : f32
    %91 = vector.broadcast %cst_36 : f32 to vector<96x128xf32>
    %92 = arith.addf %91, %90 : vector<96x128xf32>
    %93 = arith.divf %91, %92 : vector<96x128xf32>
    %94 = vector.extract_strided_slice %93 {offsets = [0, 0], sizes = [32, 128], strides = [1, 1]} : vector<96x128xf32> to vector<32x128xf32>
    %95 = vector.extract_strided_slice %93 {offsets = [32, 0], sizes = [32, 128], strides = [1, 1]} : vector<96x128xf32> to vector<32x128xf32>
    %96 = vector.extract_strided_slice %93 {offsets = [64, 0], sizes = [32, 128], strides = [1, 1]} : vector<96x128xf32> to vector<32x128xf32>
    %97 = vector.extract_strided_slice %87 {offsets = [96, 0], sizes = [32, 128], strides = [1, 1]} : vector<128x128xf32> to vector<32x128xf32>
    %98 = math.tanh %97 : vector<32x128xf32>
    %99 = arith.mulf %95, %57 : vector<32x128xf32>
    %100 = arith.mulf %94, %98 : vector<32x128xf32>
    %101 = arith.addf %99, %100 : vector<32x128xf32>
    %102 = math.tanh %101 : vector<32x128xf32>
    %103 = arith.mulf %96, %102 : vector<32x128xf32>
    %c32 = arith.constant 32 : index
    %c0_37 = arith.constant 0 : index
    %104 = vector.load %arg10[%c32, %c0_37] : memref<256x128xf32, #tpu.memory_space<vmem>>, vector<32x128xf32>
    tpu.vector_store %arg10[%c32, %c0_37], %103 {strides = array<i32>} : memref<256x128xf32, #tpu.memory_space<vmem>>, vector<32x128xf32>,
    %105 = arith.truncf %103 : vector<32x128xf32> to vector<32x128xbf16>
    %106 = arith.truncf %101 : vector<32x128xf32> to vector<32x128xbf16>
    %cst_38 = arith.constant dense<0.000000e+00> : vector<64x128xf32>
    %107 = tpu.matmul %3, %105, %cst_38 {dimension_numbers = #tpu.dot_dimension_numbers<[1], [0], [0], [1], [0, 0, 1, 1], [], []>} : vector<64x32xbf16>, vector<32x128xbf16>, vector<64x128xf32> -> vector<64x128xf32>
    %cst_39 = arith.constant dense<0.000000e+00> : vector<64x128xf32>
    %108 = tpu.matmul %4, %106, %cst_39 {dimension_numbers = #tpu.dot_dimension_numbers<[1], [0], [0], [1], [0, 0, 1, 1], [], []>} : vector<64x32xbf16>, vector<32x128xbf16>, vector<64x128xf32> -> vector<64x128xf32>
    %109 = arith.addf %107, %108 : vector<64x128xf32>
    %110 = arith.addf %109, %10 : vector<64x128xf32>
    %111 = arith.addf %110, %14 : vector<64x128xf32>
    %112 = math.tanh %111 : vector<64x128xf32>
    %113 = arith.truncf %112 : vector<64x128xf32> to vector<64x128xbf16>
    %cst_40 = arith.constant dense<0.000000e+00> : vector<8x128xf32>
    %114 = tpu.matmul %5, %113, %cst_40 {dimension_numbers = #tpu.dot_dimension_numbers<[1], [0], [0], [1], [0, 0, 1, 1], [], []>} : vector<8x64xbf16>, vector<64x128xbf16>, vector<8x128xf32> -> vector<8x128xf32>
    %cst_41 = arith.constant dense<0xFF800000> : vector<128xf32>
    %115 = vector.multi_reduction <maximumf>, %114, %cst_41 [0] : vector<8x128xf32> to vector<128xf32>
    %116 = vector.shape_cast %115 : vector<128xf32> to vector<1x128xf32>
    %117 = vector.broadcast %116 : vector<1x128xf32> to vector<8x128xf32>
    %118 = arith.subf %114, %117 : vector<8x128xf32>
    %119 = math.exp %118 : vector<8x128xf32>
    %cst_42 = arith.constant dense<0.000000e+00> : vector<128xf32>
    %120 = vector.multi_reduction <add>, %119, %cst_42 [0] : vector<8x128xf32> to vector<128xf32>
    %121 = vector.shape_cast %120 : vector<128xf32> to vector<1x128xf32>
    %122 = tpu.reciprocal %121 {approx = true} : vector<1x128xf32> -> vector<1x128xf32>
    %123 = vector.broadcast %122 : vector<1x128xf32> to vector<8x128xf32>
    %124 = arith.mulf %119, %123 : vector<8x128xf32>
    %125 = vector.extract_strided_slice %0 {offsets = [16, 0], sizes = [8, 128], strides = [1, 1]} : vector<64x128xf32> to vector<8x128xf32>
    %126 = arith.mulf %124, %125 : vector<8x128xf32>
    %cst_43 = arith.constant dense<0.000000e+00> : vector<128x128xf32>
    %127 = tpu.matmul %6, %105, %cst_43 {dimension_numbers = #tpu.dot_dimension_numbers<[1], [0], [0], [1], [0, 0, 1, 1], [], []>} : vector<128x32xbf16>, vector<32x128xbf16>, vector<128x128xf32> -> vector<128x128xf32>
    %128 = arith.truncf %126 : vector<8x128xf32> to vector<8x128xbf16>
    %cst_44 = arith.constant dense<0.000000e+00> : vector<128x128xf32>
    %129 = tpu.matmul %7, %128, %cst_44 {dimension_numbers = #tpu.dot_dimension_numbers<[1], [0], [0], [1], [0, 0, 1, 1], [], []>} : vector<128x8xbf16>, vector<8x128xbf16>, vector<128x128xf32> -> vector<128x128xf32>
    %130 = arith.addf %127, %129 : vector<128x128xf32>
    %131 = arith.addf %130, %13 : vector<128x128xf32>
    %132 = vector.extract_strided_slice %131 {offsets = [0, 0], sizes = [96, 128], strides = [1, 1]} : vector<128x128xf32> to vector<96x128xf32>
    %133 = arith.negf %132 : vector<96x128xf32>
    %134 = math.exp %133 : vector<96x128xf32>
    %cst_45 = arith.constant 1.000000e+00 : f32
    %135 = vector.broadcast %cst_45 : f32 to vector<96x128xf32>
    %136 = arith.addf %135, %134 : vector<96x128xf32>
    %137 = arith.divf %135, %136 : vector<96x128xf32>
    %138 = vector.extract_strided_slice %137 {offsets = [0, 0], sizes = [32, 128], strides = [1, 1]} : vector<96x128xf32> to vector<32x128xf32>
    %139 = vector.extract_strided_slice %137 {offsets = [32, 0], sizes = [32, 128], strides = [1, 1]} : vector<96x128xf32> to vector<32x128xf32>
    %140 = vector.extract_strided_slice %137 {offsets = [64, 0], sizes = [32, 128], strides = [1, 1]} : vector<96x128xf32> to vector<32x128xf32>
    %141 = vector.extract_strided_slice %131 {offsets = [96, 0], sizes = [32, 128], strides = [1, 1]} : vector<128x128xf32> to vector<32x128xf32>
    %142 = math.tanh %141 : vector<32x128xf32>
    %143 = arith.mulf %139, %101 : vector<32x128xf32>
    %144 = arith.mulf %138, %142 : vector<32x128xf32>
    %145 = arith.addf %143, %144 : vector<32x128xf32>
    %146 = math.tanh %145 : vector<32x128xf32>
    %147 = arith.mulf %140, %146 : vector<32x128xf32>
    %c64 = arith.constant 64 : index
    %c0_46 = arith.constant 0 : index
    %148 = vector.load %arg10[%c64, %c0_46] : memref<256x128xf32, #tpu.memory_space<vmem>>, vector<32x128xf32>
    tpu.vector_store %arg10[%c64, %c0_46], %147 {strides = array<i32>} : memref<256x128xf32, #tpu.memory_space<vmem>>, vector<32x128xf32>,
    %149 = arith.truncf %147 : vector<32x128xf32> to vector<32x128xbf16>
    %150 = arith.truncf %145 : vector<32x128xf32> to vector<32x128xbf16>
    %cst_47 = arith.constant dense<0.000000e+00> : vector<64x128xf32>
    %151 = tpu.matmul %3, %149, %cst_47 {dimension_numbers = #tpu.dot_dimension_numbers<[1], [0], [0], [1], [0, 0, 1, 1], [], []>} : vector<64x32xbf16>, vector<32x128xbf16>, vector<64x128xf32> -> vector<64x128xf32>
    %cst_48 = arith.constant dense<0.000000e+00> : vector<64x128xf32>
    %152 = tpu.matmul %4, %150, %cst_48 {dimension_numbers = #tpu.dot_dimension_numbers<[1], [0], [0], [1], [0, 0, 1, 1], [], []>} : vector<64x32xbf16>, vector<32x128xbf16>, vector<64x128xf32> -> vector<64x128xf32>
    %153 = arith.addf %151, %152 : vector<64x128xf32>
    %154 = arith.addf %153, %10 : vector<64x128xf32>
    %155 = arith.addf %154, %14 : vector<64x128xf32>
    %156 = math.tanh %155 : vector<64x128xf32>
    %157 = arith.truncf %156 : vector<64x128xf32> to vector<64x128xbf16>
    %cst_49 = arith.constant dense<0.000000e+00> : vector<8x128xf32>
    %158 = tpu.matmul %5, %157, %cst_49 {dimension_numbers = #tpu.dot_dimension_numbers<[1], [0], [0], [1], [0, 0, 1, 1], [], []>} : vector<8x64xbf16>, vector<64x128xbf16>, vector<8x128xf32> -> vector<8x128xf32>
    %cst_50 = arith.constant dense<0xFF800000> : vector<128xf32>
    %159 = vector.multi_reduction <maximumf>, %158, %cst_50 [0] : vector<8x128xf32> to vector<128xf32>
    %160 = vector.shape_cast %159 : vector<128xf32> to vector<1x128xf32>
    %161 = vector.broadcast %160 : vector<1x128xf32> to vector<8x128xf32>
    %162 = arith.subf %158, %161 : vector<8x128xf32>
    %163 = math.exp %162 : vector<8x128xf32>
    %cst_51 = arith.constant dense<0.000000e+00> : vector<128xf32>
    %164 = vector.multi_reduction <add>, %163, %cst_51 [0] : vector<8x128xf32> to vector<128xf32>
    %165 = vector.shape_cast %164 : vector<128xf32> to vector<1x128xf32>
    %166 = tpu.reciprocal %165 {approx = true} : vector<1x128xf32> -> vector<1x128xf32>
    %167 = vector.broadcast %166 : vector<1x128xf32> to vector<8x128xf32>
    %168 = arith.mulf %163, %167 : vector<8x128xf32>
    %169 = vector.extract_strided_slice %0 {offsets = [24, 0], sizes = [8, 128], strides = [1, 1]} : vector<64x128xf32> to vector<8x128xf32>
    %170 = arith.mulf %168, %169 : vector<8x128xf32>
    %cst_52 = arith.constant dense<0.000000e+00> : vector<128x128xf32>
    %171 = tpu.matmul %6, %149, %cst_52 {dimension_numbers = #tpu.dot_dimension_numbers<[1], [0], [0], [1], [0, 0, 1, 1], [], []>} : vector<128x32xbf16>, vector<32x128xbf16>, vector<128x128xf32> -> vector<128x128xf32>
    %172 = arith.truncf %170 : vector<8x128xf32> to vector<8x128xbf16>
    %cst_53 = arith.constant dense<0.000000e+00> : vector<128x128xf32>
    %173 = tpu.matmul %7, %172, %cst_53 {dimension_numbers = #tpu.dot_dimension_numbers<[1], [0], [0], [1], [0, 0, 1, 1], [], []>} : vector<128x8xbf16>, vector<8x128xbf16>, vector<128x128xf32> -> vector<128x128xf32>
    %174 = arith.addf %171, %173 : vector<128x128xf32>
    %175 = arith.addf %174, %13 : vector<128x128xf32>
    %176 = vector.extract_strided_slice %175 {offsets = [0, 0], sizes = [96, 128], strides = [1, 1]} : vector<128x128xf32> to vector<96x128xf32>
    %177 = arith.negf %176 : vector<96x128xf32>
    %178 = math.exp %177 : vector<96x128xf32>
    %cst_54 = arith.constant 1.000000e+00 : f32
    %179 = vector.broadcast %cst_54 : f32 to vector<96x128xf32>
    %180 = arith.addf %179, %178 : vector<96x128xf32>
    %181 = arith.divf %179, %180 : vector<96x128xf32>
    %182 = vector.extract_strided_slice %181 {offsets = [0, 0], sizes = [32, 128], strides = [1, 1]} : vector<96x128xf32> to vector<32x128xf32>
    %183 = vector.extract_strided_slice %181 {offsets = [32, 0], sizes = [32, 128], strides = [1, 1]} : vector<96x128xf32> to vector<32x128xf32>
    %184 = vector.extract_strided_slice %181 {offsets = [64, 0], sizes = [32, 128], strides = [1, 1]} : vector<96x128xf32> to vector<32x128xf32>
    %185 = vector.extract_strided_slice %175 {offsets = [96, 0], sizes = [32, 128], strides = [1, 1]} : vector<128x128xf32> to vector<32x128xf32>
    %186 = math.tanh %185 : vector<32x128xf32>
    %187 = arith.mulf %183, %145 : vector<32x128xf32>
    %188 = arith.mulf %182, %186 : vector<32x128xf32>
    %189 = arith.addf %187, %188 : vector<32x128xf32>
    %190 = math.tanh %189 : vector<32x128xf32>
    %191 = arith.mulf %184, %190 : vector<32x128xf32>
    %c96 = arith.constant 96 : index
    %c0_55 = arith.constant 0 : index
    %192 = vector.load %arg10[%c96, %c0_55] : memref<256x128xf32, #tpu.memory_space<vmem>>, vector<32x128xf32>
    tpu.vector_store %arg10[%c96, %c0_55], %191 {strides = array<i32>} : memref<256x128xf32, #tpu.memory_space<vmem>>, vector<32x128xf32>,
    %193 = arith.truncf %191 : vector<32x128xf32> to vector<32x128xbf16>
    %194 = arith.truncf %189 : vector<32x128xf32> to vector<32x128xbf16>
    %cst_56 = arith.constant dense<0.000000e+00> : vector<64x128xf32>
    %195 = tpu.matmul %3, %193, %cst_56 {dimension_numbers = #tpu.dot_dimension_numbers<[1], [0], [0], [1], [0, 0, 1, 1], [], []>} : vector<64x32xbf16>, vector<32x128xbf16>, vector<64x128xf32> -> vector<64x128xf32>
    %cst_57 = arith.constant dense<0.000000e+00> : vector<64x128xf32>
    %196 = tpu.matmul %4, %194, %cst_57 {dimension_numbers = #tpu.dot_dimension_numbers<[1], [0], [0], [1], [0, 0, 1, 1], [], []>} : vector<64x32xbf16>, vector<32x128xbf16>, vector<64x128xf32> -> vector<64x128xf32>
    %197 = arith.addf %195, %196 : vector<64x128xf32>
    %198 = arith.addf %197, %10 : vector<64x128xf32>
    %199 = arith.addf %198, %14 : vector<64x128xf32>
    %200 = math.tanh %199 : vector<64x128xf32>
    %201 = arith.truncf %200 : vector<64x128xf32> to vector<64x128xbf16>
    %cst_58 = arith.constant dense<0.000000e+00> : vector<8x128xf32>
    %202 = tpu.matmul %5, %201, %cst_58 {dimension_numbers = #tpu.dot_dimension_numbers<[1], [0], [0], [1], [0, 0, 1, 1], [], []>} : vector<8x64xbf16>, vector<64x128xbf16>, vector<8x128xf32> -> vector<8x128xf32>
    %cst_59 = arith.constant dense<0xFF800000> : vector<128xf32>
    %203 = vector.multi_reduction <maximumf>, %202, %cst_59 [0] : vector<8x128xf32> to vector<128xf32>
    %204 = vector.shape_cast %203 : vector<128xf32> to vector<1x128xf32>
    %205 = vector.broadcast %204 : vector<1x128xf32> to vector<8x128xf32>
    %206 = arith.subf %202, %205 : vector<8x128xf32>
    %207 = math.exp %206 : vector<8x128xf32>
    %cst_60 = arith.constant dense<0.000000e+00> : vector<128xf32>
    %208 = vector.multi_reduction <add>, %207, %cst_60 [0] : vector<8x128xf32> to vector<128xf32>
    %209 = vector.shape_cast %208 : vector<128xf32> to vector<1x128xf32>
    %210 = tpu.reciprocal %209 {approx = true} : vector<1x128xf32> -> vector<1x128xf32>
    %211 = vector.broadcast %210 : vector<1x128xf32> to vector<8x128xf32>
    %212 = arith.mulf %207, %211 : vector<8x128xf32>
    %213 = vector.extract_strided_slice %0 {offsets = [32, 0], sizes = [8, 128], strides = [1, 1]} : vector<64x128xf32> to vector<8x128xf32>
    %214 = arith.mulf %212, %213 : vector<8x128xf32>
    %cst_61 = arith.constant dense<0.000000e+00> : vector<128x128xf32>
    %215 = tpu.matmul %6, %193, %cst_61 {dimension_numbers = #tpu.dot_dimension_numbers<[1], [0], [0], [1], [0, 0, 1, 1], [], []>} : vector<128x32xbf16>, vector<32x128xbf16>, vector<128x128xf32> -> vector<128x128xf32>
    %216 = arith.truncf %214 : vector<8x128xf32> to vector<8x128xbf16>
    %cst_62 = arith.constant dense<0.000000e+00> : vector<128x128xf32>
    %217 = tpu.matmul %7, %216, %cst_62 {dimension_numbers = #tpu.dot_dimension_numbers<[1], [0], [0], [1], [0, 0, 1, 1], [], []>} : vector<128x8xbf16>, vector<8x128xbf16>, vector<128x128xf32> -> vector<128x128xf32>
    %218 = arith.addf %215, %217 : vector<128x128xf32>
    %219 = arith.addf %218, %13 : vector<128x128xf32>
    %220 = vector.extract_strided_slice %219 {offsets = [0, 0], sizes = [96, 128], strides = [1, 1]} : vector<128x128xf32> to vector<96x128xf32>
    %221 = arith.negf %220 : vector<96x128xf32>
    %222 = math.exp %221 : vector<96x128xf32>
    %cst_63 = arith.constant 1.000000e+00 : f32
    %223 = vector.broadcast %cst_63 : f32 to vector<96x128xf32>
    %224 = arith.addf %223, %222 : vector<96x128xf32>
    %225 = arith.divf %223, %224 : vector<96x128xf32>
    %226 = vector.extract_strided_slice %225 {offsets = [0, 0], sizes = [32, 128], strides = [1, 1]} : vector<96x128xf32> to vector<32x128xf32>
    %227 = vector.extract_strided_slice %225 {offsets = [32, 0], sizes = [32, 128], strides = [1, 1]} : vector<96x128xf32> to vector<32x128xf32>
    %228 = vector.extract_strided_slice %225 {offsets = [64, 0], sizes = [32, 128], strides = [1, 1]} : vector<96x128xf32> to vector<32x128xf32>
    %229 = vector.extract_strided_slice %219 {offsets = [96, 0], sizes = [32, 128], strides = [1, 1]} : vector<128x128xf32> to vector<32x128xf32>
    %230 = math.tanh %229 : vector<32x128xf32>
    %231 = arith.mulf %227, %189 : vector<32x128xf32>
    %232 = arith.mulf %226, %230 : vector<32x128xf32>
    %233 = arith.addf %231, %232 : vector<32x128xf32>
    %234 = math.tanh %233 : vector<32x128xf32>
    %235 = arith.mulf %228, %234 : vector<32x128xf32>
    %c128 = arith.constant 128 : index
    %c0_64 = arith.constant 0 : index
    %236 = vector.load %arg10[%c128, %c0_64] : memref<256x128xf32, #tpu.memory_space<vmem>>, vector<32x128xf32>
    tpu.vector_store %arg10[%c128, %c0_64], %235 {strides = array<i32>} : memref<256x128xf32, #tpu.memory_space<vmem>>, vector<32x128xf32>,
    %237 = arith.truncf %235 : vector<32x128xf32> to vector<32x128xbf16>
    %238 = arith.truncf %233 : vector<32x128xf32> to vector<32x128xbf16>
    %cst_65 = arith.constant dense<0.000000e+00> : vector<64x128xf32>
    %239 = tpu.matmul %3, %237, %cst_65 {dimension_numbers = #tpu.dot_dimension_numbers<[1], [0], [0], [1], [0, 0, 1, 1], [], []>} : vector<64x32xbf16>, vector<32x128xbf16>, vector<64x128xf32> -> vector<64x128xf32>
    %cst_66 = arith.constant dense<0.000000e+00> : vector<64x128xf32>
    %240 = tpu.matmul %4, %238, %cst_66 {dimension_numbers = #tpu.dot_dimension_numbers<[1], [0], [0], [1], [0, 0, 1, 1], [], []>} : vector<64x32xbf16>, vector<32x128xbf16>, vector<64x128xf32> -> vector<64x128xf32>
    %241 = arith.addf %239, %240 : vector<64x128xf32>
    %242 = arith.addf %241, %10 : vector<64x128xf32>
    %243 = arith.addf %242, %14 : vector<64x128xf32>
    %244 = math.tanh %243 : vector<64x128xf32>
    %245 = arith.truncf %244 : vector<64x128xf32> to vector<64x128xbf16>
    %cst_67 = arith.constant dense<0.000000e+00> : vector<8x128xf32>
    %246 = tpu.matmul %5, %245, %cst_67 {dimension_numbers = #tpu.dot_dimension_numbers<[1], [0], [0], [1], [0, 0, 1, 1], [], []>} : vector<8x64xbf16>, vector<64x128xbf16>, vector<8x128xf32> -> vector<8x128xf32>
    %cst_68 = arith.constant dense<0xFF800000> : vector<128xf32>
    %247 = vector.multi_reduction <maximumf>, %246, %cst_68 [0] : vector<8x128xf32> to vector<128xf32>
    %248 = vector.shape_cast %247 : vector<128xf32> to vector<1x128xf32>
    %249 = vector.broadcast %248 : vector<1x128xf32> to vector<8x128xf32>
    %250 = arith.subf %246, %249 : vector<8x128xf32>
    %251 = math.exp %250 : vector<8x128xf32>
    %cst_69 = arith.constant dense<0.000000e+00> : vector<128xf32>
    %252 = vector.multi_reduction <add>, %251, %cst_69 [0] : vector<8x128xf32> to vector<128xf32>
    %253 = vector.shape_cast %252 : vector<128xf32> to vector<1x128xf32>
    %254 = tpu.reciprocal %253 {approx = true} : vector<1x128xf32> -> vector<1x128xf32>
    %255 = vector.broadcast %254 : vector<1x128xf32> to vector<8x128xf32>
    %256 = arith.mulf %251, %255 : vector<8x128xf32>
    %257 = vector.extract_strided_slice %0 {offsets = [40, 0], sizes = [8, 128], strides = [1, 1]} : vector<64x128xf32> to vector<8x128xf32>
    %258 = arith.mulf %256, %257 : vector<8x128xf32>
    %cst_70 = arith.constant dense<0.000000e+00> : vector<128x128xf32>
    %259 = tpu.matmul %6, %237, %cst_70 {dimension_numbers = #tpu.dot_dimension_numbers<[1], [0], [0], [1], [0, 0, 1, 1], [], []>} : vector<128x32xbf16>, vector<32x128xbf16>, vector<128x128xf32> -> vector<128x128xf32>
    %260 = arith.truncf %258 : vector<8x128xf32> to vector<8x128xbf16>
    %cst_71 = arith.constant dense<0.000000e+00> : vector<128x128xf32>
    %261 = tpu.matmul %7, %260, %cst_71 {dimension_numbers = #tpu.dot_dimension_numbers<[1], [0], [0], [1], [0, 0, 1, 1], [], []>} : vector<128x8xbf16>, vector<8x128xbf16>, vector<128x128xf32> -> vector<128x128xf32>
    %262 = arith.addf %259, %261 : vector<128x128xf32>
    %263 = arith.addf %262, %13 : vector<128x128xf32>
    %264 = vector.extract_strided_slice %263 {offsets = [0, 0], sizes = [96, 128], strides = [1, 1]} : vector<128x128xf32> to vector<96x128xf32>
    %265 = arith.negf %264 : vector<96x128xf32>
    %266 = math.exp %265 : vector<96x128xf32>
    %cst_72 = arith.constant 1.000000e+00 : f32
    %267 = vector.broadcast %cst_72 : f32 to vector<96x128xf32>
    %268 = arith.addf %267, %266 : vector<96x128xf32>
    %269 = arith.divf %267, %268 : vector<96x128xf32>
    %270 = vector.extract_strided_slice %269 {offsets = [0, 0], sizes = [32, 128], strides = [1, 1]} : vector<96x128xf32> to vector<32x128xf32>
    %271 = vector.extract_strided_slice %269 {offsets = [32, 0], sizes = [32, 128], strides = [1, 1]} : vector<96x128xf32> to vector<32x128xf32>
    %272 = vector.extract_strided_slice %269 {offsets = [64, 0], sizes = [32, 128], strides = [1, 1]} : vector<96x128xf32> to vector<32x128xf32>
    %273 = vector.extract_strided_slice %263 {offsets = [96, 0], sizes = [32, 128], strides = [1, 1]} : vector<128x128xf32> to vector<32x128xf32>
    %274 = math.tanh %273 : vector<32x128xf32>
    %275 = arith.mulf %271, %233 : vector<32x128xf32>
    %276 = arith.mulf %270, %274 : vector<32x128xf32>
    %277 = arith.addf %275, %276 : vector<32x128xf32>
    %278 = math.tanh %277 : vector<32x128xf32>
    %279 = arith.mulf %272, %278 : vector<32x128xf32>
    %c160 = arith.constant 160 : index
    %c0_73 = arith.constant 0 : index
    %280 = vector.load %arg10[%c160, %c0_73] : memref<256x128xf32, #tpu.memory_space<vmem>>, vector<32x128xf32>
    tpu.vector_store %arg10[%c160, %c0_73], %279 {strides = array<i32>} : memref<256x128xf32, #tpu.memory_space<vmem>>, vector<32x128xf32>,
    %281 = arith.truncf %279 : vector<32x128xf32> to vector<32x128xbf16>
    %282 = arith.truncf %277 : vector<32x128xf32> to vector<32x128xbf16>
    %cst_74 = arith.constant dense<0.000000e+00> : vector<64x128xf32>
    %283 = tpu.matmul %3, %281, %cst_74 {dimension_numbers = #tpu.dot_dimension_numbers<[1], [0], [0], [1], [0, 0, 1, 1], [], []>} : vector<64x32xbf16>, vector<32x128xbf16>, vector<64x128xf32> -> vector<64x128xf32>
    %cst_75 = arith.constant dense<0.000000e+00> : vector<64x128xf32>
    %284 = tpu.matmul %4, %282, %cst_75 {dimension_numbers = #tpu.dot_dimension_numbers<[1], [0], [0], [1], [0, 0, 1, 1], [], []>} : vector<64x32xbf16>, vector<32x128xbf16>, vector<64x128xf32> -> vector<64x128xf32>
    %285 = arith.addf %283, %284 : vector<64x128xf32>
    %286 = arith.addf %285, %10 : vector<64x128xf32>
    %287 = arith.addf %286, %14 : vector<64x128xf32>
    %288 = math.tanh %287 : vector<64x128xf32>
    %289 = arith.truncf %288 : vector<64x128xf32> to vector<64x128xbf16>
    %cst_76 = arith.constant dense<0.000000e+00> : vector<8x128xf32>
    %290 = tpu.matmul %5, %289, %cst_76 {dimension_numbers = #tpu.dot_dimension_numbers<[1], [0], [0], [1], [0, 0, 1, 1], [], []>} : vector<8x64xbf16>, vector<64x128xbf16>, vector<8x128xf32> -> vector<8x128xf32>
    %cst_77 = arith.constant dense<0xFF800000> : vector<128xf32>
    %291 = vector.multi_reduction <maximumf>, %290, %cst_77 [0] : vector<8x128xf32> to vector<128xf32>
    %292 = vector.shape_cast %291 : vector<128xf32> to vector<1x128xf32>
    %293 = vector.broadcast %292 : vector<1x128xf32> to vector<8x128xf32>
    %294 = arith.subf %290, %293 : vector<8x128xf32>
    %295 = math.exp %294 : vector<8x128xf32>
    %cst_78 = arith.constant dense<0.000000e+00> : vector<128xf32>
    %296 = vector.multi_reduction <add>, %295, %cst_78 [0] : vector<8x128xf32> to vector<128xf32>
    %297 = vector.shape_cast %296 : vector<128xf32> to vector<1x128xf32>
    %298 = tpu.reciprocal %297 {approx = true} : vector<1x128xf32> -> vector<1x128xf32>
    %299 = vector.broadcast %298 : vector<1x128xf32> to vector<8x128xf32>
    %300 = arith.mulf %295, %299 : vector<8x128xf32>
    %301 = vector.extract_strided_slice %0 {offsets = [48, 0], sizes = [8, 128], strides = [1, 1]} : vector<64x128xf32> to vector<8x128xf32>
    %302 = arith.mulf %300, %301 : vector<8x128xf32>
    %cst_79 = arith.constant dense<0.000000e+00> : vector<128x128xf32>
    %303 = tpu.matmul %6, %281, %cst_79 {dimension_numbers = #tpu.dot_dimension_numbers<[1], [0], [0], [1], [0, 0, 1, 1], [], []>} : vector<128x32xbf16>, vector<32x128xbf16>, vector<128x128xf32> -> vector<128x128xf32>
    %304 = arith.truncf %302 : vector<8x128xf32> to vector<8x128xbf16>
    %cst_80 = arith.constant dense<0.000000e+00> : vector<128x128xf32>
    %305 = tpu.matmul %7, %304, %cst_80 {dimension_numbers = #tpu.dot_dimension_numbers<[1], [0], [0], [1], [0, 0, 1, 1], [], []>} : vector<128x8xbf16>, vector<8x128xbf16>, vector<128x128xf32> -> vector<128x128xf32>
    %306 = arith.addf %303, %305 : vector<128x128xf32>
    %307 = arith.addf %306, %13 : vector<128x128xf32>
    %308 = vector.extract_strided_slice %307 {offsets = [0, 0], sizes = [96, 128], strides = [1, 1]} : vector<128x128xf32> to vector<96x128xf32>
    %309 = arith.negf %308 : vector<96x128xf32>
    %310 = math.exp %309 : vector<96x128xf32>
    %cst_81 = arith.constant 1.000000e+00 : f32
    %311 = vector.broadcast %cst_81 : f32 to vector<96x128xf32>
    %312 = arith.addf %311, %310 : vector<96x128xf32>
    %313 = arith.divf %311, %312 : vector<96x128xf32>
    %314 = vector.extract_strided_slice %313 {offsets = [0, 0], sizes = [32, 128], strides = [1, 1]} : vector<96x128xf32> to vector<32x128xf32>
    %315 = vector.extract_strided_slice %313 {offsets = [32, 0], sizes = [32, 128], strides = [1, 1]} : vector<96x128xf32> to vector<32x128xf32>
    %316 = vector.extract_strided_slice %313 {offsets = [64, 0], sizes = [32, 128], strides = [1, 1]} : vector<96x128xf32> to vector<32x128xf32>
    %317 = vector.extract_strided_slice %307 {offsets = [96, 0], sizes = [32, 128], strides = [1, 1]} : vector<128x128xf32> to vector<32x128xf32>
    %318 = math.tanh %317 : vector<32x128xf32>
    %319 = arith.mulf %315, %277 : vector<32x128xf32>
    %320 = arith.mulf %314, %318 : vector<32x128xf32>
    %321 = arith.addf %319, %320 : vector<32x128xf32>
    %322 = math.tanh %321 : vector<32x128xf32>
    %323 = arith.mulf %316, %322 : vector<32x128xf32>
    %c192 = arith.constant 192 : index
    %c0_82 = arith.constant 0 : index
    %324 = vector.load %arg10[%c192, %c0_82] : memref<256x128xf32, #tpu.memory_space<vmem>>, vector<32x128xf32>
    tpu.vector_store %arg10[%c192, %c0_82], %323 {strides = array<i32>} : memref<256x128xf32, #tpu.memory_space<vmem>>, vector<32x128xf32>,
    %325 = arith.truncf %323 : vector<32x128xf32> to vector<32x128xbf16>
    %326 = arith.truncf %321 : vector<32x128xf32> to vector<32x128xbf16>
    %cst_83 = arith.constant dense<0.000000e+00> : vector<64x128xf32>
    %327 = tpu.matmul %3, %325, %cst_83 {dimension_numbers = #tpu.dot_dimension_numbers<[1], [0], [0], [1], [0, 0, 1, 1], [], []>} : vector<64x32xbf16>, vector<32x128xbf16>, vector<64x128xf32> -> vector<64x128xf32>
    %cst_84 = arith.constant dense<0.000000e+00> : vector<64x128xf32>
    %328 = tpu.matmul %4, %326, %cst_84 {dimension_numbers = #tpu.dot_dimension_numbers<[1], [0], [0], [1], [0, 0, 1, 1], [], []>} : vector<64x32xbf16>, vector<32x128xbf16>, vector<64x128xf32> -> vector<64x128xf32>
    %329 = arith.addf %327, %328 : vector<64x128xf32>
    %330 = arith.addf %329, %10 : vector<64x128xf32>
    %331 = arith.addf %330, %14 : vector<64x128xf32>
    %332 = math.tanh %331 : vector<64x128xf32>
    %333 = arith.truncf %332 : vector<64x128xf32> to vector<64x128xbf16>
    %cst_85 = arith.constant dense<0.000000e+00> : vector<8x128xf32>
    %334 = tpu.matmul %5, %333, %cst_85 {dimension_numbers = #tpu.dot_dimension_numbers<[1], [0], [0], [1], [0, 0, 1, 1], [], []>} : vector<8x64xbf16>, vector<64x128xbf16>, vector<8x128xf32> -> vector<8x128xf32>
    %cst_86 = arith.constant dense<0xFF800000> : vector<128xf32>
    %335 = vector.multi_reduction <maximumf>, %334, %cst_86 [0] : vector<8x128xf32> to vector<128xf32>
    %336 = vector.shape_cast %335 : vector<128xf32> to vector<1x128xf32>
    %337 = vector.broadcast %336 : vector<1x128xf32> to vector<8x128xf32>
    %338 = arith.subf %334, %337 : vector<8x128xf32>
    %339 = math.exp %338 : vector<8x128xf32>
    %cst_87 = arith.constant dense<0.000000e+00> : vector<128xf32>
    %340 = vector.multi_reduction <add>, %339, %cst_87 [0] : vector<8x128xf32> to vector<128xf32>
    %341 = vector.shape_cast %340 : vector<128xf32> to vector<1x128xf32>
    %342 = tpu.reciprocal %341 {approx = true} : vector<1x128xf32> -> vector<1x128xf32>
    %343 = vector.broadcast %342 : vector<1x128xf32> to vector<8x128xf32>
    %344 = arith.mulf %339, %343 : vector<8x128xf32>
    %345 = vector.extract_strided_slice %0 {offsets = [56, 0], sizes = [8, 128], strides = [1, 1]} : vector<64x128xf32> to vector<8x128xf32>
    %346 = arith.mulf %344, %345 : vector<8x128xf32>
    %cst_88 = arith.constant dense<0.000000e+00> : vector<128x128xf32>
    %347 = tpu.matmul %6, %325, %cst_88 {dimension_numbers = #tpu.dot_dimension_numbers<[1], [0], [0], [1], [0, 0, 1, 1], [], []>} : vector<128x32xbf16>, vector<32x128xbf16>, vector<128x128xf32> -> vector<128x128xf32>
    %348 = arith.truncf %346 : vector<8x128xf32> to vector<8x128xbf16>
    %cst_89 = arith.constant dense<0.000000e+00> : vector<128x128xf32>
    %349 = tpu.matmul %7, %348, %cst_89 {dimension_numbers = #tpu.dot_dimension_numbers<[1], [0], [0], [1], [0, 0, 1, 1], [], []>} : vector<128x8xbf16>, vector<8x128xbf16>, vector<128x128xf32> -> vector<128x128xf32>
    %350 = arith.addf %347, %349 : vector<128x128xf32>
    %351 = arith.addf %350, %13 : vector<128x128xf32>
    %352 = vector.extract_strided_slice %351 {offsets = [0, 0], sizes = [96, 128], strides = [1, 1]} : vector<128x128xf32> to vector<96x128xf32>
    %353 = arith.negf %352 : vector<96x128xf32>
    %354 = math.exp %353 : vector<96x128xf32>
    %cst_90 = arith.constant 1.000000e+00 : f32
    %355 = vector.broadcast %cst_90 : f32 to vector<96x128xf32>
    %356 = arith.addf %355, %354 : vector<96x128xf32>
    %357 = arith.divf %355, %356 : vector<96x128xf32>
    %358 = vector.extract_strided_slice %357 {offsets = [0, 0], sizes = [32, 128], strides = [1, 1]} : vector<96x128xf32> to vector<32x128xf32>
    %359 = vector.extract_strided_slice %357 {offsets = [32, 0], sizes = [32, 128], strides = [1, 1]} : vector<96x128xf32> to vector<32x128xf32>
    %360 = vector.extract_strided_slice %357 {offsets = [64, 0], sizes = [32, 128], strides = [1, 1]} : vector<96x128xf32> to vector<32x128xf32>
    %361 = vector.extract_strided_slice %351 {offsets = [96, 0], sizes = [32, 128], strides = [1, 1]} : vector<128x128xf32> to vector<32x128xf32>
    %362 = math.tanh %361 : vector<32x128xf32>
    %363 = arith.mulf %359, %321 : vector<32x128xf32>
    %364 = arith.mulf %358, %362 : vector<32x128xf32>
    %365 = arith.addf %363, %364 : vector<32x128xf32>
    %366 = math.tanh %365 : vector<32x128xf32>
    %367 = arith.mulf %360, %366 : vector<32x128xf32>
    %c224 = arith.constant 224 : index
    %c0_91 = arith.constant 0 : index
    %368 = vector.load %arg10[%c224, %c0_91] : memref<256x128xf32, #tpu.memory_space<vmem>>, vector<32x128xf32>
    tpu.vector_store %arg10[%c224, %c0_91], %367 {strides = array<i32>} : memref<256x128xf32, #tpu.memory_space<vmem>>, vector<32x128xf32>,
    return
  }
  func.func @transform_0(%arg0: i32) -> (i32, i32) {
    %c0_i32 = arith.constant 0 : i32
    %c0_i32_0 = arith.constant 0 : i32
    return %c0_i32, %arg0 : i32, i32
  }
  func.func @transform_1(%arg0: i32) -> (i32, i32) {
    %c0_i32 = arith.constant 0 : i32
    %c0_i32_0 = arith.constant 0 : i32
    %c0_i32_1 = arith.constant 0 : i32
    return %c0_i32, %c0_i32_0 : i32, i32
  }
  func.func @transform_2(%arg0: i32) -> (i32, i32) {
    %c0_i32 = arith.constant 0 : i32
    %c0_i32_0 = arith.constant 0 : i32
    %c0_i32_1 = arith.constant 0 : i32
    return %c0_i32, %c0_i32_0 : i32, i32
  }
  func.func @transform_3(%arg0: i32) -> (i32, i32) {
    %c0_i32 = arith.constant 0 : i32
    %c0_i32_0 = arith.constant 0 : i32
    %c0_i32_1 = arith.constant 0 : i32
    return %c0_i32, %c0_i32_0 : i32, i32
  }
  func.func @transform_4(%arg0: i32) -> (i32, i32) {
    %c0_i32 = arith.constant 0 : i32
    %c0_i32_0 = arith.constant 0 : i32
    %c0_i32_1 = arith.constant 0 : i32
    return %c0_i32, %c0_i32_0 : i32, i32
  }
  func.func @transform_5(%arg0: i32) -> (i32, i32) {
    %c0_i32 = arith.constant 0 : i32
    %c0_i32_0 = arith.constant 0 : i32
    %c0_i32_1 = arith.constant 0 : i32
    return %c0_i32, %c0_i32_0 : i32, i32
  }
  func.func @transform_6(%arg0: i32) -> (i32, i32) {
    %c0_i32 = arith.constant 0 : i32
    %c0_i32_0 = arith.constant 0 : i32
    %c0_i32_1 = arith.constant 0 : i32
    return %c0_i32, %c0_i32_0 : i32, i32
  }
  func.func @transform_7(%arg0: i32) -> (i32, i32) {
    %c0_i32 = arith.constant 0 : i32
    %c0_i32_0 = arith.constant 0 : i32
    %c0_i32_1 = arith.constant 0 : i32
    return %c0_i32, %c0_i32_0 : i32, i32
  }
  func.func @transform_8(%arg0: i32) -> (i32, i32) {
    %c0_i32 = arith.constant 0 : i32
    %c0_i32_0 = arith.constant 0 : i32
    %c0_i32_1 = arith.constant 0 : i32
    return %c0_i32, %c0_i32_0 : i32, i32
  }
  func.func @transform_9(%arg0: i32) -> (i32, i32) {
    %c0_i32 = arith.constant 0 : i32
    %c0_i32_0 = arith.constant 0 : i32
    return %c0_i32, %arg0 : i32, i32
  }
}

</mosaic_0001>

<bundles_post_ra>
// kernel: tpu_custom_call.1
= control target key start
LH: loop header
LB: loop body
LE: loop exit
PB: predicated region body
PF: predicated region fallthrough
CT: control target
= control target key end

     0   :  { %14 = vsyncpa [#allocation4], 0  ;;  %s10179_s0 = inlined_call_operand.vmem [shape: f32[64,256], index: 0, kind: input, shape index: {}]   ;;  %s10180_s1 = inlined_call_operand.vmem [shape: bf16[64,64], index: 1, kind: input, shape index: {}]   ;;  %s10181_s2 = inlined_call_operand.vmem [shape: bf16[64,32], index: 2, kind: input, shape index: {}]   ;;  %s10182_s3 = inlined_call_operand.vmem [shape: bf16[64,32], index: 3, kind: input, shape index: {}]   ;;  %s10183_s4 = inlined_call_operand.vmem [shape: f32[64,1], index: 4, kind: input, shape index: {}]   ;;  %s10184_s5 = inlined_call_operand.vmem [shape: bf16[8,64], index: 5, kind: input, shape index: {}]   ;;  %s10185_s6 = inlined_call_operand.vmem [shape: bf16[128,32], index: 6, kind: input, shape index: {}]   ;;  %s10186_s7 = inlined_call_operand.vmem [shape: bf16[128,8], index: 7, kind: input, shape index: {}]   ;;  %s10187_s8 = inlined_call_operand.vmem [shape: f32[128,1], index: 8, kind: input, shape index: {}]   ;;  %s10188_s9 = inlined_call_operand.hbm [shape: f32[256,256], index: 9, kind: output, shape index: {}]  }
   0x1   :  { %16 = vsyncpa [#allocation4 + $0x1], 0  ;;  %s6294_s30 = smov 0   ;;  %s6296_s10 = smov 0  }
   0x2   :  { %s6298_s11 = smov 0   ;;  %s6300_s12 = smov 0  }
   0x3 LB: > { %s4906_s13 = sadd.s32 4294967295, %s6238_s12   ;;  %s4907_s14 = sadd.s32 4294967294, %s6238_s12   ;;  %s6238_s12 = sphi %s6300_s12, %s10779_s12   ;;  %s6234_s11 = sphi %s6298_s11, %s10778_s11   ;;  %s6230_s10 = sphi %s6296_s10, %s10777_s10   ;;  %s6226_s30 = sphi %s6294_s30, %s10776_s30  }
   0x4   : > { %s6317_s15 = sadd.s32 1, %s6238_s12   ;;  %s29_s16 = sadd.s32 1, %s6234_s11 }
   0x5   : > { %s26_s17 = ssub.s32 %s6238_s12, %s6317_s15  ;;  %p36_p0 = scmp.ne.s32.totalorder %s6234_s11, %s6230_s10 }
   0x6   : > { %p27_p1 = scmp.eq.s32.totalorder %s26_s17, 0  ;;  %p37_p2 = scmp.eq.s32.totalorder %s6238_s12, 0 }
   0x7   : > { %p234_p3 = scmp.eq.s32.totalorder %s4906_s13, 1  ;;  %p239_p4 = scmp.ne.s32.totalorder %s6230_s10, %s6226_s30 }
   0x8   : > { %s6330_s18 = scalar_select %p27_p1, %s6234_s11, %s29_s16  }
   0x9   : > { %p38_p5 = por %p37_p2, %p36_p0  ;;  %p6332_p6 = por %p234_p3, %p36_p0 }
   0xa   : > { %p240_p7 = scmp.eq.s32.totalorder %s4907_s14, 1  ;;  %p4909_p9 = scmp.ge.s32.totalorder %s6238_s12, 2 }
   0xc   : > { %p6336_p8 = por %p240_p7, %p239_p4  ;;  %280 = sbr.rel (%p4909_p9) target bundleno = 29 (0x1d), region = 48 }
  0x11   : > { %283 = sbr.rel (!%p38_p5) target bundleno = 29 (0x1d), region = 52  ;;  %s285_s21 = sand.u32 (%p38_p5), 1, %s6234_s11  }
  0x12   : > { %s4911_s22 = sshll.u32 (%p38_p5), %s6238_s12, 3  ;;  %s4910_s23 = sshll.u32 (%p38_p5), %s285_s21, 6 }
  0x13   : > { %s289_s26 = scalar_lea.vmem (%p38_p5), %s10179_s0, %s4911_s22  ;;  %s287_s27 = scalar_lea.vmem (%p38_p5), [#allocation2], %s4910_s23 }
  0x14   : > { %v332_v0 = vld [vmem:[%s289_s26] sm:$0xff] (%p38_p5)  ;;  %v334_v1 = vld [vmem:[%s289_s26 + $0x10] sm:$0xff] (%p38_p5) }
  0x15   : > { %v336_v2 = vld [vmem:[%s289_s26 + $0x20] sm:$0xff] (%p38_p5)  ;;  %333 = vst [vmem:[%s287_s27] sm:$0xff] (%p38_p5), %v332_v0  ;;  %v338_v3 = vld [vmem:[%s289_s26 + $0x30] sm:$0xff] (%p38_p5) }
  0x16   : > { %335 = vst [vmem:[%s287_s27 + $0x8] sm:$0xff] %v334_v1  ;;  %v340_v4 = vld [vmem:[%s289_s26 + $0x40] sm:$0xff]  ;;  %v342_v5 = vld [vmem:[%s289_s26 + $0x50] sm:$0xff] }
  0x17   : > { %337 = vst [vmem:[%s287_s27 + $0x10] sm:$0xff] %v336_v2  ;;  %v344_v6 = vld [vmem:[%s289_s26 + $0x60] sm:$0xff]  ;;  %v346_v7 = vld [vmem:[%s289_s26 + $0x70] sm:$0xff] }
  0x18   : > { %339 = vst [vmem:[%s287_s27 + $0x18] sm:$0xff] %v338_v3 }
  0x19   : > { %341 = vst [vmem:[%s287_s27 + $0x20] sm:$0xff] %v340_v4 }
  0x1a   : > { %343 = vst [vmem:[%s287_s27 + $0x28] sm:$0xff] %v342_v5 }
  0x1b   : > { %345 = vst [vmem:[%s287_s27 + $0x30] sm:$0xff] %v344_v6 }
  0x1c   : > { %347 = vst [vmem:[%s287_s27 + $0x38] sm:$0xff] %v346_v7 }
  0x1d PF: > { %p4912_p10 = scmp.ge.s32.totalorder %s6238_s12, 1  ;;  %p352_p11 = scmp.lt.s32.totalorder %s6238_s12, 3 }
  0x1f   : > { %p353_p12 = pnand %p4912_p10, %p352_p11 }
  0x21   : > { %356 = sbr.rel (%p353_p12) target bundleno = 5533 (0x159d), region = 90 }
  0x26   : > { %s6351_s28 = sand.u32 1, %s6230_s10   ;;  %v5332_v20 = vld [vmem:[%s10180_s1 + $0x8] sm:$0xff]  ;;  %vm628_vm0 = vcmask 523264   ;;  %v5335_v21 = vld [vmem:[%s10181_s2] sm:$0xff]  ;;  %v470_v22 = vld [vmem:[%s10183_s4 + $0x30] sm:$0xff]  ;;  %v6240_v23 = vmov 0  }
  0x27   : > { %s4913_s29 = sshll.u32 %s6351_s28, 6  ;;  %771 = vmatpush.bf16.msra.mxu2 %v6240_v23  ;;  %vm690_vm1 = vcmask 261120   ;;  %5407 = vset.pattern.permute.xlu0 %v6240_v23  ;;  %v5333_v24 = vld [vmem:[%s10180_s1 + $0x10] sm:$0xff]  ;;  %v5336_v25 = vld [vmem:[%s10181_s2 + $0x8] sm:$0xff]  ;;  %v5331_v26 = vld [vmem:[%s10180_s1] sm:$0xff]  ;;  %vm921_vm2 = vcmask 1043456  }
  0x28   : > { %s6354_s14 = scalar_lea.vmem [#allocation2], %s4913_s29  ;;  %504 = vperm.xlu0 %5407, %v470_v22   ;;  %5363 = vmatpush.bf16.msra.mxu3 %v6240_v23  ;;  %v471_v27 = vld [vmem:[%s10183_s4 + $0x38] sm:$0xff]  ;;  %v468_v28 = vld [vmem:[%s10183_s4 + $0x20] sm:$0xff]  ;;  %v469_v30 = vld [vmem:[%s10183_s4 + $0x28] sm:$0xff]  ;;  %vm896_vm3 = vcmask 64512   ;;  %s4914_s25 = sshll.u32 %s6351_s28, 8 }
  0x29   : > { %v401_v8 = vld [vmem:[%s6354_s14 + $0x30] sm:$0xff]  ;;  %v402_v9 = vld [vmem:[%s6354_s14 + $0x38] sm:$0xff]  ;;  %v399_v10 = vld [vmem:[%s6354_s14 + $0x20] sm:$0xff]  ;;  %5408 = vset.pattern.permute.xlu1 %v6240_v23  ;;  %5409 = vset.pattern.permute.xlu2 %v6240_v23  ;;  %s6949_s26 = scalar_lea.vmem [#allocation3], %s4914_s25  ;;  %s4825_s24 = scalar_lea.sflag [#allocation4], %s6351_s28 }
  0x2a   : > { %v406_v11 = vpack.c.bf16 %v402_v9, %v401_v8  ;;  %v400_v12 = vld [vmem:[%s6354_s14 + $0x28] sm:$0xff]  ;;  %v397_v14 = vld [vmem:[%s6354_s14 + $0x10] sm:$0xff]  ;;  %v398_v15 = vld [vmem:[%s6354_s14 + $0x18] sm:$0xff]  ;;  %4971 = vmatmul.msk.bf16.vlgmr.msra.gmra.mxu2 %vm690_vm1, %v5335_v21  ;;  %494 = vperm.xlu1 %5408, %v468_v28  }
  0x2b   : > { %v405_v13 = vpack.c.bf16 %v400_v12, %v399_v10  ;;  %v404_v16 = vpack.c.bf16 %v398_v15, %v397_v14  ;;  %v6363_v17 = vld [vmem:[%s6354_s14] sm:$0xff]  ;;  %v396_v18 = vld [vmem:[%s6354_s14 + $0x8] sm:$0xff]  ;;  %4972 = vmatmul.msk.bf16.vlgmr.msra.gmra.mxu3 %vm690_vm1, %v5336_v25  ;;  %v5334_v31 = vld [vmem:[%s10180_s1 + $0x18] sm:$0xff] }
  0x2c   : > { %5359 = vmatpush.bf16.msra.mxu1 %v406_v11  ;;  %645 = vmatpush.bf16.msra.mxu0 %v406_v11  ;;  %v403_v19 = vpack.c.bf16 %v396_v18, %v6363_v17  ;;  %v464_v29 = vld [vmem:[%s10183_s4] sm:$0xff]  ;;  %v5337_v32 = vld [vmem:[%s10181_s2 + $0x10] sm:$0xff]  ;;  %v465_v33 = vld [vmem:[%s10183_s4 + $0x8] sm:$0xff] }
  0x2d   : > { %v515_v34 = vld [vmem:[%s10187_s8 + $0x18] sm:$0xff]  ;;  %v5339_v35 = vld [vmem:[%s10182_s3] sm:$0xff]  ;;  %v518_v36 = vld [vmem:[%s10187_s8 + $0x30] sm:$0xff] }
  0x2e   : > { %v5338_v37 = vld [vmem:[%s10181_s2 + $0x18] sm:$0xff]  ;;  %v466_v38 = vld [vmem:[%s10183_s4 + $0x10] sm:$0xff]  ;;  %v512_v39 = vld [vmem:[%s10187_s8] sm:$0xff] }
  0x2f   : > { %484 = vperm.xlu2 %5409, %v466_v38   ;;  %v513_v40 = vld [vmem:[%s10187_s8 + $0x8] sm:$0xff]  ;;  %v467_v41 = vld [vmem:[%s10183_s4 + $0x18] sm:$0xff]  ;;  %v522_v44 = vld [vmem:[%s10187_s8 + $0x50] sm:$0xff] }
  0x30   : > { %5360 = vmatpush.bf16.msra.mxu1 %v405_v13  ;;  %646 = vmatpush.bf16.msra.mxu0 %v405_v13  ;;  %v517_v42 = vld [vmem:[%s10187_s8 + $0x28] sm:$0xff]  ;;  %v514_v45 = vld [vmem:[%s10187_s8 + $0x10] sm:$0xff]  ;;  %v520_v46 = vld [vmem:[%s10187_s8 + $0x40] sm:$0xff] }
  0x31   : > { %509 = vperm.xlu0 %5407, %v471_v27   ;;  %v5340_v43 = vld [vmem:[%s10182_s3 + $0x8] sm:$0xff]  ;;  %v519_v48 = vld [vmem:[%s10187_s8 + $0x38] sm:$0xff]  ;;  %v5341_v50 = vld [vmem:[%s10182_s3 + $0x10] sm:$0xff] }
  0x32   : > { %499 = vperm.xlu1 %5408, %v469_v30   ;;  %v521_v47 = vld [vmem:[%s10187_s8 + $0x48] sm:$0xff]  ;;  %v527_v49 = vld [vmem:[%s10187_s8 + $0x78] sm:$0xff]  ;;  %v524_v51 = vld [vmem:[%s10187_s8 + $0x60] sm:$0xff] }
  0x33   : > { %v516_v52 = vld [vmem:[%s10187_s8 + $0x20] sm:$0xff]  ;;  %v523_v53 = vld [vmem:[%s10187_s8 + $0x58] sm:$0xff]  ;;  %v526_v55 = vld [vmem:[%s10187_s8 + $0x70] sm:$0xff] }
  0x34   : > { %5361 = vmatpush.bf16.msra.mxu1 %v404_v16  ;;  %647 = vmatpush.bf16.msra.mxu0 %v404_v16  ;;  %v6480_v54 = vld [vmem:[%s10182_s3 + $0x18] sm:$0xff]  ;;  %v525_v56 = vld [vmem:[%s10187_s8 + $0x68] sm:$0xff] }
  0x37   : > { %489 = vperm.xlu2 %5409, %v467_v41  }
  0x38   : > { %5362 = vmatpush.bf16.msra.mxu1 %v403_v19  ;;  %648 = vmatpush.bf16.msra.mxu0 %v403_v19 }
  0x39   : > { %474 = vperm.xlu0 %5407, %v464_v29  }
  0x3a   : > { %479 = vperm.xlu1 %5408, %v465_v33  }
  0x3b   : > { %4932 = vmatmul.msk.bf16.vlgmr.msra.gmra.mxu1 %vm628_vm0, %v5332_v20  ;;  %4931 = vmatmul.msk.bf16.vlgmr.msra.gmra.mxu0 %vm628_vm0, %v5331_v26 }
  0x3c   : > { %710 = vmatpush.bf16.msrb.mxu1 %v6240_v23  ;;  %4973 = vmatmul.msk.bf16.gmra.mxu3 %vm690_vm1, %v5337_v32 }
  0x3f   : > { %540 = vperm.xlu2 %5409, %v514_v45  }
  0x40   : > { %1045 = vmatpush.bf16.msra.mxu1 %v6240_v23 }
  0x41   : > { %545 = vperm.xlu0 %5407, %v515_v34  }
  0x42   : > { %560 = vperm.xlu1 %5408, %v518_v36  }
  0x47   : > { %565 = vperm.xlu2 %5409, %v519_v48  }
  0x49   : > { %530 = vperm.xlu0 %5407, %v512_v39  }
  0x4a   : > { %535 = vperm.xlu1 %5408, %v513_v40  }
  0x4b   : > { %4933 = vmatmul.msk.bf16.gmra.mxu1 %vm628_vm0, %v5333_v24 }
  0x4c   : > { %4974 = vmatmul.msk.bf16.gmra.mxu3 %vm690_vm1, %v5338_v37 }
  0x4f   : > { %550 = vperm.xlu2 %5409, %v516_v52  }
  0x51   : > { %555 = vperm.xlu0 %5407, %v517_v42  }
  0x52   : > { %580 = vperm.xlu1 %5408, %v522_v44  }
  0x57   : > { %585 = vperm.xlu2 %5409, %v523_v53  }
  0x59   : > { %570 = vperm.xlu0 %5407, %v520_v46  }
  0x5a   : > { %575 = vperm.xlu1 %5408, %v521_v47  }
  0x5b   : > { %4934 = vmatmul.msk.bf16.gmra.mxu1 %vm628_vm0, %v5334_v31 }
  0x5f   : > { %600 = vperm.xlu2 %5409, %v526_v55  }
  0x61   : > { %605 = vperm.xlu0 %5407, %v527_v49  }
  0x62   : > { %590 = vperm.xlu1 %5408, %v524_v51  }
  0x67   : > { %595 = vperm.xlu2 %5409, %v525_v56  }
  0x6b   : > { %4951 = vmatmul.msk.bf16.vlgmr.msrb.gmra.mxu1 %vm690_vm1, %v5339_v35 }
  0x7b   : > { %4952 = vmatmul.msk.bf16.gmra.mxu1 %vm690_vm1, %v5340_v43 }
  0x89   : > { %v6506_v14 = vpop.permute.xlu2 %484 }
  0x8a   : > { %10315 = vst [vmem:[#allocation12_spill] sm:$0xff] %v6506_v14 }
  0x8b   : > { %4953 = vmatmul.msk.bf16.gmra.mxu1 %vm690_vm1, %v5341_v50 }
  0x91   : > { %v6519_v33 = vpop.permute.xlu2 %489 }
  0x92   : > { %10318 = vst [vmem:[#allocation15_spill] sm:$0xff] %v6519_v33 }
  0x9a   : > { %v6504_v10 = vpop.permute.xlu0 %504 }
  0x9b   : > { %4954 = vmatmul.msk.bf16.gmra.mxu1 %vm690_vm1, %v6480_v54 }
  0x9c   : > { %v6502_v9 = vpop.permute.xlu1 %494 }
  0x9d   : > { %10314 = vst [vmem:[#allocation11_spill] sm:$0xff] %v6502_v9 }
  0xa3   : > { %v6510_v19 = vpop.permute.xlu0 %509 }
  0xa4   : > { %v6508_v16 = vpop.permute.xlu1 %499  ;;  %10316 = vst [vmem:[#allocation13_spill] sm:$0xff] %v6510_v19 }
  0xab   : > { %v6528_v42 = vpop.permute.xlu0 %474 }
  0xac   : > { %v6524_v38 = vpop.permute.xlu1 %479  ;;  %10320 = vst [vmem:[#allocation17_spill] sm:$0xff] %v6528_v42 }
  0xad   : > { %v773_v12 = vpop.f32.mrf.mxu2  ;;  %10319 = vst [vmem:[#allocation16_spill] sm:$0xff] %v6524_v38 }
  0xae   : > { %v778_v0 = vpop.f32.mrf.mxu3 }
  0xb5   : > { %v775_v28 = vpop.f32.mrf.mxu2 }
  0xb6   : > { %v780_v3 = vpop.f32.mrf.mxu3 }
  0xb8   : > { %v6490_v57 = vpop.f32.mrf.mxu1  ;;  %v6513_v21 = vpop.f32.mrf.mxu0 }
  0xb9   : > { %10309 = vst [vmem:[#allocation6_spill] sm:$0xff] %v6490_v57 }
  0xba   : > { %10317 = vst [vmem:[#allocation14_spill] sm:$0xff] %v6513_v21 }
  0xbf   : > { %v783_v5 = vpop.f32.mrf.mxu3 }
  0xc0   : > { %v6492_v58 = vpop.f32.mrf.mxu1  ;;  %v6532_v45 = vpop.f32.mrf.mxu0 }
  0xc1   : > { %10310 = vst [vmem:[#allocation7_spill] sm:$0xff] %v6492_v58 }
  0xc2   : > { %10321 = vst [vmem:[#allocation18_spill] sm:$0xff] %v6532_v45 }
  0xc7   : > { %v785_v7 = vpop.f32.mrf.mxu3 }
  0xc8   : > { %v6494_v59 = vpop.f32.mrf.mxu1 }
  0xc9   : > { %10311 = vst [vmem:[#allocation8_spill] sm:$0xff] %v6494_v59 }
  0xcf   : > { %v788_v11 = vpop.f32.mrf.mxu3 }
  0xd0   : > { %v6496_v60 = vpop.f32.mrf.mxu1 }
  0xd1   : > { %10312 = vst [vmem:[#allocation9_spill] sm:$0xff] %v6496_v60 }
  0xd7   : > { %v790_v23 = vpop.f32.mrf.mxu3 }
  0xd8   : > { %v6498_v61 = vpop.f32.mrf.mxu1 }
  0xe0   : > { %v6500_v62 = vpop.f32.mrf.mxu1 }
  0xe1   : > { %10313 = vst [vmem:[#allocation10_spill] sm:$0xff] %v6500_v62 }
  0xe8   : > { %v712_v63 = vpop.f32.mrf.mxu1 }
  0xe9   : > { %v774_v39 = vadd.f32 %v773_v12, %v712_v63 }
  0xeb   : > { %v793_v47 = vadd.f32 %v774_v39, %v6528_v42 }
  0xed   : > { %v801_v53 = vadd.f32 %v793_v47, %v6513_v21  ;;  %v6611_v47 = vld [vmem:[%s10186_s7 + $0x18] sm:$0xff] }
  0xee   : > { %10328 = vst [vmem:[#allocation25_spill] sm:$0xff] %v6611_v47 }
  0xf0   : > { %v714_v1 = vpop.f32.mrf.mxu1 }
  0xf1   : > { %v776_v34 = vadd.f32 %v775_v28, %v714_v1 }
  0xf3   : > { %v794_v44 = vadd.f32 %v776_v34, %v6524_v38 }
  0xf5   : > { %v802_v50 = vadd.f32 %v794_v44, %v6532_v45  ;;  %v6597_v44 = vld [vmem:[%s10186_s7 + $0x10] sm:$0xff] }
  0xf6   : > { %10326 = vst [vmem:[#allocation23_spill] sm:$0xff] %v6597_v44 }
  0xf8   : > { %v717_v2 = vpop.f32.mrf.mxu1 }
  0xf9   : > { %v779_v30 = vadd.f32 %v778_v0, %v717_v2 }
  0xfb   : > { %v795_v40 = vadd.f32 %v779_v30, %v6506_v14 }
  0xfd   : > { %v803_v46 = vadd.f32 %v795_v40, %v6490_v57  ;;  %v6569_v40 = vld [vmem:[%s10186_s7] sm:$0xff] }
  0xfe   : > { %10322 = vst [vmem:[#allocation19_spill] sm:$0xff] %v6569_v40 }
 0x100   : > { %v719_v4 = vpop.f32.mrf.mxu1 }
 0x101   : > { %v781_v25 = vadd.f32 %v780_v3, %v719_v4 }
 0x103   : > { %v796_v35 = vadd.f32 %v781_v25, %v6519_v33 }
 0x105   : > { %v804_v43 = vadd.f32 %v796_v35, %v6492_v58 }
 0x108   : > { %v722_v6 = vpop.f32.mrf.mxu1 }
 0x109   : > { %v784_v22 = vadd.f32 %v783_v5, %v722_v6  ;;  %v6541_v5 = vld [vmem:[%s10184_s5] sm:$0xf] }
 0x10b   : > { %v797_v31 = vadd.f32 %v784_v22, %v6502_v9 }
 0x10d   : > { %v805_v41 = vadd.f32 %v797_v31, %v6494_v59 }
 0x110   : > { %v724_v8 = vpop.f32.mrf.mxu1 }
 0x111   : > { %v786_v18 = vadd.f32 %v785_v7, %v724_v8 }
 0x113   : > { %v798_v26 = vadd.f32 %v786_v18, %v6508_v16 }
 0x115   : > { %v806_v36 = vadd.f32 %v798_v26, %v6496_v60 }
 0x118   : > { %v727_v13 = vpop.f32.mrf.mxu1 }
 0x119   : > { %v789_v15 = vadd.f32 %v788_v11, %v727_v13 }
 0x11b   : > { %v799_v20 = vadd.f32 %v789_v15, %v6504_v10 }
 0x11d   : > { %v807_v29 = vadd.f32 %v799_v20, %v6498_v61 }
 0x11f   : > { %5410 = vtanh.f32 %v807_v29  ;;  %v6555_v29 = vld [vmem:[%s10185_s6 + $0x8] sm:$0xff] }
 0x120   : > { %v729_v24 = vpop.f32.mrf.mxu1 }
 0x121   : > { %v791_v27 = vadd.f32 %v790_v23, %v729_v24  ;;  %v6548_v23 = vld [vmem:[%s10185_s6] sm:$0xff] }
 0x122   : > { %5048 = vmatmul.msk.bf16.vlgmr.msra.gmra.mxu1 %vm690_vm1, %v6548_v23 }
 0x123   : > { %v800_v32 = vadd.f32 %v791_v27, %v6510_v19 }
 0x125   : > { %v808_v37 = vadd.f32 %v800_v32, %v6500_v62  ;;  %v5411_v48 = vpop.eup %5410 }
 0x127   : > { %5412 = vtanh.f32 %v808_v37  ;;  %v6563_v37 = vld [vmem:[%s10185_s6 + $0x10] sm:$0xff] }
 0x128   : > { %5414 = vtanh.f32 %v806_v36 }
 0x129   : > { %5416 = vtanh.f32 %v805_v41  ;;  %v6583_v41 = vld [vmem:[%s10186_s7 + $0x8] sm:$0xff] }
 0x12a   : > { %5418 = vtanh.f32 %v804_v43  ;;  %10324 = vst [vmem:[#allocation21_spill] sm:$0xff] %v6583_v41  ;;  %v6592_v43 = vld [vmem:[%s10185_s6 + $0x20] sm:$0xff] }
 0x12b   : > { %5420 = vtanh.f32 %v803_v46  ;;  %10325 = vst [vmem:[#allocation22_spill] sm:$0xff] %v6592_v43  ;;  %v6606_v46 = vld [vmem:[%s10185_s6 + $0x28] sm:$0xff] }
 0x12c   : > { %5422 = vtanh.f32 %v802_v50  ;;  %10327 = vst [vmem:[#allocation24_spill] sm:$0xff] %v6606_v46  ;;  %v6634_v50 = vld [vmem:[%s10185_s6 + $0x38] sm:$0xff] }
 0x12d   : > { %v5413_v49 = vpop.eup %5412  ;;  %5424 = vtanh.f32 %v801_v53  ;;  %10331 = vst [vmem:[#allocation28_spill] sm:$0xff] %v6634_v50 }
 0x12e   : > { %v820_v51 = vpack.c.bf16 %v5413_v49, %v5411_v48  ;;  %v5415_v52 = vpop.eup %5414  ;;  %v6620_v48 = vld [vmem:[%s10185_s6 + $0x30] sm:$0xff]  ;;  %v6625_v49 = vld [vmem:[%s10186_s7 + $0x20] sm:$0xff] }
 0x12f   : > { %v5417_v55 = vpop.eup %5416  ;;  %10329 = vst [vmem:[#allocation26_spill] sm:$0xff] %v6620_v48 }
 0x130   : > { %828 = vmatpush.bf16.msrb.mxu3 %v820_v51  ;;  %v819_v56 = vpack.c.bf16 %v5415_v52, %v5417_v55  ;;  %v5419_v63 = vpop.eup %5418  ;;  %10330 = vst [vmem:[#allocation27_spill] sm:$0xff] %v6625_v49  ;;  %v6639_v51 = vld [vmem:[%s10186_s7 + $0x28] sm:$0xff]  ;;  %v6648_v52 = vld [vmem:[%s10186_s7 + $0x30] sm:$0xff]  ;;  %v6655_v55 = vld [vmem:[%s10186_s7 + $0x38] sm:$0xff] }
 0x131   : > { %v5421_v0 = vpop.eup %5420  ;;  %10332 = vst [vmem:[#allocation29_spill] sm:$0xff] %v6639_v51 }
 0x132   : > { %v818_v1 = vpack.c.bf16 %v5419_v63, %v5421_v0  ;;  %v5423_v2 = vpop.eup %5422  ;;  %5049 = vmatmul.msk.bf16.gmra.mxu1 %vm690_vm1, %v6555_v29  ;;  %10333 = vst [vmem:[#allocation30_spill] sm:$0xff] %v6648_v52 }
 0x133   : > { %v5425_v3 = vpop.eup %5424  ;;  %10334 = vst [vmem:[#allocation31_spill] sm:$0xff] %v6655_v55 }
 0x134   : > { %829 = vmatpush.bf16.msrb.mxu3 %v819_v56  ;;  %v817_v4 = vpack.c.bf16 %v5423_v2, %v5425_v3 }
 0x138   : > { %830 = vmatpush.bf16.msrb.mxu3 %v818_v1 }
 0x13c   : > { %831 = vmatpush.bf16.msrb.mxu3 %v817_v4 }
 0x13f   : > { %4975 = vmatmul.msk.bf16.vlgmr.msrb.gmra.mxu3 %vm628_vm0, %v6541_v5 }
 0x142   : > { %5050 = vmatmul.msk.bf16.gmra.mxu1 %vm690_vm1, %v6563_v37 }
 0x19f   : > { %v1047_v53 = vpop.f32.mrf.mxu1 }
 0x1a7   : > { %v1049_v56 = vpop.f32.mrf.mxu1 }
 0x1af   : > { %v1052_v63 = vpop.f32.mrf.mxu1 }
 0x1b7   : > { %v1054_v1 = vpop.f32.mrf.mxu1 }
 0x1bf   : > { %v1057_v4 = vpop.f32.mrf.mxu1 }
 0x1c2   : > { %v833_v6 = vpop.f32.mrf.mxu3 }
 0x1c3   : > { %v837_v7 = vrot.slane %v833_v6, 4 }
 0x1c5   : > { %v838_v8 = vmax.f32 %v833_v6, %v837_v7 }
 0x1c7   : > { %v839_v11 = vrot.slane %v838_v8, 2 }
 0x1c9   : > { %v840_v12 = vmax.f32 %v838_v8, %v839_v11  ;;  %v1059_v8 = vpop.f32.mrf.mxu1 }
 0x1ca   : > { %v835_v13 = vpop.f32.mrf.mxu3 }
 0x1cb   : > { %v841_v15 = vrot.slane %v840_v12, 1 }
 0x1cd   : > { %v842_v18 = vmax.f32 %v840_v12, %v841_v15  ;;  %v6659_v15 = vpop.permute.xlu2 %540 }
 0x1ce   : > { %10335 = vst [vmem:[#allocation32_spill] sm:$0xff] %v6659_v15 }
 0x1cf   : > { %v843_v20 = vsub.f32 %v833_v6, %v842_v18  ;;  %v6661_v18 = vpop.permute.xlu0 %545 }
 0x1d0   : > { %10336 = vst [vmem:[#allocation33_spill] sm:$0xff] %v6661_v18 }
 0x1d1   : > { %v844_v22 = vmul.f32 1.442695, %v843_v20 }
 0x1d3   : > { %5426 = vpow2.f32 %v844_v22 }
 0x1d9   : > { %v5427_v24 = vpop.eup %5426 }
 0x1da   : > { %v846_v25 = vrot.slane %v5427_v24, 4 }
 0x1dc   : > { %v847_v26 = vadd.f32 %v5427_v24, %v846_v25  ;;  %v6665_v25 = vpop.permute.xlu2 %565 }
 0x1dd   : > { %10338 = vst [vmem:[#allocation35_spill] sm:$0xff] %v6665_v25 }
 0x1de   : > { %v848_v27 = vrot.slane %v847_v26, 2 }
 0x1e0   : > { %v849_v28 = vadd.f32 %v848_v27, %v847_v26  ;;  %v6667_v26 = vpop.permute.xlu0 %530 }
 0x1e1   : > { %10339 = vst [vmem:[#allocation36_spill] sm:$0xff] %v6667_v26 }
 0x1e2   : > { %v850_v30 = vrot.slane %v849_v28, 1 }
 0x1e4   : > { %v851_v31 = vadd.f32 %v850_v30, %v849_v28 }
 0x1e6   : > { %5428 = vrcp.f32 %v851_v31 }
 0x1ec   : > { %v5429_v32 = vpop.eup %5428 }
 0x1ed   : > { %v853_v34 = vmul.f32 %v5429_v32, %v5427_v24  ;;  %v6663_v24 = vpop.permute.xlu1 %560 }
 0x1ee   : > { %10337 = vst [vmem:[#allocation34_spill] sm:$0xff] %v6663_v24 }
 0x1ef   : > { %v854_v35 = vmul.f32 %v853_v34, %v6363_v17  ;;  %v6578_v17 = vld [vmem:[%s10185_s6 + $0x18] sm:$0xff] }
 0x1f0   : > { %10323 = vst [vmem:[#allocation20_spill] sm:$0xff] %v6578_v17  ;;  %5051 = vmatmul.msk.bf16.gmra.mxu1 %vm690_vm1, %v6578_v17 }
 0x1f1   : > { %v855_v36 = vpack.c.bf16 %v854_v35, %v854_v35 }
 0x1f3   : > { %v923_v39 = vsel %vm921_vm2, %v855_v36, 0  ;;  %v6672_v36 = vpop.permute.xlu2 %550 }
 0x1f4   : > { %932 = vmatpush.bf16.msra.mxu3 %v923_v39  ;;  %10341 = vst [vmem:[#allocation38_spill] sm:$0xff] %v6672_v36 }
 0x1f5   : > { %v6670_v34 = vpop.permute.xlu1 %535 }
 0x1f6   : > { %10340 = vst [vmem:[#allocation37_spill] sm:$0xff] %v6670_v34 }
 0x1f7   : > { %5008 = vmatmul.msk.bf16.vlgmr.msra.gmra.mxu3 %vm896_vm3, %v6569_v40 }
 0x200   : > { %5052 = vmatmul.msk.bf16.gmra.mxu1 %vm690_vm1, %v6592_v43 }
 0x207   : > { %5009 = vmatmul.msk.bf16.gmra.mxu3 %vm896_vm3, %v6583_v41 }
 0x210   : > { %5053 = vmatmul.msk.bf16.gmra.mxu1 %vm690_vm1, %v6606_v46 }
 0x217   : > { %5010 = vmatmul.msk.bf16.gmra.mxu3 %vm896_vm3, %v6597_v44 }
 0x220   : > { %5054 = vmatmul.msk.bf16.gmra.mxu1 %vm690_vm1, %v6620_v48 }
 0x227   : > { %5011 = vmatmul.msk.bf16.gmra.mxu3 %vm896_vm3, %v6611_v47 }
 0x230   : > { %5055 = vmatmul.msk.bf16.gmra.mxu1 %vm690_vm1, %v6634_v50 }
 0x237   : > { %5012 = vmatmul.msk.bf16.gmra.mxu3 %vm896_vm3, %v6625_v49 }
 0x247   : > { %5013 = vmatmul.msk.bf16.gmra.mxu3 %vm896_vm3, %v6639_v51 }
 0x257   : > { %5014 = vmatmul.msk.bf16.gmra.mxu3 %vm896_vm3, %v6648_v52 }
 0x267   : > { %5015 = vmatmul.msk.bf16.gmra.mxu3 %vm896_vm3, %v6655_v55 }
 0x26d   : > { %v1062_v12 = vpop.f32.mrf.mxu1 }
 0x275   : > { %v1064_v22 = vpop.f32.mrf.mxu1 }
 0x27a   : > { %v934_v0 = vpop.f32.mrf.mxu3 }
 0x27b   : > { %v1048_v2 = vadd.f32 %v1047_v53, %v934_v0  ;;  %v6676_v0 = vpop.permute.xlu0 %555 }
 0x27c   : > { %10342 = vst [vmem:[#allocation39_spill] sm:$0xff] %v6676_v0 }
 0x27d   : > { %v1087_v28 = vadd.f32 %v1048_v2, %v6667_v26  ;;  %v1067_v31 = vpop.f32.mrf.mxu1 }
 0x27f   : > { %v5056_v35 = vmul.f32 -1.442695, %v1087_v28 }
 0x281   : > { %5430 = vpow2.f32 %v5056_v35 }
 0x282   : > { %v936_v3 = vpop.f32.mrf.mxu3 }
 0x283   : > { %v1050_v30 = vadd.f32 %v1049_v56, %v936_v3 }
 0x285   : > { %v1088_v39 = vadd.f32 %v1050_v30, %v6670_v34  ;;  %v1069_v2 = vpop.f32.mrf.mxu1  ;;  %v6680_v34 = vpop.permute.xlu1 %580 }
 0x286   : > { %10343 = vst [vmem:[#allocation40_spill] sm:$0xff] %v6680_v34 }
 0x287   : > { %v5431_v3 = vpop.eup %5430 }
 0x28a   : > { %v939_v6 = vpop.f32.mrf.mxu3 }
 0x28b   : > { %v1053_v7 = vadd.f32 %v1052_v63, %v939_v6  ;;  %v5057_v6 = vmul.f32 -1.442695, %v1088_v39 }
 0x28d   : > { %v1089_v56 = vadd.f32 %v1053_v7, %v6659_v15  ;;  %5432 = vpow2.f32 %v5057_v6 }
 0x292   : > { %v941_v11 = vpop.f32.mrf.mxu3 }
 0x293   : > { %v1055_v35 = vadd.f32 %v1054_v1, %v941_v11 }
 0x29a   : > { %v944_v13 = vpop.f32.mrf.mxu3 }
 0x29b   : > { %v1058_v32 = vadd.f32 %v1057_v4, %v944_v13  ;;  %v5058_v13 = vmul.f32 -1.442695, %v1089_v56 }
 0x29d   : > { %v1091_v53 = vadd.f32 %v1058_v32, %v6672_v36  ;;  %v6682_v32 = vadd.f32 1.0, %v5431_v3 }
 0x29f   : > { %v5060_v55 = vmul.f32 -1.442695, %v1091_v53  ;;  %v5433_v53 = vpop.eup %5432  ;;  %vm1156_vm5 = vweird.f32 %v6682_v32 }
 0x2a1   : > { %5434 = vpow2.f32 %v5060_v55  ;;  %v1072_v55 = vpop.f32.mrf.mxu1 }
 0x2a2   : > { %v946_v20 = vpop.f32.mrf.mxu3  ;;  %5436 = vpow2.f32 %v5058_v13 }
 0x2a3   : > { %v1060_v52 = vadd.f32 %v1059_v8, %v946_v20  ;;  %v6684_v8 = vpop.permute.xlu0 %570  ;;  %5438 = vrcp.f32 %v6682_v32 }
 0x2a4   : > { %10344 = vst [vmem:[#allocation41_spill] sm:$0xff] %v6684_v8 }
 0x2a5   : > { %v1092_v4 = vadd.f32 %v1060_v52, %v6676_v0  ;;  %v1090_v52 = vadd.f32 %v1055_v35, %v6661_v18 }
 0x2a7   : > { %v5061_v36 = vmul.f32 -1.442695, %v1092_v4  ;;  %v5435_v7 = vpop.eup %5434  ;;  %v5059_v3 = vmul.f32 -1.442695, %v1090_v52 }
 0x2a8   : > { %v6692_v1 = vadd.f32 1.0, %v5435_v7  ;;  %v5437_v56 = vpop.eup %5436 }
 0x2a9   : > { %5440 = vpow2.f32 %v5061_v36  ;;  %v6700_v35 = vadd.f32 1.0, %v5437_v56  ;;  %v1074_v7 = vpop.f32.mrf.mxu1 }
 0x2aa   : > { %v949_v27 = vpop.f32.mrf.mxu3  ;;  %vm1216_vm13 = vweird.f32 %v6692_v1 }
 0x2ab   : > { %v1063_v39 = vadd.f32 %v1062_v12, %v949_v27  ;;  %vm1186_vm10 = vweird.f32 %v6700_v35 }
 0x2ad   : > { %v1093_v6 = vadd.f32 %v1063_v39, %v6663_v24 }
 0x2af   : > { %v5062_v13 = vmul.f32 -1.442695, %v1093_v6 }
 0x2b2   : > { %v951_v63 = vpop.f32.mrf.mxu3 }
 0x2b3   : > { %v1065_v4 = vadd.f32 %v1064_v22, %v951_v63 }
 0x2ba   : > { %v954_v28 = vpop.f32.mrf.mxu3 }
 0x2bb   : > { %v1068_v30 = vadd.f32 %v1067_v31, %v954_v28  ;;  %v6689_v31 = vadd.f32 1.0, %v5433_v53  ;;  %v6695_v28 = vpop.eup %5438 }
 0x2bc   : > { %v5441_v36 = vpop.eup %5440  ;;  %v1152_v22 = vmul.f32 %v6695_v28, %v6682_v32  ;;  %vm1157_vm4 = vweird.f32 %v6695_v28 }
 0x2bd   : > { %v1095_v20 = vadd.f32 %v1068_v30, %v6684_v8  ;;  %5442 = vrcp.f32 %v6689_v31  ;;  %v6697_v30 = vpop.permute.xlu1 %575  ;;  %v6706_v63 = vadd.f32 1.0, %v5441_v36  ;;  %vm6754_vm6 = vmor %vm1156_vm5, %vm1157_vm4  ;;  %vm1171_vm8 = vweird.f32 %v6689_v31 }
 0x2be   : > { %10345 = vst [vmem:[#allocation42_spill] sm:$0xff] %v6697_v30  ;;  %5444 = vrcp.f32 %v6692_v1 }
 0x2bf   : > { %v5064_v12 = vmul.f32 -1.442695, %v1095_v20  ;;  %v1235_v43 = vand.u32 2147483647, %v6706_v63 }
 0x2c1   : > { %5446 = vpow2.f32 %v5064_v12 }
 0x2c2   : > { %v956_v11 = vpop.f32.mrf.mxu3  ;;  %5448 = vpow2.f32 %v5059_v3  ;;  %v1153_v3 = vsub.f32 1.0, %v1152_v22 }
 0x2c3   : > { %v1070_v27 = vadd.f32 %v1069_v2, %v956_v11  ;;  %v1094_v2 = vadd.f32 %v1065_v4, %v6665_v25  ;;  %5450 = vpow2.f32 %v5062_v13  ;;  %v6708_v20 = vpop.eup %5442  ;;  %v6717_v25 = vpop.permute.xlu2 %585 }
 0x2c4   : > { %5452 = vrcp.f32 %v6700_v35  ;;  %v6711_v11 = vpop.eup %5444  ;;  %v1167_v13 = vmul.f32 %v6708_v20, %v6689_v31  ;;  %10346 = vst [vmem:[#allocation43_spill] sm:$0xff] %v6717_v25  ;;  %v1154_v24 = vmul.f32 %v6695_v28, %v1153_v3  ;;  %v1162_v3 = vand.u32 2147483648, %v6682_v32 }
 0x2c5   : > { %v1096_v39 = vadd.f32 %v1070_v27, %v6697_v30  ;;  %v5063_v12 = vmul.f32 -1.442695, %v1094_v2  ;;  %5454 = vrcp.f32 %v6706_v63  ;;  %vm1172_vm9 = vweird.f32 %v6708_v20 }
 0x2c6   : > { %vm1217_vm11 = vweird.f32 %v6711_v11  ;;  %vm6818_vm15 = vmor %vm1171_vm8, %vm1172_vm9 }
 0x2c7   : > { %v5065_v52 = vmul.f32 -1.442695, %v1096_v39  ;;  %v5447_v27 = vpop.eup %5446  ;;  %vm6803_vm14 = vmor %vm1216_vm13, %vm1217_vm11  ;;  %vm6877_vm11 = vcmp.eq.f32.partialorder %v1235_v43, 8.507059e+37 }
 0x2c8   : > { %v5449_v56 = vpop.eup %5448  ;;  %v6721_v39 = vadd.f32 1.0, %v5447_v27  ;;  %v1077_v27 = vpop.f32.mrf.mxu1 }
 0x2c9   : > { %v5451_v4 = vpop.eup %5450  ;;  %5456 = vpow2.f32 %v5065_v52  ;;  %v6725_v22 = vadd.f32 1.0, %v5449_v56  ;;  %v1168_v52 = vsub.f32 1.0, %v1167_v13  ;;  %v1160_v56 = vand.u32 2147483647, %v6682_v32 }
 0x2ca   : > { %v959_v53 = vpop.f32.mrf.mxu3  ;;  %5458 = vpow2.f32 %v5063_v12  ;;  %v6723_v2 = vpop.eup %5452  ;;  %v1177_v13 = vand.u32 2147483648, %v6689_v31 }
 0x2cb   : > { %v1073_v6 = vadd.f32 %v1072_v55, %v959_v53  ;;  %v1212_v55 = vmul.f32 %v6711_v11, %v6692_v1  ;;  %v6727_v53 = vadd.f32 1.0, %v5451_v4  ;;  %v1182_v8 = vmul.f32 %v6723_v2, %v6700_v35  ;;  %v6765_v32 = vpop.permute.xlu2 %600 }
 0x2cc   : > { %5460 = vrcp.f32 %v6721_v39  ;;  %vm6758_vm7 = vcmp.eq.f32.partialorder %v1160_v56, 8.507059e+37  ;;  %vm1187_vm4 = vweird.f32 %v6723_v2 }
 0x2cd   : > { %v1097_v36 = vadd.f32 %v1073_v6, %v6680_v34  ;;  %v6730_v34 = vpop.eup %5454  ;;  %v1213_v12 = vsub.f32 1.0, %v1212_v55  ;;  %5462 = vrcp.f32 %v6725_v22  ;;  %v1169_v55 = vmul.f32 %v6708_v20, %v1168_v52  ;;  %vm6848_vm8 = vmor %vm1186_vm10, %vm1187_vm4 }
 0x2ce   : > { %5464 = vrcp.f32 %v6727_v53  ;;  %v1183_v15 = vsub.f32 1.0, %v1182_v8  ;;  %vm1246_vm13 = vweird.f32 %v6727_v53 }
 0x2cf   : > { %v5066_v18 = vmul.f32 -1.442695, %v1097_v36  ;;  %v5457_v0 = vpop.eup %5456  ;;  %v1227_v36 = vmul.f32 %v6730_v34, %v6706_v63  ;;  %v1214_v51 = vmul.f32 %v6711_v11, %v1213_v12 }
 0x2d0   : > { %v5459_v4 = vpop.eup %5458  ;;  %v6746_v26 = vadd.f32 1.0, %v5457_v0  ;;  %v1175_v0 = vand.u32 2147483647, %v6689_v31 }
 0x2d1   : > { %5466 = vpow2.f32 %v5066_v18  ;;  %v6750_v49 = vadd.f32 1.0, %v5459_v4  ;;  %v1163_v18 = vor.u32 1.1754944e-38, %v1162_v3  ;;  %v1170_v3 = vadd.f32 %v6708_v20, %v1169_v55 }
 0x2d2   : > { %v961_v30 = vpop.f32.mrf.mxu3  ;;  %v6763_v8 = vpop.eup %5460  ;;  %v1228_v44 = vsub.f32 1.0, %v1227_v36  ;;  %5468 = vrcp.f32 %v6746_v26  ;;  %vm6788_vm12 = vcmp.eq.f32.partialorder %v1175_v0, 8.507059e+37  ;;  %v1222_v55 = vand.u32 2147483648, %v6692_v1 }
 0x2d3   : > { %v1075_v6 = vadd.f32 %v1074_v7, %v961_v30  ;;  %v1155_v7 = vadd.f32 %v6695_v28, %v1154_v24  ;;  %v6773_v56 = vpop.eup %5462  ;;  %5470 = vrcp.f32 %v6750_v49  ;;  %v1192_v0 = vand.u32 2147483648, %v6700_v35 }
 0x2d4   : > { %v6777_v41 = vpop.eup %5464  ;;  %v1197_v24 = vmul.f32 %v6773_v56, %v6725_v22  ;;  %v1229_v40 = vmul.f32 %v6730_v34, %v1228_v44 }
 0x2d5   : > { %v1098_v30 = vadd.f32 %v1075_v6, %v6717_v25  ;;  %v1159_v4 = vsel %vm6754_vm6, %v6695_v28, %v1155_v7  ;;  %v6771_v25 = vor.u32 1.1754944e-38, %v1177_v13  ;;  %v1184_v28 = vmul.f32 %v6723_v2, %v1183_v15 }
 0x2d6   : > { %v1215_v7 = vadd.f32 %v6711_v11, %v1214_v51  ;;  %v1272_v15 = vmul.f32 %v6763_v8, %v6721_v39  ;;  %v1079_v51 = vpop.f32.mrf.mxu1  ;;  %v1223_v6 = vor.u32 1.1754944e-38, %v1222_v55  ;;  %v1198_v48 = vsub.f32 1.0, %v1197_v24 }
 0x2d7   : > { %v5067_v52 = vmul.f32 -1.442695, %v1098_v30  ;;  %v6779_v30 = vpop.permute.xlu1 %590  ;;  %v6832_v46 = vadd.f32 %v6723_v2, %v1184_v28  ;;  %v1230_v17 = vadd.f32 %v6730_v34, %v1229_v40  ;;  %vm1232_vm6 = vweird.f32 %v6730_v34 }
 0x2d8   : > { %10351 = vst [vmem:[#allocation44_spill] sm:$0xff] %v6779_v30  ;;  %v1219_v44 = vsel %vm6803_vm14, %v6711_v11, %v1215_v7  ;;  %vm1276_vm14 = vweird.f32 %v6721_v39 }
 0x2d9   : > { %5472 = vpow2.f32 %v5067_v52  ;;  %v1242_v52 = vmul.f32 %v6777_v41, %v6727_v53 }
 0x2da   : > { %v964_v12 = vpop.f32.mrf.mxu3 }
 0x2db   : > { %v1078_v47 = vadd.f32 %v1077_v27, %v964_v12  ;;  %v5467_v27 = vpop.eup %5466  ;;  %v1220_v12 = vand.u32 2147483647, %v6692_v1  ;;  %v1164_v1 = vsel %vm6758_vm7, %v1163_v18, %v1159_v4  ;;  %v1273_v18 = vsub.f32 1.0, %v1272_v15 }
 0x2dc   : > { %v6810_v50 = vadd.f32 1.0, %v5467_v27  ;;  %v1174_v27 = vsel %vm6818_vm15, %v6708_v20, %v1170_v3  ;;  %v6829_v4 = vpop.eup %5468  ;;  %v6839_v3 = vpop.permute.xlu2 %595  ;;  %v1243_v55 = vsub.f32 1.0, %v1242_v52  ;;  %v1193_v15 = vor.u32 1.1754944e-38, %v1192_v0 }
 0x2dd   : > { %v1099_v13 = vadd.f32 %v1078_v47, %v6779_v30  ;;  %v1190_v47 = vand.u32 2147483647, %v6700_v35  ;;  %vm1221_vm5 = vcmp.eq.f32.partialorder %v1220_v12, 8.507059e+37  ;;  %v6835_v30 = vpop.eup %5470  ;;  %vm1231_vm7 = vweird.f32 %v6706_v63 }
 0x2de   : > { %v1224_v7 = vsel %vm1221_vm5, %v1223_v6, %v1219_v44  ;;  %v1274_v12 = vmul.f32 %v6763_v8, %v1273_v18  ;;  %v1287_v0 = vmul.f32 %v6829_v4, %v6746_v26  ;;  %v1189_v52 = vsel %vm6848_vm8, %v6723_v2, %v6832_v46  ;;  %vm6869_vm10 = vmor %vm1231_vm7, %vm1232_vm6 }
 0x2df   : > { %5474 = vtanh.f32 %v1099_v13  ;;  %v5473_v20 = vpop.eup %5472  ;;  %vm6860_vm9 = vcmp.eq.f32.partialorder %v1190_v47, 8.507059e+37  ;;  %v1179_v35 = vsel %vm6788_vm12, %v6771_v25, %v1174_v27  ;;  %v1335_v44 = vmul.f32 0.0, %v1224_v7  ;;  %v1082_v47 = vpop.f32.mrf.mxu1 }
 0x2e0   : > { %5476 = vrcp.f32 %v6810_v50  ;;  %v1199_v18 = vmul.f32 %v6773_v56, %v1198_v48  ;;  %v1234_v46 = vsel %vm6869_vm10, %v6730_v34, %v1230_v17  ;;  %v1257_v25 = vmul.f32 %v6835_v30, %v6750_v49 }
 0x2e1   : > { %v6883_v36 = vadd.f32 1.0, %v5473_v20  ;;  %v1244_v27 = vmul.f32 %v6777_v41, %v1243_v55  ;;  %v1275_v48 = vadd.f32 %v6763_v8, %v1274_v12  ;;  %vm1277_vm12 = vweird.f32 %v6763_v8 }
 0x2e2   : > { %v966_v31 = vpop.f32.mrf.mxu3  ;;  %v1288_v17 = vsub.f32 1.0, %v1287_v0  ;;  %v1282_v7 = vand.u32 2147483648, %v6721_v39  ;;  %vm1247_vm15 = vweird.f32 %v6777_v41  ;;  %v1258_v40 = vsub.f32 1.0, %v1257_v25  ;;  %vm6905_vm4 = vmor %vm1276_vm14, %vm1277_vm12 }
 0x2e3   : > { %v1080_v11 = vadd.f32 %v1079_v51, %v966_v31  ;;  %v1237_v51 = vand.u32 2147483648, %v6706_v63  ;;  %v1279_v63 = vsel %vm6905_vm4, %v6763_v8, %v1275_v48  ;;  %vm1202_vm5 = vweird.f32 %v6773_v56  ;;  %vm6925_vm6 = vmor %vm1246_vm13, %vm1247_vm15 }
 0x2e4   : > { %v1283_v25 = vor.u32 1.1754944e-38, %v1282_v7  ;;  %vm1201_vm8 = vweird.f32 %v6725_v22  ;;  %v1259_v13 = vmul.f32 %v6835_v30, %v1258_v40  ;;  %v6953_v40 = vpop.permute.xlu0 %605  ;;  %vm1261_vm12 = vweird.f32 %v6750_v49 }
 0x2e5   : > { %v5475_v28 = vpop.eup %5474  ;;  %v1100_v24 = vadd.f32 %v1080_v11, %v6839_v3  ;;  %v1238_v31 = vor.u32 1.1754944e-38, %v1237_v51  ;;  %v1252_v11 = vand.u32 2147483648, %v6727_v53  ;;  %vm1262_vm13 = vweird.f32 %v6835_v30 }
 0x2e6   : > { %v1339_v6 = vmul.f32 %v5475_v28, %v1164_v1  ;;  %v6890_v43 = vpop.eup %5476  ;;  %v1280_v28 = vand.u32 2147483647, %v6721_v39  ;;  %v1267_v51 = vand.u32 2147483648, %v6750_v49  ;;  %vm6979_vm15 = vmor %vm1261_vm12, %vm1262_vm13  ;;  %vm1321_vm13 = vweird.f32 %v6883_v36 }
 0x2e7   : > { %5478 = vtanh.f32 %v1100_v24  ;;  %v1239_v55 = vsel %vm6877_vm11, %v1238_v31, %v1234_v46  ;;  %v1245_v24 = vadd.f32 %v6777_v41, %v1244_v27  ;;  %v1302_v39 = vmul.f32 %v6890_v43, %v6810_v50 }
 0x2e8   : > { %v6886_v1 = vadd.f32 %v1339_v6, %v1335_v44  ;;  %v1289_v44 = vmul.f32 %v6829_v4, %v1288_v17  ;;  %v1250_v6 = vand.u32 2147483647, %v6727_v53  ;;  %v1336_v46 = vmul.f32 0.0, %v1239_v55 }
 0x2e9   : > { %v1253_v8 = vor.u32 1.1754944e-38, %v1252_v11  ;;  %vm1281_vm7 = vcmp.eq.f32.partialorder %v1280_v28, 8.507059e+37  ;;  %v1303_v53 = vsub.f32 1.0, %v1302_v39  ;;  %v1084_v11 = vpop.f32.mrf.mxu1  ;;  %vm1291_vm11 = vweird.f32 %v6746_v26 }
 0x2ea   : > { %v969_v34 = vpop.f32.mrf.mxu3  ;;  %5480 = vtanh.f32 %v6886_v1  ;;  %v1290_v48 = vadd.f32 %v6829_v4, %v1289_v44  ;;  %vm1251_vm10 = vcmp.eq.f32.partialorder %v1250_v6, 8.507059e+37  ;;  %v1265_v6 = vand.u32 2147483647, %v6750_v49  ;;  %v7068_v49 = vld [vmem:[%s10181_s2 + $0x10] sm:$0xff] }
 0x2eb   : > { %v1083_v20 = vadd.f32 %v1082_v47, %v969_v34  ;;  %5482 = vrcp.f32 %v6883_v36  ;;  %v1194_v47 = vsel %vm6860_vm9, %v1193_v15, %v1189_v52  ;;  %v1284_v52 = vsel %vm1281_vm7, %v1283_v25, %v1279_v63 }
 0x2ec   : > { %vm1292_vm9 = vweird.f32 %v6829_v4  ;;  %v1304_v39 = vmul.f32 %v6890_v43, %v1303_v53  ;;  %v1205_v27 = vand.u32 2147483647, %v6725_v22  ;;  %vm1307_vm7 = vweird.f32 %v6890_v43 }
 0x2ed   : > { %v5479_v12 = vpop.eup %5478  ;;  %v1101_v0 = vadd.f32 %v1083_v20, %v6765_v32  ;;  %v1200_v20 = vadd.f32 %v6773_v56, %v1199_v18  ;;  %v1260_v18 = vadd.f32 %v6835_v30, %v1259_v13  ;;  %vm6961_vm14 = vmor %vm1291_vm11, %vm1292_vm9  ;;  %vm1266_vm9 = vcmp.eq.f32.partialorder %v1265_v6, 8.507059e+37 }
 0x2ee   : > { %v1340_v2 = vmul.f32 %v5479_v12, %v1179_v35  ;;  %v1249_v35 = vsel %vm6925_vm6, %v6777_v41, %v1245_v24  ;;  %v1297_v41 = vand.u32 2147483648, %v6746_v26  ;;  %v1295_v24 = vand.u32 2147483647, %v6746_v26  ;;  %vm6992_vm6 = vmor %vm1201_vm8, %vm1202_vm5 }
 0x2ef   : > { %5484 = vtanh.f32 %v1101_v0  ;;  %v1254_v28 = vsel %vm1251_vm10, %v1253_v8, %v1249_v35  ;;  %v1294_v44 = vsel %vm6961_vm14, %v6829_v4, %v1290_v48  ;;  %v1207_v8 = vand.u32 2147483648, %v6725_v22 }
 0x2f0   : > { %v5481_v31 = vpop.eup %5480  ;;  %v6934_v15 = vadd.f32 %v1340_v2, %v1336_v46  ;;  %v1337_v46 = vmul.f32 0.0, %v1254_v28  ;;  %v1298_v25 = vor.u32 1.1754944e-38, %v1297_v41  ;;  %vm1296_vm4 = vcmp.eq.f32.partialorder %v1295_v24, 8.507059e+37 }
 0x2f1   : > { %v6938_v17 = vmul.f32 %v5481_v31, %v1284_v52  ;;  %v6940_v34 = vpop.eup %5482  ;;  %v1268_v35 = vor.u32 1.1754944e-38, %v1267_v51  ;;  %v1305_v53 = vadd.f32 %v6890_v43, %v1304_v39  ;;  %v1208_v22 = vor.u32 1.1754944e-38, %v1207_v8 }
 0x2f2   : > { %v971_v7 = vpop.f32.mrf.mxu3  ;;  %5486 = vtanh.f32 %v6934_v15  ;;  %v1317_v63 = vmul.f32 %v6940_v34, %v6883_v36  ;;  %v1299_v52 = vsel %vm1296_vm4, %v1298_v25, %v1294_v44  ;;  %vm1306_vm5 = vweird.f32 %v6810_v50 }
 0x2f3   : > { %v1085_v55 = vadd.f32 %v1084_v11, %v971_v7  ;;  %1355 = vst [vmem:[%s6949_s26] sm:$0xff] %v6938_v17  ;;  %v1312_v7 = vand.u32 2147483648, %v6810_v50  ;;  %vm1206_vm8 = vcmp.eq.f32.partialorder %v1205_v27, 8.507059e+37  ;;  %vm1308_vm10 = vmor %vm1306_vm5, %vm1307_vm7  ;;  %vm1322_vm12 = vweird.f32 %v6940_v34 }
 0x2f4   : > { %v1318_v48 = vsub.f32 1.0, %v1317_v63  ;;  %v1325_v6 = vand.u32 2147483647, %v6883_v36  ;;  %vm1323_vm14 = vmor %vm1321_vm13, %vm1322_vm12 }
 0x2f5   : > { %v5485_v12 = vpop.eup %5484  ;;  %v1102_v0 = vadd.f32 %v1085_v55, %v6953_v40  ;;  %v1310_v55 = vand.u32 2147483647, %v6810_v50  ;;  %v1313_v26 = vor.u32 1.1754944e-38, %v1312_v7 }
 0x2f6   : > { %v1341_v2 = vmul.f32 %v5485_v12, %v1194_v47  ;;  %v1264_v47 = vsel %vm6979_vm15, %v6835_v30, %v1260_v18  ;;  %v1204_v30 = vsel %vm6992_vm6, %v6773_v56, %v1200_v20  ;;  %v1309_v18 = vsel %vm1308_vm10, %v6890_v43, %v1305_v53  ;;  %v7077_v53 = vld [vmem:[%s10181_s2 + $0x18] sm:$0xff] }
 0x2f7   : > { %5488 = vtanh.f32 %v1102_v0  ;;  %v1269_v41 = vsel %vm1266_vm9, %v1268_v35, %v1264_v47  ;;  %v1209_v24 = vsel %vm1206_vm8, %v1208_v22, %v1204_v30  ;;  %v1319_v56 = vmul.f32 %v6940_v34, %v1318_v48  ;;  %v7040_v47 = vld [vmem:[%s10181_s2] sm:$0xff]  ;;  %v7047_v35 = vld [vmem:[%s10182_s3 + $0x8] sm:$0xff] }
 0x2f8   : > { %v5487_v4 = vpop.eup %5486  ;;  %v6986_v13 = vadd.f32 %v1341_v2, %v1337_v46  ;;  %v1338_v20 = vmul.f32 0.0, %v1269_v41  ;;  %vm1311_vm11 = vcmp.eq.f32.partialorder %v1310_v55, 8.507059e+37  ;;  %v1327_v43 = vand.u32 2147483648, %v6883_v36 }
 0x2f9   : > { %v1352_v11 = vmul.f32 %v5487_v4, %v1299_v52  ;;  %v1314_v39 = vsel %vm1311_vm11, %v1313_v26, %v1309_v18  ;;  %v1320_v50 = vadd.f32 %v6940_v34, %v1319_v56  ;;  %v1361_v2 = vpack.c.bf16 %v6934_v15, %v6886_v1  ;;  %v7025_v4 = vld [vmem:[%s10182_s3] sm:$0xff]  ;;  %v7061_v52 = vld [vmem:[%s10182_s3 + $0x10] sm:$0xff] }
 0x2fa   : > { %5490 = vtanh.f32 %v6986_v13  ;;  %v1328_v25 = vor.u32 1.1754944e-38, %v1327_v43  ;;  %vm1326_vm15 = vcmp.eq.f32.partialorder %v1325_v6, 8.507059e+37 }
 0x2fb   : > { %1356 = vst [vmem:[%s6949_s26 + $0x8] sm:$0xff] %v1352_v11  ;;  %v1324_v46 = vsel %vm1323_vm14, %v6940_v34, %v1320_v50  ;;  %v7034_v34 = vpack.c.bf16 %v1352_v11, %v6938_v17  ;;  %v7054_v17 = vld [vmem:[%s10181_s2 + $0x8] sm:$0xff] }
 0x2fc   : > { %v1329_v8 = vsel %vm1326_vm15, %v1328_v25, %v1324_v46 }
 0x2fd   : > { %v5489_v28 = vpop.eup %5488 }
 0x2fe   : > { %v1342_v51 = vmul.f32 %v5489_v28, %v1209_v24 }
 0x300   : > { %v5491_v12 = vpop.eup %5490  ;;  %v7008_v0 = vadd.f32 %v1342_v51, %v1338_v20 }
 0x301   : > { %v1353_v63 = vmul.f32 %v5491_v12, %v1314_v39 }
 0x302   : > { %v1362_v44 = vpack.c.bf16 %v7008_v0, %v6986_v13  ;;  %5492 = vtanh.f32 %v7008_v0 }
 0x303   : > { %1357 = vst [vmem:[%s6949_s26 + $0x10] sm:$0xff] %v1353_v63 }
 0x304   : > { %1369 = vmatpush.bf16.msrb.mxu2 %v1362_v44 }
 0x308   : > { %v5493_v27 = vpop.eup %5492  ;;  %1370 = vmatpush.bf16.msrb.mxu2 %v1361_v2 }
 0x309   : > { %v1354_v31 = vmul.f32 %v5493_v27, %v1329_v8 }
 0x30b   : > { %5068 = vmatmul.msk.bf16.vlgmr.msrb.gmra.mxu2 %vm690_vm1, %v7025_v4  ;;  %1358 = vst [vmem:[%s6949_s26 + $0x18] sm:$0xff] %v1354_v31  ;;  %v7030_v36 = vpack.c.bf16 %v1354_v31, %v1353_v63 }
 0x30d   : > { %1398 = vmatpush.bf16.msrb.mxu0 %v7030_v36 }
 0x311   : > { %1399 = vmatpush.bf16.msrb.mxu0 %v7034_v34 }
 0x314   : > { %5072 = vmatmul.msk.bf16.vlgmr.msrb.gmra.mxu0 %vm690_vm1, %v7040_v47 }
 0x31b   : > { %5069 = vmatmul.msk.bf16.gmra.mxu2 %vm690_vm1, %v7047_v35 }
 0x324   : > { %5073 = vmatmul.msk.bf16.gmra.mxu0 %vm690_vm1, %v7054_v17 }
 0x32b   : > { %5070 = vmatmul.msk.bf16.gmra.mxu2 %vm690_vm1, %v7061_v52 }
 0x334   : > { %5074 = vmatmul.msk.bf16.gmra.mxu0 %vm690_vm1, %v7068_v49 }
 0x33b   : > { %5071 = vmatmul.msk.bf16.gmra.mxu2 %vm690_vm1, %v6480_v54 }
 0x344   : > { %5075 = vmatmul.msk.bf16.gmra.mxu0 %vm690_vm1, %v7077_v53 }
 0x38e   : > { %v1372_v48 = vpop.f32.mrf.mxu2 }
 0x391   : > { %v1401_v11 = vpop.f32.mrf.mxu0 }
 0x392   : > { %v1402_v30 = vadd.f32 %v1401_v11, %v1372_v48 }
 0x396   : > { %v1374_v7 = vpop.f32.mrf.mxu2 }
 0x399   : > { %v1403_v22 = vpop.f32.mrf.mxu0 }
 0x39a   : > { %v1404_v48 = vadd.f32 %v1403_v22, %v1374_v7 }
 0x39e   : > { %v1377_v41 = vpop.f32.mrf.mxu2 }
 0x3a1   : > { %v1406_v55 = vpop.f32.mrf.mxu0 }
 0x3a2   : > { %v1407_v27 = vadd.f32 %v1406_v55, %v1377_v41  ;;  %v1421_v55 = vadd.f32 %v1402_v30, %v6528_v42 }
 0x3a6   : > { %v1379_v28 = vpop.f32.mrf.mxu2 }
 0x3a9   : > { %v1408_v24 = vpop.f32.mrf.mxu0 }
 0x3aa   : > { %v1409_v6 = vadd.f32 %v1408_v24, %v1379_v28  ;;  %v1423_v28 = vadd.f32 %v1407_v27, %v6506_v14  ;;  %v10377_v27 = vld [vmem:[#allocation22_spill] sm:$0xff] }
 0x3ac   : > { %v1424_v11 = vadd.f32 %v1409_v6, %v6519_v33  ;;  %v1431_v7 = vadd.f32 %v1423_v28, %v6490_v57 }
 0x3ae   : > { %v1382_v18 = vpop.f32.mrf.mxu2  ;;  %v1432_v41 = vadd.f32 %v1424_v11, %v6492_v58 }
 0x3b1   : > { %v1411_v56 = vpop.f32.mrf.mxu0 }
 0x3b2   : > { %v1412_v63 = vadd.f32 %v1411_v56, %v1382_v18  ;;  %v1422_v56 = vadd.f32 %v1404_v48, %v6524_v38 }
 0x3b4   : > { %v1425_v8 = vadd.f32 %v1412_v63, %v6502_v9 }
 0x3b6   : > { %v1384_v54 = vpop.f32.mrf.mxu2  ;;  %v1433_v24 = vadd.f32 %v1425_v8, %v6494_v59 }
 0x3b9   : > { %v1413_v20 = vpop.f32.mrf.mxu0 }
 0x3ba   : > { %v1414_v39 = vadd.f32 %v1413_v20, %v1384_v54 }
 0x3bc   : > { %v1426_v46 = vadd.f32 %v1414_v39, %v6508_v16  ;;  %v1429_v39 = vadd.f32 %v1421_v55, %v6513_v21 }
 0x3be   : > { %v1387_v51 = vpop.f32.mrf.mxu2  ;;  %v1434_v54 = vadd.f32 %v1426_v46, %v6496_v60 }
 0x3c1   : > { %v1416_v26 = vpop.f32.mrf.mxu0 }
 0x3c2   : > { %v1417_v12 = vadd.f32 %v1416_v26, %v1387_v51  ;;  %v1430_v51 = vadd.f32 %v1422_v56, %v6532_v45 }
 0x3c4   : > { %v1427_v50 = vadd.f32 %v1417_v12, %v6504_v10 }
 0x3c6   : > { %v1389_v44 = vpop.f32.mrf.mxu2  ;;  %v1435_v25 = vadd.f32 %v1427_v50, %v6498_v61 }
 0x3c8   : > { %5494 = vtanh.f32 %v1435_v25  ;;  %v10376_v25 = vld [vmem:[#allocation20_spill] sm:$0xff] }
 0x3c9   : > { %v1418_v43 = vpop.f32.mrf.mxu0 }
 0x3ca   : > { %v1419_v2 = vadd.f32 %v1418_v43, %v1389_v44 }
 0x3cc   : > { %v1428_v31 = vadd.f32 %v1419_v2, %v6510_v19 }
 0x3ce   : > { %v1436_v18 = vadd.f32 %v1428_v31, %v6500_v62  ;;  %v5495_v22 = vpop.eup %5494 }
 0x3d0   : > { %5496 = vtanh.f32 %v1436_v18 }
 0x3d1   : > { %5498 = vtanh.f32 %v1434_v54 }
 0x3d2   : > { %5500 = vtanh.f32 %v1433_v24 }
 0x3d3   : > { %5502 = vtanh.f32 %v1432_v41 }
 0x3d4   : > { %5504 = vtanh.f32 %v1431_v7 }
 0x3d5   : > { %5506 = vtanh.f32 %v1430_v51 }
 0x3d6   : > { %v5497_v20 = vpop.eup %5496  ;;  %5508 = vtanh.f32 %v1429_v39 }
 0x3d7   : > { %v1448_v26 = vpack.c.bf16 %v5497_v20, %v5495_v22  ;;  %v5499_v12 = vpop.eup %5498 }
 0x3d8   : > { %v5501_v50 = vpop.eup %5500 }
 0x3d9   : > { %1453 = vmatpush.bf16.msra.mxu2 %v1448_v26  ;;  %v1447_v63 = vpack.c.bf16 %v5499_v12, %v5501_v50  ;;  %v5503_v44 = vpop.eup %5502  ;;  %v6089_v12 = vld [vmem:[%s6354_s14 + $0x8] sm:$0xff] }
 0x3da   : > { %v5505_v30 = vpop.eup %5504 }
 0x3db   : > { %v1446_v43 = vpack.c.bf16 %v5503_v44, %v5505_v30  ;;  %v5507_v6 = vpop.eup %5506  ;;  %v10381_v44 = vld [vmem:[#allocation19_spill] sm:$0xff]  ;;  %v10382_v30 = vld [vmem:[#allocation21_spill] sm:$0xff] }
 0x3dc   : > { %v5509_v46 = vpop.eup %5508 }
 0x3dd   : > { %1454 = vmatpush.bf16.msra.mxu2 %v1447_v63  ;;  %v1445_v2 = vpack.c.bf16 %v5507_v6, %v5509_v46  ;;  %v10384_v6 = vld [vmem:[#allocation25_spill] sm:$0xff]  ;;  %v10385_v46 = vld [vmem:[#allocation27_spill] sm:$0xff] }
 0x3e1   : > { %1455 = vmatpush.bf16.msra.mxu2 %v1446_v43  ;;  %v10383_v43 = vld [vmem:[#allocation23_spill] sm:$0xff] }
 0x3e5   : > { %1456 = vmatpush.bf16.msra.mxu2 %v1445_v2  ;;  %v10386_v2 = vld [vmem:[#allocation29_spill] sm:$0xff] }
 0x3e8   : > { %5076 = vmatmul.msk.bf16.vlgmr.msra.gmra.mxu2 %vm628_vm0, %v6541_v5  ;;  %v10379_v5 = vld [vmem:[#allocation26_spill] sm:$0xff] }
 0x3e9   : > { %1539 = vmatpush.bf16.msrb.mxu2 %v7030_v36  ;;  %v10378_v36 = vld [vmem:[#allocation24_spill] sm:$0xff] }
 0x3ed   : > { %1540 = vmatpush.bf16.msrb.mxu2 %v7034_v34  ;;  %v10380_v34 = vld [vmem:[#allocation28_spill] sm:$0xff] }
 0x3f8   : > { %5085 = vmatmul.msk.bf16.vlgmr.msrb.gmra.mxu2 %vm690_vm1, %v6548_v23 }
 0x408   : > { %5086 = vmatmul.msk.bf16.gmra.mxu2 %vm690_vm1, %v6555_v29 }
 0x418   : > { %5087 = vmatmul.msk.bf16.gmra.mxu2 %vm690_vm1, %v6563_v37 }
 0x428   : > { %5088 = vmatmul.msk.bf16.gmra.mxu2 %vm690_vm1, %v10376_v25 }
 0x438   : > { %5089 = vmatmul.msk.bf16.gmra.mxu2 %vm690_vm1, %v10377_v27  ;;  %v10387_v27 = vld [vmem:[#allocation30_spill] sm:$0xff] }
 0x448   : > { %5090 = vmatmul.msk.bf16.gmra.mxu2 %vm690_vm1, %v10378_v36 }
 0x458   : > { %5091 = vmatmul.msk.bf16.gmra.mxu2 %vm690_vm1, %v10379_v5  ;;  %v10388_v5 = vld [vmem:[#allocation31_spill] sm:$0xff] }
 0x468   : > { %5092 = vmatmul.msk.bf16.gmra.mxu2 %vm690_vm1, %v10380_v34 }
 0x46b   : > { %v1458_v23 = vpop.f32.mrf.mxu2 }
 0x46c   : > { %v1462_v29 = vrot.slane %v1458_v23, 4 }
 0x46e   : > { %v1463_v8 = vmax.f32 %v1458_v23, %v1462_v29 }
 0x470   : > { %v1464_v31 = vrot.slane %v1463_v8, 2 }
 0x472   : > { %v1465_v37 = vmax.f32 %v1463_v8, %v1464_v31 }
 0x473   : > { %v1460_v48 = vpop.f32.mrf.mxu2 }
 0x474   : > { %v1466_v11 = vrot.slane %v1465_v37, 1 }
 0x476   : > { %v1467_v54 = vmax.f32 %v1465_v37, %v1466_v11 }
 0x478   : > { %v1468_v18 = vsub.f32 %v1458_v23, %v1467_v54 }
 0x47a   : > { %v1469_v28 = vmul.f32 1.442695, %v1468_v18 }
 0x47b   : > { %v1542_v25 = vpop.f32.mrf.mxu2 }
 0x47c   : > { %5510 = vpow2.f32 %v1469_v28 }
 0x482   : > { %v5511_v24 = vpop.eup %5510 }
 0x483   : > { %v1471_v56 = vrot.slane %v5511_v24, 4  ;;  %v1544_v36 = vpop.f32.mrf.mxu2 }
 0x485   : > { %v1472_v41 = vadd.f32 %v5511_v24, %v1471_v56 }
 0x487   : > { %v1473_v55 = vrot.slane %v1472_v41, 2 }
 0x489   : > { %v1474_v7 = vadd.f32 %v1473_v55, %v1472_v41  ;;  %v10389_v55 = vld [vmem:[#allocation36_spill] sm:$0xff] }
 0x48b   : > { %v1475_v22 = vrot.slane %v1474_v7, 1  ;;  %v1547_v34 = vpop.f32.mrf.mxu2 }
 0x48d   : > { %v1476_v20 = vadd.f32 %v1475_v22, %v1474_v7 }
 0x48f   : > { %5512 = vrcp.f32 %v1476_v20 }
 0x493   : > { %v1549_v29 = vpop.f32.mrf.mxu2 }
 0x495   : > { %v5513_v51 = vpop.eup %5512 }
 0x496   : > { %v1478_v26 = vmul.f32 %v5513_v51, %v5511_v24 }
 0x498   : > { %v1479_v39 = vmul.f32 %v6089_v12, %v1478_v26 }
 0x49a   : > { %v1480_v50 = vpack.c.bf16 %v1479_v39, %v1479_v39  ;;  %v10390_v39 = vld [vmem:[#allocation37_spill] sm:$0xff] }
 0x49b   : > { %v1552_v37 = vpop.f32.mrf.mxu2 }
 0x49c   : > { %v1482_v63 = vsel %vm921_vm2, %v1480_v50, 0 }
 0x49d   : > { %1491 = vmatpush.bf16.msra.mxu0 %v1482_v63  ;;  %v10391_v63 = vld [vmem:[#allocation38_spill] sm:$0xff] }
 0x4a0   : > { %5077 = vmatmul.msk.bf16.vlgmr.msra.gmra.mxu0 %vm896_vm3, %v10381_v44 }
 0x4a3   : > { %v1554_v54 = vpop.f32.mrf.mxu2 }
 0x4ab   : > { %v1557_v28 = vpop.f32.mrf.mxu2 }
 0x4b0   : > { %5078 = vmatmul.msk.bf16.gmra.mxu0 %vm896_vm3, %v10382_v30 }
 0x4b3   : > { %v1559_v41 = vpop.f32.mrf.mxu2 }
 0x4bb   : > { %v1562_v51 = vpop.f32.mrf.mxu2 }
 0x4c0   : > { %5079 = vmatmul.msk.bf16.gmra.mxu0 %vm896_vm3, %v10383_v43 }
 0x4d0   : > { %5080 = vmatmul.msk.bf16.gmra.mxu0 %vm896_vm3, %v10384_v6 }
 0x4e0   : > { %5081 = vmatmul.msk.bf16.gmra.mxu0 %vm896_vm3, %v10385_v46 }
 0x4f0   : > { %5082 = vmatmul.msk.bf16.gmra.mxu0 %vm896_vm3, %v10386_v2  ;;  %v10392_v2 = vld [vmem:[#allocation32_spill] sm:$0xff] }
 0x500   : > { %5083 = vmatmul.msk.bf16.gmra.mxu0 %vm896_vm3, %v10387_v27  ;;  %v1564_v27 = vpop.f32.mrf.mxu2 }
 0x510   : > { %5084 = vmatmul.msk.bf16.gmra.mxu0 %vm896_vm3, %v10388_v5 }
 0x51d   : > { %v1493_v23 = vpop.f32.mrf.mxu0 }
 0x51e   : > { %v1543_v8 = vadd.f32 %v1542_v25, %v1493_v23 }
 0x520   : > { %v1582_v7 = vadd.f32 %v1543_v8, %v10389_v55 }
 0x522   : > { %v5093_v12 = vmul.f32 -1.442695, %v1582_v7 }
 0x524   : > { %5514 = vpow2.f32 %v5093_v12 }
 0x525   : > { %v1495_v31 = vpop.f32.mrf.mxu0 }
 0x526   : > { %v1545_v20 = vadd.f32 %v1544_v36, %v1495_v31 }
 0x528   : > { %v1583_v50 = vadd.f32 %v1545_v20, %v10390_v39 }
 0x52a   : > { %v5094_v43 = vmul.f32 -1.442695, %v1583_v50  ;;  %v5515_v5 = vpop.eup %5514  ;;  %v1567_v50 = vpop.f32.mrf.mxu2 }
 0x52b   : > { %v7140_v31 = vadd.f32 1.0, %v5515_v5 }
 0x52c   : > { %5516 = vpow2.f32 %v5094_v43  ;;  %v10396_v43 = vld [vmem:[#allocation34_spill] sm:$0xff] }
 0x52d   : > { %v1498_v48 = vpop.f32.mrf.mxu0  ;;  %vm1651_vm6 = vweird.f32 %v7140_v31 }
 0x52e   : > { %v1548_v11 = vadd.f32 %v1547_v34, %v1498_v48  ;;  %v10393_v34 = vld [vmem:[#allocation39_spill] sm:$0xff] }
 0x530   : > { %v1584_v25 = vadd.f32 %v1548_v11, %v10392_v2  ;;  %v10394_v11 = vld [vmem:[#allocation41_spill] sm:$0xff] }
 0x532   : > { %v5095_v23 = vmul.f32 -1.442695, %v1584_v25  ;;  %v5517_v20 = vpop.eup %5516 }
 0x535   : > { %v1500_v18 = vpop.f32.mrf.mxu0 }
 0x536   : > { %v1550_v48 = vadd.f32 %v1549_v29, %v1500_v18 }
 0x53d   : > { %v1503_v24 = vpop.f32.mrf.mxu0 }
 0x53e   : > { %v1553_v26 = vadd.f32 %v1552_v37, %v1503_v24 }
 0x540   : > { %v1586_v44 = vadd.f32 %v1553_v26, %v10391_v63 }
 0x542   : > { %v5097_v6 = vmul.f32 -1.442695, %v1586_v44  ;;  %v7145_v44 = vadd.f32 1.0, %v5517_v20  ;;  %v1569_v20 = vpop.f32.mrf.mxu2 }
 0x544   : > { %5518 = vpow2.f32 %v5097_v6  ;;  %v1670_v39 = vand.u32 2147483647, %v7145_v44  ;;  %vm1666_vm5 = vweird.f32 %v7145_v44 }
 0x545   : > { %v1505_v56 = vpop.f32.mrf.mxu0  ;;  %5520 = vpow2.f32 %v5095_v23 }
 0x546   : > { %v1555_v46 = vadd.f32 %v1554_v54, %v1505_v56  ;;  %5522 = vrcp.f32 %v7140_v31  ;;  %v10395_v56 = vld [vmem:[#allocation33_spill] sm:$0xff]  ;;  %vm7231_vm11 = vcmp.eq.f32.partialorder %v1670_v39, 8.507059e+37 }
 0x547   : > { %v1585_v12 = vadd.f32 %v1550_v48, %v10395_v56 }
 0x548   : > { %v1587_v36 = vadd.f32 %v1555_v46, %v10393_v34 }
 0x54a   : > { %v5098_v24 = vmul.f32 -1.442695, %v1587_v36  ;;  %v5519_v26 = vpop.eup %5518 }
 0x54b   : > { %v7148_v46 = vadd.f32 1.0, %v5519_v26 }
 0x54c   : > { %5524 = vpow2.f32 %v5098_v24 }
 0x54d   : > { %v1508_v22 = vpop.f32.mrf.mxu0  ;;  %5526 = vrcp.f32 %v7145_v44  ;;  %vm1711_vm12 = vweird.f32 %v7148_v46 }
 0x54e   : > { %v1558_v7 = vadd.f32 %v1557_v28, %v1508_v22  ;;  %v5521_v22 = vpop.eup %5520  ;;  %5528 = vrcp.f32 %v7148_v46 }
 0x54f   : > { %v7150_v5 = vpop.eup %5522 }
 0x550   : > { %v1588_v6 = vadd.f32 %v1558_v7, %v10396_v43  ;;  %v1647_v24 = vmul.f32 %v7150_v5, %v7140_v31  ;;  %vm1652_vm4 = vweird.f32 %v7150_v5 }
 0x551   : > { %vm7200_vm7 = vmor %vm1651_vm6, %vm1652_vm4 }
 0x552   : > { %v5099_v36 = vmul.f32 -1.442695, %v1588_v6  ;;  %v5525_v23 = vpop.eup %5524 }
 0x553   : > { %v7162_v26 = vpop.eup %5526 }
 0x554   : > { %v7165_v6 = vpop.eup %5528  ;;  %vm1667_vm8 = vweird.f32 %v7162_v26 }
 0x555   : > { %v1510_v30 = vpop.f32.mrf.mxu0  ;;  %vm1712_vm10 = vweird.f32 %v7165_v6  ;;  %vm7258_vm15 = vmor %vm1666_vm5, %vm1667_vm8 }
 0x556   : > { %v1560_v25 = vadd.f32 %v1559_v41, %v1510_v30  ;;  %v7160_v41 = vadd.f32 1.0, %v5525_v23  ;;  %vm7244_vm14 = vmor %vm1711_vm12, %vm1712_vm10 }
 0x558   : > { %v1730_v59 = vand.u32 2147483647, %v7160_v41 }
 0x55a   : > { %vm7315_vm12 = vcmp.eq.f32.partialorder %v1730_v59, 8.507059e+37 }
 0x55d   : > { %v1513_v8 = vpop.f32.mrf.mxu0 }
 0x55e   : > { %v1563_v37 = vadd.f32 %v1562_v51, %v1513_v8  ;;  %v5096_v51 = vmul.f32 -1.442695, %v1585_v12  ;;  %v7154_v8 = vadd.f32 1.0, %v5521_v22 }
 0x560   : > { %v1590_v54 = vadd.f32 %v1563_v37, %v10394_v11  ;;  %v10397_v37 = vld [vmem:[#allocation42_spill] sm:$0xff]  ;;  %vm1681_vm13 = vweird.f32 %v7154_v8 }
 0x562   : > { %v5101_v18 = vmul.f32 -1.442695, %v1590_v54 }
 0x564   : > { %5530 = vpow2.f32 %v5101_v18 }
 0x565   : > { %v1515_v29 = vpop.f32.mrf.mxu0  ;;  %5532 = vpow2.f32 %v5096_v51 }
 0x566   : > { %v1565_v28 = vadd.f32 %v1564_v27, %v1515_v29  ;;  %v10398_v27 = vld [vmem:[#allocation35_spill] sm:$0xff]  ;;  %5534 = vpow2.f32 %v5099_v36  ;;  %v1648_v29 = vsub.f32 1.0, %v1647_v24  ;;  %v10399_v36 = vld [vmem:[#allocation40_spill] sm:$0xff] }
 0x567   : > { %v1589_v7 = vadd.f32 %v1560_v25, %v10398_v27  ;;  %5536 = vrcp.f32 %v7154_v8  ;;  %v1662_v25 = vmul.f32 %v7162_v26, %v7145_v44  ;;  %v1707_v27 = vmul.f32 %v7165_v6, %v7148_v46 }
 0x568   : > { %v1591_v48 = vadd.f32 %v1565_v28, %v10397_v37  ;;  %5538 = vrcp.f32 %v7160_v41 }
 0x569   : > { %v5100_v18 = vmul.f32 -1.442695, %v1589_v7  ;;  %v1663_v43 = vsub.f32 1.0, %v1662_v25  ;;  %v10400_v25 = vld [vmem:[#allocation43_spill] sm:$0xff] }
 0x56a   : > { %v5102_v54 = vmul.f32 -1.442695, %v1591_v48  ;;  %v5531_v28 = vpop.eup %5530  ;;  %v1649_v48 = vmul.f32 %v7150_v5, %v1648_v29  ;;  %v1572_v29 = vpop.f32.mrf.mxu2 }
 0x56b   : > { %v5533_v22 = vpop.eup %5532  ;;  %v1664_v34 = vmul.f32 %v7162_v26, %v1663_v43 }
 0x56c   : > { %v5535_v51 = vpop.eup %5534  ;;  %5540 = vpow2.f32 %v5102_v54  ;;  %v7178_v7 = vadd.f32 1.0, %v5533_v22  ;;  %v1650_v22 = vadd.f32 %v7150_v5, %v1649_v48 }
 0x56d   : > { %v1518_v30 = vpop.f32.mrf.mxu0  ;;  %5542 = vpow2.f32 %v5100_v18  ;;  %v7176_v24 = vpop.eup %5536 }
 0x56e   : > { %v1568_v12 = vadd.f32 %v1567_v50, %v1518_v30  ;;  %v7173_v50 = vadd.f32 1.0, %v5531_v28  ;;  %v7180_v30 = vadd.f32 1.0, %v5535_v51  ;;  %v1677_v18 = vmul.f32 %v7176_v24, %v7154_v8 }
 0x56f   : > { %v1708_v28 = vsub.f32 1.0, %v1707_v27  ;;  %v1655_v51 = vand.u32 2147483647, %v7140_v31  ;;  %v1672_v27 = vand.u32 2147483648, %v7145_v44  ;;  %vm1682_vm4 = vweird.f32 %v7176_v24 }
 0x570   : > { %v1592_v23 = vadd.f32 %v1568_v12, %v10399_v36  ;;  %v7183_v12 = vpop.eup %5538  ;;  %5544 = vrcp.f32 %v7173_v50  ;;  %v1678_v2 = vsub.f32 1.0, %v1677_v18  ;;  %vm7286_vm5 = vmor %vm1681_vm13, %vm1682_vm4  ;;  %vm1741_vm13 = vweird.f32 %v7180_v30 }
 0x571   : > { %5546 = vrcp.f32 %v7178_v7  ;;  %v1722_v11 = vmul.f32 %v7183_v12, %v7160_v41  ;;  %vm1656_vm9 = vcmp.eq.f32.partialorder %v1655_v51, 8.507059e+37  ;;  %v1673_v43 = vor.u32 1.1754944e-38, %v1672_v27 }
 0x572   : > { %v5103_v56 = vmul.f32 -1.442695, %v1592_v23  ;;  %v5541_v36 = vpop.eup %5540  ;;  %5548 = vrcp.f32 %v7180_v30  ;;  %v1717_v27 = vand.u32 2147483648, %v7148_v46  ;;  %v1574_v48 = vpop.f32.mrf.mxu2 }
 0x573   : > { %v7205_v63 = vadd.f32 1.0, %v5541_v36 }
 0x574   : > { %5550 = vpow2.f32 %v5103_v56 }
 0x575   : > { %v1520_v37 = vpop.f32.mrf.mxu0  ;;  %5552 = vrcp.f32 %v7205_v63 }
 0x576   : > { %v1570_v54 = vadd.f32 %v1569_v20, %v1520_v37  ;;  %v1657_v37 = vand.u32 2147483648, %v7140_v31  ;;  %v5543_v20 = vpop.eup %5542  ;;  %v1654_v31 = vsel %vm7200_vm7, %v7150_v5, %v1650_v22  ;;  %v1723_v5 = vsub.f32 1.0, %v1722_v11 }
 0x577   : > { %v7214_v55 = vpop.eup %5544  ;;  %v1665_v22 = vadd.f32 %v7162_v26, %v1664_v34  ;;  %vm1727_vm7 = vweird.f32 %v7183_v12 }
 0x578   : > { %v1593_v23 = vadd.f32 %v1570_v54, %v10400_v25  ;;  %v1709_v54 = vmul.f32 %v7165_v6, %v1708_v28  ;;  %v7211_v25 = vadd.f32 1.0, %v5543_v20  ;;  %v1658_v56 = vor.u32 1.1754944e-38, %v1657_v37  ;;  %v7218_v36 = vpop.eup %5546 }
 0x579   : > { %v7221_v51 = vpop.eup %5548  ;;  %v1679_v37 = vmul.f32 %v7176_v24, %v1678_v2  ;;  %v1767_v11 = vmul.f32 %v7214_v55, %v7173_v50  ;;  %v1692_v2 = vmul.f32 %v7218_v36, %v7178_v7 }
 0x57a   : > { %v5104_v21 = vmul.f32 -1.442695, %v1593_v23  ;;  %v1659_v28 = vsel %vm1656_vm9, %v1658_v56, %v1654_v31  ;;  %v1710_v20 = vadd.f32 %v7165_v6, %v1709_v54  ;;  %v5551_v23 = vpop.eup %5550  ;;  %5554 = vrcp.f32 %v7211_v25 }
 0x57b   : > { %v1715_v31 = vand.u32 2147483647, %v7148_v46  ;;  %v1685_v54 = vand.u32 2147483647, %v7154_v8  ;;  %v1724_v56 = vmul.f32 %v7183_v12, %v1723_v5  ;;  %v1687_v46 = vand.u32 2147483648, %v7154_v8  ;;  %v7269_v42 = vpop.eup %5552 }
 0x57c   : > { %5556 = vpow2.f32 %v5104_v21  ;;  %v1737_v21 = vmul.f32 %v7221_v51, %v7180_v30  ;;  %v1669_v5 = vsel %vm7258_vm15, %v7162_v26, %v1665_v22  ;;  %v1768_v57 = vsub.f32 1.0, %v1767_v11 }
 0x57d   : > { %v1523_v45 = vpop.f32.mrf.mxu0  ;;  %v1693_v58 = vsub.f32 1.0, %v1692_v2  ;;  %v7272_v38 = vadd.f32 %v7176_v24, %v1679_v37  ;;  %vm1716_vm6 = vcmp.eq.f32.partialorder %v1715_v31, 8.507059e+37  ;;  %v1725_v14 = vadd.f32 %v7183_v12, %v1724_v56 }
 0x57e   : > { %v1573_v18 = vadd.f32 %v1572_v29, %v1523_v45  ;;  %v10403_v45 = vld [vmem:[#allocation44_spill] sm:$0xff]  ;;  %v1738_v22 = vsub.f32 1.0, %v1737_v21  ;;  %v1688_v11 = vor.u32 1.1754944e-38, %v1687_v46  ;;  %vm1726_vm9 = vweird.f32 %v7160_v41 }
 0x57f   : > { %v1732_v2 = vand.u32 2147483648, %v7160_v41  ;;  %v1782_v31 = vmul.f32 %v7269_v42, %v7205_v63  ;;  %v1684_v21 = vsel %vm7286_vm5, %v7176_v24, %v7272_v38  ;;  %vm7298_vm8 = vcmp.eq.f32.partialorder %v1685_v54, 8.507059e+37  ;;  %vm7306_vm10 = vmor %vm1726_vm9, %vm1727_vm7 }
 0x580   : > { %v1594_v29 = vadd.f32 %v1573_v18, %v10403_v45  ;;  %v7251_v18 = vadd.f32 1.0, %v5551_v23  ;;  %v1714_v45 = vsel %vm7244_vm14, %v7165_v6, %v1710_v20  ;;  %v1718_v23 = vor.u32 1.1754944e-38, %v1717_v27  ;;  %v7275_v39 = vpop.eup %5554 }
 0x581   : > { %v1674_v8 = vsel %vm7231_vm11, %v1673_v43, %v1669_v5  ;;  %v1729_v38 = vsel %vm7306_vm10, %v7183_v12, %v1725_v14  ;;  %v1739_v43 = vmul.f32 %v7221_v51, %v1738_v22  ;;  %v1752_v34 = vmul.f32 %v7275_v39, %v7211_v25 }
 0x582   : > { %5558 = vtanh.f32 %v1594_v29  ;;  %v1719_v20 = vsel %vm1716_vm6, %v1718_v23, %v1714_v45  ;;  %v5557_v26 = vpop.eup %5556  ;;  %v1577_v29 = vpop.f32.mrf.mxu2  ;;  %v1733_v5 = vor.u32 1.1754944e-38, %v1732_v2  ;;  %vm1772_vm11 = vweird.f32 %v7214_v55 }
 0x583   : > { %5560 = vrcp.f32 %v7251_v18  ;;  %v1830_v41 = vmul.f32 %v1719_v20, %v6886_v1  ;;  %v7322_v54 = vadd.f32 1.0, %v5557_v26  ;;  %v1783_v14 = vsub.f32 1.0, %v1782_v31 }
 0x584   : > { %v1747_v12 = vand.u32 2147483648, %v7180_v30  ;;  %v1734_v20 = vsel %vm7315_vm12, %v1733_v5, %v1729_v38  ;;  %vm1771_vm14 = vweird.f32 %v7173_v50  ;;  %v1775_v26 = vand.u32 2147483647, %v7173_v50 }
 0x585   : > { %v1525_v44 = vpop.f32.mrf.mxu0  ;;  %vm1742_vm15 = vweird.f32 %v7221_v51  ;;  %v1753_v22 = vsub.f32 1.0, %v1752_v34  ;;  %vm7343_vm4 = vmor %vm1771_vm14, %vm1772_vm11  ;;  %v1784_v31 = vmul.f32 %v7269_v42, %v1783_v14  ;;  %vm1697_vm6 = vweird.f32 %v7218_v36 }
 0x586   : > { %v1575_v6 = vadd.f32 %v1574_v48, %v1525_v44  ;;  %v1769_v48 = vmul.f32 %v7214_v55, %v1768_v57  ;;  %v1777_v44 = vand.u32 2147483648, %v7173_v50  ;;  %v1831_v57 = vmul.f32 %v1734_v20, %v6934_v15  ;;  %vm7361_vm7 = vmor %vm1741_vm13, %vm1742_vm15 }
 0x587   : > { %vm1776_vm9 = vcmp.eq.f32.partialorder %v1775_v26, 8.507059e+37  ;;  %vm1696_vm5 = vweird.f32 %v7178_v7  ;;  %vm1786_vm12 = vweird.f32 %v7205_v63  ;;  %vm1756_vm11 = vweird.f32 %v7211_v25 }
 0x588   : > { %v5559_v37 = vpop.eup %5558  ;;  %v1595_v27 = vadd.f32 %v1575_v6, %v6839_v3  ;;  %v1778_v38 = vor.u32 1.1754944e-38, %v1777_v44  ;;  %v1762_v20 = vand.u32 2147483648, %v7211_v25  ;;  %vm1757_vm13 = vweird.f32 %v7275_v39 }
 0x589   : > { %v1834_v56 = vmul.f32 %v5559_v37, %v1659_v28  ;;  %v1694_v28 = vmul.f32 %v7218_v36, %v1693_v58  ;;  %v1770_v58 = vadd.f32 %v7214_v55, %v1769_v48  ;;  %v7328_v59 = vpop.eup %5560  ;;  %v1740_v37 = vadd.f32 %v7221_v51, %v1739_v43  ;;  %vm7410_vm15 = vmor %vm1756_vm11, %vm1757_vm13 }
 0x58a   : > { %5562 = vtanh.f32 %v1595_v27  ;;  %v1797_v2 = vmul.f32 %v7328_v59, %v7251_v18  ;;  %v1748_v43 = vor.u32 1.1754944e-38, %v1747_v12  ;;  %v1579_v46 = vpop.f32.mrf.mxu2  ;;  %v1763_v24 = vor.u32 1.1754944e-38, %v1762_v20 }
 0x58b   : > { %v7324_v1 = vadd.f32 %v1834_v56, %v1830_v41  ;;  %v1774_v50 = vsel %vm7343_vm4, %v7214_v55, %v1770_v58  ;;  %v1745_v56 = vand.u32 2147483647, %v7180_v30  ;;  %v1689_v55 = vsel %vm7298_vm8, %v1688_v11, %v1684_v21 }
 0x58c   : > { %v1744_v15 = vsel %vm7361_vm7, %v7221_v51, %v1740_v37  ;;  %v1798_v5 = vsub.f32 1.0, %v1797_v2  ;;  %v1785_v58 = vadd.f32 %v7269_v42, %v1784_v31  ;;  %vm1787_vm8 = vweird.f32 %v7269_v42  ;;  %vm7423_vm7 = vmor %vm1696_vm5, %vm1697_vm6 }
 0x58d   : > { %v1528_v23 = vpop.f32.mrf.mxu0  ;;  %5564 = vtanh.f32 %v7324_v1  ;;  %v1695_v12 = vadd.f32 %v7218_v36, %v1694_v28  ;;  %vm1746_vm10 = vcmp.eq.f32.partialorder %v1745_v56, 8.507059e+37  ;;  %v1792_v51 = vand.u32 2147483648, %v7205_v63  ;;  %vm7393_vm14 = vmor %vm1786_vm12, %vm1787_vm8 }
 0x58e   : > { %v1578_v6 = vadd.f32 %v1577_v29, %v1528_v23  ;;  %5566 = vrcp.f32 %v7322_v54  ;;  %v1754_v29 = vmul.f32 %v7275_v39, %v1753_v22  ;;  %v1749_v44 = vsel %vm1746_vm10, %v1748_v43, %v1744_v15 }
 0x58f   : > { %v1799_v27 = vmul.f32 %v7328_v59, %v1798_v5  ;;  %v1793_v31 = vor.u32 1.1754944e-38, %v1792_v51  ;;  %v1700_v56 = vand.u32 2147483647, %v7178_v7  ;;  %v1807_v15 = vand.u32 2147483648, %v7251_v18 }
 0x590   : > { %v5563_v45 = vpop.eup %5562  ;;  %v1596_v48 = vadd.f32 %v1578_v6, %v6765_v32  ;;  %v1790_v6 = vand.u32 2147483647, %v7205_v63  ;;  %v1755_v26 = vadd.f32 %v7275_v39, %v1754_v29  ;;  %vm1801_vm6 = vweird.f32 %v7251_v18 }
 0x591   : > { %v1835_v41 = vmul.f32 %v5563_v45, %v1674_v8  ;;  %v1779_v8 = vsel %vm1776_vm9, %v1778_v38, %v1774_v50  ;;  %v1789_v45 = vsel %vm7393_vm14, %v7269_v42, %v1785_v58  ;;  %v1832_v50 = vmul.f32 %v1749_v44, %v6986_v13 }
 0x592   : > { %5568 = vtanh.f32 %v1596_v48  ;;  %v1760_v48 = vand.u32 2147483647, %v7211_v25  ;;  %vm1791_vm4 = vcmp.eq.f32.partialorder %v1790_v6, 8.507059e+37  ;;  %v1759_v42 = vsel %vm7410_vm15, %v7275_v39, %v1755_v26 }
 0x593   : > { %v5565_v34 = vpop.eup %5564  ;;  %v7372_v30 = vadd.f32 %v1835_v41, %v1831_v57  ;;  %v1702_v57 = vand.u32 2147483648, %v7178_v7  ;;  %v1794_v43 = vsel %vm1791_vm4, %v1793_v31, %v1789_v45  ;;  %vm1802_vm9 = vweird.f32 %v7328_v59  ;;  %v7500_v41 = vld [vmem:[%s10185_s6 + $0x28] sm:$0xff] }
 0x594   : > { %v7376_v11 = vmul.f32 %v5565_v34, %v1779_v8  ;;  %v7378_v21 = vpop.eup %5566  ;;  %v1800_v34 = vadd.f32 %v7328_v59, %v1799_v27  ;;  %v1699_v39 = vsel %vm7423_vm7, %v7218_v36, %v1695_v12  ;;  %vm1761_vm8 = vcmp.eq.f32.partialorder %v1760_v48, 8.507059e+37  ;;  %vm1803_vm10 = vmor %vm1801_vm6, %vm1802_vm9  ;;  %10428 = vst [vmem:[#allocation20_spill] sm:$0xff] %v7500_v41 }
 0x595   : > { %v1530_v14 = vpop.f32.mrf.mxu0  ;;  %5570 = vtanh.f32 %v7372_v30  ;;  %v1812_v63 = vmul.f32 %v7378_v21, %v7322_v54  ;;  %v1703_v8 = vor.u32 1.1754944e-38, %v1702_v57  ;;  %v1764_v7 = vsel %vm1761_vm8, %v1763_v24, %v1759_v42 }
 0x596   : > { %v1580_v23 = vadd.f32 %v1579_v46, %v1530_v14  ;;  %1850 = vst [vmem:[%s6949_s26 + $0x20] sm:$0xff] %v7376_v11  ;;  %v1805_v5 = vand.u32 2147483647, %v7251_v18  ;;  %vm1701_vm5 = vcmp.eq.f32.partialorder %v1700_v56, 8.507059e+37  ;;  %v1804_v14 = vsel %vm1803_vm10, %v7328_v59, %v1800_v34 }
 0x597   : > { %v1704_v46 = vsel %vm1701_vm5, %v1703_v8, %v1699_v39  ;;  %v1833_v51 = vmul.f32 %v1764_v7, %v7008_v0  ;;  %vm1817_vm11 = vweird.f32 %v7378_v21  ;;  %v1822_v28 = vand.u32 2147483648, %v7322_v54  ;;  %v7514_v8 = vld [vmem:[%s10185_s6 + $0x38] sm:$0xff] }
 0x598   : > { %v5569_v22 = vpop.eup %5568  ;;  %v1597_v37 = vadd.f32 %v1580_v23, %v6953_v40  ;;  %v1808_v23 = vor.u32 1.1754944e-38, %v1807_v15  ;;  %vm1806_vm12 = vcmp.eq.f32.partialorder %v1805_v5, 8.507059e+37  ;;  %vm1816_vm13 = vweird.f32 %v7322_v54  ;;  %10430 = vst [vmem:[#allocation24_spill] sm:$0xff] %v7514_v8 }
 0x599   : > { %v1836_v2 = vmul.f32 %v5569_v22, %v1689_v55  ;;  %v1813_v55 = vsub.f32 1.0, %v1812_v63  ;;  %v1820_v0 = vand.u32 2147483647, %v7322_v54  ;;  %vm1818_vm14 = vmor %vm1816_vm13, %vm1817_vm11  ;;  %v1856_v63 = vpack.c.bf16 %v7372_v30, %v7324_v1 }
 0x59a   : > { %5572 = vtanh.f32 %v1597_v37  ;;  %v1809_v20 = vsel %vm1806_vm12, %v1808_v23, %v1804_v14  ;;  %v1823_v37 = vor.u32 1.1754944e-38, %v1822_v28 }
 0x59b   : > { %v5571_v38 = vpop.eup %5570  ;;  %v7417_v13 = vadd.f32 %v1836_v2, %v1832_v50  ;;  %v1814_v36 = vmul.f32 %v7378_v21, %v1813_v55  ;;  %vm1821_vm15 = vcmp.eq.f32.partialorder %v1820_v0, 8.507059e+37  ;;  %v7507_v55 = vld [vmem:[%s10185_s6 + $0x30] sm:$0xff] }
 0x59c   : > { %v1847_v29 = vmul.f32 %v5571_v38, %v1794_v43  ;;  %10429 = vst [vmem:[#allocation22_spill] sm:$0xff] %v7507_v55 }
 0x59d   : > { %5574 = vtanh.f32 %v7417_v13  ;;  %v1815_v18 = vadd.f32 %v7378_v21, %v1814_v36 }
 0x59e   : > { %1851 = vst [vmem:[%s6949_s26 + $0x28] sm:$0xff] %v1847_v29  ;;  %v1854_v54 = vpack.c.bf16 %v1847_v29, %v7376_v11 }
 0x59f   : > { %v1819_v22 = vsel %vm1818_vm14, %v7378_v21, %v1815_v18  ;;  %v6095_v21 = vld [vmem:[%s10185_s6 + $0x20] sm:$0xff] }
 0x5a0   : > { %v5573_v58 = vpop.eup %5572  ;;  %v1824_v45 = vsel %vm1821_vm15, %v1823_v37, %v1819_v22  ;;  %v10431_v22 = vld [vmem:[#allocation12_spill] sm:$0xff] }
 0x5a1   : > { %v1837_v12 = vmul.f32 %v5573_v58, %v1704_v46  ;;  %v10432_v37 = vld [vmem:[#allocation8_spill] sm:$0xff] }
 0x5a3   : > { %v5575_v44 = vpop.eup %5574  ;;  %v7440_v6 = vadd.f32 %v1837_v12, %v1833_v51 }
 0x5a4   : > { %v1848_v26 = vmul.f32 %v5575_v44, %v1809_v20 }
 0x5a5   : > { %v1857_v59 = vpack.c.bf16 %v7440_v6, %v7417_v13  ;;  %5576 = vtanh.f32 %v7440_v6 }
 0x5a6   : > { %1852 = vst [vmem:[%s6949_s26 + $0x30] sm:$0xff] %v1848_v26 }
 0x5a7   : > { %1864 = vmatpush.bf16.msrb.mxu3 %v1857_v59 }
 0x5ab   : > { %v5577_v27 = vpop.eup %5576  ;;  %1865 = vmatpush.bf16.msrb.mxu3 %v1856_v63 }
 0x5ac   : > { %v1849_v2 = vmul.f32 %v5577_v27, %v1824_v45  ;;  %v10433_v45 = vld [vmem:[#allocation16_spill] sm:$0xff] }
 0x5ae   : > { %5105 = vmatmul.msk.bf16.vlgmr.msrb.gmra.mxu3 %vm690_vm1, %v7025_v4  ;;  %1853 = vst [vmem:[%s6949_s26 + $0x38] sm:$0xff] %v1849_v2  ;;  %v1855_v48 = vpack.c.bf16 %v1849_v2, %v1848_v26  ;;  %v7471_v4 = vld [vmem:[%s10182_s3 + $0x18] sm:$0xff] }
 0x5b0   : > { %1893 = vmatpush.bf16.msrb.mxu1 %v1855_v48 }
 0x5b4   : > { %1894 = vmatpush.bf16.msrb.mxu1 %v1854_v54 }
 0x5b7   : > { %5109 = vmatmul.msk.bf16.vlgmr.msrb.gmra.mxu1 %vm690_vm1, %v7040_v47  ;;  %v6091_v47 = vld [vmem:[%s10185_s6] sm:$0xff] }
 0x5b8   : > { %2034 = vmatpush.bf16.msra.mxu1 %v1855_v48  ;;  %v10434_v48 = vld [vmem:[#allocation7_spill] sm:$0xff] }
 0x5bc   : > { %2035 = vmatpush.bf16.msra.mxu1 %v1854_v54 }
 0x5be   : > { %5106 = vmatmul.msk.bf16.gmra.mxu3 %vm690_vm1, %v7047_v35  ;;  %v6092_v35 = vld [vmem:[%s10185_s6 + $0x8] sm:$0xff] }
 0x5c7   : > { %5110 = vmatmul.msk.bf16.gmra.mxu1 %vm690_vm1, %v7054_v17  ;;  %v6093_v17 = vld [vmem:[%s10185_s6 + $0x10] sm:$0xff] }
 0x5ce   : > { %5107 = vmatmul.msk.bf16.gmra.mxu3 %vm690_vm1, %v7061_v52  ;;  %v6094_v52 = vld [vmem:[%s10185_s6 + $0x18] sm:$0xff] }
 0x5d7   : > { %5111 = vmatmul.msk.bf16.gmra.mxu1 %vm690_vm1, %v7068_v49 }
 0x5de   : > { %5108 = vmatmul.msk.bf16.gmra.mxu3 %vm690_vm1, %v7471_v4 }
 0x5e7   : > { %5112 = vmatmul.msk.bf16.gmra.mxu1 %vm690_vm1, %v7077_v53 }
 0x5f7   : > { %5122 = vmatmul.msk.bf16.vlgmr.msra.gmra.mxu1 %vm690_vm1, %v6091_v47  ;;  %v10435_v47 = vld [vmem:[#allocation17_spill] sm:$0xff] }
 0x607   : > { %5123 = vmatmul.msk.bf16.gmra.mxu1 %vm690_vm1, %v6092_v35 }
 0x617   : > { %5124 = vmatmul.msk.bf16.gmra.mxu1 %vm690_vm1, %v6093_v17  ;;  %v10436_v17 = vld [vmem:[#allocation6_spill] sm:$0xff] }
 0x627   : > { %5125 = vmatmul.msk.bf16.gmra.mxu1 %vm690_vm1, %v6094_v52 }
 0x631   : > { %v1867_v49 = vpop.f32.mrf.mxu3 }
 0x634   : > { %v1896_v53 = vpop.f32.mrf.mxu1 }
 0x635   : > { %v1897_v11 = vadd.f32 %v1896_v53, %v1867_v49 }
 0x637   : > { %5126 = vmatmul.msk.bf16.gmra.mxu1 %vm690_vm1, %v6095_v21  ;;  %v1916_v35 = vadd.f32 %v1897_v11, %v10435_v47  ;;  %v10437_v21 = vld [vmem:[#allocation18_spill] sm:$0xff] }
 0x639   : > { %v1869_v50 = vpop.f32.mrf.mxu3 }
 0x63c   : > { %v1898_v31 = vpop.f32.mrf.mxu1 }
 0x63d   : > { %v1899_v26 = vadd.f32 %v1898_v31, %v1869_v50 }
 0x63f   : > { %v1917_v2 = vadd.f32 %v1899_v26, %v10433_v45 }
 0x641   : > { %v1872_v56 = vpop.f32.mrf.mxu3  ;;  %v1925_v50 = vadd.f32 %v1917_v2, %v10437_v21 }
 0x644   : > { %v1901_v57 = vpop.f32.mrf.mxu1 }
 0x645   : > { %v1902_v44 = vadd.f32 %v1901_v57, %v1872_v56  ;;  %v10438_v57 = vld [vmem:[#allocation14_spill] sm:$0xff] }
 0x647   : > { %5127 = vmatmul.msk.bf16.gmra.mxu1 %vm690_vm1, %v7500_v41  ;;  %v1918_v63 = vadd.f32 %v1902_v44, %v10431_v22 }
 0x649   : > { %v1874_v38 = vpop.f32.mrf.mxu3  ;;  %v1926_v52 = vadd.f32 %v1918_v63, %v10436_v17 }
 0x64c   : > { %v1903_v42 = vpop.f32.mrf.mxu1 }
 0x64d   : > { %v1904_v36 = vadd.f32 %v1903_v42, %v1874_v38  ;;  %v1924_v38 = vadd.f32 %v1916_v35, %v10438_v57 }
 0x64f   : > { %v1919_v59 = vadd.f32 %v1904_v36, %v6519_v33 }
 0x651   : > { %v1877_v24 = vpop.f32.mrf.mxu3  ;;  %v1927_v54 = vadd.f32 %v1919_v59, %v10434_v48 }
 0x654   : > { %v1906_v43 = vpop.f32.mrf.mxu1 }
 0x655   : > { %v1907_v58 = vadd.f32 %v1906_v43, %v1877_v24 }
 0x657   : > { %5128 = vmatmul.msk.bf16.gmra.mxu1 %vm690_vm1, %v7507_v55  ;;  %v1920_v20 = vadd.f32 %v1907_v58, %v6502_v9 }
 0x659   : > { %v1879_v25 = vpop.f32.mrf.mxu3  ;;  %v1928_v27 = vadd.f32 %v1920_v20, %v10432_v37 }
 0x65c   : > { %v1908_v34 = vpop.f32.mrf.mxu1 }
 0x65d   : > { %v1909_v7 = vadd.f32 %v1908_v34, %v1879_v25 }
 0x65f   : > { %v1921_v12 = vadd.f32 %v1909_v7, %v6508_v16 }
 0x661   : > { %v1882_v29 = vpop.f32.mrf.mxu3  ;;  %v1929_v28 = vadd.f32 %v1921_v12, %v6496_v60 }
 0x664   : > { %v1911_v39 = vpop.f32.mrf.mxu1 }
 0x665   : > { %v1912_v15 = vadd.f32 %v1911_v39, %v1882_v29 }
 0x667   : > { %5129 = vmatmul.msk.bf16.gmra.mxu1 %vm690_vm1, %v7514_v8  ;;  %v1922_v5 = vadd.f32 %v1912_v15, %v6504_v10  ;;  %v7537_v15 = vld [vmem:[%s10184_s5] sm:$0xf] }
 0x668   : > { %10439 = vst [vmem:[#allocation26_spill] sm:$0xff] %v7537_v15 }
 0x669   : > { %v1884_v46 = vpop.f32.mrf.mxu3  ;;  %v1930_v23 = vadd.f32 %v1922_v5, %v6498_v61 }
 0x66b   : > { %5578 = vtanh.f32 %v1930_v23 }
 0x66c   : > { %v1913_v14 = vpop.f32.mrf.mxu1 }
 0x66d   : > { %v1914_v51 = vadd.f32 %v1913_v14, %v1884_v46 }
 0x66f   : > { %v1923_v18 = vadd.f32 %v1914_v51, %v6510_v19 }
 0x671   : > { %v1931_v0 = vadd.f32 %v1923_v18, %v6500_v62  ;;  %v5579_v49 = vpop.eup %5578 }
 0x673   : > { %5580 = vtanh.f32 %v1931_v0 }
 0x674   : > { %5582 = vtanh.f32 %v1929_v28 }
 0x675   : > { %5584 = vtanh.f32 %v1928_v27 }
 0x676   : > { %5586 = vtanh.f32 %v1927_v54  ;;  %v6100_v54 = vld [vmem:[%s6354_s14 + $0x10] sm:$0xff] }
 0x677   : > { %5588 = vtanh.f32 %v1926_v52 }
 0x678   : > { %5590 = vtanh.f32 %v1925_v50  ;;  %v7553_v50 = vld [vmem:[%s10186_s7 + $0x8] sm:$0xff] }
 0x679   : > { %v5581_v53 = vpop.eup %5580  ;;  %5592 = vtanh.f32 %v1924_v38  ;;  %10441 = vst [vmem:[#allocation19_spill] sm:$0xff] %v7553_v50  ;;  %v7574_v38 = vld [vmem:[%s10186_s7 + $0x20] sm:$0xff] }
 0x67a   : > { %v1943_v31 = vpack.c.bf16 %v5581_v53, %v5579_v49  ;;  %v5583_v56 = vpop.eup %5582  ;;  %v7546_v53 = vld [vmem:[%s10186_s7] sm:$0xff]  ;;  %10444 = vst [vmem:[#allocation25_spill] sm:$0xff] %v7574_v38 }
 0x67b   : > { %v5585_v42 = vpop.eup %5584  ;;  %10440 = vst [vmem:[#allocation28_spill] sm:$0xff] %v7546_v53 }
 0x67c   : > { %1948 = vmatpush.bf16.msra.mxu3 %v1943_v31  ;;  %v1942_v24 = vpack.c.bf16 %v5583_v56, %v5585_v42  ;;  %v5587_v43 = vpop.eup %5586  ;;  %v7560_v31 = vld [vmem:[%s10186_s7 + $0x10] sm:$0xff]  ;;  %v7567_v56 = vld [vmem:[%s10186_s7 + $0x18] sm:$0xff]  ;;  %v7581_v42 = vld [vmem:[%s10186_s7 + $0x28] sm:$0xff] }
 0x67d   : > { %v5589_v11 = vpop.eup %5588  ;;  %10442 = vst [vmem:[#allocation21_spill] sm:$0xff] %v7560_v31 }
 0x67e   : > { %v1941_v25 = vpack.c.bf16 %v5587_v43, %v5589_v11  ;;  %v5591_v34 = vpop.eup %5590  ;;  %10443 = vst [vmem:[#allocation23_spill] sm:$0xff] %v7567_v56  ;;  %v2037_v43 = vpop.f32.mrf.mxu1 }
 0x67f   : > { %v5593_v29 = vpop.eup %5592  ;;  %10445 = vst [vmem:[#allocation27_spill] sm:$0xff] %v7581_v42 }
 0x680   : > { %1949 = vmatpush.bf16.msra.mxu3 %v1942_v24  ;;  %v1940_v39 = vpack.c.bf16 %v5591_v34, %v5593_v29  ;;  %v7588_v24 = vld [vmem:[%s10186_s7 + $0x30] sm:$0xff] }
 0x681   : > { %10446 = vst [vmem:[#allocation29_spill] sm:$0xff] %v7588_v24 }
 0x684   : > { %1950 = vmatpush.bf16.msra.mxu3 %v1941_v25  ;;  %v7595_v25 = vld [vmem:[%s10186_s7 + $0x38] sm:$0xff] }
 0x685   : > { %10447 = vst [vmem:[#allocation30_spill] sm:$0xff] %v7595_v25 }
 0x686   : > { %v2039_v11 = vpop.f32.mrf.mxu1 }
 0x688   : > { %1951 = vmatpush.bf16.msra.mxu3 %v1940_v39 }
 0x68b   : > { %5113 = vmatmul.msk.bf16.vlgmr.msra.gmra.mxu3 %vm628_vm0, %v7537_v15 }
 0x68e   : > { %v2042_v34 = vpop.f32.mrf.mxu1 }
 0x696   : > { %v2044_v39 = vpop.f32.mrf.mxu1 }
 0x70e   : > { %v1953_v7 = vpop.f32.mrf.mxu3 }
 0x70f   : > { %v1957_v5 = vrot.slane %v1953_v7, 4 }
 0x711   : > { %v1958_v58 = vmax.f32 %v1953_v7, %v1957_v5 }
 0x713   : > { %v1959_v46 = vrot.slane %v1958_v58, 2 }
 0x715   : > { %v1960_v14 = vmax.f32 %v1958_v58, %v1959_v46  ;;  %v2047_v58 = vpop.f32.mrf.mxu1 }
 0x716   : > { %v1955_v36 = vpop.f32.mrf.mxu3 }
 0x717   : > { %v1961_v12 = vrot.slane %v1960_v14, 1 }
 0x719   : > { %v1962_v51 = vmax.f32 %v1960_v14, %v1961_v12 }
 0x71b   : > { %v1963_v23 = vsub.f32 %v1953_v7, %v1962_v51 }
 0x71d   : > { %v1964_v44 = vmul.f32 1.442695, %v1963_v23  ;;  %v2049_v36 = vpop.f32.mrf.mxu1 }
 0x71f   : > { %5594 = vpow2.f32 %v1964_v44 }
 0x725   : > { %v5595_v20 = vpop.eup %5594  ;;  %v2052_v51 = vpop.f32.mrf.mxu1 }
 0x726   : > { %v1966_v18 = vrot.slane %v5595_v20, 4 }
 0x728   : > { %v1967_v26 = vadd.f32 %v5595_v20, %v1966_v18  ;;  %v10448_v18 = vld [vmem:[#allocation36_spill] sm:$0xff] }
 0x72a   : > { %v1968_v59 = vrot.slane %v1967_v26, 2 }
 0x72c   : > { %v1969_v28 = vadd.f32 %v1968_v59, %v1967_v26 }
 0x72e   : > { %v1970_v0 = vrot.slane %v1969_v28, 1 }
 0x730   : > { %v1971_v63 = vadd.f32 %v1970_v0, %v1969_v28 }
 0x732   : > { %5596 = vrcp.f32 %v1971_v63 }
 0x738   : > { %v5597_v27 = vpop.eup %5596 }
 0x739   : > { %v1973_v2 = vmul.f32 %v5597_v27, %v5595_v20  ;;  %v2054_v20 = vpop.f32.mrf.mxu1 }
 0x73b   : > { %v1974_v35 = vmul.f32 %v6100_v54, %v1973_v2  ;;  %v10449_v2 = vld [vmem:[#allocation37_spill] sm:$0xff] }
 0x73d   : > { %v1975_v52 = vpack.c.bf16 %v1974_v35, %v1974_v35  ;;  %v10450_v35 = vld [vmem:[#allocation38_spill] sm:$0xff] }
 0x73f   : > { %v1977_v49 = vsel %vm921_vm2, %v1975_v52, 0 }
 0x740   : > { %1986 = vmatpush.bf16.msrb.mxu3 %v1977_v49 }
 0x741   : > { %v2057_v0 = vpop.f32.mrf.mxu1 }
 0x743   : > { %5114 = vmatmul.msk.bf16.vlgmr.msrb.gmra.mxu3 %vm896_vm3, %v7546_v53 }
 0x753   : > { %5115 = vmatmul.msk.bf16.gmra.mxu3 %vm896_vm3, %v7553_v50 }
 0x763   : > { %5116 = vmatmul.msk.bf16.gmra.mxu3 %vm896_vm3, %v7560_v31 }
 0x773   : > { %5117 = vmatmul.msk.bf16.gmra.mxu3 %vm896_vm3, %v7567_v56 }
 0x783   : > { %5118 = vmatmul.msk.bf16.gmra.mxu3 %vm896_vm3, %v7574_v38 }
 0x793   : > { %5119 = vmatmul.msk.bf16.gmra.mxu3 %vm896_vm3, %v7581_v42 }
 0x7a3   : > { %5120 = vmatmul.msk.bf16.gmra.mxu3 %vm896_vm3, %v7588_v24  ;;  %v2059_v24 = vpop.f32.mrf.mxu1 }
 0x7b3   : > { %5121 = vmatmul.msk.bf16.gmra.mxu3 %vm896_vm3, %v7595_v25 }
 0x7c6   : > { %v1988_v29 = vpop.f32.mrf.mxu3 }
 0x7c7   : > { %v2038_v7 = vadd.f32 %v2037_v43, %v1988_v29 }
 0x7c9   : > { %v2077_v26 = vadd.f32 %v2038_v7, %v10448_v18  ;;  %v10452_v7 = vld [vmem:[#allocation39_spill] sm:$0xff] }
 0x7cb   : > { %v5130_v27 = vmul.f32 -1.442695, %v2077_v26 }
 0x7cd   : > { %5598 = vpow2.f32 %v5130_v27 }
 0x7ce   : > { %v1990_v5 = vpop.f32.mrf.mxu3 }
 0x7cf   : > { %v2040_v28 = vadd.f32 %v2039_v11, %v1990_v5 }
 0x7d1   : > { %v2078_v54 = vadd.f32 %v2040_v28, %v10449_v2 }
 0x7d3   : > { %v5131_v43 = vmul.f32 -1.442695, %v2078_v54  ;;  %v5599_v42 = vpop.eup %5598 }
 0x7d5   : > { %5600 = vpow2.f32 %v5131_v43  ;;  %v2062_v43 = vpop.f32.mrf.mxu1 }
 0x7d6   : > { %v1993_v46 = vpop.f32.mrf.mxu3 }
 0x7d7   : > { %v2043_v14 = vadd.f32 %v2042_v34, %v1993_v46  ;;  %v10451_v46 = vld [vmem:[#allocation32_spill] sm:$0xff] }
 0x7d9   : > { %v2079_v25 = vadd.f32 %v2043_v14, %v10451_v46  ;;  %v10453_v14 = vld [vmem:[#allocation41_spill] sm:$0xff] }
 0x7db   : > { %v5132_v5 = vmul.f32 -1.442695, %v2079_v25  ;;  %v10455_v25 = vld [vmem:[#allocation34_spill] sm:$0xff] }
 0x7de   : > { %v1995_v12 = vpop.f32.mrf.mxu3 }
 0x7df   : > { %v2045_v28 = vadd.f32 %v2044_v39, %v1995_v12 }
 0x7e6   : > { %v1998_v23 = vpop.f32.mrf.mxu3 }
 0x7e7   : > { %v2048_v63 = vadd.f32 %v2047_v58, %v1998_v23  ;;  %v7604_v23 = vadd.f32 1.0, %v5599_v42 }
 0x7e9   : > { %v2081_v52 = vadd.f32 %v2048_v63, %v10450_v35  ;;  %v5601_v35 = vpop.eup %5600  ;;  %vm2146_vm7 = vweird.f32 %v7604_v23 }
 0x7eb   : > { %v5134_v34 = vmul.f32 -1.442695, %v2081_v52 }
 0x7ed   : > { %5602 = vpow2.f32 %v5134_v34  ;;  %v7609_v34 = vadd.f32 1.0, %v5601_v35 }
 0x7ee   : > { %v2000_v44 = vpop.f32.mrf.mxu3  ;;  %5604 = vpow2.f32 %v5132_v5 }
 0x7ef   : > { %v2050_v29 = vadd.f32 %v2049_v36, %v2000_v44  ;;  %5606 = vrcp.f32 %v7604_v23  ;;  %v10454_v44 = vld [vmem:[#allocation33_spill] sm:$0xff]  ;;  %v2165_v56 = vand.u32 2147483647, %v7609_v34  ;;  %vm2161_vm6 = vweird.f32 %v7609_v34 }
 0x7f0   : > { %v2080_v52 = vadd.f32 %v2045_v28, %v10454_v44  ;;  %v10456_v28 = vld [vmem:[#allocation42_spill] sm:$0xff] }
 0x7f1   : > { %v2082_v11 = vadd.f32 %v2050_v29, %v10452_v7  ;;  %vm7695_vm12 = vcmp.eq.f32.partialorder %v2165_v56, 8.507059e+37 }
 0x7f3   : > { %v5135_v63 = vmul.f32 -1.442695, %v2082_v11  ;;  %v5603_v54 = vpop.eup %5602 }
 0x7f4   : > { %v7612_v29 = vadd.f32 1.0, %v5603_v54 }
 0x7f5   : > { %5608 = vpow2.f32 %v5135_v63 }
 0x7f6   : > { %v2003_v59 = vpop.f32.mrf.mxu3  ;;  %5610 = vrcp.f32 %v7609_v34  ;;  %vm2206_vm11 = vweird.f32 %v7612_v29 }
 0x7f7   : > { %v2053_v27 = vadd.f32 %v2052_v51, %v2003_v59  ;;  %v5605_v59 = vpop.eup %5604  ;;  %5612 = vrcp.f32 %v7612_v29 }
 0x7f8   : > { %v7614_v5 = vpop.eup %5606 }
 0x7f9   : > { %v2083_v42 = vadd.f32 %v2053_v27, %v10455_v25  ;;  %v2142_v27 = vmul.f32 %v7614_v5, %v7604_v23  ;;  %vm2147_vm4 = vweird.f32 %v7614_v5 }
 0x7fa   : > { %vm7664_vm9 = vmor %vm2146_vm7, %vm2147_vm4 }
 0x7fb   : > { %v5609_v35 = vpop.eup %5608 }
 0x7fe   : > { %v2005_v49 = vpop.f32.mrf.mxu3 }
 0x7ff   : > { %v2055_v11 = vadd.f32 %v2054_v20, %v2005_v49  ;;  %v7624_v20 = vadd.f32 1.0, %v5609_v35 }
 0x801   : > { %v2225_v57 = vand.u32 2147483647, %v7624_v20 }
 0x806   : > { %v2008_v58 = vpop.f32.mrf.mxu3 }
 0x807   : > { %v2058_v26 = vadd.f32 %v2057_v0, %v2008_v58  ;;  %v5133_v0 = vmul.f32 -1.442695, %v2080_v52  ;;  %v5136_v58 = vmul.f32 -1.442695, %v2083_v42  ;;  %v7626_v52 = vpop.eup %5610 }
 0x808   : > { %vm2162_vm5 = vweird.f32 %v7626_v52 }
 0x809   : > { %v2085_v36 = vadd.f32 %v2058_v26, %v10453_v14  ;;  %v7618_v26 = vadd.f32 1.0, %v5605_v59  ;;  %vm7722_vm15 = vmor %vm2161_vm6, %vm2162_vm5 }
 0x80b   : > { %v5138_v12 = vmul.f32 -1.442695, %v2085_v36  ;;  %v2064_v36 = vpop.f32.mrf.mxu1  ;;  %vm2176_vm13 = vweird.f32 %v7618_v26 }
 0x80d   : > { %5614 = vpow2.f32 %v5138_v12  ;;  %v7629_v12 = vpop.eup %5612 }
 0x80e   : > { %v2010_v39 = vpop.f32.mrf.mxu3  ;;  %5616 = vpow2.f32 %v5133_v0  ;;  %vm2207_vm10 = vweird.f32 %v7629_v12 }
 0x80f   : > { %v2060_v51 = vadd.f32 %v2059_v24, %v2010_v39  ;;  %v10457_v24 = vld [vmem:[#allocation35_spill] sm:$0xff]  ;;  %5618 = vpow2.f32 %v5136_v58  ;;  %v10458_v58 = vld [vmem:[#allocation40_spill] sm:$0xff]  ;;  %vm7708_vm14 = vmor %vm2206_vm11, %vm2207_vm10  ;;  %vm7779_vm11 = vcmp.eq.f32.partialorder %v2225_v57, 8.507059e+37 }
 0x810   : > { %v2084_v54 = vadd.f32 %v2055_v11, %v10457_v24  ;;  %5620 = vrcp.f32 %v7618_v26  ;;  %v2157_v11 = vmul.f32 %v7626_v52, %v7609_v34  ;;  %v2202_v24 = vmul.f32 %v7629_v12, %v7612_v29 }
 0x811   : > { %v2086_v63 = vadd.f32 %v2060_v51, %v10456_v28  ;;  %v2143_v51 = vsub.f32 1.0, %v2142_v27  ;;  %5622 = vrcp.f32 %v7624_v20 }
 0x812   : > { %v5137_v59 = vmul.f32 -1.442695, %v2084_v54  ;;  %v2158_v14 = vsub.f32 1.0, %v2157_v11  ;;  %v10459_v11 = vld [vmem:[#allocation43_spill] sm:$0xff] }
 0x813   : > { %v5139_v42 = vmul.f32 -1.442695, %v2086_v63  ;;  %v5615_v28 = vpop.eup %5614  ;;  %v2144_v63 = vmul.f32 %v7614_v5, %v2143_v51  ;;  %v2067_v51 = vpop.f32.mrf.mxu1 }
 0x814   : > { %v5617_v25 = vpop.eup %5616  ;;  %v2159_v2 = vmul.f32 %v7626_v52, %v2158_v14 }
 0x815   : > { %v5619_v0 = vpop.eup %5618  ;;  %5624 = vpow2.f32 %v5139_v42  ;;  %v7642_v54 = vadd.f32 1.0, %v5617_v25  ;;  %v2145_v25 = vadd.f32 %v7614_v5, %v2144_v63 }
 0x816   : > { %v2013_v49 = vpop.f32.mrf.mxu3  ;;  %5626 = vpow2.f32 %v5137_v59  ;;  %v7640_v27 = vpop.eup %5620  ;;  %v2203_v59 = vsub.f32 1.0, %v2202_v24  ;;  %v2167_v24 = vand.u32 2147483648, %v7609_v34 }
 0x817   : > { %v2063_v39 = vadd.f32 %v2062_v43, %v2013_v49  ;;  %v7637_v43 = vadd.f32 1.0, %v5615_v28  ;;  %v7644_v49 = vadd.f32 1.0, %v5619_v0  ;;  %v2172_v28 = vmul.f32 %v7640_v27, %v7618_v26 }
 0x818   : > { %v2150_v0 = vand.u32 2147483647, %v7604_v23  ;;  %v2168_v14 = vor.u32 1.1754944e-38, %v2167_v24  ;;  %v2212_v24 = vand.u32 2147483648, %v7612_v29  ;;  %vm2177_vm4 = vweird.f32 %v7640_v27 }
 0x819   : > { %v2087_v35 = vadd.f32 %v2063_v39, %v10458_v58  ;;  %v7647_v39 = vpop.eup %5622  ;;  %5628 = vrcp.f32 %v7637_v43  ;;  %v2173_v18 = vsub.f32 1.0, %v2172_v28  ;;  %vm7750_vm6 = vmor %vm2176_vm13, %vm2177_vm4  ;;  %vm2236_vm13 = vweird.f32 %v7644_v49 }
 0x81a   : > { %5630 = vrcp.f32 %v7642_v54  ;;  %v2217_v46 = vmul.f32 %v7647_v39, %v7624_v20  ;;  %vm2151_vm8 = vcmp.eq.f32.partialorder %v2150_v0, 8.507059e+37 }
 0x81b   : > { %v5140_v7 = vmul.f32 -1.442695, %v2087_v35  ;;  %v5625_v58 = vpop.eup %5624  ;;  %5632 = vrcp.f32 %v7644_v49  ;;  %v2069_v63 = vpop.f32.mrf.mxu1 }
 0x81c   : > { %v7669_v38 = vadd.f32 1.0, %v5625_v58 }
 0x81d   : > { %5634 = vpow2.f32 %v5140_v7 }
 0x81e   : > { %v2015_v44 = vpop.f32.mrf.mxu3  ;;  %5636 = vrcp.f32 %v7669_v38 }
 0x81f   : > { %v2065_v42 = vadd.f32 %v2064_v36, %v2015_v44  ;;  %v2152_v44 = vand.u32 2147483648, %v7604_v23  ;;  %v5627_v36 = vpop.eup %5626  ;;  %v2149_v23 = vsel %vm7664_vm9, %v7614_v5, %v2145_v25  ;;  %v2218_v5 = vsub.f32 1.0, %v2217_v46 }
 0x820   : > { %v7678_v31 = vpop.eup %5628  ;;  %v2160_v25 = vadd.f32 %v7626_v52, %v2159_v2  ;;  %vm2222_vm9 = vweird.f32 %v7647_v39 }
 0x821   : > { %v2088_v35 = vadd.f32 %v2065_v42, %v10459_v11  ;;  %v2204_v42 = vmul.f32 %v7629_v12, %v2203_v59  ;;  %v7675_v11 = vadd.f32 1.0, %v5627_v36  ;;  %v2153_v7 = vor.u32 1.1754944e-38, %v2152_v44  ;;  %v7682_v58 = vpop.eup %5630 }
 0x822   : > { %v7685_v0 = vpop.eup %5632  ;;  %v2174_v44 = vmul.f32 %v7640_v27, %v2173_v18  ;;  %v2262_v46 = vmul.f32 %v7678_v31, %v7637_v43  ;;  %v2187_v18 = vmul.f32 %v7682_v58, %v7642_v54 }
 0x823   : > { %v5141_v50 = vmul.f32 -1.442695, %v2088_v35  ;;  %v2154_v59 = vsel %vm2151_vm8, %v2153_v7, %v2149_v23  ;;  %v2205_v36 = vadd.f32 %v7629_v12, %v2204_v42  ;;  %v5635_v35 = vpop.eup %5634  ;;  %5638 = vrcp.f32 %v7675_v11 }
 0x824   : > { %v2210_v23 = vand.u32 2147483647, %v7612_v29  ;;  %v2180_v42 = vand.u32 2147483647, %v7618_v26  ;;  %v2219_v7 = vmul.f32 %v7647_v39, %v2218_v5  ;;  %v2182_v29 = vand.u32 2147483648, %v7618_v26  ;;  %v7733_v55 = vpop.eup %5636 }
 0x825   : > { %5640 = vpow2.f32 %v5141_v50  ;;  %v2232_v50 = vmul.f32 %v7685_v0, %v7644_v49  ;;  %v2164_v5 = vsel %vm7722_vm15, %v7626_v52, %v2160_v25  ;;  %v2263_v8 = vsub.f32 1.0, %v2262_v46 }
 0x826   : > { %v2018_v53 = vpop.f32.mrf.mxu3  ;;  %v2188_v41 = vsub.f32 1.0, %v2187_v18  ;;  %v7736_v15 = vadd.f32 %v7640_v27, %v2174_v44  ;;  %vm2211_vm7 = vcmp.eq.f32.partialorder %v2210_v23, 8.507059e+37  ;;  %v2220_v21 = vadd.f32 %v7647_v39, %v2219_v7 }
 0x827   : > { %v2068_v28 = vadd.f32 %v2067_v51, %v2018_v53  ;;  %v10462_v53 = vld [vmem:[#allocation44_spill] sm:$0xff]  ;;  %v2233_v25 = vsub.f32 1.0, %v2232_v50  ;;  %v2183_v46 = vor.u32 1.1754944e-38, %v2182_v29  ;;  %vm2221_vm8 = vweird.f32 %v7624_v20 }
 0x828   : > { %v2227_v18 = vand.u32 2147483648, %v7624_v20  ;;  %v2277_v23 = vmul.f32 %v7733_v55, %v7669_v38  ;;  %v2179_v50 = vsel %vm7750_vm6, %v7640_v27, %v7736_v15  ;;  %vm7762_vm5 = vcmp.eq.f32.partialorder %v2180_v42, 8.507059e+37  ;;  %vm7770_vm10 = vmor %vm2221_vm8, %vm2222_vm9 }
 0x829   : > { %v2089_v51 = vadd.f32 %v2068_v28, %v10462_v53  ;;  %v7715_v28 = vadd.f32 1.0, %v5635_v35  ;;  %v2209_v53 = vsel %vm7708_vm14, %v7629_v12, %v2205_v36  ;;  %v2213_v35 = vor.u32 1.1754944e-38, %v2212_v24  ;;  %v7739_v56 = vpop.eup %5638 }
 0x82a   : > { %v2169_v26 = vsel %vm7695_vm12, %v2168_v14, %v2164_v5  ;;  %v2224_v15 = vsel %vm7770_vm10, %v7647_v39, %v2220_v21  ;;  %v2234_v14 = vmul.f32 %v7685_v0, %v2233_v25  ;;  %v2247_v2 = vmul.f32 %v7739_v56, %v7675_v11 }
 0x82b   : > { %5642 = vtanh.f32 %v2089_v51  ;;  %v2214_v36 = vsel %vm2211_vm7, %v2213_v35, %v2209_v53  ;;  %v5641_v52 = vpop.eup %5640  ;;  %v2072_v51 = vpop.f32.mrf.mxu1  ;;  %v2228_v5 = vor.u32 1.1754944e-38, %v2227_v18  ;;  %vm2267_vm12 = vweird.f32 %v7678_v31 }
 0x82c   : > { %5644 = vrcp.f32 %v7715_v28  ;;  %v2325_v20 = vmul.f32 %v2214_v36, %v7324_v1  ;;  %v7786_v42 = vadd.f32 1.0, %v5641_v52  ;;  %v2278_v21 = vsub.f32 1.0, %v2277_v23 }
 0x82d   : > { %v2242_v39 = vand.u32 2147483648, %v7644_v49  ;;  %v2229_v36 = vsel %vm7779_vm11, %v2228_v5, %v2224_v15  ;;  %vm2266_vm14 = vweird.f32 %v7637_v43  ;;  %v2270_v52 = vand.u32 2147483647, %v7637_v43 }
 0x82e   : > { %v2020_v34 = vpop.f32.mrf.mxu3  ;;  %vm2237_vm15 = vweird.f32 %v7685_v0  ;;  %v2248_v25 = vsub.f32 1.0, %v2247_v2  ;;  %vm7807_vm4 = vmor %vm2266_vm14, %vm2267_vm12  ;;  %v2279_v23 = vmul.f32 %v7733_v55, %v2278_v21  ;;  %vm2192_vm7 = vweird.f32 %v7682_v58 }
 0x82f   : > { %v2070_v12 = vadd.f32 %v2069_v63, %v2020_v34  ;;  %v2264_v63 = vmul.f32 %v7678_v31, %v2263_v8  ;;  %v2272_v34 = vand.u32 2147483648, %v7637_v43  ;;  %v2326_v8 = vmul.f32 %v2229_v36, %v7372_v30  ;;  %vm7825_vm9 = vmor %vm2236_vm13, %vm2237_vm15 }
 0x830   : > { %vm2271_vm8 = vcmp.eq.f32.partialorder %v2270_v52, 8.507059e+37  ;;  %vm2191_vm6 = vweird.f32 %v7642_v54  ;;  %vm2281_vm11 = vweird.f32 %v7669_v38  ;;  %vm2251_vm12 = vweird.f32 %v7675_v11 }
 0x831   : > { %v5643_v44 = vpop.eup %5642  ;;  %v2090_v24 = vadd.f32 %v2070_v12, %v6839_v3  ;;  %v2273_v15 = vor.u32 1.1754944e-38, %v2272_v34  ;;  %v2257_v36 = vand.u32 2147483648, %v7675_v11  ;;  %vm2252_vm13 = vweird.f32 %v7739_v56 }
 0x832   : > { %v2329_v7 = vmul.f32 %v5643_v44, %v2154_v59  ;;  %v2189_v59 = vmul.f32 %v7682_v58, %v2188_v41  ;;  %v2265_v41 = vadd.f32 %v7678_v31, %v2264_v63  ;;  %v7792_v57 = vpop.eup %5644  ;;  %v2235_v44 = vadd.f32 %v7685_v0, %v2234_v14  ;;  %vm7874_vm15 = vmor %vm2251_vm12, %vm2252_vm13 }
 0x833   : > { %5646 = vtanh.f32 %v2090_v24  ;;  %v2292_v18 = vmul.f32 %v7792_v57, %v7715_v28  ;;  %v2243_v14 = vor.u32 1.1754944e-38, %v2242_v39  ;;  %v2074_v29 = vpop.f32.mrf.mxu1  ;;  %v2258_v27 = vor.u32 1.1754944e-38, %v2257_v36 }
 0x834   : > { %v7788_v1 = vadd.f32 %v2329_v7, %v2325_v20  ;;  %v2269_v43 = vsel %vm7807_vm4, %v7678_v31, %v2265_v41  ;;  %v2240_v7 = vand.u32 2147483647, %v7644_v49  ;;  %v2184_v31 = vsel %vm7762_vm5, %v2183_v46, %v2179_v50 }
 0x835   : > { %v2239_v30 = vsel %vm7825_vm9, %v7685_v0, %v2235_v44  ;;  %v2293_v5 = vsub.f32 1.0, %v2292_v18  ;;  %v2280_v41 = vadd.f32 %v7733_v55, %v2279_v23  ;;  %vm2282_vm5 = vweird.f32 %v7733_v55  ;;  %vm7887_vm9 = vmor %vm2191_vm6, %vm2192_vm7 }
 0x836   : > { %v2023_v35 = vpop.f32.mrf.mxu3  ;;  %5648 = vtanh.f32 %v7788_v1  ;;  %v2190_v39 = vadd.f32 %v7682_v58, %v2189_v59  ;;  %vm2241_vm10 = vcmp.eq.f32.partialorder %v2240_v7, 8.507059e+37  ;;  %v2287_v0 = vand.u32 2147483648, %v7669_v38  ;;  %vm7857_vm14 = vmor %vm2281_vm11, %vm2282_vm5 }
 0x837   : > { %v2073_v12 = vadd.f32 %v2072_v51, %v2023_v35  ;;  %5650 = vrcp.f32 %v7786_v42  ;;  %v2249_v51 = vmul.f32 %v7739_v56, %v2248_v25  ;;  %v2244_v34 = vsel %vm2241_vm10, %v2243_v14, %v2239_v30 }
 0x838   : > { %v2294_v24 = vmul.f32 %v7792_v57, %v2293_v5  ;;  %v2288_v23 = vor.u32 1.1754944e-38, %v2287_v0  ;;  %v2195_v7 = vand.u32 2147483647, %v7642_v54  ;;  %v2302_v30 = vand.u32 2147483648, %v7715_v28 }
 0x839   : > { %v5647_v53 = vpop.eup %5646  ;;  %v2091_v63 = vadd.f32 %v2073_v12, %v6765_v32  ;;  %v2285_v12 = vand.u32 2147483647, %v7669_v38  ;;  %v2250_v52 = vadd.f32 %v7739_v56, %v2249_v51  ;;  %vm2296_vm7 = vweird.f32 %v7715_v28 }
 0x83a   : > { %v2330_v20 = vmul.f32 %v5647_v53, %v2169_v26  ;;  %v2274_v26 = vsel %vm2271_vm8, %v2273_v15, %v2269_v43  ;;  %v2284_v53 = vsel %vm7857_vm14, %v7733_v55, %v2280_v41  ;;  %v2327_v43 = vmul.f32 %v2244_v34, %v7417_v13 }
 0x83b   : > { %5652 = vtanh.f32 %v2091_v63  ;;  %v2255_v63 = vand.u32 2147483647, %v7675_v11  ;;  %vm2286_vm4 = vcmp.eq.f32.partialorder %v2285_v12, 8.507059e+37  ;;  %v2254_v55 = vsel %vm7874_vm15, %v7739_v56, %v2250_v52 }
 0x83c   : > { %v5649_v2 = vpop.eup %5648  ;;  %v7836_v49 = vadd.f32 %v2330_v20, %v2326_v8  ;;  %v2197_v8 = vand.u32 2147483648, %v7642_v54  ;;  %v2289_v14 = vsel %vm2286_vm4, %v2288_v23, %v2284_v53  ;;  %vm2297_vm8 = vweird.f32 %v7792_v57  ;;  %v7943_v23 = vld [vmem:[%s10182_s3 + $0x8] sm:$0xff]  ;;  %v7973_v20 = vld [vmem:[%s10181_s2 + $0x18] sm:$0xff] }
 0x83d   : > { %v7840_v46 = vmul.f32 %v5649_v2, %v2274_v26  ;;  %v7842_v50 = vpop.eup %5650  ;;  %v2295_v2 = vadd.f32 %v7792_v57, %v2294_v24  ;;  %v2194_v56 = vsel %vm7887_vm9, %v7682_v58, %v2190_v39  ;;  %vm2256_vm5 = vcmp.eq.f32.partialorder %v2255_v63, 8.507059e+37  ;;  %vm2298_vm10 = vmor %vm2296_vm7, %vm2297_vm8 }
 0x83e   : > { %v2025_v21 = vpop.f32.mrf.mxu3  ;;  %5654 = vtanh.f32 %v7836_v49  ;;  %v2307_v38 = vmul.f32 %v7842_v50, %v7786_v42  ;;  %v2198_v26 = vor.u32 1.1754944e-38, %v2197_v8  ;;  %v2259_v54 = vsel %vm2256_vm5, %v2258_v27, %v2254_v55  ;;  %v7964_v8 = vld [vmem:[%s10181_s2 + $0x10] sm:$0xff] }
 0x83f   : > { %v2075_v35 = vadd.f32 %v2074_v29, %v2025_v21  ;;  %2345 = vst [vmem:[%s6949_s26 + $0x40] sm:$0xff] %v7840_v46  ;;  %v2300_v5 = vand.u32 2147483647, %v7715_v28  ;;  %vm2196_vm6 = vcmp.eq.f32.partialorder %v2195_v7, 8.507059e+37  ;;  %v2299_v21 = vsel %vm2298_vm10, %v7792_v57, %v2295_v2  ;;  %v7957_v7 = vld [vmem:[%s10182_s3 + $0x10] sm:$0xff] }
 0x840   : > { %v2199_v29 = vsel %vm2196_vm6, %v2198_v26, %v2194_v56  ;;  %v2328_v0 = vmul.f32 %v2259_v54, %v7440_v6  ;;  %vm2312_vm12 = vweird.f32 %v7842_v50  ;;  %v2317_v59 = vand.u32 2147483648, %v7786_v42 }
 0x841   : > { %v5653_v25 = vpop.eup %5652  ;;  %v2092_v44 = vadd.f32 %v2075_v35, %v6953_v40  ;;  %v2303_v35 = vor.u32 1.1754944e-38, %v2302_v30  ;;  %vm2301_vm11 = vcmp.eq.f32.partialorder %v2300_v5, 8.507059e+37  ;;  %vm2311_vm13 = vweird.f32 %v7786_v42 }
 0x842   : > { %v2331_v18 = vmul.f32 %v5653_v25, %v2184_v31  ;;  %v2308_v31 = vsub.f32 1.0, %v2307_v38  ;;  %v2315_v6 = vand.u32 2147483647, %v7786_v42  ;;  %vm2313_vm14 = vmor %vm2311_vm13, %vm2312_vm12  ;;  %v2351_v38 = vpack.c.bf16 %v7836_v49, %v7788_v1  ;;  %v7924_v42 = vld [vmem:[%s10182_s3] sm:$0xff] }
 0x843   : > { %5656 = vtanh.f32 %v2092_v44  ;;  %v2304_v36 = vsel %vm2301_vm11, %v2303_v35, %v2299_v21  ;;  %v2318_v44 = vor.u32 1.1754944e-38, %v2317_v59 }
 0x844   : > { %v5655_v15 = vpop.eup %5654  ;;  %v7881_v13 = vadd.f32 %v2331_v18, %v2327_v43  ;;  %v2309_v58 = vmul.f32 %v7842_v50, %v2308_v31  ;;  %vm2316_vm15 = vcmp.eq.f32.partialorder %v2315_v6, 8.507059e+37  ;;  %v7936_v43 = vld [vmem:[%s10181_s2] sm:$0xff] }
 0x845   : > { %v2342_v51 = vmul.f32 %v5655_v15, %v2289_v14 }
 0x846   : > { %5658 = vtanh.f32 %v7881_v13  ;;  %v2310_v28 = vadd.f32 %v7842_v50, %v2309_v58 }
 0x847   : > { %2346 = vst [vmem:[%s6949_s26 + $0x48] sm:$0xff] %v2342_v51 }
 0x848   : > { %v2314_v25 = vsel %vm2313_vm14, %v7842_v50, %v2310_v28  ;;  %v7930_v50 = vpack.c.bf16 %v2342_v51, %v7840_v46  ;;  %v7950_v46 = vld [vmem:[%s10181_s2 + $0x8] sm:$0xff] }
 0x849   : > { %v5657_v41 = vpop.eup %5656  ;;  %v2319_v53 = vsel %vm2316_vm15, %v2318_v44, %v2314_v25 }
 0x84a   : > { %v2332_v39 = vmul.f32 %v5657_v41, %v2199_v29 }
 0x84c   : > { %v5659_v34 = vpop.eup %5658  ;;  %v7904_v12 = vadd.f32 %v2332_v39, %v2328_v0 }
 0x84d   : > { %v2343_v52 = vmul.f32 %v5659_v34, %v2304_v36 }
 0x84e   : > { %v2352_v57 = vpack.c.bf16 %v7904_v12, %v7881_v13  ;;  %5660 = vtanh.f32 %v7904_v12 }
 0x84f   : > { %2347 = vst [vmem:[%s6949_s26 + $0x50] sm:$0xff] %v2343_v52 }
 0x850   : > { %2359 = vmatpush.bf16.msrb.mxu0 %v2352_v57 }
 0x854   : > { %v5661_v24 = vpop.eup %5660  ;;  %2360 = vmatpush.bf16.msrb.mxu0 %v2351_v38 }
 0x855   : > { %v2344_v18 = vmul.f32 %v5661_v24, %v2319_v53 }
 0x857   : > { %2348 = vst [vmem:[%s6949_s26 + $0x58] sm:$0xff] %v2344_v18  ;;  %v7919_v63 = vpack.c.bf16 %v2344_v18, %v2343_v52  ;;  %5142 = vmatmul.msk.bf16.vlgmr.msrb.gmra.mxu0 %vm690_vm1, %v7924_v42 }
 0x859   : > { %2388 = vmatpush.bf16.msra.mxu2 %v7919_v63 }
 0x85d   : > { %2389 = vmatpush.bf16.msra.mxu2 %v7930_v50 }
 0x860   : > { %5146 = vmatmul.msk.bf16.vlgmr.msra.gmra.mxu2 %vm690_vm1, %v7936_v43 }
 0x867   : > { %5143 = vmatmul.msk.bf16.gmra.mxu0 %vm690_vm1, %v7943_v23 }
 0x870   : > { %5147 = vmatmul.msk.bf16.gmra.mxu2 %vm690_vm1, %v7950_v46 }
 0x877   : > { %5144 = vmatmul.msk.bf16.gmra.mxu0 %vm690_vm1, %v7957_v7 }
 0x880   : > { %5148 = vmatmul.msk.bf16.gmra.mxu2 %vm690_vm1, %v7964_v8 }
 0x887   : > { %5145 = vmatmul.msk.bf16.gmra.mxu0 %vm690_vm1, %v7471_v4 }
 0x890   : > { %5149 = vmatmul.msk.bf16.gmra.mxu2 %vm690_vm1, %v7973_v20 }
 0x8d4   : > { %v2362_v15 = vpop.f32.mrf.mxu0 }
 0x8dc   : > { %v2364_v55 = vpop.f32.mrf.mxu0 }
 0x8e3   : > { %v2391_v27 = vpop.f32.mrf.mxu2 }
 0x8e4   : > { %v2392_v14 = vadd.f32 %v2391_v27, %v2362_v15  ;;  %v2367_v31 = vpop.f32.mrf.mxu0 }
 0x8eb   : > { %v2393_v11 = vpop.f32.mrf.mxu2 }
 0x8ec   : > { %v2369_v2 = vpop.f32.mrf.mxu0  ;;  %v2394_v25 = vadd.f32 %v2393_v11, %v2364_v55 }
 0x8ee   : > { %v2412_v15 = vadd.f32 %v2394_v25, %v10433_v45 }
 0x8f3   : > { %v2396_v51 = vpop.f32.mrf.mxu2 }
 0x8f4   : > { %v2372_v30 = vpop.f32.mrf.mxu0  ;;  %v2397_v57 = vadd.f32 %v2396_v51, %v2367_v31  ;;  %v2411_v31 = vadd.f32 %v2392_v14, %v10435_v47  ;;  %v10487_v51 = vld [vmem:[#allocation18_spill] sm:$0xff] }
 0x8f6   : > { %v2413_v53 = vadd.f32 %v2397_v57, %v10431_v22  ;;  %v10491_v57 = vld [vmem:[#allocation22_spill] sm:$0xff] }
 0x8f8   : > { %v2421_v55 = vadd.f32 %v2413_v53, %v10436_v17 }
 0x8fb   : > { %v2398_v56 = vpop.f32.mrf.mxu2 }
 0x8fc   : > { %v2374_v4 = vpop.f32.mrf.mxu0  ;;  %v2399_v34 = vadd.f32 %v2398_v56, %v2369_v2  ;;  %v2420_v56 = vadd.f32 %v2412_v15, %v10487_v51 }
 0x8fe   : > { %v2414_v38 = vadd.f32 %v2399_v34, %v6519_v33  ;;  %v8000_v34 = vld [vmem:[%s10185_s6] sm:$0xff] }
 0x900   : > { %v2422_v27 = vadd.f32 %v2414_v38, %v10434_v48  ;;  %v10492_v38 = vld [vmem:[#allocation24_spill] sm:$0xff] }
 0x903   : > { %v2401_v26 = vpop.f32.mrf.mxu2 }
 0x904   : > { %v2377_v5 = vpop.f32.mrf.mxu0  ;;  %v2402_v39 = vadd.f32 %v2401_v26, %v2372_v30 }
 0x906   : > { %v2415_v59 = vadd.f32 %v2402_v39, %v6502_v9 }
 0x908   : > { %v2423_v18 = vadd.f32 %v2415_v59, %v10432_v37 }
 0x90b   : > { %v2403_v54 = vpop.f32.mrf.mxu2 }
 0x90c   : > { %v2404_v21 = vadd.f32 %v2403_v54, %v2374_v4  ;;  %v2379_v0 = vpop.f32.mrf.mxu0  ;;  %v10488_v4 = vld [vmem:[#allocation14_spill] sm:$0xff] }
 0x90d   : > { %v2419_v54 = vadd.f32 %v2411_v31, %v10488_v4 }
 0x90e   : > { %v2416_v36 = vadd.f32 %v2404_v21, %v6508_v16 }
 0x910   : > { %v2424_v44 = vadd.f32 %v2416_v36, %v6496_v60  ;;  %v8007_v36 = vld [vmem:[%s10185_s6 + $0x8] sm:$0xff] }
 0x913   : > { %v2406_v41 = vpop.f32.mrf.mxu2 }
 0x914   : > { %v2407_v29 = vadd.f32 %v2406_v41, %v2377_v5 }
 0x916   : > { %v2417_v58 = vadd.f32 %v2407_v29, %v6504_v10 }
 0x918   : > { %v2425_v52 = vadd.f32 %v2417_v58, %v6498_v61 }
 0x91a   : > { %5662 = vtanh.f32 %v2425_v52  ;;  %v10490_v52 = vld [vmem:[#allocation20_spill] sm:$0xff] }
 0x91b   : > { %v2408_v35 = vpop.f32.mrf.mxu2 }
 0x91c   : > { %v2409_v28 = vadd.f32 %v2408_v35, %v2379_v0  ;;  %v10489_v35 = vld [vmem:[#allocation26_spill] sm:$0xff] }
 0x91e   : > { %v2418_v6 = vadd.f32 %v2409_v28, %v6510_v19  ;;  %v8028_v28 = vld [vmem:[%s10185_s6 + $0x20] sm:$0xff] }
 0x920   : > { %v2426_v24 = vadd.f32 %v2418_v6, %v6500_v62  ;;  %v5663_v11 = vpop.eup %5662 }
 0x922   : > { %5664 = vtanh.f32 %v2426_v24 }
 0x923   : > { %5666 = vtanh.f32 %v2424_v44 }
 0x924   : > { %5668 = vtanh.f32 %v2423_v18 }
 0x925   : > { %5670 = vtanh.f32 %v2422_v27 }
 0x926   : > { %5672 = vtanh.f32 %v2421_v55 }
 0x927   : > { %5674 = vtanh.f32 %v2420_v56 }
 0x928   : > { %v5665_v2 = vpop.eup %5664  ;;  %5676 = vtanh.f32 %v2419_v54 }
 0x929   : > { %v2438_v30 = vpack.c.bf16 %v5665_v2, %v5663_v11  ;;  %v5667_v26 = vpop.eup %5666 }
 0x92a   : > { %v5669_v5 = vpop.eup %5668 }
 0x92b   : > { %2443 = vmatpush.bf16.msra.mxu0 %v2438_v30  ;;  %v2437_v41 = vpack.c.bf16 %v5667_v26, %v5669_v5  ;;  %v5671_v29 = vpop.eup %5670 }
 0x92c   : > { %v5673_v14 = vpop.eup %5672 }
 0x92d   : > { %v2436_v21 = vpack.c.bf16 %v5671_v29, %v5673_v14  ;;  %v5675_v58 = vpop.eup %5674  ;;  %v6121_v29 = vld [vmem:[%s6354_s14 + $0x18] sm:$0xff] }
 0x92e   : > { %v5677_v39 = vpop.eup %5676 }
 0x92f   : > { %2444 = vmatpush.bf16.msra.mxu0 %v2437_v41  ;;  %v2435_v0 = vpack.c.bf16 %v5675_v58, %v5677_v39  ;;  %v10493_v39 = vld [vmem:[#allocation28_spill] sm:$0xff] }
 0x933   : > { %2445 = vmatpush.bf16.msra.mxu0 %v2436_v21 }
 0x937   : > { %2446 = vmatpush.bf16.msra.mxu0 %v2435_v0  ;;  %v10494_v0 = vld [vmem:[#allocation19_spill] sm:$0xff] }
 0x93a   : > { %5150 = vmatmul.msk.bf16.vlgmr.msra.gmra.mxu0 %vm628_vm0, %v10489_v35  ;;  %v10495_v35 = vld [vmem:[#allocation21_spill] sm:$0xff] }
 0x93b   : > { %2529 = vmatpush.bf16.msrb.mxu0 %v7919_v63  ;;  %v8014_v63 = vld [vmem:[%s10185_s6 + $0x10] sm:$0xff] }
 0x93f   : > { %2530 = vmatpush.bf16.msrb.mxu0 %v7930_v50  ;;  %v8021_v50 = vld [vmem:[%s10185_s6 + $0x18] sm:$0xff] }
 0x94a   : > { %5159 = vmatmul.msk.bf16.vlgmr.msrb.gmra.mxu0 %vm690_vm1, %v8000_v34 }
 0x95a   : > { %5160 = vmatmul.msk.bf16.gmra.mxu0 %vm690_vm1, %v8007_v36 }
 0x96a   : > { %5161 = vmatmul.msk.bf16.gmra.mxu0 %vm690_vm1, %v8014_v63 }
 0x97a   : > { %5162 = vmatmul.msk.bf16.gmra.mxu0 %vm690_vm1, %v8021_v50 }
 0x98a   : > { %5163 = vmatmul.msk.bf16.gmra.mxu0 %vm690_vm1, %v8028_v28 }
 0x99a   : > { %5164 = vmatmul.msk.bf16.gmra.mxu0 %vm690_vm1, %v10490_v52  ;;  %v10496_v52 = vld [vmem:[#allocation23_spill] sm:$0xff] }
 0x9aa   : > { %5165 = vmatmul.msk.bf16.gmra.mxu0 %vm690_vm1, %v10491_v57  ;;  %v10497_v57 = vld [vmem:[#allocation25_spill] sm:$0xff] }
 0x9b7   : > { %v2448_v59 = vpop.f32.mrf.mxu0 }
 0x9b8   : > { %v2452_v6 = vrot.slane %v2448_v59, 4 }
 0x9ba   : > { %v2453_v25 = vmax.f32 %v2448_v59, %v2452_v6  ;;  %5166 = vmatmul.msk.bf16.gmra.mxu0 %vm690_vm1, %v10492_v38  ;;  %v10499_v6 = vld [vmem:[#allocation29_spill] sm:$0xff] }
 0x9bc   : > { %v2454_v44 = vrot.slane %v2453_v25, 2 }
 0x9be   : > { %v2455_v24 = vmax.f32 %v2453_v25, %v2454_v44  ;;  %v10500_v44 = vld [vmem:[#allocation30_spill] sm:$0xff] }
 0x9bf   : > { %v2450_v53 = vpop.f32.mrf.mxu0 }
 0x9c0   : > { %v2456_v18 = vrot.slane %v2455_v24, 1 }
 0x9c2   : > { %v2457_v15 = vmax.f32 %v2455_v24, %v2456_v18 }
 0x9c4   : > { %v2458_v27 = vsub.f32 %v2448_v59, %v2457_v15  ;;  %v10498_v59 = vld [vmem:[#allocation27_spill] sm:$0xff] }
 0x9c6   : > { %v2459_v31 = vmul.f32 1.442695, %v2458_v27 }
 0x9c7   : > { %v2532_v25 = vpop.f32.mrf.mxu0 }
 0x9c8   : > { %5678 = vpow2.f32 %v2459_v31 }
 0x9ce   : > { %v5679_v55 = vpop.eup %5678 }
 0x9cf   : > { %v2461_v11 = vrot.slane %v5679_v55, 4  ;;  %v2534_v38 = vpop.f32.mrf.mxu0 }
 0x9d1   : > { %v2462_v2 = vadd.f32 %v5679_v55, %v2461_v11 }
 0x9d3   : > { %v2463_v56 = vrot.slane %v2462_v2, 2 }
 0x9d5   : > { %v2464_v30 = vadd.f32 %v2463_v56, %v2462_v2 }
 0x9d7   : > { %v2465_v26 = vrot.slane %v2464_v30, 1  ;;  %v2537_v24 = vpop.f32.mrf.mxu0 }
 0x9d9   : > { %v2466_v54 = vadd.f32 %v2465_v26, %v2464_v30 }
 0x9db   : > { %5680 = vrcp.f32 %v2466_v54 }
 0x9df   : > { %v2539_v18 = vpop.f32.mrf.mxu0 }
 0x9e1   : > { %v5681_v5 = vpop.eup %5680 }
 0x9e2   : > { %v2468_v41 = vmul.f32 %v5681_v5, %v5679_v55 }
 0x9e4   : > { %v2469_v14 = vmul.f32 %v6121_v29, %v2468_v41  ;;  %v10501_v41 = vld [vmem:[#allocation36_spill] sm:$0xff] }
 0x9e6   : > { %v2470_v21 = vpack.c.bf16 %v2469_v14, %v2469_v14 }
 0x9e7   : > { %v2542_v31 = vpop.f32.mrf.mxu0 }
 0x9e8   : > { %v2472_v58 = vsel %vm921_vm2, %v2470_v21, 0 }
 0x9e9   : > { %2481 = vmatpush.bf16.msrb.mxu2 %v2472_v58 }
 0x9ec   : > { %5151 = vmatmul.msk.bf16.vlgmr.msrb.gmra.mxu2 %vm896_vm3, %v10493_v39 }
 0x9ef   : > { %v2544_v2 = vpop.f32.mrf.mxu0 }
 0x9f7   : > { %v2547_v30 = vpop.f32.mrf.mxu0 }
 0x9fc   : > { %5152 = vmatmul.msk.bf16.gmra.mxu2 %vm896_vm3, %v10494_v0 }
 0x9ff   : > { %v2549_v5 = vpop.f32.mrf.mxu0 }
 0xa07   : > { %v2552_v58 = vpop.f32.mrf.mxu0 }
 0xa0c   : > { %5153 = vmatmul.msk.bf16.gmra.mxu2 %vm896_vm3, %v10495_v35  ;;  %v10502_v35 = vld [vmem:[#allocation37_spill] sm:$0xff] }
 0xa0f   : > { %v2554_v4 = vpop.f32.mrf.mxu0 }
 0xa1c   : > { %5154 = vmatmul.msk.bf16.gmra.mxu2 %vm896_vm3, %v10496_v52 }
 0xa2c   : > { %5155 = vmatmul.msk.bf16.gmra.mxu2 %vm896_vm3, %v10497_v57  ;;  %v10503_v57 = vld [vmem:[#allocation38_spill] sm:$0xff] }
 0xa3c   : > { %5156 = vmatmul.msk.bf16.gmra.mxu2 %vm896_vm3, %v10498_v59 }
 0xa4c   : > { %5157 = vmatmul.msk.bf16.gmra.mxu2 %vm896_vm3, %v10499_v6 }
 0xa5c   : > { %5158 = vmatmul.msk.bf16.gmra.mxu2 %vm896_vm3, %v10500_v44 }
 0xa6f   : > { %v2483_v53 = vpop.f32.mrf.mxu2 }
 0xa70   : > { %v2533_v15 = vadd.f32 %v2532_v25, %v2483_v53  ;;  %v10504_v53 = vld [vmem:[#allocation32_spill] sm:$0xff] }
 0xa72   : > { %v2572_v29 = vadd.f32 %v2533_v15, %v10501_v41  ;;  %v10505_v15 = vld [vmem:[#allocation39_spill] sm:$0xff] }
 0xa74   : > { %v5167_v0 = vmul.f32 -1.442695, %v2572_v29 }
 0xa76   : > { %5682 = vpow2.f32 %v5167_v0 }
 0xa77   : > { %v2485_v27 = vpop.f32.mrf.mxu2 }
 0xa78   : > { %v2535_v21 = vadd.f32 %v2534_v38, %v2485_v27 }
 0xa7a   : > { %v2573_v52 = vadd.f32 %v2535_v21, %v10502_v35 }
 0xa7c   : > { %v5168_v25 = vmul.f32 -1.442695, %v2573_v52  ;;  %v5683_v51 = vpop.eup %5682 }
 0xa7e   : > { %5684 = vpow2.f32 %v5168_v25  ;;  %v2557_v25 = vpop.f32.mrf.mxu0 }
 0xa7f   : > { %v2488_v55 = vpop.f32.mrf.mxu2 }
 0xa80   : > { %v2538_v11 = vadd.f32 %v2537_v24, %v2488_v55 }
 0xa82   : > { %v2574_v55 = vadd.f32 %v2538_v11, %v10504_v53  ;;  %v10506_v11 = vld [vmem:[#allocation41_spill] sm:$0xff] }
 0xa84   : > { %v5169_v27 = vmul.f32 -1.442695, %v2574_v55 }
 0xa87   : > { %v2490_v56 = vpop.f32.mrf.mxu2 }
 0xa88   : > { %v2540_v21 = vadd.f32 %v2539_v18, %v2490_v56 }
 0xa8f   : > { %v2493_v26 = vpop.f32.mrf.mxu2 }
 0xa90   : > { %v2543_v39 = vadd.f32 %v2542_v31, %v2493_v26  ;;  %v8061_v26 = vadd.f32 1.0, %v5683_v51 }
 0xa92   : > { %v2576_v59 = vadd.f32 %v2543_v39, %v10503_v57  ;;  %v5685_v57 = vpop.eup %5684  ;;  %vm2641_vm9 = vweird.f32 %v8061_v26 }
 0xa94   : > { %v5171_v44 = vmul.f32 -1.442695, %v2576_v59 }
 0xa96   : > { %5686 = vpow2.f32 %v5171_v44  ;;  %v8066_v44 = vadd.f32 1.0, %v5685_v57 }
 0xa97   : > { %v2495_v54 = vpop.f32.mrf.mxu2  ;;  %5688 = vpow2.f32 %v5169_v27 }
 0xa98   : > { %v2545_v24 = vadd.f32 %v2544_v2, %v2495_v54  ;;  %5690 = vrcp.f32 %v8061_v26  ;;  %v10507_v54 = vld [vmem:[#allocation33_spill] sm:$0xff]  ;;  %v2660_v47 = vand.u32 2147483647, %v8066_v44  ;;  %vm2656_vm7 = vweird.f32 %v8066_v44 }
 0xa99   : > { %v2575_v59 = vadd.f32 %v2540_v21, %v10507_v54  ;;  %v10509_v21 = vld [vmem:[#allocation42_spill] sm:$0xff] }
 0xa9a   : > { %v2577_v38 = vadd.f32 %v2545_v24, %v10505_v15  ;;  %v10508_v24 = vld [vmem:[#allocation34_spill] sm:$0xff]  ;;  %vm8152_vm11 = vcmp.eq.f32.partialorder %v2660_v47, 8.507059e+37 }
 0xa9c   : > { %v5172_v39 = vmul.f32 -1.442695, %v2577_v38  ;;  %v5687_v52 = vpop.eup %5686 }
 0xa9d   : > { %v8069_v55 = vadd.f32 1.0, %v5687_v52 }
 0xa9e   : > { %5692 = vpow2.f32 %v5172_v39 }
 0xa9f   : > { %v2498_v14 = vpop.f32.mrf.mxu2  ;;  %5694 = vrcp.f32 %v8066_v44  ;;  %vm2701_vm12 = vweird.f32 %v8069_v55 }
 0xaa0   : > { %v2548_v0 = vadd.f32 %v2547_v30, %v2498_v14  ;;  %v5689_v14 = vpop.eup %5688  ;;  %5696 = vrcp.f32 %v8069_v55 }
 0xaa1   : > { %v8071_v27 = vpop.eup %5690 }
 0xaa2   : > { %v2578_v51 = vadd.f32 %v2548_v0, %v10508_v24  ;;  %v2637_v0 = vmul.f32 %v8071_v27, %v8061_v26  ;;  %vm2642_vm4 = vweird.f32 %v8071_v27 }
 0xaa3   : > { %vm8121_vm8 = vmor %vm2641_vm9, %vm2642_vm4 }
 0xaa4   : > { %v5693_v57 = vpop.eup %5692 }
 0xaa7   : > { %v2500_v6 = vpop.f32.mrf.mxu2 }
 0xaa8   : > { %v2550_v38 = vadd.f32 %v2549_v5, %v2500_v6  ;;  %v8081_v5 = vadd.f32 1.0, %v5693_v57 }
 0xaaa   : > { %v2720_v19 = vand.u32 2147483647, %v8081_v5 }
 0xaaf   : > { %v2503_v31 = vpop.f32.mrf.mxu2 }
 0xab0   : > { %v2553_v29 = vadd.f32 %v2552_v58, %v2503_v31  ;;  %v5170_v58 = vmul.f32 -1.442695, %v2575_v59  ;;  %v5173_v31 = vmul.f32 -1.442695, %v2578_v51  ;;  %v8083_v59 = vpop.eup %5694 }
 0xab1   : > { %vm2657_vm6 = vweird.f32 %v8083_v59 }
 0xab2   : > { %v2580_v2 = vadd.f32 %v2553_v29, %v10506_v11  ;;  %v8075_v29 = vadd.f32 1.0, %v5689_v14  ;;  %vm8179_vm15 = vmor %vm2656_vm7, %vm2657_vm6 }
 0xab4   : > { %v5175_v56 = vmul.f32 -1.442695, %v2580_v2  ;;  %v2559_v2 = vpop.f32.mrf.mxu0  ;;  %vm2671_vm13 = vweird.f32 %v8075_v29 }
 0xab6   : > { %5698 = vpow2.f32 %v5175_v56  ;;  %v8086_v56 = vpop.eup %5696 }
 0xab7   : > { %v2505_v18 = vpop.f32.mrf.mxu2  ;;  %5700 = vpow2.f32 %v5170_v58  ;;  %vm2702_vm10 = vweird.f32 %v8086_v56 }
 0xab8   : > { %v2555_v30 = vadd.f32 %v2554_v4, %v2505_v18  ;;  %v10510_v4 = vld [vmem:[#allocation35_spill] sm:$0xff]  ;;  %5702 = vpow2.f32 %v5173_v31  ;;  %v10511_v31 = vld [vmem:[#allocation40_spill] sm:$0xff]  ;;  %vm8165_vm14 = vmor %vm2701_vm12, %vm2702_vm10  ;;  %vm8236_vm12 = vcmp.eq.f32.partialorder %v2720_v19, 8.507059e+37 }
 0xab9   : > { %v2579_v52 = vadd.f32 %v2550_v38, %v10510_v4  ;;  %5704 = vrcp.f32 %v8075_v29  ;;  %v2652_v38 = vmul.f32 %v8083_v59, %v8066_v44  ;;  %v2697_v4 = vmul.f32 %v8086_v56, %v8069_v55 }
 0xaba   : > { %v2581_v39 = vadd.f32 %v2555_v30, %v10509_v21  ;;  %v2638_v30 = vsub.f32 1.0, %v2637_v0  ;;  %5706 = vrcp.f32 %v8081_v5 }
 0xabb   : > { %v5174_v14 = vmul.f32 -1.442695, %v2579_v52  ;;  %v2653_v11 = vsub.f32 1.0, %v2652_v38  ;;  %v10512_v38 = vld [vmem:[#allocation43_spill] sm:$0xff] }
 0xabc   : > { %v5176_v51 = vmul.f32 -1.442695, %v2581_v39  ;;  %v5699_v21 = vpop.eup %5698  ;;  %v2639_v39 = vmul.f32 %v8071_v27, %v2638_v30  ;;  %v2562_v30 = vpop.f32.mrf.mxu0 }
 0xabd   : > { %v5701_v24 = vpop.eup %5700  ;;  %v2654_v35 = vmul.f32 %v8083_v59, %v2653_v11 }
 0xabe   : > { %v5703_v58 = vpop.eup %5702  ;;  %5708 = vpow2.f32 %v5176_v51  ;;  %v8099_v52 = vadd.f32 1.0, %v5701_v24  ;;  %v2640_v24 = vadd.f32 %v8071_v27, %v2639_v39 }
 0xabf   : > { %v2508_v6 = vpop.f32.mrf.mxu2  ;;  %5710 = vpow2.f32 %v5174_v14  ;;  %v8097_v0 = vpop.eup %5704  ;;  %v2698_v14 = vsub.f32 1.0, %v2697_v4  ;;  %v2662_v4 = vand.u32 2147483648, %v8066_v44 }
 0xac0   : > { %v2558_v18 = vadd.f32 %v2557_v25, %v2508_v6  ;;  %v8094_v25 = vadd.f32 1.0, %v5699_v21  ;;  %v8101_v6 = vadd.f32 1.0, %v5703_v58  ;;  %v2667_v21 = vmul.f32 %v8097_v0, %v8075_v29 }
 0xac1   : > { %v2645_v58 = vand.u32 2147483647, %v8061_v26  ;;  %v2663_v11 = vor.u32 1.1754944e-38, %v2662_v4  ;;  %v2707_v4 = vand.u32 2147483648, %v8069_v55  ;;  %vm2672_vm4 = vweird.f32 %v8097_v0 }
 0xac2   : > { %v2582_v57 = vadd.f32 %v2558_v18, %v10511_v31  ;;  %v8104_v18 = vpop.eup %5706  ;;  %5712 = vrcp.f32 %v8094_v25  ;;  %v2668_v41 = vsub.f32 1.0, %v2667_v21  ;;  %vm8207_vm7 = vmor %vm2671_vm13, %vm2672_vm4  ;;  %vm2731_vm13 = vweird.f32 %v8101_v6 }
 0xac3   : > { %5714 = vrcp.f32 %v8099_v52  ;;  %v2712_v53 = vmul.f32 %v8104_v18, %v8081_v5  ;;  %vm2646_vm5 = vcmp.eq.f32.partialorder %v2645_v58, 8.507059e+37 }
 0xac4   : > { %v5177_v15 = vmul.f32 -1.442695, %v2582_v57  ;;  %v5709_v31 = vpop.eup %5708  ;;  %5716 = vrcp.f32 %v8101_v6  ;;  %v2564_v39 = vpop.f32.mrf.mxu0 }
 0xac5   : > { %v8126_v17 = vadd.f32 1.0, %v5709_v31 }
 0xac6   : > { %5718 = vpow2.f32 %v5177_v15 }
 0xac7   : > { %v2510_v54 = vpop.f32.mrf.mxu2  ;;  %5720 = vrcp.f32 %v8126_v17 }
 0xac8   : > { %v2560_v51 = vadd.f32 %v2559_v2, %v2510_v54  ;;  %v2647_v54 = vand.u32 2147483648, %v8061_v26  ;;  %v5711_v2 = vpop.eup %5710  ;;  %v2644_v26 = vsel %vm8121_vm8, %v8071_v27, %v2640_v24  ;;  %v2713_v27 = vsub.f32 1.0, %v2712_v53 }
 0xac9   : > { %v8135_v48 = vpop.eup %5712  ;;  %v2655_v24 = vadd.f32 %v8083_v59, %v2654_v35  ;;  %vm2717_vm8 = vweird.f32 %v8104_v18 }
 0xaca   : > { %v2583_v57 = vadd.f32 %v2560_v51, %v10512_v38  ;;  %v2699_v51 = vmul.f32 %v8086_v56, %v2698_v14  ;;  %v8132_v38 = vadd.f32 1.0, %v5711_v2  ;;  %v2648_v15 = vor.u32 1.1754944e-38, %v2647_v54  ;;  %v8139_v31 = vpop.eup %5714 }
 0xacb   : > { %v8142_v58 = vpop.eup %5716  ;;  %v2669_v54 = vmul.f32 %v8097_v0, %v2668_v41  ;;  %v2757_v53 = vmul.f32 %v8135_v48, %v8094_v25  ;;  %v2682_v41 = vmul.f32 %v8139_v31, %v8099_v52 }
 0xacc   : > { %v5178_v45 = vmul.f32 -1.442695, %v2583_v57  ;;  %v2649_v14 = vsel %vm2646_vm5, %v2648_v15, %v2644_v26  ;;  %v2700_v2 = vadd.f32 %v8086_v56, %v2699_v51  ;;  %v5719_v57 = vpop.eup %5718  ;;  %5722 = vrcp.f32 %v8132_v38 }
 0xacd   : > { %v2705_v26 = vand.u32 2147483647, %v8069_v55  ;;  %v2675_v51 = vand.u32 2147483647, %v8075_v29  ;;  %v2714_v15 = vmul.f32 %v8104_v18, %v2713_v27  ;;  %v2677_v55 = vand.u32 2147483648, %v8075_v29  ;;  %v8190_v62 = vpop.eup %5720 }
 0xace   : > { %5724 = vpow2.f32 %v5178_v45  ;;  %v2727_v45 = vmul.f32 %v8142_v58, %v8101_v6  ;;  %v2659_v27 = vsel %vm8179_vm15, %v8083_v59, %v2655_v24  ;;  %v2758_v22 = vsub.f32 1.0, %v2757_v53 }
 0xacf   : > { %v2513_v37 = vpop.f32.mrf.mxu2  ;;  %v2683_v60 = vsub.f32 1.0, %v2682_v41  ;;  %v8193_v33 = vadd.f32 %v8097_v0, %v2669_v54  ;;  %vm2706_vm9 = vcmp.eq.f32.partialorder %v2705_v26, 8.507059e+37  ;;  %v2715_v9 = vadd.f32 %v8104_v18, %v2714_v15 }
 0xad0   : > { %v2563_v21 = vadd.f32 %v2562_v30, %v2513_v37  ;;  %v10515_v37 = vld [vmem:[#allocation44_spill] sm:$0xff]  ;;  %v2728_v24 = vsub.f32 1.0, %v2727_v45  ;;  %v2678_v53 = vor.u32 1.1754944e-38, %v2677_v55  ;;  %vm2716_vm5 = vweird.f32 %v8081_v5 }
 0xad1   : > { %v2722_v41 = vand.u32 2147483648, %v8081_v5  ;;  %v2772_v26 = vmul.f32 %v8190_v62, %v8126_v17  ;;  %v2674_v45 = vsel %vm8207_vm7, %v8097_v0, %v8193_v33  ;;  %vm8219_vm6 = vcmp.eq.f32.partialorder %v2675_v51, 8.507059e+37  ;;  %vm8227_vm10 = vmor %vm2716_vm5, %vm2717_vm8 }
 0xad2   : > { %v2584_v30 = vadd.f32 %v2563_v21, %v10515_v37  ;;  %v8172_v21 = vadd.f32 1.0, %v5719_v57  ;;  %v2704_v37 = vsel %vm8165_vm14, %v8086_v56, %v2700_v2  ;;  %v2708_v57 = vor.u32 1.1754944e-38, %v2707_v4  ;;  %v8196_v47 = vpop.eup %5722 }
 0xad3   : > { %v2664_v29 = vsel %vm8152_vm11, %v2663_v11, %v2659_v27  ;;  %v2719_v33 = vsel %vm8227_vm10, %v8104_v18, %v2715_v9  ;;  %v2729_v11 = vmul.f32 %v8142_v58, %v2728_v24  ;;  %v2742_v35 = vmul.f32 %v8196_v47, %v8132_v38 }
 0xad4   : > { %5726 = vtanh.f32 %v2584_v30  ;;  %v2709_v2 = vsel %vm2706_vm9, %v2708_v57, %v2704_v37  ;;  %v5725_v59 = vpop.eup %5724  ;;  %v2567_v30 = vpop.f32.mrf.mxu0  ;;  %v2723_v27 = vor.u32 1.1754944e-38, %v2722_v41  ;;  %vm2762_vm11 = vweird.f32 %v8135_v48 }
 0xad5   : > { %5728 = vrcp.f32 %v8172_v21  ;;  %v2820_v5 = vmul.f32 %v2709_v2, %v7788_v1  ;;  %v8243_v51 = vadd.f32 1.0, %v5725_v59  ;;  %v2773_v9 = vsub.f32 1.0, %v2772_v26 }
 0xad6   : > { %v2737_v18 = vand.u32 2147483648, %v8101_v6  ;;  %v2724_v2 = vsel %vm8236_vm12, %v2723_v27, %v2719_v33  ;;  %vm2761_vm14 = vweird.f32 %v8094_v25  ;;  %v2765_v59 = vand.u32 2147483647, %v8094_v25 }
 0xad7   : > { %v2515_v44 = vpop.f32.mrf.mxu2  ;;  %vm2732_vm15 = vweird.f32 %v8142_v58  ;;  %v2743_v24 = vsub.f32 1.0, %v2742_v35  ;;  %vm8264_vm4 = vmor %vm2761_vm14, %vm2762_vm11  ;;  %v2774_v26 = vmul.f32 %v8190_v62, %v2773_v9  ;;  %vm2687_vm9 = vweird.f32 %v8139_v31 }
 0xad8   : > { %v2565_v56 = vadd.f32 %v2564_v39, %v2515_v44  ;;  %v2759_v39 = vmul.f32 %v8135_v48, %v2758_v22  ;;  %v2767_v44 = vand.u32 2147483648, %v8094_v25  ;;  %v2821_v22 = vmul.f32 %v2724_v2, %v7836_v49  ;;  %vm8282_vm8 = vmor %vm2731_vm13, %vm2732_vm15 }
 0xad9   : > { %vm2766_vm5 = vcmp.eq.f32.partialorder %v2765_v59, 8.507059e+37  ;;  %vm2686_vm7 = vweird.f32 %v8099_v52  ;;  %vm2776_vm12 = vweird.f32 %v8126_v17  ;;  %vm2746_vm11 = vweird.f32 %v8132_v38 }
 0xada   : > { %v5727_v54 = vpop.eup %5726  ;;  %v2585_v4 = vadd.f32 %v2565_v56, %v6839_v3  ;;  %v2768_v33 = vor.u32 1.1754944e-38, %v2767_v44  ;;  %v2752_v2 = vand.u32 2147483648, %v8132_v38  ;;  %vm2747_vm13 = vweird.f32 %v8196_v47 }
 0xadb   : > { %v2824_v15 = vmul.f32 %v5727_v54, %v2649_v14  ;;  %v2684_v14 = vmul.f32 %v8139_v31, %v2683_v60  ;;  %v2760_v60 = vadd.f32 %v8135_v48, %v2759_v39  ;;  %v8249_v19 = vpop.eup %5728  ;;  %v2730_v54 = vadd.f32 %v8142_v58, %v2729_v11  ;;  %vm8331_vm15 = vmor %vm2746_vm11, %vm2747_vm13 }
 0xadc   : > { %5730 = vtanh.f32 %v2585_v4  ;;  %v2787_v41 = vmul.f32 %v8249_v19, %v8172_v21  ;;  %v2738_v11 = vor.u32 1.1754944e-38, %v2737_v18  ;;  %v2569_v55 = vpop.f32.mrf.mxu0  ;;  %v2753_v0 = vor.u32 1.1754944e-38, %v2752_v2 }
 0xadd   : > { %v8245_v1 = vadd.f32 %v2824_v15, %v2820_v5  ;;  %v2764_v25 = vsel %vm8264_vm4, %v8135_v48, %v2760_v60  ;;  %v2735_v15 = vand.u32 2147483647, %v8101_v6  ;;  %v2679_v48 = vsel %vm8219_vm6, %v2678_v53, %v2674_v45 }
 0xade   : > { %v2734_v49 = vsel %vm8282_vm8, %v8142_v58, %v2730_v54  ;;  %v2788_v27 = vsub.f32 1.0, %v2787_v41  ;;  %v2775_v60 = vadd.f32 %v8190_v62, %v2774_v26  ;;  %vm2777_vm6 = vweird.f32 %v8190_v62  ;;  %vm8344_vm8 = vmor %vm2686_vm7, %vm2687_vm9 }
 0xadf   : > { %v2518_v57 = vpop.f32.mrf.mxu2  ;;  %5732 = vtanh.f32 %v8245_v1  ;;  %v2685_v18 = vadd.f32 %v8139_v31, %v2684_v14  ;;  %vm2736_vm10 = vcmp.eq.f32.partialorder %v2735_v15, 8.507059e+37  ;;  %v2782_v58 = vand.u32 2147483648, %v8126_v17  ;;  %vm8314_vm14 = vmor %vm2776_vm12, %vm2777_vm6 }
 0xae0   : > { %v2568_v56 = vadd.f32 %v2567_v30, %v2518_v57  ;;  %5734 = vrcp.f32 %v8243_v51  ;;  %v2744_v30 = vmul.f32 %v8196_v47, %v2743_v24  ;;  %v2739_v44 = vsel %vm2736_vm10, %v2738_v11, %v2734_v49 }
 0xae1   : > { %v2789_v4 = vmul.f32 %v8249_v19, %v2788_v27  ;;  %v2783_v26 = vor.u32 1.1754944e-38, %v2782_v58  ;;  %v2690_v15 = vand.u32 2147483647, %v8099_v52  ;;  %v2797_v49 = vand.u32 2147483648, %v8172_v21 }
 0xae2   : > { %v5731_v37 = vpop.eup %5730  ;;  %v2586_v39 = vadd.f32 %v2568_v56, %v6765_v32  ;;  %v2780_v56 = vand.u32 2147483647, %v8126_v17  ;;  %v2745_v59 = vadd.f32 %v8196_v47, %v2744_v30  ;;  %vm2791_vm9 = vweird.f32 %v8172_v21 }
 0xae3   : > { %v2825_v5 = vmul.f32 %v5731_v37, %v2664_v29  ;;  %v2769_v29 = vsel %vm2766_vm5, %v2768_v33, %v2764_v25  ;;  %v2779_v37 = vsel %vm8314_vm14, %v8190_v62, %v2775_v60  ;;  %v2822_v25 = vmul.f32 %v2739_v44, %v7881_v13 }
 0xae4   : > { %5736 = vtanh.f32 %v2586_v39  ;;  %v2750_v39 = vand.u32 2147483647, %v8132_v38  ;;  %vm2781_vm4 = vcmp.eq.f32.partialorder %v2780_v56, 8.507059e+37  ;;  %v2749_v62 = vsel %vm8331_vm15, %v8196_v47, %v2745_v59 }
 0xae5   : > { %v5733_v35 = vpop.eup %5732  ;;  %v8293_v6 = vadd.f32 %v2825_v5, %v2821_v22  ;;  %v2692_v22 = vand.u32 2147483648, %v8099_v52  ;;  %v2784_v11 = vsel %vm2781_vm4, %v2783_v26, %v2779_v37  ;;  %vm2792_vm5 = vweird.f32 %v8249_v19 }
 0xae6   : > { %v8297_v53 = vmul.f32 %v5733_v35, %v2769_v29  ;;  %v8299_v45 = vpop.eup %5734  ;;  %v2790_v35 = vadd.f32 %v8249_v19, %v2789_v4  ;;  %v2689_v47 = vsel %vm8344_vm8, %v8139_v31, %v2685_v18  ;;  %vm2751_vm6 = vcmp.eq.f32.partialorder %v2750_v39, 8.507059e+37  ;;  %vm2793_vm10 = vmor %vm2791_vm9, %vm2792_vm5 }
 0xae7   : > { %v2520_v9 = vpop.f32.mrf.mxu2  ;;  %5738 = vtanh.f32 %v8293_v6  ;;  %v2802_v17 = vmul.f32 %v8299_v45, %v8243_v51  ;;  %v2693_v29 = vor.u32 1.1754944e-38, %v2692_v22  ;;  %v2754_v52 = vsel %vm2751_vm6, %v2753_v0, %v2749_v62 }
 0xae8   : > { %v2570_v57 = vadd.f32 %v2569_v55, %v2520_v9  ;;  %2840 = vst [vmem:[%s6949_s26 + $0x60] sm:$0xff] %v8297_v53  ;;  %v2795_v27 = vand.u32 2147483647, %v8172_v21  ;;  %vm2691_vm7 = vcmp.eq.f32.partialorder %v2690_v15, 8.507059e+37  ;;  %v2794_v9 = vsel %vm2793_vm10, %v8249_v19, %v2790_v35 }
 0xae9   : > { %v2694_v55 = vsel %vm2691_vm7, %v2693_v29, %v2689_v47  ;;  %v2823_v58 = vmul.f32 %v2754_v52, %v7904_v12  ;;  %vm2807_vm11 = vweird.f32 %v8299_v45  ;;  %v2812_v14 = vand.u32 2147483648, %v8243_v51  ;;  %v10543_v52 = vld [vmem:[#allocation11_spill] sm:$0xff] }
 0xaea   : > { %v5737_v24 = vpop.eup %5736  ;;  %v2587_v54 = vadd.f32 %v2570_v57, %v6953_v40  ;;  %v2798_v57 = vor.u32 1.1754944e-38, %v2797_v49  ;;  %vm2796_vm12 = vcmp.eq.f32.partialorder %v2795_v27, 8.507059e+37  ;;  %vm2806_vm13 = vweird.f32 %v8243_v51 }
 0xaeb   : > { %v2826_v41 = vmul.f32 %v5737_v24, %v2679_v48  ;;  %v2803_v48 = vsub.f32 1.0, %v2802_v17  ;;  %v2810_v12 = vand.u32 2147483647, %v8243_v51  ;;  %vm2808_vm14 = vmor %vm2806_vm13, %vm2807_vm11  ;;  %v2846_v17 = vpack.c.bf16 %v8293_v6, %v8245_v1 }
 0xaec   : > { %5740 = vtanh.f32 %v2587_v54  ;;  %v2799_v2 = vsel %vm2796_vm12, %v2798_v57, %v2794_v9  ;;  %v2813_v54 = vor.u32 1.1754944e-38, %v2812_v14 }
 0xaed   : > { %v5739_v33 = vpop.eup %5738  ;;  %v8338_v13 = vadd.f32 %v2826_v41, %v2822_v25  ;;  %v2804_v31 = vmul.f32 %v8299_v45, %v2803_v48  ;;  %vm2811_vm15 = vcmp.eq.f32.partialorder %v2810_v12, 8.507059e+37  ;;  %v10550_v12 = vld [vmem:[#allocation16_spill] sm:$0xff] }
 0xaee   : > { %v2837_v30 = vmul.f32 %v5739_v33, %v2784_v11  ;;  %v8425_v33 = vld [vmem:[%s10185_s6 + $0x38] sm:$0xff] }
 0xaef   : > { %5742 = vtanh.f32 %v8338_v13  ;;  %v2805_v21 = vadd.f32 %v8299_v45, %v2804_v31  ;;  %10542 = vst [vmem:[#allocation20_spill] sm:$0xff] %v8425_v33  ;;  %v10545_v31 = vld [vmem:[#allocation15_spill] sm:$0xff] }
 0xaf0   : > { %2841 = vst [vmem:[%s6949_s26 + $0x68] sm:$0xff] %v2837_v30  ;;  %v2844_v51 = vpack.c.bf16 %v2837_v30, %v8297_v53 }
 0xaf1   : > { %v2809_v24 = vsel %vm2808_vm14, %v8299_v45, %v2805_v21  ;;  %v10548_v21 = vld [vmem:[#allocation12_spill] sm:$0xff] }
 0xaf2   : > { %v5741_v60 = vpop.eup %5740  ;;  %v2814_v37 = vsel %vm2811_vm15, %v2813_v54, %v2809_v24 }
 0xaf3   : > { %v2827_v18 = vmul.f32 %v5741_v60, %v2694_v55  ;;  %v10544_v60 = vld [vmem:[#allocation13_spill] sm:$0xff] }
 0xaf5   : > { %v5743_v44 = vpop.eup %5742  ;;  %v8361_v56 = vadd.f32 %v2827_v18, %v2823_v58  ;;  %v10546_v58 = vld [vmem:[#allocation9_spill] sm:$0xff] }
 0xaf6   : > { %v2838_v59 = vmul.f32 %v5743_v44, %v2799_v2  ;;  %v10547_v44 = vld [vmem:[#allocation10_spill] sm:$0xff] }
 0xaf7   : > { %v2847_v19 = vpack.c.bf16 %v8361_v56, %v8338_v13  ;;  %5744 = vtanh.f32 %v8361_v56 }
 0xaf8   : > { %2842 = vst [vmem:[%s6949_s26 + $0x70] sm:$0xff] %v2838_v59 }
 0xaf9   : > { %2854 = vmatpush.bf16.msra.mxu3 %v2847_v19  ;;  %v10549_v19 = vld [vmem:[#allocation8_spill] sm:$0xff] }
 0xafd   : > { %v5745_v4 = vpop.eup %5744  ;;  %2855 = vmatpush.bf16.msra.mxu3 %v2846_v17  ;;  %v10551_v17 = vld [vmem:[#allocation7_spill] sm:$0xff] }
 0xafe   : > { %v2839_v41 = vmul.f32 %v5745_v4, %v2814_v37  ;;  %v10552_v4 = vld [vmem:[#allocation17_spill] sm:$0xff] }
 0xb00   : > { %5179 = vmatmul.msk.bf16.vlgmr.msra.gmra.mxu3 %vm690_vm1, %v7924_v42  ;;  %2843 = vst [vmem:[%s6949_s26 + $0x78] sm:$0xff] %v2839_v41  ;;  %v2845_v39 = vpack.c.bf16 %v2839_v41, %v2838_v59  ;;  %v8392_v42 = vld [vmem:[%s10182_s3 + $0x18] sm:$0xff]  ;;  %v10553_v41 = vld [vmem:[#allocation6_spill] sm:$0xff] }
 0xb02   : > { %2883 = vmatpush.bf16.msrb.mxu1 %v2845_v39 }
 0xb06   : > { %2884 = vmatpush.bf16.msrb.mxu1 %v2844_v51 }
 0xb09   : > { %5183 = vmatmul.msk.bf16.vlgmr.msrb.gmra.mxu1 %vm690_vm1, %v7936_v43 }
 0xb0a   : > { %3024 = vmatpush.bf16.msra.mxu1 %v2845_v39 }
 0xb0e   : > { %3025 = vmatpush.bf16.msra.mxu1 %v2844_v51 }
 0xb10   : > { %5180 = vmatmul.msk.bf16.gmra.mxu3 %vm690_vm1, %v7943_v23 }
 0xb19   : > { %5184 = vmatmul.msk.bf16.gmra.mxu1 %vm690_vm1, %v7950_v46 }
 0xb20   : > { %5181 = vmatmul.msk.bf16.gmra.mxu3 %vm690_vm1, %v7957_v7 }
 0xb29   : > { %5185 = vmatmul.msk.bf16.gmra.mxu1 %vm690_vm1, %v7964_v8 }
 0xb30   : > { %5182 = vmatmul.msk.bf16.gmra.mxu3 %vm690_vm1, %v8392_v42 }
 0xb39   : > { %5186 = vmatmul.msk.bf16.gmra.mxu1 %vm690_vm1, %v7973_v20 }
 0xb49   : > { %5196 = vmatmul.msk.bf16.vlgmr.msra.gmra.mxu1 %vm690_vm1, %v8000_v34  ;;  %v8411_v34 = vld [vmem:[%s10185_s6 + $0x28] sm:$0xff] }
 0xb4a   : > { %10540 = vst [vmem:[#allocation31_spill] sm:$0xff] %v8411_v34 }
 0xb59   : > { %5197 = vmatmul.msk.bf16.gmra.mxu1 %vm690_vm1, %v8007_v36 }
 0xb69   : > { %5198 = vmatmul.msk.bf16.gmra.mxu1 %vm690_vm1, %v8014_v63 }
 0xb79   : > { %5199 = vmatmul.msk.bf16.gmra.mxu1 %vm690_vm1, %v8021_v50 }
 0xb83   : > { %v2857_v43 = vpop.f32.mrf.mxu3 }
 0xb86   : > { %v2886_v23 = vpop.f32.mrf.mxu1 }
 0xb87   : > { %v2887_v46 = vadd.f32 %v2886_v23, %v2857_v43  ;;  %v10554_v23 = vld [vmem:[#allocation18_spill] sm:$0xff] }
 0xb89   : > { %5200 = vmatmul.msk.bf16.gmra.mxu1 %vm690_vm1, %v8028_v28  ;;  %v8418_v28 = vld [vmem:[%s10185_s6 + $0x30] sm:$0xff]  ;;  %v2906_v37 = vadd.f32 %v2887_v46, %v10552_v4 }
 0xb8a   : > { %10541 = vst [vmem:[#allocation26_spill] sm:$0xff] %v8418_v28 }
 0xb8b   : > { %v2859_v7 = vpop.f32.mrf.mxu3 }
 0xb8e   : > { %v2888_v8 = vpop.f32.mrf.mxu1 }
 0xb8f   : > { %v2889_v9 = vadd.f32 %v2888_v8, %v2859_v7 }
 0xb91   : > { %v2907_v24 = vadd.f32 %v2889_v9, %v10550_v12 }
 0xb93   : > { %v2862_v20 = vpop.f32.mrf.mxu3  ;;  %v2915_v7 = vadd.f32 %v2907_v24, %v10554_v23 }
 0xb96   : > { %v2891_v53 = vpop.f32.mrf.mxu1 }
 0xb97   : > { %v2892_v29 = vadd.f32 %v2891_v53, %v2862_v20  ;;  %v10555_v53 = vld [vmem:[#allocation14_spill] sm:$0xff] }
 0xb99   : > { %5201 = vmatmul.msk.bf16.gmra.mxu1 %vm690_vm1, %v8411_v34  ;;  %v2908_v59 = vadd.f32 %v2892_v29, %v10548_v21 }
 0xb9b   : > { %v2864_v36 = vpop.f32.mrf.mxu3  ;;  %v2916_v39 = vadd.f32 %v2908_v59, %v10553_v41 }
 0xb9e   : > { %v2893_v63 = vpop.f32.mrf.mxu1 }
 0xb9f   : > { %v2894_v35 = vadd.f32 %v2893_v63, %v2864_v36  ;;  %v2914_v36 = vadd.f32 %v2906_v37, %v10555_v53 }
 0xba1   : > { %v2909_v18 = vadd.f32 %v2894_v35, %v10545_v31 }
 0xba3   : > { %v2867_v50 = vpop.f32.mrf.mxu3  ;;  %v2917_v54 = vadd.f32 %v2909_v18, %v10551_v17 }
 0xba6   : > { %v2896_v45 = vpop.f32.mrf.mxu1 }
 0xba7   : > { %v2897_v11 = vadd.f32 %v2896_v45, %v2867_v50 }
 0xba9   : > { %5202 = vmatmul.msk.bf16.gmra.mxu1 %vm690_vm1, %v8418_v28  ;;  %v2910_v27 = vadd.f32 %v2897_v11, %v10543_v52 }
 0xbab   : > { %v2869_v25 = vpop.f32.mrf.mxu3  ;;  %v2918_v14 = vadd.f32 %v2910_v27, %v10549_v19 }
 0xbae   : > { %v2898_v26 = vpop.f32.mrf.mxu1 }
 0xbaf   : > { %v2899_v62 = vadd.f32 %v2898_v26, %v2869_v25 }
 0xbb1   : > { %v2911_v30 = vadd.f32 %v2899_v62, %v6508_v16 }
 0xbb3   : > { %v2872_v15 = vpop.f32.mrf.mxu3  ;;  %v2919_v57 = vadd.f32 %v2911_v30, %v10546_v58 }
 0xbb6   : > { %v2901_v22 = vpop.f32.mrf.mxu1 }
 0xbb7   : > { %v2902_v5 = vadd.f32 %v2901_v22, %v2872_v15 }
 0xbb9   : > { %5203 = vmatmul.msk.bf16.gmra.mxu1 %vm690_vm1, %v8425_v33  ;;  %v2912_v0 = vadd.f32 %v2902_v5, %v6504_v10  ;;  %v8448_v5 = vld [vmem:[%s10184_s5] sm:$0xf] }
 0xbba   : > { %10556 = vst [vmem:[#allocation22_spill] sm:$0xff] %v8448_v5 }
 0xbbb   : > { %v2874_v48 = vpop.f32.mrf.mxu3  ;;  %v2920_v49 = vadd.f32 %v2912_v0, %v6498_v61 }
 0xbbd   : > { %5746 = vtanh.f32 %v2920_v49 }
 0xbbe   : > { %v2903_v38 = vpop.f32.mrf.mxu1 }
 0xbbf   : > { %v2904_v47 = vadd.f32 %v2903_v38, %v2874_v48 }
 0xbc1   : > { %v2913_v55 = vadd.f32 %v2904_v47, %v10544_v60 }
 0xbc3   : > { %v2921_v2 = vadd.f32 %v2913_v55, %v10547_v44  ;;  %v5747_v51 = vpop.eup %5746 }
 0xbc5   : > { %5748 = vtanh.f32 %v2921_v2 }
 0xbc6   : > { %5750 = vtanh.f32 %v2919_v57 }
 0xbc7   : > { %5752 = vtanh.f32 %v2918_v14 }
 0xbc8   : > { %5754 = vtanh.f32 %v2917_v54  ;;  %v6127_v54 = vld [vmem:[%s6354_s14 + $0x20] sm:$0xff] }
 0xbc9   : > { %5756 = vtanh.f32 %v2916_v39 }
 0xbca   : > { %5758 = vtanh.f32 %v2915_v7  ;;  %v8464_v7 = vld [vmem:[%s10186_s7 + $0x8] sm:$0xff] }
 0xbcb   : > { %v5749_v43 = vpop.eup %5748  ;;  %5760 = vtanh.f32 %v2914_v36  ;;  %10558 = vst [vmem:[#allocation28_spill] sm:$0xff] %v8464_v7  ;;  %v8485_v36 = vld [vmem:[%s10186_s7 + $0x20] sm:$0xff] }
 0xbcc   : > { %v2933_v8 = vpack.c.bf16 %v5749_v43, %v5747_v51  ;;  %v5751_v20 = vpop.eup %5750  ;;  %v8457_v43 = vld [vmem:[%s10186_s7] sm:$0xff]  ;;  %10561 = vst [vmem:[#allocation23_spill] sm:$0xff] %v8485_v36 }
 0xbcd   : > { %v5753_v63 = vpop.eup %5752  ;;  %10557 = vst [vmem:[#allocation24_spill] sm:$0xff] %v8457_v43 }
 0xbce   : > { %2938 = vmatpush.bf16.msrb.mxu3 %v2933_v8  ;;  %v2932_v50 = vpack.c.bf16 %v5751_v20, %v5753_v63  ;;  %v5755_v45 = vpop.eup %5754  ;;  %v8471_v8 = vld [vmem:[%s10186_s7 + $0x10] sm:$0xff]  ;;  %v8478_v20 = vld [vmem:[%s10186_s7 + $0x18] sm:$0xff]  ;;  %v8492_v63 = vld [vmem:[%s10186_s7 + $0x28] sm:$0xff] }
 0xbcf   : > { %v5757_v46 = vpop.eup %5756  ;;  %10559 = vst [vmem:[#allocation19_spill] sm:$0xff] %v8471_v8 }
 0xbd0   : > { %v2931_v25 = vpack.c.bf16 %v5755_v45, %v5757_v46  ;;  %v5759_v26 = vpop.eup %5758  ;;  %10560 = vst [vmem:[#allocation21_spill] sm:$0xff] %v8478_v20  ;;  %v3027_v45 = vpop.f32.mrf.mxu1 }
 0xbd1   : > { %v5761_v15 = vpop.eup %5760  ;;  %10562 = vst [vmem:[#allocation25_spill] sm:$0xff] %v8492_v63 }
 0xbd2   : > { %2939 = vmatpush.bf16.msrb.mxu3 %v2932_v50  ;;  %v2930_v22 = vpack.c.bf16 %v5759_v26, %v5761_v15  ;;  %v8499_v50 = vld [vmem:[%s10186_s7 + $0x30] sm:$0xff] }
 0xbd3   : > { %10563 = vst [vmem:[#allocation27_spill] sm:$0xff] %v8499_v50 }
 0xbd6   : > { %2940 = vmatpush.bf16.msrb.mxu3 %v2931_v25  ;;  %v8506_v25 = vld [vmem:[%s10186_s7 + $0x38] sm:$0xff] }
 0xbd7   : > { %10564 = vst [vmem:[#allocation29_spill] sm:$0xff] %v8506_v25 }
 0xbd8   : > { %v3029_v46 = vpop.f32.mrf.mxu1 }
 0xbda   : > { %2941 = vmatpush.bf16.msrb.mxu3 %v2930_v22 }
 0xbdd   : > { %5187 = vmatmul.msk.bf16.vlgmr.msrb.gmra.mxu3 %vm628_vm0, %v8448_v5 }
 0xbe0   : > { %v3032_v26 = vpop.f32.mrf.mxu1 }
 0xbe8   : > { %v3034_v22 = vpop.f32.mrf.mxu1 }
 0xc60   : > { %v2943_v62 = vpop.f32.mrf.mxu3 }
 0xc61   : > { %v2947_v0 = vrot.slane %v2943_v62, 4 }
 0xc63   : > { %v2948_v11 = vmax.f32 %v2943_v62, %v2947_v0 }
 0xc65   : > { %v2949_v48 = vrot.slane %v2948_v11, 2 }
 0xc67   : > { %v2950_v38 = vmax.f32 %v2948_v11, %v2949_v48  ;;  %v3037_v11 = vpop.f32.mrf.mxu1 }
 0xc68   : > { %v2945_v35 = vpop.f32.mrf.mxu3 }
 0xc69   : > { %v2951_v30 = vrot.slane %v2950_v38, 1 }
 0xc6b   : > { %v2952_v47 = vmax.f32 %v2950_v38, %v2951_v30 }
 0xc6d   : > { %v2953_v49 = vsub.f32 %v2943_v62, %v2952_v47 }
 0xc6f   : > { %v2954_v29 = vmul.f32 1.442695, %v2953_v49  ;;  %v3039_v35 = vpop.f32.mrf.mxu1 }
 0xc71   : > { %5762 = vpow2.f32 %v2954_v29 }
 0xc77   : > { %v5763_v27 = vpop.eup %5762  ;;  %v3042_v47 = vpop.f32.mrf.mxu1 }
 0xc78   : > { %v2956_v55 = vrot.slane %v5763_v27, 4 }
 0xc7a   : > { %v2957_v9 = vadd.f32 %v5763_v27, %v2956_v55  ;;  %v10565_v55 = vld [vmem:[#allocation36_spill] sm:$0xff] }
 0xc7c   : > { %v2958_v18 = vrot.slane %v2957_v9, 2 }
 0xc7e   : > { %v2959_v57 = vadd.f32 %v2958_v18, %v2957_v9 }
 0xc80   : > { %v2960_v2 = vrot.slane %v2959_v57, 1 }
 0xc82   : > { %v2961_v59 = vadd.f32 %v2960_v2, %v2959_v57 }
 0xc84   : > { %5764 = vrcp.f32 %v2961_v59 }
 0xc8a   : > { %v5765_v14 = vpop.eup %5764 }
 0xc8b   : > { %v2963_v24 = vmul.f32 %v5765_v14, %v5763_v27  ;;  %v3044_v27 = vpop.f32.mrf.mxu1 }
 0xc8d   : > { %v2964_v37 = vmul.f32 %v6127_v54, %v2963_v24  ;;  %v10566_v24 = vld [vmem:[#allocation37_spill] sm:$0xff] }
 0xc8f   : > { %v2965_v39 = vpack.c.bf16 %v2964_v37, %v2964_v37  ;;  %v10567_v37 = vld [vmem:[#allocation38_spill] sm:$0xff] }
 0xc91   : > { %v2967_v51 = vsel %vm921_vm2, %v2965_v39, 0 }
 0xc92   : > { %2976 = vmatpush.bf16.msra.mxu3 %v2967_v51 }
 0xc93   : > { %v3047_v2 = vpop.f32.mrf.mxu1 }
 0xc95   : > { %5188 = vmatmul.msk.bf16.vlgmr.msra.gmra.mxu3 %vm896_vm3, %v8457_v43 }
 0xca5   : > { %5189 = vmatmul.msk.bf16.gmra.mxu3 %vm896_vm3, %v8464_v7 }
 0xcb5   : > { %5190 = vmatmul.msk.bf16.gmra.mxu3 %vm896_vm3, %v8471_v8 }
 0xcc5   : > { %5191 = vmatmul.msk.bf16.gmra.mxu3 %vm896_vm3, %v8478_v20 }
 0xcd5   : > { %5192 = vmatmul.msk.bf16.gmra.mxu3 %vm896_vm3, %v8485_v36 }
 0xce5   : > { %5193 = vmatmul.msk.bf16.gmra.mxu3 %vm896_vm3, %v8492_v63 }
 0xcf5   : > { %5194 = vmatmul.msk.bf16.gmra.mxu3 %vm896_vm3, %v8499_v50  ;;  %v3049_v50 = vpop.f32.mrf.mxu1 }
 0xd05   : > { %5195 = vmatmul.msk.bf16.gmra.mxu3 %vm896_vm3, %v8506_v25 }
 0xd18   : > { %v2978_v15 = vpop.f32.mrf.mxu3 }
 0xd19   : > { %v3028_v62 = vadd.f32 %v3027_v45, %v2978_v15 }
 0xd1b   : > { %v3067_v9 = vadd.f32 %v3028_v62, %v10565_v55  ;;  %v10569_v62 = vld [vmem:[#allocation39_spill] sm:$0xff] }
 0xd1d   : > { %v5204_v14 = vmul.f32 -1.442695, %v3067_v9 }
 0xd1f   : > { %5766 = vpow2.f32 %v5204_v14 }
 0xd20   : > { %v2980_v0 = vpop.f32.mrf.mxu3 }
 0xd21   : > { %v3030_v57 = vadd.f32 %v3029_v46, %v2980_v0 }
 0xd23   : > { %v3068_v54 = vadd.f32 %v3030_v57, %v10566_v24 }
 0xd25   : > { %v5205_v45 = vmul.f32 -1.442695, %v3068_v54  ;;  %v5767_v63 = vpop.eup %5766 }
 0xd27   : > { %5768 = vpow2.f32 %v5205_v45  ;;  %v3052_v45 = vpop.f32.mrf.mxu1 }
 0xd28   : > { %v2983_v48 = vpop.f32.mrf.mxu3 }
 0xd29   : > { %v3033_v38 = vadd.f32 %v3032_v26, %v2983_v48  ;;  %v10568_v48 = vld [vmem:[#allocation32_spill] sm:$0xff] }
 0xd2b   : > { %v3069_v25 = vadd.f32 %v3033_v38, %v10568_v48  ;;  %v10570_v38 = vld [vmem:[#allocation41_spill] sm:$0xff] }
 0xd2d   : > { %v5206_v0 = vmul.f32 -1.442695, %v3069_v25  ;;  %v10572_v25 = vld [vmem:[#allocation34_spill] sm:$0xff] }
 0xd30   : > { %v2985_v30 = vpop.f32.mrf.mxu3 }
 0xd31   : > { %v3035_v57 = vadd.f32 %v3034_v22, %v2985_v30 }
 0xd38   : > { %v2988_v49 = vpop.f32.mrf.mxu3 }
 0xd39   : > { %v3038_v59 = vadd.f32 %v3037_v11, %v2988_v49  ;;  %v8515_v49 = vadd.f32 1.0, %v5767_v63 }
 0xd3b   : > { %v3071_v39 = vadd.f32 %v3038_v59, %v10567_v37  ;;  %v5769_v37 = vpop.eup %5768  ;;  %vm3136_vm8 = vweird.f32 %v8515_v49 }
 0xd3d   : > { %v5208_v26 = vmul.f32 -1.442695, %v3071_v39 }
 0xd3f   : > { %5770 = vpow2.f32 %v5208_v26  ;;  %v8520_v26 = vadd.f32 1.0, %v5769_v37 }
 0xd40   : > { %v2990_v29 = vpop.f32.mrf.mxu3  ;;  %5772 = vpow2.f32 %v5206_v0 }
 0xd41   : > { %v3040_v15 = vadd.f32 %v3039_v35, %v2990_v29  ;;  %5774 = vrcp.f32 %v8515_v49  ;;  %v10571_v29 = vld [vmem:[#allocation33_spill] sm:$0xff]  ;;  %v3155_v20 = vand.u32 2147483647, %v8520_v26  ;;  %vm3151_vm9 = vweird.f32 %v8520_v26 }
 0xd42   : > { %v3070_v39 = vadd.f32 %v3035_v57, %v10571_v29  ;;  %v10573_v57 = vld [vmem:[#allocation42_spill] sm:$0xff] }
 0xd43   : > { %v3072_v46 = vadd.f32 %v3040_v15, %v10569_v62  ;;  %vm8606_vm12 = vcmp.eq.f32.partialorder %v3155_v20, 8.507059e+37 }
 0xd45   : > { %v5209_v59 = vmul.f32 -1.442695, %v3072_v46  ;;  %v5771_v54 = vpop.eup %5770 }
 0xd46   : > { %v8523_v15 = vadd.f32 1.0, %v5771_v54 }
 0xd47   : > { %5776 = vpow2.f32 %v5209_v59 }
 0xd48   : > { %v2993_v18 = vpop.f32.mrf.mxu3  ;;  %5778 = vrcp.f32 %v8520_v26  ;;  %vm3196_vm11 = vweird.f32 %v8523_v15 }
 0xd49   : > { %v3043_v14 = vadd.f32 %v3042_v47, %v2993_v18  ;;  %v5773_v18 = vpop.eup %5772  ;;  %5780 = vrcp.f32 %v8523_v15 }
 0xd4a   : > { %v8525_v0 = vpop.eup %5774 }
 0xd4b   : > { %v3073_v63 = vadd.f32 %v3043_v14, %v10572_v25  ;;  %v3132_v14 = vmul.f32 %v8525_v0, %v8515_v49  ;;  %vm3137_vm4 = vweird.f32 %v8525_v0 }
 0xd4c   : > { %vm8575_vm5 = vmor %vm3136_vm8, %vm3137_vm4 }
 0xd4d   : > { %v5777_v37 = vpop.eup %5776 }
 0xd50   : > { %v2995_v51 = vpop.f32.mrf.mxu3 }
 0xd51   : > { %v3045_v46 = vadd.f32 %v3044_v27, %v2995_v51  ;;  %v8535_v27 = vadd.f32 1.0, %v5777_v37 }
 0xd53   : > { %v3215_v53 = vand.u32 2147483647, %v8535_v27 }
 0xd58   : > { %v2998_v11 = vpop.f32.mrf.mxu3 }
 0xd59   : > { %v3048_v9 = vadd.f32 %v3047_v2, %v2998_v11  ;;  %v5207_v2 = vmul.f32 -1.442695, %v3070_v39  ;;  %v5210_v11 = vmul.f32 -1.442695, %v3073_v63  ;;  %v8537_v39 = vpop.eup %5778 }
 0xd5a   : > { %vm3152_vm7 = vweird.f32 %v8537_v39 }
 0xd5b   : > { %v3075_v35 = vadd.f32 %v3048_v9, %v10570_v38  ;;  %v8529_v9 = vadd.f32 1.0, %v5773_v18  ;;  %vm8633_vm15 = vmor %vm3151_vm9, %vm3152_vm7 }
 0xd5d   : > { %v5212_v30 = vmul.f32 -1.442695, %v3075_v35  ;;  %v3054_v35 = vpop.f32.mrf.mxu1  ;;  %vm3166_vm13 = vweird.f32 %v8529_v9 }
 0xd5f   : > { %5782 = vpow2.f32 %v5212_v30  ;;  %v8540_v30 = vpop.eup %5780 }
 0xd60   : > { %v3000_v22 = vpop.f32.mrf.mxu3  ;;  %5784 = vpow2.f32 %v5207_v2  ;;  %vm3197_vm10 = vweird.f32 %v8540_v30 }
 0xd61   : > { %v3050_v47 = vadd.f32 %v3049_v50, %v3000_v22  ;;  %v10574_v50 = vld [vmem:[#allocation35_spill] sm:$0xff]  ;;  %5786 = vpow2.f32 %v5210_v11  ;;  %v10575_v11 = vld [vmem:[#allocation40_spill] sm:$0xff]  ;;  %vm8619_vm14 = vmor %vm3196_vm11, %vm3197_vm10  ;;  %vm8690_vm11 = vcmp.eq.f32.partialorder %v3215_v53, 8.507059e+37 }
 0xd62   : > { %v3074_v54 = vadd.f32 %v3045_v46, %v10574_v50  ;;  %5788 = vrcp.f32 %v8529_v9  ;;  %v3147_v46 = vmul.f32 %v8537_v39, %v8520_v26  ;;  %v3192_v50 = vmul.f32 %v8540_v30, %v8523_v15 }
 0xd63   : > { %v3076_v59 = vadd.f32 %v3050_v47, %v10573_v57  ;;  %v3133_v47 = vsub.f32 1.0, %v3132_v14  ;;  %5790 = vrcp.f32 %v8535_v27 }
 0xd64   : > { %v5211_v18 = vmul.f32 -1.442695, %v3074_v54  ;;  %v3148_v38 = vsub.f32 1.0, %v3147_v46  ;;  %v10576_v46 = vld [vmem:[#allocation43_spill] sm:$0xff] }
 0xd65   : > { %v5213_v63 = vmul.f32 -1.442695, %v3076_v59  ;;  %v5783_v57 = vpop.eup %5782  ;;  %v3134_v59 = vmul.f32 %v8525_v0, %v3133_v47  ;;  %v3057_v47 = vpop.f32.mrf.mxu1 }
 0xd66   : > { %v5785_v25 = vpop.eup %5784  ;;  %v3149_v24 = vmul.f32 %v8537_v39, %v3148_v38 }
 0xd67   : > { %v5787_v2 = vpop.eup %5786  ;;  %5792 = vpow2.f32 %v5213_v63  ;;  %v8553_v54 = vadd.f32 1.0, %v5785_v25  ;;  %v3135_v25 = vadd.f32 %v8525_v0, %v3134_v59 }
 0xd68   : > { %v3003_v51 = vpop.f32.mrf.mxu3  ;;  %5794 = vpow2.f32 %v5211_v18  ;;  %v8551_v14 = vpop.eup %5788  ;;  %v3193_v18 = vsub.f32 1.0, %v3192_v50  ;;  %v3157_v50 = vand.u32 2147483648, %v8520_v26 }
 0xd69   : > { %v3053_v22 = vadd.f32 %v3052_v45, %v3003_v51  ;;  %v8548_v45 = vadd.f32 1.0, %v5783_v57  ;;  %v8555_v51 = vadd.f32 1.0, %v5787_v2  ;;  %v3162_v57 = vmul.f32 %v8551_v14, %v8529_v9 }
 0xd6a   : > { %v3140_v2 = vand.u32 2147483647, %v8515_v49  ;;  %v3158_v38 = vor.u32 1.1754944e-38, %v3157_v50  ;;  %v3202_v50 = vand.u32 2147483648, %v8523_v15  ;;  %vm3167_vm4 = vweird.f32 %v8551_v14 }
 0xd6b   : > { %v3077_v37 = vadd.f32 %v3053_v22, %v10575_v11  ;;  %v8558_v22 = vpop.eup %5790  ;;  %5796 = vrcp.f32 %v8548_v45  ;;  %v3163_v55 = vsub.f32 1.0, %v3162_v57  ;;  %vm8661_vm9 = vmor %vm3166_vm13, %vm3167_vm4  ;;  %vm3226_vm13 = vweird.f32 %v8555_v51 }
 0xd6c   : > { %5798 = vrcp.f32 %v8553_v54  ;;  %v3207_v48 = vmul.f32 %v8558_v22, %v8535_v27  ;;  %vm3141_vm6 = vcmp.eq.f32.partialorder %v3140_v2, 8.507059e+37 }
 0xd6d   : > { %v5214_v62 = vmul.f32 -1.442695, %v3077_v37  ;;  %v5793_v11 = vpop.eup %5792  ;;  %5800 = vrcp.f32 %v8555_v51  ;;  %v3059_v59 = vpop.f32.mrf.mxu1 }
 0xd6e   : > { %v8580_v36 = vadd.f32 1.0, %v5793_v11 }
 0xd6f   : > { %5802 = vpow2.f32 %v5214_v62 }
 0xd70   : > { %v3005_v29 = vpop.f32.mrf.mxu3  ;;  %5804 = vrcp.f32 %v8580_v36 }
 0xd71   : > { %v3055_v63 = vadd.f32 %v3054_v35, %v3005_v29  ;;  %v3142_v29 = vand.u32 2147483648, %v8515_v49  ;;  %v5795_v35 = vpop.eup %5794  ;;  %v3139_v49 = vsel %vm8575_vm5, %v8525_v0, %v3135_v25  ;;  %v3208_v0 = vsub.f32 1.0, %v3207_v48 }
 0xd72   : > { %v8589_v8 = vpop.eup %5796  ;;  %v3150_v25 = vadd.f32 %v8537_v39, %v3149_v24  ;;  %vm3212_vm5 = vweird.f32 %v8558_v22 }
 0xd73   : > { %v3078_v37 = vadd.f32 %v3055_v63, %v10576_v46  ;;  %v3194_v63 = vmul.f32 %v8540_v30, %v3193_v18  ;;  %v8586_v46 = vadd.f32 1.0, %v5795_v35  ;;  %v3143_v62 = vor.u32 1.1754944e-38, %v3142_v29  ;;  %v8593_v11 = vpop.eup %5798 }
 0xd74   : > { %v8596_v2 = vpop.eup %5800  ;;  %v3164_v29 = vmul.f32 %v8551_v14, %v3163_v55  ;;  %v3252_v48 = vmul.f32 %v8589_v8, %v8548_v45  ;;  %v3177_v55 = vmul.f32 %v8593_v11, %v8553_v54 }
 0xd75   : > { %v5215_v7 = vmul.f32 -1.442695, %v3078_v37  ;;  %v3144_v18 = vsel %vm3141_vm6, %v3143_v62, %v3139_v49  ;;  %v3195_v35 = vadd.f32 %v8540_v30, %v3194_v63  ;;  %v5803_v37 = vpop.eup %5802  ;;  %5806 = vrcp.f32 %v8586_v46 }
 0xd76   : > { %v3200_v49 = vand.u32 2147483647, %v8523_v15  ;;  %v3170_v63 = vand.u32 2147483647, %v8529_v9  ;;  %v3209_v62 = vmul.f32 %v8558_v22, %v3208_v0  ;;  %v3172_v15 = vand.u32 2147483648, %v8529_v9  ;;  %v8644_v28 = vpop.eup %5804 }
 0xd77   : > { %5808 = vpow2.f32 %v5215_v7  ;;  %v3222_v7 = vmul.f32 %v8596_v2, %v8555_v51  ;;  %v3154_v0 = vsel %vm8633_vm15, %v8537_v39, %v3150_v25  ;;  %v3253_v33 = vsub.f32 1.0, %v3252_v48 }
 0xd78   : > { %v3008_v43 = vpop.f32.mrf.mxu3  ;;  %v3178_v34 = vsub.f32 1.0, %v3177_v55  ;;  %v8647_v5 = vadd.f32 %v8551_v14, %v3164_v29  ;;  %vm3201_vm8 = vcmp.eq.f32.partialorder %v3200_v49, 8.507059e+37  ;;  %v3210_v23 = vadd.f32 %v8558_v22, %v3209_v62 }
 0xd79   : > { %v3058_v57 = vadd.f32 %v3057_v47, %v3008_v43  ;;  %v10579_v43 = vld [vmem:[#allocation44_spill] sm:$0xff]  ;;  %v3223_v25 = vsub.f32 1.0, %v3222_v7  ;;  %v3173_v48 = vor.u32 1.1754944e-38, %v3172_v15  ;;  %vm3211_vm6 = vweird.f32 %v8535_v27 }
 0xd7a   : > { %v3217_v55 = vand.u32 2147483648, %v8535_v27  ;;  %v3267_v49 = vmul.f32 %v8644_v28, %v8580_v36  ;;  %v3169_v7 = vsel %vm8661_vm9, %v8551_v14, %v8647_v5  ;;  %vm8673_vm7 = vcmp.eq.f32.partialorder %v3170_v63, 8.507059e+37  ;;  %vm8681_vm10 = vmor %vm3211_vm6, %vm3212_vm5 }
 0xd7b   : > { %v3079_v47 = vadd.f32 %v3058_v57, %v10579_v43  ;;  %v8626_v57 = vadd.f32 1.0, %v5803_v37  ;;  %v3199_v43 = vsel %vm8619_vm14, %v8540_v30, %v3195_v35  ;;  %v3203_v37 = vor.u32 1.1754944e-38, %v3202_v50  ;;  %v8650_v20 = vpop.eup %5806 }
 0xd7c   : > { %v3159_v9 = vsel %vm8606_vm12, %v3158_v38, %v3154_v0  ;;  %v3214_v5 = vsel %vm8681_vm10, %v8558_v22, %v3210_v23  ;;  %v3224_v38 = vmul.f32 %v8596_v2, %v3223_v25  ;;  %v3237_v24 = vmul.f32 %v8650_v20, %v8586_v46 }
 0xd7d   : > { %5810 = vtanh.f32 %v3079_v47  ;;  %v3204_v35 = vsel %vm3201_vm8, %v3203_v37, %v3199_v43  ;;  %v5809_v39 = vpop.eup %5808  ;;  %v3062_v47 = vpop.f32.mrf.mxu1  ;;  %v3218_v0 = vor.u32 1.1754944e-38, %v3217_v55  ;;  %vm3257_vm12 = vweird.f32 %v8589_v8 }
 0xd7e   : > { %5812 = vrcp.f32 %v8626_v57  ;;  %v3315_v27 = vmul.f32 %v3204_v35, %v8245_v1  ;;  %v8697_v63 = vadd.f32 1.0, %v5809_v39  ;;  %v3268_v23 = vsub.f32 1.0, %v3267_v49 }
 0xd7f   : > { %v3232_v22 = vand.u32 2147483648, %v8555_v51  ;;  %v3219_v35 = vsel %vm8690_vm11, %v3218_v0, %v3214_v5  ;;  %vm3256_vm14 = vweird.f32 %v8548_v45  ;;  %v3260_v39 = vand.u32 2147483647, %v8548_v45 }
 0xd80   : > { %v3010_v26 = vpop.f32.mrf.mxu3  ;;  %vm3227_vm15 = vweird.f32 %v8596_v2  ;;  %v3238_v25 = vsub.f32 1.0, %v3237_v24  ;;  %vm8718_vm4 = vmor %vm3256_vm14, %vm3257_vm12  ;;  %v3269_v49 = vmul.f32 %v8644_v28, %v3268_v23  ;;  %vm3182_vm8 = vweird.f32 %v8593_v11 }
 0xd81   : > { %v3060_v30 = vadd.f32 %v3059_v59, %v3010_v26  ;;  %v3254_v59 = vmul.f32 %v8589_v8, %v3253_v33  ;;  %v3262_v26 = vand.u32 2147483648, %v8548_v45  ;;  %v3316_v33 = vmul.f32 %v3219_v35, %v8293_v6  ;;  %vm8736_vm5 = vmor %vm3226_vm13, %vm3227_vm15 }
 0xd82   : > { %vm3261_vm6 = vcmp.eq.f32.partialorder %v3260_v39, 8.507059e+37  ;;  %vm3181_vm9 = vweird.f32 %v8553_v54  ;;  %vm3271_vm11 = vweird.f32 %v8580_v36  ;;  %vm3241_vm12 = vweird.f32 %v8586_v46 }
 0xd83   : > { %v5811_v29 = vpop.eup %5810  ;;  %v3080_v50 = vadd.f32 %v3060_v30, %v6839_v3  ;;  %v3263_v5 = vor.u32 1.1754944e-38, %v3262_v26  ;;  %v3247_v35 = vand.u32 2147483648, %v8586_v46  ;;  %vm3242_vm13 = vweird.f32 %v8650_v20 }
 0xd84   : > { %v3319_v62 = vmul.f32 %v5811_v29, %v3144_v18  ;;  %v3179_v18 = vmul.f32 %v8593_v11, %v3178_v34  ;;  %v3255_v34 = vadd.f32 %v8589_v8, %v3254_v59  ;;  %v8703_v53 = vpop.eup %5812  ;;  %v3225_v29 = vadd.f32 %v8596_v2, %v3224_v38  ;;  %vm8785_vm15 = vmor %vm3241_vm12, %vm3242_vm13 }
 0xd85   : > { %5814 = vtanh.f32 %v3080_v50  ;;  %v3282_v55 = vmul.f32 %v8703_v53, %v8626_v57  ;;  %v3233_v38 = vor.u32 1.1754944e-38, %v3232_v22  ;;  %v3064_v15 = vpop.f32.mrf.mxu1  ;;  %v3248_v14 = vor.u32 1.1754944e-38, %v3247_v35 }
 0xd86   : > { %v8699_v1 = vadd.f32 %v3319_v62, %v3315_v27  ;;  %v3259_v45 = vsel %vm8718_vm4, %v8589_v8, %v3255_v34  ;;  %v3230_v62 = vand.u32 2147483647, %v8555_v51  ;;  %v3174_v8 = vsel %vm8673_vm7, %v3173_v48, %v3169_v7 }
 0xd87   : > { %v3229_v6 = vsel %vm8736_vm5, %v8596_v2, %v3225_v29  ;;  %v3283_v0 = vsub.f32 1.0, %v3282_v55  ;;  %v3270_v34 = vadd.f32 %v8644_v28, %v3269_v49  ;;  %vm3272_vm7 = vweird.f32 %v8644_v28  ;;  %vm8798_vm5 = vmor %vm3181_vm9, %vm3182_vm8 }
 0xd88   : > { %v3013_v37 = vpop.f32.mrf.mxu3  ;;  %5816 = vtanh.f32 %v8699_v1  ;;  %v3180_v22 = vadd.f32 %v8593_v11, %v3179_v18  ;;  %vm3231_vm10 = vcmp.eq.f32.partialorder %v3230_v62, 8.507059e+37  ;;  %v3277_v2 = vand.u32 2147483648, %v8580_v36  ;;  %vm8768_vm14 = vmor %vm3271_vm11, %vm3272_vm7 }
 0xd89   : > { %v3063_v30 = vadd.f32 %v3062_v47, %v3013_v37  ;;  %5818 = vrcp.f32 %v8697_v63  ;;  %v3239_v47 = vmul.f32 %v8650_v20, %v3238_v25  ;;  %v3234_v26 = vsel %vm3231_vm10, %v3233_v38, %v3229_v6 }
 0xd8a   : > { %v3284_v50 = vmul.f32 %v8703_v53, %v3283_v0  ;;  %v3278_v49 = vor.u32 1.1754944e-38, %v3277_v2  ;;  %v3185_v62 = vand.u32 2147483647, %v8553_v54  ;;  %v3292_v6 = vand.u32 2147483648, %v8626_v57 }
 0xd8b   : > { %v5815_v43 = vpop.eup %5814  ;;  %v3081_v59 = vadd.f32 %v3063_v30, %v6765_v32  ;;  %v3275_v30 = vand.u32 2147483647, %v8580_v36  ;;  %v3240_v39 = vadd.f32 %v8650_v20, %v3239_v47  ;;  %vm3286_vm8 = vweird.f32 %v8626_v57 }
 0xd8c   : > { %v3320_v27 = vmul.f32 %v5815_v43, %v3159_v9  ;;  %v3264_v9 = vsel %vm3261_vm6, %v3263_v5, %v3259_v45  ;;  %v3274_v43 = vsel %vm8768_vm14, %v8644_v28, %v3270_v34  ;;  %v3317_v45 = vmul.f32 %v3234_v26, %v8338_v13 }
 0xd8d   : > { %5820 = vtanh.f32 %v3081_v59  ;;  %v3245_v59 = vand.u32 2147483647, %v8586_v46  ;;  %vm3276_vm4 = vcmp.eq.f32.partialorder %v3275_v30, 8.507059e+37  ;;  %v3244_v28 = vsel %vm8785_vm15, %v8650_v20, %v3240_v39 }
 0xd8e   : > { %v5817_v24 = vpop.eup %5816  ;;  %v8747_v51 = vadd.f32 %v3320_v27, %v3316_v33  ;;  %v3187_v33 = vand.u32 2147483648, %v8553_v54  ;;  %v3279_v38 = vsel %vm3276_vm4, %v3278_v49, %v3274_v43  ;;  %vm3287_vm6 = vweird.f32 %v8703_v53  ;;  %v8854_v49 = vld [vmem:[%s10182_s3 + $0x8] sm:$0xff]  ;;  %v8884_v27 = vld [vmem:[%s10181_s2 + $0x18] sm:$0xff] }
 0xd8f   : > { %v8751_v48 = vmul.f32 %v5817_v24, %v3264_v9  ;;  %v8753_v7 = vpop.eup %5818  ;;  %v3285_v24 = vadd.f32 %v8703_v53, %v3284_v50  ;;  %v3184_v20 = vsel %vm8798_vm5, %v8593_v11, %v3180_v22  ;;  %vm3246_vm7 = vcmp.eq.f32.partialorder %v3245_v59, 8.507059e+37  ;;  %vm3288_vm10 = vmor %vm3286_vm8, %vm3287_vm6  ;;  %v8832_v59 = vld [vmem:[%s10182_s3] sm:$0xff] }
 0xd90   : > { %v3015_v23 = vpop.f32.mrf.mxu3  ;;  %5822 = vtanh.f32 %v8747_v51  ;;  %v3297_v36 = vmul.f32 %v8753_v7, %v8697_v63  ;;  %v3188_v9 = vor.u32 1.1754944e-38, %v3187_v33  ;;  %v3249_v54 = vsel %vm3246_vm7, %v3248_v14, %v3244_v28  ;;  %v8875_v33 = vld [vmem:[%s10181_s2 + $0x10] sm:$0xff] }
 0xd91   : > { %v3065_v37 = vadd.f32 %v3064_v15, %v3015_v23  ;;  %3335 = vst [vmem:[%s6949_s26 + $0x80] sm:$0xff] %v8751_v48  ;;  %v3290_v0 = vand.u32 2147483647, %v8626_v57  ;;  %vm3186_vm9 = vcmp.eq.f32.partialorder %v3185_v62, 8.507059e+37  ;;  %v3289_v23 = vsel %vm3288_vm10, %v8703_v53, %v3285_v24  ;;  %v8868_v62 = vld [vmem:[%s10182_s3 + $0x10] sm:$0xff] }
 0xd92   : > { %v3189_v15 = vsel %vm3186_vm9, %v3188_v9, %v3184_v20  ;;  %v3318_v2 = vmul.f32 %v3249_v54, %v8361_v56  ;;  %vm3302_vm12 = vweird.f32 %v8753_v7  ;;  %v3307_v18 = vand.u32 2147483648, %v8697_v63 }
 0xd93   : > { %v5821_v25 = vpop.eup %5820  ;;  %v3082_v29 = vadd.f32 %v3065_v37, %v6953_v40  ;;  %v3293_v37 = vor.u32 1.1754944e-38, %v3292_v6  ;;  %vm3291_vm11 = vcmp.eq.f32.partialorder %v3290_v0, 8.507059e+37  ;;  %vm3301_vm13 = vweird.f32 %v8697_v63 }
 0xd94   : > { %v3321_v55 = vmul.f32 %v5821_v25, %v3174_v8  ;;  %v3298_v8 = vsub.f32 1.0, %v3297_v36  ;;  %v3305_v56 = vand.u32 2147483647, %v8697_v63  ;;  %vm3303_vm14 = vmor %vm3301_vm13, %vm3302_vm12  ;;  %v3341_v36 = vpack.c.bf16 %v8747_v51, %v8699_v1 }
 0xd95   : > { %5824 = vtanh.f32 %v3082_v29  ;;  %v3294_v35 = vsel %vm3291_vm11, %v3293_v37, %v3289_v23  ;;  %v3308_v29 = vor.u32 1.1754944e-38, %v3307_v18 }
 0xd96   : > { %v5823_v5 = vpop.eup %5822  ;;  %v8792_v13 = vadd.f32 %v3321_v55, %v3317_v45  ;;  %v3299_v11 = vmul.f32 %v8753_v7, %v3298_v8  ;;  %vm3306_vm15 = vcmp.eq.f32.partialorder %v3305_v56, 8.507059e+37  ;;  %v8847_v45 = vld [vmem:[%s10181_s2] sm:$0xff] }
 0xd97   : > { %v3332_v47 = vmul.f32 %v5823_v5, %v3279_v38 }
 0xd98   : > { %5826 = vtanh.f32 %v8792_v13  ;;  %v3300_v57 = vadd.f32 %v8753_v7, %v3299_v11 }
 0xd99   : > { %3336 = vst [vmem:[%s6949_s26 + $0x88] sm:$0xff] %v3332_v47 }
 0xd9a   : > { %v3304_v25 = vsel %vm3303_vm14, %v8753_v7, %v3300_v57  ;;  %v8841_v7 = vpack.c.bf16 %v3332_v47, %v8751_v48  ;;  %v8861_v48 = vld [vmem:[%s10181_s2 + $0x8] sm:$0xff] }
 0xd9b   : > { %v5825_v34 = vpop.eup %5824  ;;  %v3309_v43 = vsel %vm3306_vm15, %v3308_v29, %v3304_v25 }
 0xd9c   : > { %v3322_v22 = vmul.f32 %v5825_v34, %v3189_v15 }
 0xd9e   : > { %v5827_v26 = vpop.eup %5826  ;;  %v8815_v30 = vadd.f32 %v3322_v22, %v3318_v2 }
 0xd9f   : > { %v3333_v39 = vmul.f32 %v5827_v26, %v3294_v35 }
 0xda0   : > { %v3342_v53 = vpack.c.bf16 %v8815_v30, %v8792_v13  ;;  %5828 = vtanh.f32 %v8815_v30 }
 0xda1   : > { %3337 = vst [vmem:[%s6949_s26 + $0x90] sm:$0xff] %v3333_v39 }
 0xda2   : > { %3349 = vmatpush.bf16.msra.mxu2 %v3342_v53 }
 0xda6   : > { %v5829_v50 = vpop.eup %5828  ;;  %3350 = vmatpush.bf16.msra.mxu2 %v3341_v36 }
 0xda7   : > { %v3334_v55 = vmul.f32 %v5829_v50, %v3309_v43 }
 0xda9   : > { %5216 = vmatmul.msk.bf16.vlgmr.msra.gmra.mxu2 %vm690_vm1, %v8832_v59  ;;  %3338 = vst [vmem:[%s6949_s26 + $0x98] sm:$0xff] %v3334_v55  ;;  %v8837_v63 = vpack.c.bf16 %v3334_v55, %v3333_v39 }
 0xdab   : > { %3378 = vmatpush.bf16.msra.mxu0 %v8837_v63 }
 0xdaf   : > { %3379 = vmatpush.bf16.msra.mxu0 %v8841_v7 }
 0xdb2   : > { %5220 = vmatmul.msk.bf16.vlgmr.msra.gmra.mxu0 %vm690_vm1, %v8847_v45 }
 0xdb9   : > { %5217 = vmatmul.msk.bf16.gmra.mxu2 %vm690_vm1, %v8854_v49 }
 0xdc2   : > { %5221 = vmatmul.msk.bf16.gmra.mxu0 %vm690_vm1, %v8861_v48 }
 0xdc9   : > { %5218 = vmatmul.msk.bf16.gmra.mxu2 %vm690_vm1, %v8868_v62 }
 0xdd2   : > { %5222 = vmatmul.msk.bf16.gmra.mxu0 %vm690_vm1, %v8875_v33 }
 0xdd9   : > { %5219 = vmatmul.msk.bf16.gmra.mxu2 %vm690_vm1, %v8392_v42 }
 0xde2   : > { %5223 = vmatmul.msk.bf16.gmra.mxu0 %vm690_vm1, %v8884_v27 }
 0xe2c   : > { %v3352_v5 = vpop.f32.mrf.mxu2 }
 0xe2f   : > { %v3381_v28 = vpop.f32.mrf.mxu0 }
 0xe30   : > { %v3382_v14 = vadd.f32 %v3381_v28, %v3352_v5 }
 0xe34   : > { %v3354_v38 = vpop.f32.mrf.mxu2 }
 0xe37   : > { %v3383_v8 = vpop.f32.mrf.mxu0 }
 0xe38   : > { %v3384_v25 = vadd.f32 %v3383_v8, %v3354_v38 }
 0xe3a   : > { %v3402_v5 = vadd.f32 %v3384_v25, %v10550_v12 }
 0xe3c   : > { %v3357_v46 = vpop.f32.mrf.mxu2 }
 0xe3f   : > { %v3386_v24 = vpop.f32.mrf.mxu0 }
 0xe40   : > { %v3387_v53 = vadd.f32 %v3386_v24, %v3357_v46  ;;  %v3401_v46 = vadd.f32 %v3382_v14, %v10552_v4 }
 0xe42   : > { %v3403_v43 = vadd.f32 %v3387_v53, %v10548_v21  ;;  %v10613_v53 = vld [vmem:[#allocation26_spill] sm:$0xff] }
 0xe44   : > { %v3359_v47 = vpop.f32.mrf.mxu2  ;;  %v3411_v38 = vadd.f32 %v3403_v43, %v10553_v41 }
 0xe47   : > { %v3388_v20 = vpop.f32.mrf.mxu0 }
 0xe48   : > { %v3389_v26 = vadd.f32 %v3388_v20, %v3359_v47  ;;  %v10604_v47 = vld [vmem:[#allocation18_spill] sm:$0xff] }
 0xe49   : > { %v3410_v20 = vadd.f32 %v3402_v5, %v10604_v47 }
 0xe4a   : > { %v3404_v36 = vadd.f32 %v3389_v26, %v10545_v31  ;;  %v8911_v26 = vld [vmem:[%s10185_s6] sm:$0xff] }
 0xe4b   : > { %10607 = vst [vmem:[#allocation30_spill] sm:$0xff] %v8911_v26 }
 0xe4c   : > { %v3362_v6 = vpop.f32.mrf.mxu2  ;;  %v3412_v28 = vadd.f32 %v3404_v36, %v10551_v17 }
 0xe4f   : > { %v3391_v9 = vpop.f32.mrf.mxu0 }
 0xe50   : > { %v3392_v22 = vadd.f32 %v3391_v9, %v3362_v6 }
 0xe52   : > { %v3405_v18 = vadd.f32 %v3392_v22, %v10543_v52 }
 0xe54   : > { %v3364_v42 = vpop.f32.mrf.mxu2  ;;  %v3413_v55 = vadd.f32 %v3405_v18, %v10549_v19  ;;  %v10614_v18 = vld [vmem:[#allocation20_spill] sm:$0xff] }
 0xe57   : > { %v3393_v54 = vpop.f32.mrf.mxu0 }
 0xe58   : > { %v3394_v23 = vadd.f32 %v3393_v54, %v3364_v42  ;;  %v10605_v42 = vld [vmem:[#allocation14_spill] sm:$0xff] }
 0xe59   : > { %v3409_v54 = vadd.f32 %v3401_v46, %v10605_v42 }
 0xe5a   : > { %v3406_v35 = vadd.f32 %v3394_v23, %v6508_v16 }
 0xe5c   : > { %v3367_v0 = vpop.f32.mrf.mxu2  ;;  %v3414_v29 = vadd.f32 %v3406_v35, %v10546_v58  ;;  %v8918_v35 = vld [vmem:[%s10185_s6 + $0x8] sm:$0xff] }
 0xe5d   : > { %10608 = vst [vmem:[#allocation11_spill] sm:$0xff] %v8918_v35 }
 0xe5f   : > { %v3396_v34 = vpop.f32.mrf.mxu0 }
 0xe60   : > { %v3397_v15 = vadd.f32 %v3396_v34, %v3367_v0 }
 0xe62   : > { %v3407_v11 = vadd.f32 %v3397_v15, %v6504_v10 }
 0xe64   : > { %v3369_v2 = vpop.f32.mrf.mxu2  ;;  %v3415_v39 = vadd.f32 %v3407_v11, %v6498_v61 }
 0xe66   : > { %5830 = vtanh.f32 %v3415_v39  ;;  %v10612_v39 = vld [vmem:[#allocation31_spill] sm:$0xff] }
 0xe67   : > { %v3398_v37 = vpop.f32.mrf.mxu0 }
 0xe68   : > { %v3399_v57 = vadd.f32 %v3398_v37, %v3369_v2  ;;  %v10606_v37 = vld [vmem:[#allocation22_spill] sm:$0xff] }
 0xe6a   : > { %v3408_v56 = vadd.f32 %v3399_v57, %v10544_v60  ;;  %v8939_v57 = vld [vmem:[%s10185_s6 + $0x20] sm:$0xff] }
 0xe6b   : > { %10611 = vst [vmem:[#allocation9_spill] sm:$0xff] %v8939_v57 }
 0xe6c   : > { %v3416_v50 = vadd.f32 %v3408_v56, %v10547_v44  ;;  %v5831_v8 = vpop.eup %5830 }
 0xe6e   : > { %5832 = vtanh.f32 %v3416_v50 }
 0xe6f   : > { %5834 = vtanh.f32 %v3414_v29 }
 0xe70   : > { %5836 = vtanh.f32 %v3413_v55 }
 0xe71   : > { %5838 = vtanh.f32 %v3412_v28 }
 0xe72   : > { %5840 = vtanh.f32 %v3411_v38 }
 0xe73   : > { %5842 = vtanh.f32 %v3410_v20 }
 0xe74   : > { %v5833_v24 = vpop.eup %5832  ;;  %5844 = vtanh.f32 %v3409_v54 }
 0xe75   : > { %v3428_v6 = vpack.c.bf16 %v5833_v24, %v5831_v8  ;;  %v5835_v9 = vpop.eup %5834 }
 0xe76   : > { %v5837_v0 = vpop.eup %5836 }
 0xe77   : > { %3433 = vmatpush.bf16.msrb.mxu2 %v3428_v6  ;;  %v3427_v34 = vpack.c.bf16 %v5835_v9, %v5837_v0  ;;  %v5839_v15 = vpop.eup %5838 }
 0xe78   : > { %v5841_v14 = vpop.eup %5840 }
 0xe79   : > { %v3426_v23 = vpack.c.bf16 %v5839_v15, %v5841_v14  ;;  %v5843_v11 = vpop.eup %5842  ;;  %v6148_v15 = vld [vmem:[%s6354_s14 + $0x28] sm:$0xff] }
 0xe7a   : > { %v5845_v22 = vpop.eup %5844 }
 0xe7b   : > { %3434 = vmatpush.bf16.msrb.mxu2 %v3427_v34  ;;  %v3425_v2 = vpack.c.bf16 %v5843_v11, %v5845_v22  ;;  %v10615_v22 = vld [vmem:[#allocation24_spill] sm:$0xff] }
 0xe7f   : > { %3435 = vmatpush.bf16.msrb.mxu2 %v3426_v23 }
 0xe83   : > { %3436 = vmatpush.bf16.msrb.mxu2 %v3425_v2  ;;  %v10616_v2 = vld [vmem:[#allocation28_spill] sm:$0xff] }
 0xe86   : > { %5224 = vmatmul.msk.bf16.vlgmr.msrb.gmra.mxu2 %vm628_vm0, %v10606_v37  ;;  %v10617_v37 = vld [vmem:[#allocation19_spill] sm:$0xff] }
 0xe87   : > { %3519 = vmatpush.bf16.msra.mxu2 %v8837_v63  ;;  %v8925_v63 = vld [vmem:[%s10185_s6 + $0x10] sm:$0xff] }
 0xe88   : > { %10609 = vst [vmem:[#allocation13_spill] sm:$0xff] %v8925_v63 }
 0xe8b   : > { %3520 = vmatpush.bf16.msra.mxu2 %v8841_v7  ;;  %v8932_v7 = vld [vmem:[%s10185_s6 + $0x18] sm:$0xff] }
 0xe8c   : > { %10610 = vst [vmem:[#allocation15_spill] sm:$0xff] %v8932_v7 }
 0xe96   : > { %5233 = vmatmul.msk.bf16.vlgmr.msra.gmra.mxu2 %vm690_vm1, %v8911_v26 }
 0xea6   : > { %5234 = vmatmul.msk.bf16.gmra.mxu2 %vm690_vm1, %v8918_v35 }
 0xeb6   : > { %5235 = vmatmul.msk.bf16.gmra.mxu2 %vm690_vm1, %v8925_v63 }
 0xec6   : > { %5236 = vmatmul.msk.bf16.gmra.mxu2 %vm690_vm1, %v8932_v7 }
 0xed6   : > { %5237 = vmatmul.msk.bf16.gmra.mxu2 %vm690_vm1, %v8939_v57 }
 0xee6   : > { %5238 = vmatmul.msk.bf16.gmra.mxu2 %vm690_vm1, %v10612_v39  ;;  %v10618_v39 = vld [vmem:[#allocation21_spill] sm:$0xff] }
 0xef6   : > { %5239 = vmatmul.msk.bf16.gmra.mxu2 %vm690_vm1, %v10613_v53  ;;  %v10619_v53 = vld [vmem:[#allocation23_spill] sm:$0xff] }
 0xf06   : > { %5240 = vmatmul.msk.bf16.gmra.mxu2 %vm690_vm1, %v10614_v18  ;;  %v10620_v18 = vld [vmem:[#allocation25_spill] sm:$0xff] }
 0xf09   : > { %v3438_v56 = vpop.f32.mrf.mxu2 }
 0xf0a   : > { %v3442_v25 = vrot.slane %v3438_v56, 4 }
 0xf0c   : > { %v3443_v36 = vmax.f32 %v3438_v56, %v3442_v25  ;;  %v10621_v25 = vld [vmem:[#allocation27_spill] sm:$0xff] }
 0xf0e   : > { %v3444_v29 = vrot.slane %v3443_v36, 2 }
 0xf10   : > { %v3445_v50 = vmax.f32 %v3443_v36, %v3444_v29  ;;  %v10622_v29 = vld [vmem:[#allocation29_spill] sm:$0xff] }
 0xf11   : > { %v3440_v43 = vpop.f32.mrf.mxu2 }
 0xf12   : > { %v3446_v55 = vrot.slane %v3445_v50, 1 }
 0xf14   : > { %v3447_v5 = vmax.f32 %v3445_v50, %v3446_v55 }
 0xf16   : > { %v3448_v28 = vsub.f32 %v3438_v56, %v3447_v5 }
 0xf18   : > { %v3449_v46 = vmul.f32 1.442695, %v3448_v28 }
 0xf19   : > { %v3522_v56 = vpop.f32.mrf.mxu2 }
 0xf1a   : > { %5846 = vpow2.f32 %v3449_v46 }
 0xf20   : > { %v5847_v38 = vpop.eup %5846 }
 0xf21   : > { %v3451_v8 = vrot.slane %v5847_v38, 4  ;;  %v3524_v36 = vpop.f32.mrf.mxu2 }
 0xf23   : > { %v3452_v24 = vadd.f32 %v5847_v38, %v3451_v8 }
 0xf25   : > { %v3453_v20 = vrot.slane %v3452_v24, 2 }
 0xf27   : > { %v3454_v6 = vadd.f32 %v3453_v20, %v3452_v24 }
 0xf29   : > { %v3455_v9 = vrot.slane %v3454_v6, 1  ;;  %v3527_v50 = vpop.f32.mrf.mxu2 }
 0xf2b   : > { %v3456_v54 = vadd.f32 %v3455_v9, %v3454_v6 }
 0xf2d   : > { %5848 = vrcp.f32 %v3456_v54 }
 0xf31   : > { %v3529_v55 = vpop.f32.mrf.mxu2 }
 0xf33   : > { %v5849_v0 = vpop.eup %5848 }
 0xf34   : > { %v3458_v34 = vmul.f32 %v5849_v0, %v5847_v38 }
 0xf36   : > { %v3459_v14 = vmul.f32 %v6148_v15, %v3458_v34  ;;  %v10623_v34 = vld [vmem:[#allocation36_spill] sm:$0xff] }
 0xf38   : > { %v3460_v23 = vpack.c.bf16 %v3459_v14, %v3459_v14 }
 0xf39   : > { %v3532_v46 = vpop.f32.mrf.mxu2 }
 0xf3a   : > { %v3462_v11 = vsel %vm921_vm2, %v3460_v23, 0 }
 0xf3b   : > { %3471 = vmatpush.bf16.msrb.mxu0 %v3462_v11 }
 0xf3e   : > { %5225 = vmatmul.msk.bf16.vlgmr.msrb.gmra.mxu0 %vm896_vm3, %v10615_v22 }
 0xf41   : > { %v3534_v24 = vpop.f32.mrf.mxu2 }
 0xf49   : > { %v3537_v6 = vpop.f32.mrf.mxu2 }
 0xf4e   : > { %5226 = vmatmul.msk.bf16.gmra.mxu0 %vm896_vm3, %v10616_v2 }
 0xf51   : > { %v3539_v0 = vpop.f32.mrf.mxu2 }
 0xf59   : > { %v3542_v11 = vpop.f32.mrf.mxu2 }
 0xf5e   : > { %5227 = vmatmul.msk.bf16.gmra.mxu0 %vm896_vm3, %v10617_v37  ;;  %v10624_v37 = vld [vmem:[#allocation37_spill] sm:$0xff] }
 0xf61   : > { %v3544_v57 = vpop.f32.mrf.mxu2 }
 0xf6e   : > { %5228 = vmatmul.msk.bf16.gmra.mxu0 %vm896_vm3, %v10618_v39 }
 0xf7e   : > { %5229 = vmatmul.msk.bf16.gmra.mxu0 %vm896_vm3, %v10619_v53  ;;  %v10625_v53 = vld [vmem:[#allocation38_spill] sm:$0xff] }
 0xf8e   : > { %5230 = vmatmul.msk.bf16.gmra.mxu0 %vm896_vm3, %v10620_v18 }
 0xf9e   : > { %5231 = vmatmul.msk.bf16.gmra.mxu0 %vm896_vm3, %v10621_v25 }
 0xfae   : > { %5232 = vmatmul.msk.bf16.gmra.mxu0 %vm896_vm3, %v10622_v29 }
 0xfbb   : > { %v3473_v43 = vpop.f32.mrf.mxu0 }
 0xfbc   : > { %v3523_v5 = vadd.f32 %v3522_v56, %v3473_v43  ;;  %v10626_v43 = vld [vmem:[#allocation32_spill] sm:$0xff] }
 0xfbe   : > { %v3562_v15 = vadd.f32 %v3523_v5, %v10623_v34  ;;  %v10627_v5 = vld [vmem:[#allocation39_spill] sm:$0xff] }
 0xfc0   : > { %v5241_v2 = vmul.f32 -1.442695, %v3562_v15 }
 0xfc2   : > { %5850 = vpow2.f32 %v5241_v2 }
 0xfc3   : > { %v3475_v28 = vpop.f32.mrf.mxu0 }
 0xfc4   : > { %v3525_v23 = vadd.f32 %v3524_v36, %v3475_v28 }
 0xfc6   : > { %v3563_v39 = vadd.f32 %v3525_v23, %v10624_v37 }
 0xfc8   : > { %v5242_v25 = vmul.f32 -1.442695, %v3563_v39  ;;  %v5851_v7 = vpop.eup %5850 }
 0xfca   : > { %5852 = vpow2.f32 %v5242_v25  ;;  %v3547_v25 = vpop.f32.mrf.mxu2 }
 0xfcb   : > { %v3478_v38 = vpop.f32.mrf.mxu0 }
 0xfcc   : > { %v3528_v8 = vadd.f32 %v3527_v50, %v3478_v38 }
 0xfce   : > { %v3564_v38 = vadd.f32 %v3528_v8, %v10626_v43  ;;  %v10628_v8 = vld [vmem:[#allocation41_spill] sm:$0xff] }
 0xfd0   : > { %v5243_v28 = vmul.f32 -1.442695, %v3564_v38 }
 0xfd3   : > { %v3480_v20 = vpop.f32.mrf.mxu0 }
 0xfd4   : > { %v3530_v23 = vadd.f32 %v3529_v55, %v3480_v20 }
 0xfdb   : > { %v3483_v9 = vpop.f32.mrf.mxu0 }
 0xfdc   : > { %v3533_v22 = vadd.f32 %v3532_v46, %v3483_v9  ;;  %v8972_v9 = vadd.f32 1.0, %v5851_v7 }
 0xfde   : > { %v3566_v18 = vadd.f32 %v3533_v22, %v10625_v53  ;;  %v5853_v53 = vpop.eup %5852  ;;  %vm3631_vm5 = vweird.f32 %v8972_v9 }
 0xfe0   : > { %v5245_v29 = vmul.f32 -1.442695, %v3566_v18 }
 0xfe2   : > { %5854 = vpow2.f32 %v5245_v29  ;;  %v8977_v29 = vadd.f32 1.0, %v5853_v53 }
 0xfe3   : > { %v3485_v54 = vpop.f32.mrf.mxu0  ;;  %5856 = vpow2.f32 %v5243_v28 }
 0xfe4   : > { %v3535_v50 = vadd.f32 %v3534_v24, %v3485_v54  ;;  %5858 = vrcp.f32 %v8972_v9  ;;  %v10629_v54 = vld [vmem:[#allocation33_spill] sm:$0xff]  ;;  %v3650_v35 = vand.u32 2147483647, %v8977_v29  ;;  %vm3646_vm8 = vweird.f32 %v8977_v29 }
 0xfe5   : > { %v3565_v18 = vadd.f32 %v3530_v23, %v10629_v54  ;;  %v10631_v23 = vld [vmem:[#allocation42_spill] sm:$0xff] }
 0xfe6   : > { %v3567_v36 = vadd.f32 %v3535_v50, %v10627_v5  ;;  %v10630_v50 = vld [vmem:[#allocation34_spill] sm:$0xff]  ;;  %vm9063_vm11 = vcmp.eq.f32.partialorder %v3650_v35, 8.507059e+37 }
 0xfe8   : > { %v5246_v22 = vmul.f32 -1.442695, %v3567_v36  ;;  %v5855_v39 = vpop.eup %5854 }
 0xfe9   : > { %v8980_v38 = vadd.f32 1.0, %v5855_v39 }
 0xfea   : > { %5860 = vpow2.f32 %v5246_v22 }
 0xfeb   : > { %v3488_v14 = vpop.f32.mrf.mxu0  ;;  %5862 = vrcp.f32 %v8977_v29  ;;  %vm3691_vm12 = vweird.f32 %v8980_v38 }
 0xfec   : > { %v3538_v2 = vadd.f32 %v3537_v6, %v3488_v14  ;;  %v5857_v14 = vpop.eup %5856  ;;  %5864 = vrcp.f32 %v8980_v38 }
 0xfed   : > { %v8982_v28 = vpop.eup %5858 }
 0xfee   : > { %v3568_v7 = vadd.f32 %v3538_v2, %v10630_v50  ;;  %v3627_v2 = vmul.f32 %v8982_v28, %v8972_v9  ;;  %vm3632_vm4 = vweird.f32 %v8982_v28 }
 0xfef   : > { %vm9032_vm6 = vmor %vm3631_vm5, %vm3632_vm4 }
 0xff0   : > { %v5861_v53 = vpop.eup %5860 }
 0xff3   : > { %v3490_v56 = vpop.f32.mrf.mxu0 }
 0xff4   : > { %v3540_v36 = vadd.f32 %v3539_v0, %v3490_v56  ;;  %v8992_v0 = vadd.f32 1.0, %v5861_v53 }
 0xff6   : > { %v3710_v19 = vand.u32 2147483647, %v8992_v0 }
 0xffb   : > { %v3493_v46 = vpop.f32.mrf.mxu0 }
 0xffc   : > { %v3543_v15 = vadd.f32 %v3542_v11, %v3493_v46  ;;  %v5244_v11 = vmul.f32 -1.442695, %v3565_v18  ;;  %v5247_v46 = vmul.f32 -1.442695, %v3568_v7  ;;  %v8994_v18 = vpop.eup %5862 }
 0xffd   : > { %vm3647_vm9 = vweird.f32 %v8994_v18 }
 0xffe   : > { %v3570_v24 = vadd.f32 %v3543_v15, %v10628_v8  ;;  %v8986_v15 = vadd.f32 1.0, %v5857_v14  ;;  %vm9090_vm15 = vmor %vm3646_vm8, %vm3647_vm9 }
0x1000   : > { %v5249_v20 = vmul.f32 -1.442695, %v3570_v24  ;;  %v3549_v24 = vpop.f32.mrf.mxu2  ;;  %vm3661_vm13 = vweird.f32 %v8986_v15 }
0x1002   : > { %5866 = vpow2.f32 %v5249_v20  ;;  %v8997_v20 = vpop.eup %5864 }
0x1003   : > { %v3495_v55 = vpop.f32.mrf.mxu0  ;;  %5868 = vpow2.f32 %v5244_v11  ;;  %vm3692_vm10 = vweird.f32 %v8997_v20 }
0x1004   : > { %v3545_v6 = vadd.f32 %v3544_v57, %v3495_v55  ;;  %v10632_v57 = vld [vmem:[#allocation35_spill] sm:$0xff]  ;;  %5870 = vpow2.f32 %v5247_v46  ;;  %v10633_v46 = vld [vmem:[#allocation40_spill] sm:$0xff]  ;;  %vm9076_vm14 = vmor %vm3691_vm12, %vm3692_vm10  ;;  %vm9147_vm12 = vcmp.eq.f32.partialorder %v3710_v19, 8.507059e+37 }
0x1005   : > { %v3569_v39 = vadd.f32 %v3540_v36, %v10632_v57  ;;  %5872 = vrcp.f32 %v8986_v15  ;;  %v3642_v36 = vmul.f32 %v8994_v18, %v8977_v29  ;;  %v3687_v57 = vmul.f32 %v8997_v20, %v8980_v38 }
0x1006   : > { %v3571_v22 = vadd.f32 %v3545_v6, %v10631_v23  ;;  %v3628_v6 = vsub.f32 1.0, %v3627_v2  ;;  %5874 = vrcp.f32 %v8992_v0 }
0x1007   : > { %v5248_v14 = vmul.f32 -1.442695, %v3569_v39  ;;  %v3643_v8 = vsub.f32 1.0, %v3642_v36  ;;  %v10634_v36 = vld [vmem:[#allocation43_spill] sm:$0xff] }
0x1008   : > { %v5250_v7 = vmul.f32 -1.442695, %v3571_v22  ;;  %v5867_v23 = vpop.eup %5866  ;;  %v3629_v22 = vmul.f32 %v8982_v28, %v3628_v6  ;;  %v3552_v6 = vpop.f32.mrf.mxu2 }
0x1009   : > { %v5869_v50 = vpop.eup %5868  ;;  %v3644_v37 = vmul.f32 %v8994_v18, %v3643_v8 }
0x100a   : > { %v5871_v11 = vpop.eup %5870  ;;  %5876 = vpow2.f32 %v5250_v7  ;;  %v9010_v39 = vadd.f32 1.0, %v5869_v50  ;;  %v3630_v50 = vadd.f32 %v8982_v28, %v3629_v22 }
0x100b   : > { %v3498_v56 = vpop.f32.mrf.mxu0  ;;  %5878 = vpow2.f32 %v5248_v14  ;;  %v9008_v2 = vpop.eup %5872  ;;  %v3688_v14 = vsub.f32 1.0, %v3687_v57  ;;  %v3652_v57 = vand.u32 2147483648, %v8977_v29 }
0x100c   : > { %v3548_v55 = vadd.f32 %v3547_v25, %v3498_v56  ;;  %v9005_v25 = vadd.f32 1.0, %v5867_v23  ;;  %v9012_v56 = vadd.f32 1.0, %v5871_v11  ;;  %v3657_v23 = vmul.f32 %v9008_v2, %v8986_v15 }
0x100d   : > { %v3635_v11 = vand.u32 2147483647, %v8972_v9  ;;  %v3653_v8 = vor.u32 1.1754944e-38, %v3652_v57  ;;  %v3697_v57 = vand.u32 2147483648, %v8980_v38  ;;  %vm3662_vm4 = vweird.f32 %v9008_v2 }
0x100e   : > { %v3572_v53 = vadd.f32 %v3548_v55, %v10633_v46  ;;  %v9015_v55 = vpop.eup %5874  ;;  %5880 = vrcp.f32 %v9005_v25  ;;  %v3658_v34 = vsub.f32 1.0, %v3657_v23  ;;  %vm9118_vm8 = vmor %vm3661_vm13, %vm3662_vm4  ;;  %vm3721_vm13 = vweird.f32 %v9012_v56 }
0x100f   : > { %5882 = vrcp.f32 %v9010_v39  ;;  %v3702_v43 = vmul.f32 %v9015_v55, %v8992_v0  ;;  %vm3636_vm7 = vcmp.eq.f32.partialorder %v3635_v11, 8.507059e+37 }
0x1010   : > { %v5251_v5 = vmul.f32 -1.442695, %v3572_v53  ;;  %v5877_v46 = vpop.eup %5876  ;;  %5884 = vrcp.f32 %v9012_v56  ;;  %v3554_v22 = vpop.f32.mrf.mxu2 }
0x1011   : > { %v9037_v63 = vadd.f32 1.0, %v5877_v46 }
0x1012   : > { %5886 = vpow2.f32 %v5251_v5 }
0x1013   : > { %v3500_v54 = vpop.f32.mrf.mxu0  ;;  %5888 = vrcp.f32 %v9037_v63 }
0x1014   : > { %v3550_v7 = vadd.f32 %v3549_v24, %v3500_v54  ;;  %v3637_v54 = vand.u32 2147483648, %v8972_v9  ;;  %v5879_v24 = vpop.eup %5878  ;;  %v3634_v9 = vsel %vm9032_vm6, %v8982_v28, %v3630_v50  ;;  %v3703_v28 = vsub.f32 1.0, %v3702_v43 }
0x1015   : > { %v9046_v26 = vpop.eup %5880  ;;  %v3645_v50 = vadd.f32 %v8994_v18, %v3644_v37  ;;  %vm3707_vm6 = vweird.f32 %v9015_v55 }
0x1016   : > { %v3573_v53 = vadd.f32 %v3550_v7, %v10634_v36  ;;  %v3689_v7 = vmul.f32 %v8997_v20, %v3688_v14  ;;  %v9043_v36 = vadd.f32 1.0, %v5879_v24  ;;  %v3638_v5 = vor.u32 1.1754944e-38, %v3637_v54  ;;  %v9050_v46 = vpop.eup %5882 }
0x1017   : > { %v9053_v11 = vpop.eup %5884  ;;  %v3659_v54 = vmul.f32 %v9008_v2, %v3658_v34  ;;  %v3747_v43 = vmul.f32 %v9046_v26, %v9005_v25  ;;  %v3672_v34 = vmul.f32 %v9050_v46, %v9010_v39 }
0x1018   : > { %v5252_v42 = vmul.f32 -1.442695, %v3573_v53  ;;  %v3639_v14 = vsel %vm3636_vm7, %v3638_v5, %v3634_v9  ;;  %v3690_v24 = vadd.f32 %v8997_v20, %v3689_v7  ;;  %v5887_v53 = vpop.eup %5886  ;;  %5890 = vrcp.f32 %v9043_v36 }
0x1019   : > { %v3695_v9 = vand.u32 2147483647, %v8980_v38  ;;  %v3665_v7 = vand.u32 2147483647, %v8986_v15  ;;  %v3704_v5 = vmul.f32 %v9015_v55, %v3703_v28  ;;  %v3667_v38 = vand.u32 2147483648, %v8986_v15  ;;  %v9101_v4 = vpop.eup %5888 }
0x101a   : > { %5892 = vpow2.f32 %v5252_v42  ;;  %v3717_v42 = vmul.f32 %v9053_v11, %v9012_v56  ;;  %v3649_v28 = vsel %vm9090_vm15, %v8994_v18, %v3645_v50  ;;  %v3748_v41 = vsub.f32 1.0, %v3747_v43 }
0x101b   : > { %v3503_v47 = vpop.f32.mrf.mxu0  ;;  %v3673_v17 = vsub.f32 1.0, %v3672_v34  ;;  %v9104_v12 = vadd.f32 %v9008_v2, %v3659_v54  ;;  %vm3696_vm5 = vcmp.eq.f32.partialorder %v3695_v9, 8.507059e+37  ;;  %v3705_v21 = vadd.f32 %v9015_v55, %v3704_v5 }
0x101c   : > { %v3553_v23 = vadd.f32 %v3552_v6, %v3503_v47  ;;  %v10637_v47 = vld [vmem:[#allocation44_spill] sm:$0xff]  ;;  %v3718_v50 = vsub.f32 1.0, %v3717_v42  ;;  %v3668_v43 = vor.u32 1.1754944e-38, %v3667_v38  ;;  %vm3706_vm7 = vweird.f32 %v8992_v0 }
0x101d   : > { %v3712_v34 = vand.u32 2147483648, %v8992_v0  ;;  %v3762_v9 = vmul.f32 %v9101_v4, %v9037_v63  ;;  %v3664_v42 = vsel %vm9118_vm8, %v9008_v2, %v9104_v12  ;;  %vm9130_vm9 = vcmp.eq.f32.partialorder %v3665_v7, 8.507059e+37  ;;  %vm9138_vm10 = vmor %vm3706_vm7, %vm3707_vm6 }
0x101e   : > { %v3574_v6 = vadd.f32 %v3553_v23, %v10637_v47  ;;  %v9083_v23 = vadd.f32 1.0, %v5887_v53  ;;  %v3694_v47 = vsel %vm9076_vm14, %v8997_v20, %v3690_v24  ;;  %v3698_v53 = vor.u32 1.1754944e-38, %v3697_v57  ;;  %v9107_v35 = vpop.eup %5890 }
0x101f   : > { %v3654_v15 = vsel %vm9063_vm11, %v3653_v8, %v3649_v28  ;;  %v3709_v12 = vsel %vm9138_vm10, %v9015_v55, %v3705_v21  ;;  %v3719_v8 = vmul.f32 %v9053_v11, %v3718_v50  ;;  %v3732_v37 = vmul.f32 %v9107_v35, %v9043_v36 }
0x1020   : > { %5894 = vtanh.f32 %v3574_v6  ;;  %v3699_v24 = vsel %vm3696_vm5, %v3698_v53, %v3694_v47  ;;  %v5893_v18 = vpop.eup %5892  ;;  %v3557_v6 = vpop.f32.mrf.mxu2  ;;  %v3713_v28 = vor.u32 1.1754944e-38, %v3712_v34  ;;  %vm3752_vm11 = vweird.f32 %v9046_v26 }
0x1021   : > { %5896 = vrcp.f32 %v9083_v23  ;;  %v3810_v0 = vmul.f32 %v3699_v24, %v8699_v1  ;;  %v9154_v7 = vadd.f32 1.0, %v5893_v18  ;;  %v3763_v21 = vsub.f32 1.0, %v3762_v9 }
0x1022   : > { %v3727_v55 = vand.u32 2147483648, %v9012_v56  ;;  %v3714_v24 = vsel %vm9147_vm12, %v3713_v28, %v3709_v12  ;;  %vm3751_vm14 = vweird.f32 %v9005_v25  ;;  %v3755_v18 = vand.u32 2147483647, %v9005_v25 }
0x1023   : > { %v3505_v29 = vpop.f32.mrf.mxu0  ;;  %vm3722_vm15 = vweird.f32 %v9053_v11  ;;  %v3733_v50 = vsub.f32 1.0, %v3732_v37  ;;  %vm9175_vm4 = vmor %vm3751_vm14, %vm3752_vm11  ;;  %v3764_v9 = vmul.f32 %v9101_v4, %v3763_v21  ;;  %vm3677_vm5 = vweird.f32 %v9050_v46 }
0x1024   : > { %v3555_v20 = vadd.f32 %v3554_v22, %v3505_v29  ;;  %v3749_v22 = vmul.f32 %v9046_v26, %v3748_v41  ;;  %v3757_v29 = vand.u32 2147483648, %v9005_v25  ;;  %v3811_v41 = vmul.f32 %v3714_v24, %v8747_v51  ;;  %vm9193_vm6 = vmor %vm3721_vm13, %vm3722_vm15 }
0x1025   : > { %vm3756_vm7 = vcmp.eq.f32.partialorder %v3755_v18, 8.507059e+37  ;;  %vm3676_vm8 = vweird.f32 %v9010_v39  ;;  %vm3766_vm12 = vweird.f32 %v9037_v63  ;;  %vm3736_vm11 = vweird.f32 %v9043_v36 }
0x1026   : > { %v5895_v54 = vpop.eup %5894  ;;  %v3575_v57 = vadd.f32 %v3555_v20, %v6839_v3  ;;  %v3758_v12 = vor.u32 1.1754944e-38, %v3757_v29  ;;  %v3742_v24 = vand.u32 2147483648, %v9043_v36  ;;  %vm3737_vm13 = vweird.f32 %v9107_v35 }
0x1027   : > { %v3814_v5 = vmul.f32 %v5895_v54, %v3639_v14  ;;  %v3674_v14 = vmul.f32 %v9050_v46, %v3673_v17  ;;  %v3750_v17 = vadd.f32 %v9046_v26, %v3749_v22  ;;  %v9160_v19 = vpop.eup %5896  ;;  %v3720_v54 = vadd.f32 %v9053_v11, %v3719_v8  ;;  %vm9242_vm15 = vmor %vm3736_vm11, %vm3737_vm13 }
0x1028   : > { %5898 = vtanh.f32 %v3575_v57  ;;  %v3777_v34 = vmul.f32 %v9160_v19, %v9083_v23  ;;  %v3728_v8 = vor.u32 1.1754944e-38, %v3727_v55  ;;  %v3559_v38 = vpop.f32.mrf.mxu2  ;;  %v3743_v2 = vor.u32 1.1754944e-38, %v3742_v24 }
0x1029   : > { %v9156_v1 = vadd.f32 %v3814_v5, %v3810_v0  ;;  %v3754_v25 = vsel %vm9175_vm4, %v9046_v26, %v3750_v17  ;;  %v3725_v5 = vand.u32 2147483647, %v9012_v56  ;;  %v3669_v26 = vsel %vm9130_vm9, %v3668_v43, %v3664_v42 }
0x102a   : > { %v3724_v51 = vsel %vm9193_vm6, %v9053_v11, %v3720_v54  ;;  %v3778_v28 = vsub.f32 1.0, %v3777_v34  ;;  %v3765_v17 = vadd.f32 %v9101_v4, %v3764_v9  ;;  %vm3767_vm9 = vweird.f32 %v9101_v4  ;;  %vm9255_vm6 = vmor %vm3676_vm8, %vm3677_vm5 }
0x102b   : > { %v3508_v53 = vpop.f32.mrf.mxu0  ;;  %5900 = vtanh.f32 %v9156_v1  ;;  %v3675_v55 = vadd.f32 %v9050_v46, %v3674_v14  ;;  %vm3726_vm10 = vcmp.eq.f32.partialorder %v3725_v5, 8.507059e+37  ;;  %v3772_v11 = vand.u32 2147483648, %v9037_v63  ;;  %vm9225_vm14 = vmor %vm3766_vm12, %vm3767_vm9 }
0x102c   : > { %v3558_v20 = vadd.f32 %v3557_v6, %v3508_v53  ;;  %5902 = vrcp.f32 %v9154_v7  ;;  %v3734_v6 = vmul.f32 %v9107_v35, %v3733_v50  ;;  %v3729_v29 = vsel %vm3726_vm10, %v3728_v8, %v3724_v51 }
0x102d   : > { %v3779_v57 = vmul.f32 %v9160_v19, %v3778_v28  ;;  %v3773_v9 = vor.u32 1.1754944e-38, %v3772_v11  ;;  %v3680_v5 = vand.u32 2147483647, %v9010_v39  ;;  %v3787_v51 = vand.u32 2147483648, %v9083_v23 }
0x102e   : > { %v5899_v47 = vpop.eup %5898  ;;  %v3576_v22 = vadd.f32 %v3558_v20, %v6765_v32  ;;  %v3770_v20 = vand.u32 2147483647, %v9037_v63  ;;  %v3735_v18 = vadd.f32 %v9107_v35, %v3734_v6  ;;  %vm3781_vm5 = vweird.f32 %v9083_v23 }
0x102f   : > { %v3815_v0 = vmul.f32 %v5899_v47, %v3654_v15  ;;  %v3759_v15 = vsel %vm3756_vm7, %v3758_v12, %v3754_v25  ;;  %v3769_v47 = vsel %vm9225_vm14, %v9101_v4, %v3765_v17  ;;  %v3812_v25 = vmul.f32 %v3729_v29, %v8792_v13 }
0x1030   : > { %5904 = vtanh.f32 %v3576_v22  ;;  %v3740_v22 = vand.u32 2147483647, %v9043_v36  ;;  %vm3771_vm4 = vcmp.eq.f32.partialorder %v3770_v20, 8.507059e+37  ;;  %v3739_v4 = vsel %vm9242_vm15, %v9107_v35, %v3735_v18 }
0x1031   : > { %v5901_v37 = vpop.eup %5900  ;;  %v9204_v56 = vadd.f32 %v3815_v0, %v3811_v41  ;;  %v3682_v41 = vand.u32 2147483648, %v9010_v39  ;;  %v3774_v8 = vsel %vm3771_vm4, %v3773_v9, %v3769_v47  ;;  %vm3782_vm7 = vweird.f32 %v9160_v19 }
0x1032   : > { %v9208_v43 = vmul.f32 %v5901_v37, %v3759_v15  ;;  %v9210_v42 = vpop.eup %5902  ;;  %v3780_v37 = vadd.f32 %v9160_v19, %v3779_v57  ;;  %v3679_v35 = vsel %vm9255_vm6, %v9050_v46, %v3675_v55  ;;  %vm3741_vm9 = vcmp.eq.f32.partialorder %v3740_v22, 8.507059e+37  ;;  %vm3783_vm10 = vmor %vm3781_vm5, %vm3782_vm7 }
0x1033   : > { %v3510_v21 = vpop.f32.mrf.mxu0  ;;  %5906 = vtanh.f32 %v9204_v56  ;;  %v3792_v63 = vmul.f32 %v9210_v42, %v9154_v7  ;;  %v3683_v15 = vor.u32 1.1754944e-38, %v3682_v41  ;;  %v3744_v39 = vsel %vm3741_vm9, %v3743_v2, %v3739_v4 }
0x1034   : > { %v3560_v53 = vadd.f32 %v3559_v38, %v3510_v21  ;;  %3830 = vst [vmem:[%s6949_s26 + $0xa0] sm:$0xff] %v9208_v43  ;;  %v3785_v28 = vand.u32 2147483647, %v9083_v23  ;;  %vm3681_vm8 = vcmp.eq.f32.partialorder %v3680_v5, 8.507059e+37  ;;  %v3784_v21 = vsel %vm3783_vm10, %v9160_v19, %v3780_v37 }
0x1035   : > { %v3684_v38 = vsel %vm3681_vm8, %v3683_v15, %v3679_v35  ;;  %v3813_v11 = vmul.f32 %v3744_v39, %v8815_v30  ;;  %vm3797_vm11 = vweird.f32 %v9210_v42  ;;  %v3802_v14 = vand.u32 2147483648, %v9154_v7 }
0x1036   : > { %v5905_v50 = vpop.eup %5904  ;;  %v3577_v54 = vadd.f32 %v3560_v53, %v6953_v40  ;;  %v3788_v53 = vor.u32 1.1754944e-38, %v3787_v51  ;;  %vm3786_vm12 = vcmp.eq.f32.partialorder %v3785_v28, 8.507059e+37  ;;  %vm3796_vm13 = vweird.f32 %v9154_v7 }
0x1037   : > { %v3816_v34 = vmul.f32 %v5905_v50, %v3669_v26  ;;  %v3793_v26 = vsub.f32 1.0, %v3792_v63  ;;  %v3800_v30 = vand.u32 2147483647, %v9154_v7  ;;  %vm3798_vm14 = vmor %vm3796_vm13, %vm3797_vm11  ;;  %v3836_v63 = vpack.c.bf16 %v9204_v56, %v9156_v1 }
0x1038   : > { %5908 = vtanh.f32 %v3577_v54  ;;  %v3789_v24 = vsel %vm3786_vm12, %v3788_v53, %v3784_v21  ;;  %v3803_v54 = vor.u32 1.1754944e-38, %v3802_v14  ;;  %v10662_v53 = vld [vmem:[#allocation12_spill] sm:$0xff]  ;;  %v10665_v14 = vld [vmem:[#allocation7_spill] sm:$0xff] }
0x1039   : > { %v5907_v12 = vpop.eup %5906  ;;  %v9249_v13 = vadd.f32 %v3816_v34, %v3812_v25  ;;  %v3794_v46 = vmul.f32 %v9210_v42, %v3793_v26  ;;  %vm3801_vm15 = vcmp.eq.f32.partialorder %v3800_v30, 8.507059e+37 }
0x103a   : > { %v3827_v6 = vmul.f32 %v5907_v12, %v3774_v8 }
0x103b   : > { %5910 = vtanh.f32 %v9249_v13  ;;  %v3795_v23 = vadd.f32 %v9210_v42, %v3794_v46 }
0x103c   : > { %3831 = vst [vmem:[%s6949_s26 + $0xa8] sm:$0xff] %v3827_v6  ;;  %v9293_v7 = vpack.c.bf16 %v3827_v6, %v9208_v43 }
0x103d   : > { %v3799_v50 = vsel %vm3798_vm14, %v9210_v42, %v3795_v23 }
0x103e   : > { %v5909_v17 = vpop.eup %5908  ;;  %v3804_v47 = vsel %vm3801_vm15, %v3803_v54, %v3799_v50  ;;  %v10666_v50 = vld [vmem:[#allocation17_spill] sm:$0xff]  ;;  %v10667_v54 = vld [vmem:[#allocation6_spill] sm:$0xff] }
0x103f   : > { %v3817_v55 = vmul.f32 %v5909_v17, %v3684_v38 }
0x1041   : > { %v5911_v29 = vpop.eup %5910  ;;  %v9272_v20 = vadd.f32 %v3817_v55, %v3813_v11 }
0x1042   : > { %v3828_v18 = vmul.f32 %v5911_v29, %v3789_v24  ;;  %v10663_v24 = vld [vmem:[#allocation8_spill] sm:$0xff] }
0x1043   : > { %v3837_v19 = vpack.c.bf16 %v9272_v20, %v9249_v13  ;;  %5912 = vtanh.f32 %v9272_v20 }
0x1044   : > { %3832 = vst [vmem:[%s6949_s26 + $0xb0] sm:$0xff] %v3828_v18 }
0x1045   : > { %3844 = vmatpush.bf16.msrb.mxu3 %v3837_v19 }
0x1049   : > { %v5913_v57 = vpop.eup %5912  ;;  %3845 = vmatpush.bf16.msrb.mxu3 %v3836_v63 }
0x104a   : > { %v3829_v34 = vmul.f32 %v5913_v57, %v3804_v47 }
0x104c   : > { %5253 = vmatmul.msk.bf16.vlgmr.msrb.gmra.mxu3 %vm690_vm1, %v8832_v59  ;;  %3833 = vst [vmem:[%s6949_s26 + $0xb8] sm:$0xff] %v3829_v34  ;;  %v9289_v22 = vpack.c.bf16 %v3829_v34, %v3828_v18  ;;  %v9309_v59 = vld [vmem:[%s10182_s3 + $0x18] sm:$0xff]  ;;  %v10664_v18 = vld [vmem:[#allocation16_spill] sm:$0xff] }
0x104e   : > { %3873 = vmatpush.bf16.msrb.mxu1 %v9289_v22 }
0x1052   : > { %3874 = vmatpush.bf16.msrb.mxu1 %v9293_v7 }
0x1055   : > { %5257 = vmatmul.msk.bf16.vlgmr.msrb.gmra.mxu1 %vm690_vm1, %v8847_v45 }
0x105c   : > { %5254 = vmatmul.msk.bf16.gmra.mxu3 %vm690_vm1, %v8854_v49 }
0x1065   : > { %5258 = vmatmul.msk.bf16.gmra.mxu1 %vm690_vm1, %v8861_v48 }
0x106c   : > { %5255 = vmatmul.msk.bf16.gmra.mxu3 %vm690_vm1, %v8868_v62 }
0x1075   : > { %5259 = vmatmul.msk.bf16.gmra.mxu1 %vm690_vm1, %v8875_v33 }
0x107c   : > { %5256 = vmatmul.msk.bf16.gmra.mxu3 %vm690_vm1, %v9309_v59 }
0x1085   : > { %5260 = vmatmul.msk.bf16.gmra.mxu1 %vm690_vm1, %v8884_v27 }
0x10cf   : > { %v3847_v45 = vpop.f32.mrf.mxu3 }
0x10d2   : > { %v3876_v49 = vpop.f32.mrf.mxu1 }
0x10d3   : > { %v3877_v48 = vadd.f32 %v3876_v49, %v3847_v45  ;;  %v10668_v45 = vld [vmem:[#allocation18_spill] sm:$0xff] }
0x10d5   : > { %v3896_v63 = vadd.f32 %v3877_v48, %v10666_v50 }
0x10d7   : > { %v3849_v43 = vpop.f32.mrf.mxu3 }
0x10da   : > { %v3878_v42 = vpop.f32.mrf.mxu1 }
0x10db   : > { %v3879_v21 = vadd.f32 %v3878_v42, %v3849_v43 }
0x10dd   : > { %v3897_v19 = vadd.f32 %v3879_v21, %v10664_v18 }
0x10df   : > { %v3852_v62 = vpop.f32.mrf.mxu3  ;;  %v3905_v49 = vadd.f32 %v3897_v19, %v10668_v45 }
0x10e2   : > { %v3881_v25 = vpop.f32.mrf.mxu1 }
0x10e3   : > { %v3882_v28 = vadd.f32 %v3881_v25, %v3852_v62  ;;  %v10669_v62 = vld [vmem:[#allocation14_spill] sm:$0xff] }
0x10e4   : > { %v3904_v25 = vadd.f32 %v3896_v63, %v10669_v62 }
0x10e5   : > { %v3898_v29 = vadd.f32 %v3882_v28, %v10662_v53 }
0x10e7   : > { %v3854_v9 = vpop.f32.mrf.mxu3  ;;  %v3906_v57 = vadd.f32 %v3898_v29, %v10667_v54 }
0x10ea   : > { %v3883_v33 = vpop.f32.mrf.mxu1 }
0x10eb   : > { %v3884_v35 = vadd.f32 %v3883_v33, %v3854_v9 }
0x10ed   : > { %v3899_v46 = vadd.f32 %v3884_v35, %v10545_v31 }
0x10ef   : > { %v3857_v5 = vpop.f32.mrf.mxu3  ;;  %v3907_v30 = vadd.f32 %v3899_v46, %v10665_v14 }
0x10f2   : > { %v3886_v41 = vpop.f32.mrf.mxu1 }
0x10f3   : > { %v3887_v27 = vadd.f32 %v3886_v41, %v3857_v5 }
0x10f5   : > { %v3900_v17 = vadd.f32 %v3887_v27, %v10543_v52  ;;  %v10675_v27 = vld [vmem:[#allocation9_spill] sm:$0xff] }
0x10f7   : > { %v3859_v0 = vpop.f32.mrf.mxu3  ;;  %v3908_v23 = vadd.f32 %v3900_v17, %v10663_v24 }
0x10fa   : > { %v3888_v12 = vpop.f32.mrf.mxu1 }
0x10fb   : > { %v3889_v26 = vadd.f32 %v3888_v12, %v3859_v0 }
0x10fd   : > { %v3901_v51 = vadd.f32 %v3889_v26, %v6508_v16  ;;  %v10672_v26 = vld [vmem:[#allocation11_spill] sm:$0xff] }
0x10ff   : > { %v3862_v4 = vpop.f32.mrf.mxu3  ;;  %v3909_v55 = vadd.f32 %v3901_v51, %v10546_v58 }
0x1102   : > { %v3891_v2 = vpop.f32.mrf.mxu1 }
0x1103   : > { %v3892_v8 = vadd.f32 %v3891_v2, %v3862_v4  ;;  %v9335_v2 = vld [vmem:[%s10184_s5] sm:$0xf] }
0x1104   : > { %10670 = vst [vmem:[#allocation10_spill] sm:$0xff] %v9335_v2 }
0x1105   : > { %v3902_v36 = vadd.f32 %v3892_v8, %v6504_v10  ;;  %v10671_v8 = vld [vmem:[#allocation30_spill] sm:$0xff] }
0x1107   : > { %v3864_v37 = vpop.f32.mrf.mxu3  ;;  %v3910_v39 = vadd.f32 %v3902_v36, %v6498_v61  ;;  %v10673_v36 = vld [vmem:[#allocation13_spill] sm:$0xff] }
0x1109   : > { %5914 = vtanh.f32 %v3910_v39 }
0x110a   : > { %v3893_v6 = vpop.f32.mrf.mxu1 }
0x110b   : > { %v3894_v15 = vadd.f32 %v3893_v6, %v3864_v37  ;;  %v9353_v37 = vld [vmem:[%s10185_s6 + $0x28] sm:$0xff]  ;;  %v9367_v6 = vld [vmem:[%s10185_s6 + $0x38] sm:$0xff] }
0x110c   : > { %10676 = vst [vmem:[#allocation22_spill] sm:$0xff] %v9353_v37 }
0x110d   : > { %v3903_v38 = vadd.f32 %v3894_v15, %v10544_v60  ;;  %10678 = vst [vmem:[#allocation26_spill] sm:$0xff] %v9367_v6 }
0x110f   : > { %v3911_v11 = vadd.f32 %v3903_v38, %v10547_v44  ;;  %v5915_v47 = vpop.eup %5914 }
0x1111   : > { %5916 = vtanh.f32 %v3911_v11 }
0x1112   : > { %5918 = vtanh.f32 %v3909_v55 }
0x1113   : > { %5920 = vtanh.f32 %v3908_v23 }
0x1114   : > { %5922 = vtanh.f32 %v3907_v30 }
0x1115   : > { %5924 = vtanh.f32 %v3906_v57 }
0x1116   : > { %5926 = vtanh.f32 %v3905_v49  ;;  %v6154_v49 = vld [vmem:[%s6354_s14 + $0x30] sm:$0xff] }
0x1117   : > { %v5917_v34 = vpop.eup %5916  ;;  %5928 = vtanh.f32 %v3904_v25 }
0x1118   : > { %v3923_v43 = vpack.c.bf16 %v5917_v34, %v5915_v47  ;;  %v5919_v42 = vpop.eup %5918 }
0x1119   : > { %v5921_v9 = vpop.eup %5920 }
0x111a   : > { %3928 = vmatpush.bf16.msra.mxu3 %v3923_v43  ;;  %v3922_v33 = vpack.c.bf16 %v5919_v42, %v5921_v9  ;;  %v5923_v5 = vpop.eup %5922  ;;  %v9376_v9 = vld [vmem:[%s10186_s7] sm:$0xff] }
0x111b   : > { %v5925_v48 = vpop.eup %5924  ;;  %10679 = vst [vmem:[#allocation20_spill] sm:$0xff] %v9376_v9 }
0x111c   : > { %v3921_v41 = vpack.c.bf16 %v5923_v5, %v5925_v48  ;;  %v5927_v0 = vpop.eup %5926  ;;  %v9390_v5 = vld [vmem:[%s10186_s7 + $0x10] sm:$0xff]  ;;  %v9397_v48 = vld [vmem:[%s10186_s7 + $0x18] sm:$0xff] }
0x111d   : > { %v5929_v12 = vpop.eup %5928  ;;  %10681 = vst [vmem:[#allocation28_spill] sm:$0xff] %v9390_v5 }
0x111e   : > { %3929 = vmatpush.bf16.msra.mxu3 %v3922_v33  ;;  %v3920_v4 = vpack.c.bf16 %v5927_v0, %v5929_v12  ;;  %v9383_v33 = vld [vmem:[%s10186_s7 + $0x8] sm:$0xff]  ;;  %10682 = vst [vmem:[#allocation19_spill] sm:$0xff] %v9397_v48 }
0x111f   : > { %10680 = vst [vmem:[#allocation24_spill] sm:$0xff] %v9383_v33  ;;  %v9411_v0 = vld [vmem:[%s10186_s7 + $0x28] sm:$0xff] }
0x1120   : > { %10684 = vst [vmem:[#allocation23_spill] sm:$0xff] %v9411_v0 }
0x1122   : > { %3930 = vmatpush.bf16.msra.mxu3 %v3921_v41  ;;  %v9404_v41 = vld [vmem:[%s10186_s7 + $0x20] sm:$0xff] }
0x1123   : > { %10683 = vst [vmem:[#allocation21_spill] sm:$0xff] %v9404_v41 }
0x1126   : > { %3931 = vmatpush.bf16.msra.mxu3 %v3920_v4  ;;  %v9418_v4 = vld [vmem:[%s10186_s7 + $0x30] sm:$0xff] }
0x1127   : > { %10685 = vst [vmem:[#allocation25_spill] sm:$0xff] %v9418_v4 }
0x1129   : > { %5261 = vmatmul.msk.bf16.vlgmr.msra.gmra.mxu3 %vm628_vm0, %v9335_v2 }
0x112a   : > { %4014 = vmatpush.bf16.msrb.mxu3 %v9289_v22  ;;  %v10674_v22 = vld [vmem:[#allocation15_spill] sm:$0xff] }
0x112e   : > { %4015 = vmatpush.bf16.msrb.mxu3 %v9293_v7  ;;  %v9360_v7 = vld [vmem:[%s10185_s6 + $0x30] sm:$0xff] }
0x112f   : > { %10677 = vst [vmem:[#allocation31_spill] sm:$0xff] %v9360_v7 }
0x1139   : > { %5270 = vmatmul.msk.bf16.vlgmr.msrb.gmra.mxu3 %vm690_vm1, %v10671_v8 }
0x1149   : > { %5271 = vmatmul.msk.bf16.gmra.mxu3 %vm690_vm1, %v10672_v26  ;;  %v9425_v26 = vld [vmem:[%s10186_s7 + $0x38] sm:$0xff] }
0x114a   : > { %10686 = vst [vmem:[#allocation27_spill] sm:$0xff] %v9425_v26 }
0x1159   : > { %5272 = vmatmul.msk.bf16.gmra.mxu3 %vm690_vm1, %v10673_v36 }
0x1169   : > { %5273 = vmatmul.msk.bf16.gmra.mxu3 %vm690_vm1, %v10674_v22 }
0x1179   : > { %5274 = vmatmul.msk.bf16.gmra.mxu3 %vm690_vm1, %v10675_v27 }
0x1189   : > { %5275 = vmatmul.msk.bf16.gmra.mxu3 %vm690_vm1, %v9353_v37 }
0x1199   : > { %5276 = vmatmul.msk.bf16.gmra.mxu3 %vm690_vm1, %v9360_v7 }
0x11a9   : > { %5277 = vmatmul.msk.bf16.gmra.mxu3 %vm690_vm1, %v9367_v6 }
0x11ac   : > { %v3933_v35 = vpop.f32.mrf.mxu3 }
0x11ad   : > { %v3937_v51 = vrot.slane %v3933_v35, 4 }
0x11af   : > { %v3938_v15 = vmax.f32 %v3933_v35, %v3937_v51 }
0x11b1   : > { %v3939_v39 = vrot.slane %v3938_v15, 2 }
0x11b3   : > { %v3940_v28 = vmax.f32 %v3938_v15, %v3939_v39 }
0x11b4   : > { %v3935_v17 = vpop.f32.mrf.mxu3 }
0x11b5   : > { %v3941_v38 = vrot.slane %v3940_v28, 1 }
0x11b7   : > { %v3942_v21 = vmax.f32 %v3940_v28, %v3941_v38 }
0x11b9   : > { %v3943_v46 = vsub.f32 %v3933_v35, %v3942_v21 }
0x11bb   : > { %v3944_v55 = vmul.f32 1.442695, %v3943_v46 }
0x11bc   : > { %v4017_v12 = vpop.f32.mrf.mxu3 }
0x11bd   : > { %5930 = vpow2.f32 %v3944_v55 }
0x11c3   : > { %v5931_v11 = vpop.eup %5930 }
0x11c4   : > { %v3946_v29 = vrot.slane %v5931_v11, 4  ;;  %v4019_v8 = vpop.f32.mrf.mxu3 }
0x11c6   : > { %v3947_v23 = vadd.f32 %v5931_v11, %v3946_v29 }
0x11c8   : > { %v3948_v19 = vrot.slane %v3947_v23, 2 }
0x11ca   : > { %v3949_v30 = vadd.f32 %v3948_v19, %v3947_v23  ;;  %v10687_v19 = vld [vmem:[#allocation36_spill] sm:$0xff] }
0x11cc   : > { %v3950_v63 = vrot.slane %v3949_v30, 1  ;;  %v4022_v36 = vpop.f32.mrf.mxu3 }
0x11ce   : > { %v3951_v57 = vadd.f32 %v3950_v63, %v3949_v30 }
0x11d0   : > { %5932 = vrcp.f32 %v3951_v57 }
0x11d4   : > { %v4024_v27 = vpop.f32.mrf.mxu3 }
0x11d6   : > { %v5933_v47 = vpop.eup %5932 }
0x11d7   : > { %v3953_v34 = vmul.f32 %v5933_v47, %v5931_v11 }
0x11d9   : > { %v3954_v43 = vmul.f32 %v6154_v49, %v3953_v34  ;;  %v10688_v49 = vld [vmem:[#allocation37_spill] sm:$0xff] }
0x11db   : > { %v3955_v42 = vpack.c.bf16 %v3954_v43, %v3954_v43 }
0x11dc   : > { %v4027_v39 = vpop.f32.mrf.mxu3 }
0x11dd   : > { %v3957_v25 = vsel %vm921_vm2, %v3955_v42, 0  ;;  %v10689_v42 = vld [vmem:[#allocation38_spill] sm:$0xff] }
0x11de   : > { %3966 = vmatpush.bf16.msra.mxu1 %v3957_v25 }
0x11e1   : > { %5262 = vmatmul.msk.bf16.vlgmr.msra.gmra.mxu1 %vm896_vm3, %v9376_v9 }
0x11e4   : > { %v4029_v38 = vpop.f32.mrf.mxu3 }
0x11ec   : > { %v4032_v55 = vpop.f32.mrf.mxu3 }
0x11f1   : > { %5263 = vmatmul.msk.bf16.gmra.mxu1 %vm896_vm3, %v9383_v33 }
0x11f4   : > { %v4034_v23 = vpop.f32.mrf.mxu3 }
0x11fc   : > { %v4037_v57 = vpop.f32.mrf.mxu3 }
0x1201   : > { %5264 = vmatmul.msk.bf16.gmra.mxu1 %vm896_vm3, %v9390_v5 }
0x1211   : > { %5265 = vmatmul.msk.bf16.gmra.mxu1 %vm896_vm3, %v9397_v48 }
0x1221   : > { %5266 = vmatmul.msk.bf16.gmra.mxu1 %vm896_vm3, %v9404_v41 }
0x1231   : > { %5267 = vmatmul.msk.bf16.gmra.mxu1 %vm896_vm3, %v9411_v0 }
0x1241   : > { %5268 = vmatmul.msk.bf16.gmra.mxu1 %vm896_vm3, %v9418_v4 }
0x1251   : > { %5269 = vmatmul.msk.bf16.gmra.mxu1 %vm896_vm3, %v9425_v26 }
0x125e   : > { %v3968_v22 = vpop.f32.mrf.mxu1 }
0x125f   : > { %v4018_v35 = vadd.f32 %v4017_v12, %v3968_v22 }
0x1261   : > { %v4057_v30 = vadd.f32 %v4018_v35, %v10687_v19  ;;  %v10691_v35 = vld [vmem:[#allocation39_spill] sm:$0xff] }
0x1263   : > { %v5278_v34 = vmul.f32 -1.442695, %v4057_v30 }
0x1265   : > { %5934 = vpow2.f32 %v5278_v34 }
0x1266   : > { %v3970_v51 = vpop.f32.mrf.mxu1 }
0x1267   : > { %v4020_v15 = vadd.f32 %v4019_v8, %v3970_v51 }
0x1269   : > { %v4058_v43 = vadd.f32 %v4020_v15, %v10688_v49 }
0x126b   : > { %v5279_v8 = vmul.f32 -1.442695, %v4058_v43 }
0x126d   : > { %5936 = vpow2.f32 %v5279_v8 }
0x126e   : > { %v3973_v28 = vpop.f32.mrf.mxu1 }
0x126f   : > { %v4023_v17 = vadd.f32 %v4022_v36, %v3973_v28  ;;  %v4039_v28 = vpop.f32.mrf.mxu3 }
0x1276   : > { %v3975_v21 = vpop.f32.mrf.mxu1 }
0x1277   : > { %v4025_v46 = vadd.f32 %v4024_v27, %v3975_v21  ;;  %v10690_v27 = vld [vmem:[#allocation32_spill] sm:$0xff]  ;;  %v5935_v21 = vpop.eup %5934  ;;  %v4042_v8 = vpop.f32.mrf.mxu3 }
0x1278   : > { %v4059_v51 = vadd.f32 %v4023_v17, %v10690_v27  ;;  %v5937_v34 = vpop.eup %5936 }
0x127a   : > { %v5280_v26 = vmul.f32 -1.442695, %v4059_v51 }
0x127e   : > { %v3978_v11 = vpop.f32.mrf.mxu1 }
0x127f   : > { %v4028_v47 = vadd.f32 %v4027_v39, %v3978_v11  ;;  %v9434_v11 = vadd.f32 1.0, %v5935_v21 }
0x1281   : > { %v4061_v25 = vadd.f32 %v4028_v47, %v10689_v42  ;;  %vm4126_vm6 = vweird.f32 %v9434_v11 }
0x1283   : > { %v5282_v36 = vmul.f32 -1.442695, %v4061_v25 }
0x1285   : > { %5938 = vpow2.f32 %v5282_v36  ;;  %v9439_v36 = vadd.f32 1.0, %v5937_v34 }
0x1286   : > { %v3980_v29 = vpop.f32.mrf.mxu1  ;;  %5940 = vpow2.f32 %v5280_v26 }
0x1287   : > { %v4030_v22 = vadd.f32 %v4029_v38, %v3980_v29  ;;  %5942 = vrcp.f32 %v9434_v11  ;;  %v10692_v38 = vld [vmem:[#allocation41_spill] sm:$0xff]  ;;  %v4145_v48 = vand.u32 2147483647, %v9439_v36  ;;  %vm4141_vm5 = vweird.f32 %v9439_v36 }
0x1288   : > { %v10693_v29 = vld [vmem:[#allocation33_spill] sm:$0xff] }
0x1289   : > { %v4062_v19 = vadd.f32 %v4030_v22, %v10691_v35  ;;  %v4060_v25 = vadd.f32 %v4025_v46, %v10693_v29  ;;  %v10694_v22 = vld [vmem:[#allocation34_spill] sm:$0xff]  ;;  %vm9525_vm12 = vcmp.eq.f32.partialorder %v4145_v48, 8.507059e+37 }
0x128b   : > { %v5283_v30 = vmul.f32 -1.442695, %v4062_v19  ;;  %v5939_v43 = vpop.eup %5938  ;;  %v5281_v26 = vmul.f32 -1.442695, %v4060_v25  ;;  %v4044_v25 = vpop.f32.mrf.mxu3 }
0x128c   : > { %v9442_v21 = vadd.f32 1.0, %v5939_v43 }
0x128d   : > { %5944 = vpow2.f32 %v5283_v30  ;;  %v10695_v30 = vld [vmem:[#allocation42_spill] sm:$0xff] }
0x128e   : > { %v3983_v63 = vpop.f32.mrf.mxu1  ;;  %5946 = vrcp.f32 %v9439_v36  ;;  %vm4186_vm11 = vweird.f32 %v9442_v21 }
0x128f   : > { %v4033_v47 = vadd.f32 %v4032_v55, %v3983_v63  ;;  %v5941_v63 = vpop.eup %5940  ;;  %5948 = vrcp.f32 %v9442_v21 }
0x1290   : > { %v9444_v35 = vpop.eup %5942  ;;  %v9448_v34 = vadd.f32 1.0, %v5941_v63 }
0x1291   : > { %v4063_v51 = vadd.f32 %v4033_v47, %v10694_v22  ;;  %v4122_v43 = vmul.f32 %v9444_v35, %v9434_v11  ;;  %vm4127_vm4 = vweird.f32 %v9444_v35 }
0x1292   : > { %vm9494_vm7 = vmor %vm4126_vm6, %vm4127_vm4  ;;  %vm4156_vm13 = vweird.f32 %v9448_v34 }
0x1293   : > { %v5945_v46 = vpop.eup %5944 }
0x1296   : > { %v3985_v12 = vpop.f32.mrf.mxu1 }
0x129e   : > { %v3988_v39 = vpop.f32.mrf.mxu1 }
0x129f   : > { %v4038_v15 = vadd.f32 %v4037_v57, %v3988_v39  ;;  %v4035_v39 = vadd.f32 %v4034_v23, %v3985_v12  ;;  %v9454_v23 = vadd.f32 1.0, %v5945_v46 }
0x12a1   : > { %v4065_v17 = vadd.f32 %v4038_v15, %v10692_v38  ;;  %v5284_v15 = vmul.f32 -1.442695, %v4063_v51  ;;  %v9456_v51 = vpop.eup %5946  ;;  %v4205_v62 = vand.u32 2147483647, %v9454_v23 }
0x12a2   : > { %vm4142_vm8 = vweird.f32 %v9456_v51 }
0x12a3   : > { %v5286_v19 = vmul.f32 -1.442695, %v4065_v17  ;;  %vm9551_vm15 = vmor %vm4141_vm5, %vm4142_vm8 }
0x12a5   : > { %5950 = vpow2.f32 %v5286_v19  ;;  %v9459_v19 = vpop.eup %5948 }
0x12a6   : > { %v3990_v57 = vpop.f32.mrf.mxu1  ;;  %5952 = vpow2.f32 %v5281_v26  ;;  %vm4187_vm10 = vweird.f32 %v9459_v19 }
0x12a7   : > { %v4040_v55 = vadd.f32 %v4039_v28, %v3990_v57  ;;  %v10696_v28 = vld [vmem:[#allocation35_spill] sm:$0xff]  ;;  %5954 = vpow2.f32 %v5284_v15  ;;  %v10697_v15 = vld [vmem:[#allocation40_spill] sm:$0xff]  ;;  %vm9538_vm14 = vmor %vm4186_vm11, %vm4187_vm10 }
0x12a8   : > { %v4064_v17 = vadd.f32 %v4035_v39, %v10696_v28  ;;  %5956 = vrcp.f32 %v9448_v34  ;;  %v4137_v39 = vmul.f32 %v9456_v51, %v9439_v36  ;;  %v4182_v28 = vmul.f32 %v9459_v19, %v9442_v21 }
0x12a9   : > { %v4066_v47 = vadd.f32 %v4040_v55, %v10695_v30  ;;  %v4123_v55 = vsub.f32 1.0, %v4122_v43  ;;  %5958 = vrcp.f32 %v9454_v23 }
0x12aa   : > { %v5285_v30 = vmul.f32 -1.442695, %v4064_v17  ;;  %v4138_v27 = vsub.f32 1.0, %v4137_v39  ;;  %v10698_v39 = vld [vmem:[#allocation43_spill] sm:$0xff] }
0x12ab   : > { %v5287_v57 = vmul.f32 -1.442695, %v4066_v47  ;;  %v5951_v22 = vpop.eup %5950  ;;  %v4124_v47 = vmul.f32 %v9444_v35, %v4123_v55  ;;  %v4047_v55 = vpop.f32.mrf.mxu3 }
0x12ac   : > { %v5953_v29 = vpop.eup %5952  ;;  %v4139_v4 = vmul.f32 %v9456_v51, %v4138_v27 }
0x12ad   : > { %v5955_v26 = vpop.eup %5954  ;;  %5960 = vpow2.f32 %v5287_v57  ;;  %v9472_v17 = vadd.f32 1.0, %v5953_v29  ;;  %v4125_v29 = vadd.f32 %v9444_v35, %v4124_v47 }
0x12ae   : > { %v3993_v12 = vpop.f32.mrf.mxu1  ;;  %5962 = vpow2.f32 %v5285_v30  ;;  %v9470_v43 = vpop.eup %5956  ;;  %v4183_v30 = vsub.f32 1.0, %v4182_v28  ;;  %v4147_v28 = vand.u32 2147483648, %v9439_v36 }
0x12af   : > { %v4043_v63 = vadd.f32 %v4042_v8, %v3993_v12  ;;  %v9467_v8 = vadd.f32 1.0, %v5951_v22  ;;  %v9474_v12 = vadd.f32 1.0, %v5955_v26  ;;  %v4152_v22 = vmul.f32 %v9470_v43, %v9448_v34 }
0x12b0   : > { %v4130_v26 = vand.u32 2147483647, %v9434_v11  ;;  %v4148_v27 = vor.u32 1.1754944e-38, %v4147_v28  ;;  %v4192_v28 = vand.u32 2147483648, %v9442_v21  ;;  %vm4157_vm4 = vweird.f32 %v9470_v43 }
0x12b1   : > { %v4067_v46 = vadd.f32 %v4043_v63, %v10697_v15  ;;  %v9477_v63 = vpop.eup %5958  ;;  %5964 = vrcp.f32 %v9467_v8  ;;  %v4153_v0 = vsub.f32 1.0, %v4152_v22  ;;  %vm9582_vm5 = vmor %vm4156_vm13, %vm4157_vm4  ;;  %vm4216_vm13 = vweird.f32 %v9474_v12 }
0x12b2   : > { %5966 = vrcp.f32 %v9472_v17  ;;  %v4197_v49 = vmul.f32 %v9477_v63, %v9454_v23  ;;  %vm4131_vm9 = vcmp.eq.f32.partialorder %v4130_v26, 8.507059e+37 }
0x12b3   : > { %v5288_v42 = vmul.f32 -1.442695, %v4067_v46  ;;  %v5961_v15 = vpop.eup %5960  ;;  %5968 = vrcp.f32 %v9474_v12  ;;  %v4049_v47 = vpop.f32.mrf.mxu3 }
0x12b4   : > { %v9499_v41 = vadd.f32 1.0, %v5961_v15 }
0x12b5   : > { %5970 = vpow2.f32 %v5288_v42 }
0x12b6   : > { %v3995_v38 = vpop.f32.mrf.mxu1  ;;  %5972 = vrcp.f32 %v9499_v41 }
0x12b7   : > { %v4045_v57 = vadd.f32 %v4044_v25, %v3995_v38  ;;  %v4132_v38 = vand.u32 2147483648, %v9434_v11  ;;  %v5963_v25 = vpop.eup %5962  ;;  %v4129_v11 = vsel %vm9494_vm7, %v9444_v35, %v4125_v29  ;;  %v4198_v35 = vsub.f32 1.0, %v4197_v49 }
0x12b8   : > { %v9508_v5 = vpop.eup %5964  ;;  %v4140_v29 = vadd.f32 %v9456_v51, %v4139_v4  ;;  %vm4202_vm7 = vweird.f32 %v9477_v63 }
0x12b9   : > { %v4068_v46 = vadd.f32 %v4045_v57, %v10698_v39  ;;  %v4184_v57 = vmul.f32 %v9459_v19, %v4183_v30  ;;  %v9505_v39 = vadd.f32 1.0, %v5963_v25  ;;  %v4133_v42 = vor.u32 1.1754944e-38, %v4132_v38  ;;  %v9512_v15 = vpop.eup %5966 }
0x12ba   : > { %v9515_v26 = vpop.eup %5968  ;;  %v4154_v38 = vmul.f32 %v9470_v43, %v4153_v0  ;;  %v4242_v49 = vmul.f32 %v9508_v5, %v9467_v8  ;;  %v4167_v0 = vmul.f32 %v9512_v15, %v9472_v17  ;;  %vm4247_vm11 = vweird.f32 %v9508_v5 }
0x12bb   : > { %v5289_v33 = vmul.f32 -1.442695, %v4068_v46  ;;  %v4134_v30 = vsel %vm4131_vm9, %v4133_v42, %v4129_v11  ;;  %v4185_v25 = vadd.f32 %v9459_v19, %v4184_v57  ;;  %v5971_v46 = vpop.eup %5970  ;;  %5974 = vrcp.f32 %v9505_v39 }
0x12bc   : > { %v4190_v11 = vand.u32 2147483647, %v9442_v21  ;;  %v4160_v57 = vand.u32 2147483647, %v9448_v34  ;;  %v4199_v42 = vmul.f32 %v9477_v63, %v4198_v35  ;;  %v4144_v35 = vsel %vm9551_vm15, %v9456_v51, %v4140_v29  ;;  %v9563_v7 = vpop.eup %5972 }
0x12bd   : > { %5976 = vpow2.f32 %v5289_v33  ;;  %v4212_v33 = vmul.f32 %v9515_v26, %v9474_v12  ;;  %v4243_v6 = vsub.f32 1.0, %v4242_v49  ;;  %v4168_v36 = vsub.f32 1.0, %v4167_v0 }
0x12be   : > { %v3998_v9 = vpop.f32.mrf.mxu1  ;;  %v9566_v2 = vadd.f32 %v9470_v43, %v4154_v38  ;;  %vm4191_vm6 = vcmp.eq.f32.partialorder %v4190_v11, 8.507059e+37  ;;  %v4200_v51 = vadd.f32 %v9477_v63, %v4199_v42  ;;  %vm4201_vm9 = vweird.f32 %v9454_v23 }
0x12bf   : > { %v4048_v22 = vadd.f32 %v4047_v55, %v3998_v9  ;;  %v10701_v9 = vld [vmem:[#allocation44_spill] sm:$0xff]  ;;  %v4213_v49 = vsub.f32 1.0, %v4212_v33  ;;  %v4257_v0 = vmul.f32 %v9563_v7, %v9499_v41  ;;  %v4149_v33 = vsel %vm9525_vm12, %v4148_v27, %v4144_v35  ;;  %vm9600_vm10 = vmor %vm4201_vm9, %vm4202_vm7 }
0x12c0   : > { %v4159_v21 = vsel %vm9582_vm5, %v9470_v43, %v9566_v2  ;;  %vm9594_vm8 = vcmp.eq.f32.partialorder %v4160_v57, 8.507059e+37  ;;  %v4204_v27 = vsel %vm9600_vm10, %v9477_v63, %v4200_v51  ;;  %vm9609_vm12 = vcmp.eq.f32.partialorder %v4205_v62, 8.507059e+37  ;;  %v4052_v57 = vpop.f32.mrf.mxu3 }
0x12c1   : > { %v4069_v55 = vadd.f32 %v4048_v22, %v10701_v9  ;;  %v9545_v22 = vadd.f32 1.0, %v5971_v46  ;;  %v4189_v9 = vsel %vm9538_vm14, %v9459_v19, %v4185_v25  ;;  %v4193_v46 = vor.u32 1.1754944e-38, %v4192_v28  ;;  %v9569_v48 = vpop.eup %5974 }
0x12c2   : > { %v4214_v43 = vmul.f32 %v9515_v26, %v4213_v49  ;;  %v4258_v63 = vsub.f32 1.0, %v4257_v0  ;;  %vm4246_vm14 = vweird.f32 %v9467_v8  ;;  %v4250_v49 = vand.u32 2147483647, %v9467_v8 }
0x12c3   : > { %5978 = vtanh.f32 %v4069_v55  ;;  %v4162_v55 = vand.u32 2147483648, %v9448_v34  ;;  %v4194_v25 = vsel %vm4191_vm6, %v4193_v46, %v4189_v9  ;;  %v5977_v29 = vpop.eup %5976  ;;  %v4207_v9 = vand.u32 2147483648, %v9454_v23  ;;  %vm9637_vm4 = vmor %vm4246_vm14, %vm4247_vm11 }
0x12c4   : > { %5980 = vrcp.f32 %v9545_v22  ;;  %v4169_v23 = vmul.f32 %v9512_v15, %v4168_v36  ;;  %v9616_v4 = vadd.f32 1.0, %v5977_v29  ;;  %v4222_v36 = vand.u32 2147483648, %v9474_v12 }
0x12c5   : > { %v4163_v28 = vor.u32 1.1754944e-38, %v4162_v55  ;;  %v4208_v35 = vor.u32 1.1754944e-38, %v4207_v9  ;;  %vm4217_vm15 = vweird.f32 %v9515_v26  ;;  %v4215_v0 = vadd.f32 %v9515_v26, %v4214_v43 }
0x12c6   : > { %v4000_v37 = vpop.f32.mrf.mxu1  ;;  %vm4172_vm6 = vweird.f32 %v9512_v15  ;;  %vm9655_vm7 = vmor %vm4216_vm13, %vm4217_vm15  ;;  %vm4251_vm9 = vcmp.eq.f32.partialorder %v4250_v49, 8.507059e+37  ;;  %vm4171_vm5 = vweird.f32 %v9472_v17  ;;  %vm4231_vm11 = vweird.f32 %v9505_v39 }
0x12c7   : > { %v4050_v19 = vadd.f32 %v4049_v47, %v4000_v37  ;;  %v4244_v47 = vmul.f32 %v9508_v5, %v4243_v6  ;;  %v4305_v6 = vmul.f32 %v4194_v25, %v9156_v1  ;;  %v4252_v25 = vand.u32 2147483648, %v9467_v8 }
0x12c8   : > { %v4209_v29 = vsel %vm9609_vm12, %v4208_v35, %v4204_v27  ;;  %v4054_v55 = vpop.f32.mrf.mxu3  ;;  %vm4261_vm12 = vweird.f32 %v9499_v41  ;;  %vm4232_vm13 = vweird.f32 %v9569_v48  ;;  %v4237_v49 = vand.u32 2147483648, %v9505_v39 }
0x12c9   : > { %v5979_v38 = vpop.eup %5978  ;;  %v4070_v11 = vadd.f32 %v4050_v19, %v6839_v3  ;;  %v4245_v46 = vadd.f32 %v9508_v5, %v4244_v47  ;;  %v4306_v27 = vmul.f32 %v4209_v29, %v9204_v56  ;;  %v4253_v2 = vor.u32 1.1754944e-38, %v4252_v25  ;;  %vm9700_vm15 = vmor %vm4231_vm11, %vm4232_vm13 }
0x12ca   : > { %v4309_v42 = vmul.f32 %v5979_v38, %v4134_v30  ;;  %v4227_v30 = vmul.f32 %v9569_v48, %v9505_v39  ;;  %v9622_v62 = vpop.eup %5980  ;;  %v4219_v56 = vsel %vm9655_vm7, %v9515_v26, %v4215_v0  ;;  %v4267_v26 = vand.u32 2147483648, %v9499_v41  ;;  %vm9715_vm7 = vmor %vm4171_vm5, %vm4172_vm6 }
0x12cb   : > { %5982 = vtanh.f32 %v4070_v11  ;;  %v4272_v9 = vmul.f32 %v9622_v62, %v9545_v22  ;;  %v4249_v8 = vsel %vm9637_vm4, %v9508_v5, %v4245_v46  ;;  %v4164_v5 = vsel %vm9594_vm8, %v4163_v28, %v4159_v21 }
0x12cc   : > { %v9618_v1 = vadd.f32 %v4309_v42, %v4305_v6  ;;  %v4228_v38 = vsub.f32 1.0, %v4227_v30  ;;  %v4259_v42 = vmul.f32 %v9563_v7, %v4258_v63  ;;  %v4220_v6 = vand.u32 2147483647, %v9474_v12 }
0x12cd   : > { %v4223_v30 = vor.u32 1.1754944e-38, %v4222_v36  ;;  %v4254_v35 = vsel %vm4251_vm9, %v4253_v2, %v4249_v8  ;;  %v4273_v46 = vsub.f32 1.0, %v4272_v9  ;;  %vm4262_vm8 = vweird.f32 %v9563_v7 }
0x12ce   : > { %v4003_v19 = vpop.f32.mrf.mxu1  ;;  %5984 = vtanh.f32 %v9618_v1  ;;  %v4260_v63 = vadd.f32 %v9563_v7, %v4259_v42  ;;  %vm4221_vm10 = vcmp.eq.f32.partialorder %v4220_v6, 8.507059e+37  ;;  %v4265_v29 = vand.u32 2147483647, %v9499_v41  ;;  %vm9687_vm14 = vmor %vm4261_vm12, %vm4262_vm8  ;;  %v6165_v6 = vld [vmem:[%s10182_s3 + $0x8] sm:$0xff] }
0x12cf   : > { %v4053_v51 = vadd.f32 %v4052_v57, %v4003_v19  ;;  %5986 = vrcp.f32 %v9616_v4  ;;  %v4229_v57 = vmul.f32 %v9569_v48, %v4228_v38  ;;  %v4170_v19 = vadd.f32 %v9512_v15, %v4169_v23 }
0x12d0   : > { %v4264_v9 = vsel %vm9687_vm14, %v9563_v7, %v4260_v63  ;;  %v4235_v8 = vand.u32 2147483647, %v9505_v39  ;;  %v4177_v2 = vand.u32 2147483648, %v9472_v17  ;;  %vm4266_vm4 = vcmp.eq.f32.partialorder %v4265_v29, 8.507059e+37 }
0x12d1   : > { %v5983_v37 = vpop.eup %5982  ;;  %v4071_v47 = vadd.f32 %v4053_v51, %v6765_v32  ;;  %v4224_v51 = vsel %vm4221_vm10, %v4223_v30, %v4219_v56  ;;  %v4230_v23 = vadd.f32 %v9569_v48, %v4229_v57  ;;  %v4238_v30 = vor.u32 1.1754944e-38, %v4237_v49 }
0x12d2   : > { %v4310_v34 = vmul.f32 %v5983_v37, %v4149_v33  ;;  %v4274_v37 = vmul.f32 %v9622_v62, %v4273_v46  ;;  %v4307_v42 = vmul.f32 %v4224_v51, %v9249_v13  ;;  %vm4277_vm9 = vweird.f32 %v9622_v62 }
0x12d3   : > { %5988 = vtanh.f32 %v4071_v47  ;;  %v4234_v7 = vsel %vm9700_vm15, %v9569_v48, %v4230_v23  ;;  %v4174_v48 = vsel %vm9715_vm7, %v9512_v15, %v4170_v19  ;;  %vm4236_vm8 = vcmp.eq.f32.partialorder %v4235_v8, 8.507059e+37 }
0x12d4   : > { %v5985_v33 = vpop.eup %5984  ;;  %v9666_v12 = vadd.f32 %v4310_v34, %v4306_v27  ;;  %v4268_v34 = vor.u32 1.1754944e-38, %v4267_v26  ;;  %v4175_v27 = vand.u32 2147483647, %v9472_v17  ;;  %v4275_v57 = vadd.f32 %v9622_v62, %v4274_v37 }
0x12d5   : > { %v9670_v28 = vmul.f32 %v5985_v33, %v4254_v35  ;;  %v9672_v21 = vpop.eup %5986  ;;  %v4282_v35 = vand.u32 2147483648, %v9545_v22  ;;  %v4178_v46 = vor.u32 1.1754944e-38, %v4177_v2  ;;  %v4239_v17 = vsel %vm4236_vm8, %v4238_v30, %v4234_v7  ;;  %v6168_v2 = vld [vmem:[%s10181_s2 + $0x10] sm:$0xff] }
0x12d6   : > { %v4005_v36 = vpop.f32.mrf.mxu1  ;;  %5990 = vtanh.f32 %v9666_v12  ;;  %v4287_v41 = vmul.f32 %v9672_v21, %v9616_v4  ;;  %v4269_v13 = vsel %vm4266_vm4, %v4268_v34, %v4264_v9  ;;  %vm4276_vm6 = vweird.f32 %v9545_v22  ;;  %v6164_v34 = vld [vmem:[%s10181_s2] sm:$0xff] }
0x12d7   : > { %v4055_v25 = vadd.f32 %v4054_v55, %v4005_v36  ;;  %4325 = vst [vmem:[%s6949_s26 + $0xc0] sm:$0xff] %v9670_v28  ;;  %v4280_v63 = vand.u32 2147483647, %v9545_v22  ;;  %vm4176_vm5 = vcmp.eq.f32.partialorder %v4175_v27, 8.507059e+37  ;;  %vm4278_vm10 = vmor %vm4276_vm6, %vm4277_vm9  ;;  %v4283_v51 = vor.u32 1.1754944e-38, %v4282_v35  ;;  %v6166_v27 = vld [vmem:[%s10181_s2 + $0x8] sm:$0xff] }
0x12d8   : > { %v4179_v36 = vsel %vm4176_vm5, %v4178_v46, %v4174_v48  ;;  %v4279_v26 = vsel %vm4278_vm10, %v9622_v62, %v4275_v57  ;;  %vm4292_vm11 = vweird.f32 %v9672_v21  ;;  %vm4291_vm13 = vweird.f32 %v9616_v4 }
0x12d9   : > { %v5989_v0 = vpop.eup %5988  ;;  %v4072_v11 = vadd.f32 %v4055_v25, %v6953_v40  ;;  %v4308_v25 = vmul.f32 %v4239_v17, %v9272_v20  ;;  %vm4281_vm12 = vcmp.eq.f32.partialorder %v4280_v63, 8.507059e+37  ;;  %v4295_v20 = vand.u32 2147483647, %v9616_v4  ;;  %vm4293_vm14 = vmor %vm4291_vm13, %vm4292_vm11 }
0x12da   : > { %v4311_v47 = vmul.f32 %v5989_v0, %v4164_v5  ;;  %v4288_v5 = vsub.f32 1.0, %v4287_v41  ;;  %v4284_v23 = vsel %vm4281_vm12, %v4283_v51, %v4279_v26  ;;  %v4297_v0 = vand.u32 2147483648, %v9616_v4  ;;  %v6163_v4 = vld [vmem:[%s10182_s3] sm:$0xff] }
0x12db   : > { %5992 = vtanh.f32 %v4072_v11  ;;  %v4331_v11 = vpack.c.bf16 %v9666_v12, %v9618_v1  ;;  %vm4296_vm15 = vcmp.eq.f32.partialorder %v4295_v20, 8.507059e+37 }
0x12dc   : > { %v5991_v43 = vpop.eup %5990  ;;  %v9709_v39 = vadd.f32 %v4311_v47, %v4307_v42  ;;  %v4289_v15 = vmul.f32 %v9672_v21, %v4288_v5  ;;  %v4298_v37 = vor.u32 1.1754944e-38, %v4297_v0 }
0x12dd   : > { %v4322_v56 = vmul.f32 %v5991_v43, %v4269_v13  ;;  %v6169_v43 = vld [vmem:[%s10181_s2 + $0x18] sm:$0xff] }
0x12de   : > { %5994 = vtanh.f32 %v9709_v39  ;;  %v4290_v22 = vadd.f32 %v9672_v21, %v4289_v15 }
0x12df   : > { %4326 = vst [vmem:[%s6949_s26 + $0xc8] sm:$0xff] %v4322_v56 }
0x12e0   : > { %v4294_v41 = vsel %vm4293_vm14, %v9672_v21, %v4290_v22  ;;  %v9755_v21 = vpack.c.bf16 %v4322_v56, %v9670_v28  ;;  %v6167_v28 = vld [vmem:[%s10182_s3 + $0x10] sm:$0xff] }
0x12e1   : > { %v5993_v55 = vpop.eup %5992  ;;  %v4299_v47 = vsel %vm4296_vm15, %v4298_v37, %v4294_v41 }
0x12e2   : > { %v4312_v19 = vmul.f32 %v5993_v55, %v4179_v36 }
0x12e4   : > { %v5995_v29 = vpop.eup %5994  ;;  %v9732_v49 = vadd.f32 %v4312_v19, %v4308_v25 }
0x12e5   : > { %v4323_v38 = vmul.f32 %v5995_v29, %v4284_v23 }
0x12e6   : > { %v4332_v62 = vpack.c.bf16 %v9732_v49, %v9709_v39  ;;  %5996 = vtanh.f32 %v9732_v49 }
0x12e7   : > { %4327 = vst [vmem:[%s6949_s26 + $0xd0] sm:$0xff] %v4323_v38 }
0x12e8   : > { %4339 = vmatpush.bf16.msra.mxu0 %v4332_v62 }
0x12ec   : > { %v5997_v9 = vpop.eup %5996  ;;  %4340 = vmatpush.bf16.msra.mxu0 %v4331_v11 }
0x12ed   : > { %v4324_v8 = vmul.f32 %v5997_v9, %v4299_v47 }
0x12ef   : > { %4328 = vst [vmem:[%s6949_s26 + $0xd8] sm:$0xff] %v4324_v8  ;;  %v9747_v42 = vpack.c.bf16 %v4324_v8, %v4323_v38  ;;  %5290 = vmatmul.msk.bf16.vlgmr.msra.gmra.mxu0 %vm690_vm1, %v6163_v4 }
0x12f1   : > { %4368 = vmatpush.bf16.msrb.mxu2 %v9747_v42 }
0x12f5   : > { %4369 = vmatpush.bf16.msrb.mxu2 %v9755_v21 }
0x12f8   : > { %5294 = vmatmul.msk.bf16.vlgmr.msrb.gmra.mxu2 %vm690_vm1, %v6164_v34  ;;  %v10726_v34 = vld [vmem:[#allocation14_spill] sm:$0xff] }
0x12ff   : > { %5291 = vmatmul.msk.bf16.gmra.mxu0 %vm690_vm1, %v6165_v6 }
0x1308   : > { %5295 = vmatmul.msk.bf16.gmra.mxu2 %vm690_vm1, %v6166_v27 }
0x130f   : > { %5292 = vmatmul.msk.bf16.gmra.mxu0 %vm690_vm1, %v6167_v28 }
0x1318   : > { %5296 = vmatmul.msk.bf16.gmra.mxu2 %vm690_vm1, %v6168_v2 }
0x131f   : > { %5293 = vmatmul.msk.bf16.gmra.mxu0 %vm690_vm1, %v9309_v59 }
0x1328   : > { %5297 = vmatmul.msk.bf16.gmra.mxu2 %vm690_vm1, %v6169_v43  ;;  %v6170_v43 = vld [vmem:[%s10185_s6] sm:$0xff] }
0x136c   : > { %v4342_v30 = vpop.f32.mrf.mxu0 }
0x1374   : > { %v4344_v7 = vpop.f32.mrf.mxu0 }
0x137b   : > { %v4371_v13 = vpop.f32.mrf.mxu2 }
0x137c   : > { %v4372_v5 = vadd.f32 %v4371_v13, %v4342_v30  ;;  %v4347_v33 = vpop.f32.mrf.mxu0  ;;  %v6171_v30 = vld [vmem:[%s10185_s6 + $0x8] sm:$0xff]  ;;  %v10728_v13 = vld [vmem:[#allocation22_spill] sm:$0xff] }
0x1383   : > { %v4373_v57 = vpop.f32.mrf.mxu2 }
0x1384   : > { %v4349_v48 = vpop.f32.mrf.mxu0  ;;  %v4374_v11 = vadd.f32 %v4373_v57, %v4344_v7  ;;  %v6174_v7 = vld [vmem:[%s10185_s6 + $0x20] sm:$0xff] }
0x138b   : > { %v4376_v56 = vpop.f32.mrf.mxu2 }
0x138c   : > { %v4352_v46 = vpop.f32.mrf.mxu0  ;;  %v4377_v0 = vadd.f32 %v4376_v56, %v4347_v33 }
0x138e   : > { %v4393_v47 = vadd.f32 %v4377_v0, %v10662_v53 }
0x1393   : > { %v4378_v35 = vpop.f32.mrf.mxu2 }
0x1394   : > { %v4354_v63 = vpop.f32.mrf.mxu0  ;;  %v4379_v23 = vadd.f32 %v4378_v35, %v4349_v48  ;;  %v10730_v48 = vld [vmem:[#allocation26_spill] sm:$0xff] }
0x1396   : > { %v4394_v37 = vadd.f32 %v4379_v23, %v10545_v31 }
0x1398   : > { %v4402_v8 = vadd.f32 %v4394_v37, %v10665_v14  ;;  %v10732_v37 = vld [vmem:[#allocation24_spill] sm:$0xff] }
0x139b   : > { %v4381_v17 = vpop.f32.mrf.mxu2 }
0x139c   : > { %v4357_v59 = vpop.f32.mrf.mxu0  ;;  %v4382_v25 = vadd.f32 %v4381_v17, %v4352_v46 }
0x139e   : > { %v4395_v20 = vadd.f32 %v4382_v25, %v10543_v52  ;;  %v4391_v52 = vadd.f32 %v4372_v5, %v10666_v50  ;;  %v10729_v5 = vld [vmem:[#allocation31_spill] sm:$0xff] }
0x13a3   : > { %v4383_v55 = vpop.f32.mrf.mxu2 }
0x13a4   : > { %v4384_v15 = vadd.f32 %v4383_v55, %v4354_v63  ;;  %v4359_v51 = vpop.f32.mrf.mxu0 }
0x13a6   : > { %v4396_v22 = vadd.f32 %v4384_v15, %v6508_v16  ;;  %v4403_v16 = vadd.f32 %v4395_v20, %v10663_v24  ;;  %v4399_v24 = vadd.f32 %v4391_v52, %v10726_v34 }
0x13a8   : > { %v4404_v9 = vadd.f32 %v4396_v22, %v10546_v58 }
0x13ab   : > { %v4386_v36 = vpop.f32.mrf.mxu2 }
0x13ac   : > { %v4387_v26 = vadd.f32 %v4386_v36, %v4357_v59 }
0x13ae   : > { %v4397_v19 = vadd.f32 %v4387_v26, %v6504_v10 }
0x13b0   : > { %v4405_v62 = vadd.f32 %v4397_v19, %v6498_v61  ;;  %v4392_v61 = vadd.f32 %v4374_v11, %v10664_v18  ;;  %v10731_v11 = vld [vmem:[#allocation20_spill] sm:$0xff] }
0x13b2   : > { %5998 = vtanh.f32 %v4405_v62  ;;  %v6175_v62 = vld [vmem:[%s6354_s14 + $0x38] sm:$0xff]  ;;  %s5328_s14 = sshll.u32 %s4906_s13, 3  ;;  %s4836_s13 = sshll.u32 %s6949_s26, 4  ;;  %s4837_s13 = int_to_ptr.vmem [resolvable:$true] %s4836_s13 }
0x13b3   : > { %v4388_v29 = vpop.f32.mrf.mxu2  ;;  %s4835_s22 = scalar_lea.hbm %s10188_s9, %s5328_s14  ;;  %s6196_s14 = scalar_lea.hbm %s10188_s9, 512 }
0x13b4   : > { %v4389_v38 = vadd.f32 %v4388_v29, %v4359_v51  ;;  %s10146_s23 = sshll.u32 %s4835_s22, 4  ;;  %s4839_s23 = int_to_ptr.hbm [resolvable:$true] %s10146_s23 }
0x13b5   : > { %s6190_s25 = sshra.s32 %s4839_s23, 4  ;;  %s6191_s25 = int_to_ptr.hbm [resolvable:$true] %s6190_s25 }
0x13b6   : > { %v4398_v41 = vadd.f32 %v4389_v38, %v10544_v60  ;;  %v4401_v60 = vadd.f32 %v4393_v47, %v10667_v54  ;;  %v10735_v47 = vld [vmem:[#allocation21_spill] sm:$0xff]  ;;  %s6192_s27 = scalar_lea.hbm %s6191_s25, 256  ;;  %p6197_p2 = scmp.lt.s32.totalorder %s6191_s25, %s10188_s9 }
0x13b7   : > { %p6193_p13 = scmp.ne.s32.totalorder %s6191_s25, %s6192_s27  ;;  %p6198_p3 = scmp.lt.s32.totalorder %s6196_s14, %s6192_s27 }
0x13b8   : > { %v4406_v10 = vadd.f32 %v4398_v41, %v10547_v44  ;;  %v5999_v31 = vpop.eup %5998  ;;  %v4400_v44 = vadd.f32 %v4392_v61, %v10668_v45  ;;  %v10727_v45 = vld [vmem:[#allocation10_spill] sm:$0xff]  ;;  %v10737_v61 = vld [vmem:[#allocation25_spill] sm:$0xff] }
0x13b9   : > { %p6194_p0 = pnand %p6193_p13, %p6332_p6  ;;  %p6199_p4 = por %p6198_p3, %p6197_p2 }
0x13ba   : > { %6000 = vtanh.f32 %v4406_v10  ;;  %v10734_v10 = vld [vmem:[#allocation19_spill] sm:$0xff] }
0x13bb   : > { %6002 = vtanh.f32 %v4404_v9  ;;  %v10733_v9 = vld [vmem:[#allocation28_spill] sm:$0xff]  ;;  %p6195_p1 = pneg %p6194_p0 }
0x13bc   : > { %6004 = vtanh.f32 %v4403_v16  ;;  %v10736_v16 = vld [vmem:[#allocation23_spill] sm:$0xff] }
0x13bd   : > { %6006 = vtanh.f32 %v4402_v8  ;;  %p6200_p5 = pnand %p6199_p4, %p6195_p1 }
0x13be   : > { %6008 = vtanh.f32 %v4401_v60  ;;  %v10738_v60 = vld [vmem:[#allocation27_spill] sm:$0xff] }
0x13bf   : > { %6010 = vtanh.f32 %v4400_v44 }
0x13c0   : > { %v6001_v58 = vpop.eup %6000  ;;  %6012 = vtanh.f32 %v4399_v24 }
0x13c1   : > { %v4418_v4 = vpack.c.bf16 %v6001_v58, %v5999_v31  ;;  %v6003_v53 = vpop.eup %6002 }
0x13c2   : > { %v6005_v18 = vpop.eup %6004 }
0x13c3   : > { %4423 = vmatpush.bf16.msrb.mxu0 %v4418_v4  ;;  %v4417_v14 = vpack.c.bf16 %v6003_v53, %v6005_v18  ;;  %v6007_v6 = vpop.eup %6006 }
0x13c4   : > { %v6009_v50 = vpop.eup %6008 }
0x13c5   : > { %v4416_v54 = vpack.c.bf16 %v6007_v6, %v6009_v50  ;;  %v6011_v27 = vpop.eup %6010 }
0x13c6   : > { %v6013_v28 = vpop.eup %6012 }
0x13c7   : > { %4424 = vmatpush.bf16.msrb.mxu0 %v4417_v14  ;;  %v4415_v2 = vpack.c.bf16 %v6011_v27, %v6013_v28 }
0x13cb   : > { %4425 = vmatpush.bf16.msrb.mxu0 %v4416_v54 }
0x13cf   : > { %4426 = vmatpush.bf16.msrb.mxu0 %v4415_v2 }
0x13d2   : > { %5298 = vmatmul.msk.bf16.vlgmr.msrb.gmra.mxu0 %vm628_vm0, %v10727_v45 }
0x13d3   : > { %4509 = vmatpush.bf16.msra.mxu0 %v9747_v42  ;;  %v6172_v42 = vld [vmem:[%s10185_s6 + $0x10] sm:$0xff] }
0x13d7   : > { %4510 = vmatpush.bf16.msra.mxu0 %v9755_v21  ;;  %v6173_v21 = vld [vmem:[%s10185_s6 + $0x18] sm:$0xff] }
0x13e2   : > { %5307 = vmatmul.msk.bf16.vlgmr.msra.gmra.mxu0 %vm690_vm1, %v6170_v43  ;;  %v10739_v43 = vld [vmem:[#allocation36_spill] sm:$0xff] }
0x13f2   : > { %5308 = vmatmul.msk.bf16.gmra.mxu0 %vm690_vm1, %v6171_v30 }
0x1402   : > { %5309 = vmatmul.msk.bf16.gmra.mxu0 %vm690_vm1, %v6172_v42 }
0x1412   : > { %5310 = vmatmul.msk.bf16.gmra.mxu0 %vm690_vm1, %v6173_v21 }
0x1422   : > { %5311 = vmatmul.msk.bf16.gmra.mxu0 %vm690_vm1, %v6174_v7 }
0x1432   : > { %5312 = vmatmul.msk.bf16.gmra.mxu0 %vm690_vm1, %v10728_v13 }
0x1442   : > { %5313 = vmatmul.msk.bf16.gmra.mxu0 %vm690_vm1, %v10729_v5  ;;  %v10740_v5 = vld [vmem:[#allocation37_spill] sm:$0xff] }
0x144f   : > { %v4428_v33 = vpop.f32.mrf.mxu0 }
0x1450   : > { %v4432_v57 = vrot.slane %v4428_v33, 4 }
0x1452   : > { %v4433_v56 = vmax.f32 %v4428_v33, %v4432_v57  ;;  %5314 = vmatmul.msk.bf16.gmra.mxu0 %vm690_vm1, %v10730_v48  ;;  %v10741_v57 = vld [vmem:[#allocation38_spill] sm:$0xff] }
0x1454   : > { %v4434_v35 = vrot.slane %v4433_v56, 2 }
0x1456   : > { %v4435_v46 = vmax.f32 %v4433_v56, %v4434_v35 }
0x1457   : > { %v4430_v17 = vpop.f32.mrf.mxu0 }
0x1458   : > { %v4436_v63 = vrot.slane %v4435_v46, 1 }
0x145a   : > { %v4437_v55 = vmax.f32 %v4435_v46, %v4436_v63  ;;  %v10742_v63 = vld [vmem:[#allocation32_spill] sm:$0xff] }
0x145c   : > { %v4438_v59 = vsub.f32 %v4428_v33, %v4437_v55 }
0x145e   : > { %v4439_v36 = vmul.f32 1.442695, %v4438_v59 }
0x145f   : > { %v4512_v8 = vpop.f32.mrf.mxu0 }
0x1460   : > { %6014 = vpow2.f32 %v4439_v36 }
0x1466   : > { %v6015_v26 = vpop.eup %6014 }
0x1467   : > { %v4441_v15 = vrot.slane %v6015_v26, 4  ;;  %v4514_v52 = vpop.f32.mrf.mxu0 }
0x1469   : > { %v4442_v19 = vadd.f32 %v6015_v26, %v4441_v15 }
0x146b   : > { %v4443_v25 = vrot.slane %v4442_v19, 2 }
0x146d   : > { %v4444_v51 = vadd.f32 %v4443_v25, %v4442_v19 }
0x146f   : > { %v4445_v29 = vrot.slane %v4444_v51, 1  ;;  %v4517_v31 = vpop.f32.mrf.mxu0 }
0x1471   : > { %v4446_v23 = vadd.f32 %v4445_v29, %v4444_v51 }
0x1473   : > { %6016 = vrcp.f32 %v4446_v23 }
0x1477   : > { %v4519_v44 = vpop.f32.mrf.mxu0 }
0x1479   : > { %v6017_v22 = vpop.eup %6016 }
0x147a   : > { %v4448_v38 = vmul.f32 %v6017_v22, %v6015_v26  ;;  %v10743_v26 = vld [vmem:[#allocation39_spill] sm:$0xff] }
0x147c   : > { %v4449_v0 = vmul.f32 %v6175_v62, %v4448_v38 }
0x147e   : > { %v4450_v20 = vpack.c.bf16 %v4449_v0, %v4449_v0  ;;  %v10744_v0 = vld [vmem:[#allocation41_spill] sm:$0xff] }
0x147f   : > { %v4522_v24 = vpop.f32.mrf.mxu0 }
0x1480   : > { %v4452_v41 = vsel %vm921_vm2, %v4450_v20, 0 }
0x1481   : > { %4461 = vmatpush.bf16.msra.mxu2 %v4452_v41  ;;  %v10745_v41 = vld [vmem:[#allocation33_spill] sm:$0xff] }
0x1484   : > { %5299 = vmatmul.msk.bf16.vlgmr.msra.gmra.mxu2 %vm896_vm3, %v10731_v11 }
0x1487   : > { %v4524_v6 = vpop.f32.mrf.mxu0 }
0x148f   : > { %v4527_v27 = vpop.f32.mrf.mxu0 }
0x1494   : > { %5300 = vmatmul.msk.bf16.gmra.mxu2 %vm896_vm3, %v10732_v37 }
0x1497   : > { %v4529_v45 = vpop.f32.mrf.mxu0 }
0x149f   : > { %v4532_v21 = vpop.f32.mrf.mxu0 }
0x14a4   : > { %5301 = vmatmul.msk.bf16.gmra.mxu2 %vm896_vm3, %v10733_v9 }
0x14a7   : > { %v4534_v59 = vpop.f32.mrf.mxu0 }
0x14af   : > { %v4537_v37 = vpop.f32.mrf.mxu0 }
0x14b4   : > { %5302 = vmatmul.msk.bf16.gmra.mxu2 %vm896_vm3, %v10734_v10  ;;  %v10746_v10 = vld [vmem:[#allocation34_spill] sm:$0xff] }
0x14c4   : > { %5303 = vmatmul.msk.bf16.gmra.mxu2 %vm896_vm3, %v10735_v47 }
0x14d4   : > { %5304 = vmatmul.msk.bf16.gmra.mxu2 %vm896_vm3, %v10736_v16 }
0x14e4   : > { %5305 = vmatmul.msk.bf16.gmra.mxu2 %vm896_vm3, %v10737_v61 }
0x14f4   : > { %5306 = vmatmul.msk.bf16.gmra.mxu2 %vm896_vm3, %v10738_v60 }
0x1507   : > { %v4463_v58 = vpop.f32.mrf.mxu2 }
0x1508   : > { %v4513_v4 = vadd.f32 %v4512_v8, %v4463_v58 }
0x150a   : > { %v4552_v30 = vadd.f32 %v4513_v4, %v10739_v43 }
0x150c   : > { %v5315_v13 = vmul.f32 -1.442695, %v4552_v30 }
0x150e   : > { %6018 = vpow2.f32 %v5315_v13 }
0x150f   : > { %v4465_v53 = vpop.f32.mrf.mxu2 }
0x1510   : > { %v4515_v34 = vadd.f32 %v4514_v52, %v4465_v53 }
0x1512   : > { %v4553_v33 = vadd.f32 %v4515_v34, %v10740_v5 }
0x1514   : > { %v5316_v35 = vmul.f32 -1.442695, %v4553_v33  ;;  %v6019_v36 = vpop.eup %6018 }
0x1515   : > { %v9853_v51 = vadd.f32 1.0, %v6019_v36 }
0x1516   : > { %6020 = vpow2.f32 %v5316_v35 }
0x1517   : > { %v4468_v18 = vpop.f32.mrf.mxu2  ;;  %vm4621_vm1 = vweird.f32 %v9853_v51 }
0x1518   : > { %v4518_v14 = vadd.f32 %v4517_v31, %v4468_v18 }
0x151a   : > { %v4554_v55 = vadd.f32 %v4518_v14, %v10742_v63 }
0x151c   : > { %v5317_v19 = vmul.f32 -1.442695, %v4554_v55  ;;  %v6021_v38 = vpop.eup %6020 }
0x151d   : > { %v9858_v9 = vadd.f32 1.0, %v6021_v38 }
0x151f   : > { %v4470_v50 = vpop.f32.mrf.mxu2  ;;  %vm4636_vm4 = vweird.f32 %v9858_v9 }
0x1520   : > { %v4520_v54 = vadd.f32 %v4519_v44, %v4470_v50 }
0x1522   : > { %v4555_v11 = vadd.f32 %v4520_v54, %v10745_v41  ;;  %v10750_v41 = vld [vmem:[#allocation43_spill] sm:$0xff] }
0x1524   : > { %v5318_v31 = vmul.f32 -1.442695, %v4555_v11 }
0x1527   : > { %v4473_v28 = vpop.f32.mrf.mxu2 }
0x1528   : > { %v4523_v7 = vadd.f32 %v4522_v24, %v4473_v28  ;;  %v10747_v24 = vld [vmem:[#allocation42_spill] sm:$0xff]  ;;  %v4539_v28 = vpop.f32.mrf.mxu0 }
0x152a   : > { %v4556_v56 = vadd.f32 %v4523_v7, %v10741_v57  ;;  %v10749_v57 = vld [vmem:[#allocation40_spill] sm:$0xff] }
0x152c   : > { %v5319_v46 = vmul.f32 -1.442695, %v4556_v56 }
0x152e   : > { %6022 = vpow2.f32 %v5319_v46 }
0x152f   : > { %v4475_v2 = vpop.f32.mrf.mxu2  ;;  %6024 = vpow2.f32 %v5317_v19 }
0x1530   : > { %v4525_v17 = vadd.f32 %v4524_v6, %v4475_v2  ;;  %6026 = vrcp.f32 %v9853_v51  ;;  %v10748_v6 = vld [vmem:[#allocation35_spill] sm:$0xff] }
0x1532   : > { %v4557_v15 = vadd.f32 %v4525_v17, %v10743_v26 }
0x1534   : > { %v5320_v23 = vmul.f32 -1.442695, %v4557_v15  ;;  %v6023_v62 = vpop.eup %6022 }
0x1535   : > { %v9861_v16 = vadd.f32 1.0, %v6023_v62  ;;  %v6025_v60 = vpop.eup %6024  ;;  %v4625_v62 = vand.u32 2147483647, %v9853_v51 }
0x1536   : > { %6028 = vpow2.f32 %v5320_v23  ;;  %v9863_v44 = vpop.eup %6026  ;;  %v9867_v34 = vadd.f32 1.0, %v6025_v60  ;;  %v4542_v23 = vpop.f32.mrf.mxu0 }
0x1537   : > { %v4478_v42 = vpop.f32.mrf.mxu2  ;;  %6030 = vrcp.f32 %v9858_v9  ;;  %v4617_v14 = vmul.f32 %v9863_v44, %v9853_v51  ;;  %vm4622_vm0 = vweird.f32 %v9863_v44  ;;  %vm4626_vm3 = vcmp.eq.f32.partialorder %v4625_v62, 8.507059e+37 }
0x1538   : > { %v4528_v22 = vadd.f32 %v4527_v27, %v4478_v42  ;;  %6032 = vrcp.f32 %v9861_v16  ;;  %vm9913_vm2 = vmor %vm4621_vm1, %vm4622_vm0  ;;  %vm4681_vm6 = vweird.f32 %v9861_v16  ;;  %vm4651_vm10 = vweird.f32 %v9867_v34 }
0x1539   : > { %v4618_v42 = vsub.f32 1.0, %v4617_v14 }
0x153a   : > { %v4558_v47 = vadd.f32 %v4528_v22, %v10746_v10 }
0x153b   : > { %v4619_v46 = vmul.f32 %v9863_v44, %v4618_v42 }
0x153c   : > { %v5321_v4 = vmul.f32 -1.442695, %v4558_v47  ;;  %v6029_v53 = vpop.eup %6028 }
0x153d   : > { %v9873_v54 = vadd.f32 1.0, %v6029_v53  ;;  %v9875_v2 = vpop.eup %6030  ;;  %v4620_v22 = vadd.f32 %v9863_v44, %v4619_v46 }
0x153e   : > { %v9878_v30 = vpop.eup %6032  ;;  %v4632_v33 = vmul.f32 %v9875_v2, %v9858_v9  ;;  %vm4637_vm7 = vweird.f32 %v9875_v2  ;;  %v4544_v46 = vpop.f32.mrf.mxu0 }
0x153f   : > { %v4480_v48 = vpop.f32.mrf.mxu2  ;;  %vm4682_vm9 = vweird.f32 %v9878_v30  ;;  %vm9973_vm12 = vmor %vm4636_vm4, %vm4637_vm7  ;;  %vm4696_vm15 = vweird.f32 %v9873_v54 }
0x1540   : > { %v4530_v58 = vadd.f32 %v4529_v45, %v4480_v48  ;;  %v4677_v48 = vmul.f32 %v9878_v30, %v9861_v16  ;;  %v4633_v36 = vsub.f32 1.0, %v4632_v33  ;;  %vm9955_vm5 = vmor %vm4681_vm6, %vm4682_vm9 }
0x1542   : > { %v4559_v50 = vadd.f32 %v4530_v58, %v10748_v6 }
0x1547   : > { %v4483_v25 = vpop.f32.mrf.mxu2 }
0x1548   : > { %v4533_v29 = vadd.f32 %v4532_v21, %v4483_v25  ;;  %v5322_v21 = vmul.f32 -1.442695, %v4559_v50 }
0x154a   : > { %v4560_v20 = vadd.f32 %v4533_v29, %v10744_v0  ;;  %v4678_v29 = vsub.f32 1.0, %v4677_v48  ;;  %v4627_v0 = vand.u32 2147483648, %v9853_v51  ;;  %v4624_v51 = vsel %vm9913_vm2, %v9863_v44, %v4620_v22 }
0x154b   : > { %v4685_v48 = vand.u32 2147483647, %v9861_v16 }
0x154c   : > { %v5323_v8 = vmul.f32 -1.442695, %v4560_v20  ;;  %v4628_v58 = vor.u32 1.1754944e-38, %v4627_v0 }
0x154d   : > { %vm4686_vm13 = vcmp.eq.f32.partialorder %v4685_v48, 8.507059e+37 }
0x154e   : > { %6034 = vpow2.f32 %v5323_v8  ;;  %v4629_v44 = vsel %vm4626_vm3, %v4628_v58, %v4624_v51 }
0x154f   : > { %v4485_v61 = vpop.f32.mrf.mxu2  ;;  %6036 = vpow2.f32 %v5318_v31 }
0x1550   : > { %v4535_v52 = vadd.f32 %v4534_v59, %v4485_v61  ;;  %6038 = vpow2.f32 %v5321_v4  ;;  %v4634_v61 = vmul.f32 %v9875_v2, %v4633_v36  ;;  %v4640_v4 = vand.u32 2147483647, %v9858_v9 }
0x1551   : > { %6040 = vrcp.f32 %v9867_v34 }
0x1552   : > { %v4561_v18 = vadd.f32 %v4535_v52, %v10747_v24  ;;  %6042 = vrcp.f32 %v9873_v54  ;;  %v4679_v52 = vmul.f32 %v9878_v30, %v4678_v29  ;;  %vm9945_vm8 = vcmp.eq.f32.partialorder %v4640_v4, 8.507059e+37 }
0x1554   : > { %v5324_v45 = vmul.f32 -1.442695, %v4561_v18  ;;  %v6035_v7 = vpop.eup %6034 }
0x1555   : > { %v6037_v13 = vpop.eup %6036  ;;  %v9886_v35 = vadd.f32 1.0, %v6035_v7  ;;  %v4687_v7 = vand.u32 2147483648, %v9861_v16 }
0x1556   : > { %v6039_v5 = vpop.eup %6038  ;;  %6044 = vpow2.f32 %v5324_v45  ;;  %v9891_v63 = vadd.f32 1.0, %v6037_v13 }
0x1557   : > { %v4488_v27 = vpop.f32.mrf.mxu2  ;;  %6046 = vpow2.f32 %v5322_v21  ;;  %v9889_v17 = vpop.eup %6040  ;;  %v9893_v55 = vadd.f32 1.0, %v6039_v5  ;;  %v10753_v5 = vld [vmem:[#allocation44_spill] sm:$0xff]  ;;  %v4688_v22 = vor.u32 1.1754944e-38, %v4687_v7  ;;  %vm4741_vm9 = vweird.f32 %v9886_v35 }
0x1558   : > { %v4538_v43 = vadd.f32 %v4537_v37, %v4488_v27  ;;  %v9896_v19 = vpop.eup %6042  ;;  %v4647_v25 = vmul.f32 %v9889_v17, %v9867_v34  ;;  %6048 = vrcp.f32 %v9886_v35  ;;  %v4642_v37 = vand.u32 2147483648, %v9858_v9  ;;  %v4547_v7 = vpop.f32.mrf.mxu0 }
0x1559   : > { %6050 = vrcp.f32 %v9891_v63  ;;  %v4692_v10 = vmul.f32 %v9896_v19, %v9873_v54  ;;  %vm4652_vm11 = vweird.f32 %v9889_v17  ;;  %vm4697_vm14 = vweird.f32 %v9896_v19 }
0x155a   : > { %v4562_v56 = vadd.f32 %v4538_v43, %v10749_v57  ;;  %6052 = vrcp.f32 %v9893_v55  ;;  %v4648_v8 = vsub.f32 1.0, %v4647_v25  ;;  %v4643_v14 = vor.u32 1.1754944e-38, %v4642_v37  ;;  %vm10003_vm0 = vmor %vm4651_vm10, %vm4652_vm11 }
0x155b   : > { %v4693_v50 = vsub.f32 1.0, %v4692_v10  ;;  %v4680_v43 = vadd.f32 %v9878_v30, %v4679_v52  ;;  %vm10009_vm1 = vmor %vm4696_vm15, %vm4697_vm14  ;;  %vm4711_vm7 = vweird.f32 %v9893_v55  ;;  %v4747_v57 = vand.u32 2147483648, %v9886_v35 }
0x155c   : > { %v5325_v26 = vmul.f32 -1.442695, %v4562_v56  ;;  %v6045_v38 = vpop.eup %6044  ;;  %v4649_v42 = vmul.f32 %v9889_v17, %v4648_v8  ;;  %v4745_v48 = vand.u32 2147483647, %v9886_v35  ;;  %vm4666_vm11 = vweird.f32 %v9891_v63 }
0x155d   : > { %v6047_v20 = vpop.eup %6046  ;;  %v9919_v60 = vadd.f32 1.0, %v6045_v38  ;;  %v4694_v36 = vmul.f32 %v9896_v19, %v4693_v50  ;;  %v4684_v16 = vsel %vm9955_vm5, %v9878_v30, %v4680_v43 }
0x155e   : > { %6054 = vpow2.f32 %v5325_v26  ;;  %v9924_v31 = vadd.f32 1.0, %v6047_v20  ;;  %v9927_v53 = vpop.eup %6048  ;;  %v4655_v26 = vand.u32 2147483647, %v9867_v34  ;;  %v4702_v20 = vand.u32 2147483648, %v9873_v54 }
0x155f   : > { %v4490_v59 = vpop.f32.mrf.mxu2  ;;  %v9931_v6 = vpop.eup %6050  ;;  %6056 = vrcp.f32 %v9919_v60  ;;  %v4737_v13 = vmul.f32 %v9927_v53, %v9886_v35  ;;  %v4689_v37 = vsel %vm4686_vm13, %v4688_v22, %v4684_v16  ;;  %vm4742_vm3 = vweird.f32 %v9927_v53 }
0x1560   : > { %v4540_v15 = vadd.f32 %v4539_v28, %v4490_v59  ;;  %v4635_v28 = vadd.f32 %v9875_v2, %v4634_v61  ;;  %v9934_v45 = vpop.eup %6052  ;;  %6058 = vrcp.f32 %v9924_v31  ;;  %v4662_v56 = vmul.f32 %v9931_v6, %v9891_v63  ;;  %vm10045_vm6 = vmor %vm4741_vm9, %vm4742_vm3 }
0x1561   : > { %v4738_v38 = vsub.f32 1.0, %v4737_v13  ;;  %vm10020_vm2 = vcmp.eq.f32.partialorder %v4655_v26, 8.507059e+37  ;;  %v4703_v43 = vor.u32 1.1754944e-38, %v4702_v20  ;;  %v4715_v20 = vand.u32 2147483647, %v9893_v55 }
0x1562   : > { %v4563_v11 = vadd.f32 %v4540_v15, %v10750_v41  ;;  %v4707_v15 = vmul.f32 %v9934_v45, %v9893_v55  ;;  %v4639_v62 = vsel %vm9973_vm12, %v9875_v2, %v4635_v28  ;;  %v4663_v30 = vsub.f32 1.0, %v4662_v56 }
0x1563   : > { %v9986_v41 = vadd.f32 %v9889_v17, %v4649_v42  ;;  %v4695_v2 = vadd.f32 %v9896_v19, %v4694_v36  ;;  %v4739_v51 = vmul.f32 %v9927_v53, %v4738_v38  ;;  %v4748_v38 = vor.u32 1.1754944e-38, %v4747_v57 }
0x1564   : > { %v5326_v24 = vmul.f32 -1.442695, %v4563_v11  ;;  %v6055_v21 = vpop.eup %6054  ;;  %v4708_v61 = vsub.f32 1.0, %v4707_v15  ;;  %vm4667_vm5 = vweird.f32 %v9931_v6  ;;  %vm4746_vm12 = vcmp.eq.f32.partialorder %v4745_v48, 8.507059e+37 }
0x1565   : > { %v9964_v25 = vadd.f32 1.0, %v6055_v21  ;;  %v9982_v0 = vpop.eup %6056  ;;  %v4699_v42 = vsel %vm10009_vm1, %v9896_v19, %v4695_v2  ;;  %v4740_v13 = vadd.f32 %v9927_v53, %v4739_v51  ;;  %v4717_v19 = vand.u32 2147483648, %v9893_v55  ;;  %vm10119_vm9 = vmor %vm4666_vm11, %vm4667_vm5 }
0x1566   : > { %6060 = vpow2.f32 %v5326_v24  ;;  %v9988_v11 = vpop.eup %6058  ;;  %v4752_v58 = vmul.f32 %v9982_v0, %v9919_v60  ;;  %v4700_v24 = vand.u32 2147483647, %v9873_v54  ;;  %vm4757_vm13 = vweird.f32 %v9982_v0 }
0x1567   : > { %v4493_v18 = vpop.f32.mrf.mxu2  ;;  %v4744_v35 = vsel %vm10045_vm6, %v9927_v53, %v4740_v13  ;;  %vm4716_vm14 = vcmp.eq.f32.partialorder %v4715_v20, 8.507059e+37  ;;  %vm4756_vm15 = vweird.f32 %v9919_v60  ;;  %vm4727_vm1 = vweird.f32 %v9988_v11 }
0x1568   : > { %v4543_v27 = vadd.f32 %v4542_v23, %v4493_v18  ;;  %v4657_v23 = vand.u32 2147483648, %v9867_v34  ;;  %v4654_v34 = vsel %vm10003_vm0, %v9889_v17, %v9986_v41  ;;  %vm4701_vm4 = vcmp.eq.f32.partialorder %v4700_v24, 8.507059e+37 }
0x1569   : > { %vm4726_vm0 = vweird.f32 %v9924_v31  ;;  %v4732_v50 = vand.u32 2147483648, %v9924_v31  ;;  %vm4771_vm6 = vweird.f32 %v9964_v25 }
0x156a   : > { %v4564_v33 = vadd.f32 %v4543_v27, %v10753_v5  ;;  %v4658_v8 = vor.u32 1.1754944e-38, %v4657_v23  ;;  %v4800_v27 = vmul.f32 %v4689_v37, %v9618_v1  ;;  %v4664_v1 = vmul.f32 %v9931_v6, %v4663_v30  ;;  %vm10104_vm3 = vmor %vm4726_vm0, %vm4727_vm1 }
0x156b   : > { %v4753_v5 = vsub.f32 1.0, %v4752_v58  ;;  %v4749_v37 = vsel %vm4746_vm12, %v4748_v38, %v4744_v35  ;;  %v4549_v58 = vpop.f32.mrf.mxu0 }
0x156c   : > { %6062 = vtanh.f32 %v4564_v33  ;;  %v6061_v47 = vpop.eup %6060 }
0x156d   : > { %6064 = vrcp.f32 %v9964_v25  ;;  %v10031_v21 = vadd.f32 1.0, %v6061_v47  ;;  %v4754_v29 = vmul.f32 %v9982_v0, %v4753_v5  ;;  %v4733_v5 = vor.u32 1.1754944e-38, %v4732_v50 }
0x156f   : > { %v4495_v9 = vpop.f32.mrf.mxu2  ;;  %v4755_v2 = vadd.f32 %v9982_v0, %v4754_v29 }
0x1570   : > { %v4545_v10 = vadd.f32 %v4544_v46, %v4495_v9  ;;  %v4704_v46 = vsel %vm4701_vm4, %v4703_v43, %v4699_v42  ;;  %v4718_v9 = vor.u32 1.1754944e-38, %v4717_v19 }
0x1572   : > { %v6063_v52 = vpop.eup %6062  ;;  %v4565_v4 = vadd.f32 %v4545_v10, %v6839_v3  ;;  %v4644_v3 = vsel %vm9945_vm8, %v4643_v14, %v4639_v62  ;;  %v4722_v14 = vmul.f32 %v9988_v11, %v9924_v31  ;;  %vm4712_vm8 = vweird.f32 %v9934_v45 }
0x1573   : > { %v4804_v28 = vmul.f32 %v6063_v52, %v4629_v44  ;;  %v4709_v44 = vmul.f32 %v9934_v45, %v4708_v61  ;;  %v10035_v33 = vpop.eup %6064  ;;  %v4801_v62 = vmul.f32 %v4704_v46, %v9666_v12  ;;  %vm10065_vm10 = vmor %vm4711_vm7, %vm4712_vm8  ;;  %v4762_v52 = vand.u32 2147483648, %v9919_v60 }
0x1574   : > { %6066 = vtanh.f32 %v4565_v4  ;;  %v4723_v36 = vsub.f32 1.0, %v4722_v14  ;;  %v4767_v23 = vmul.f32 %v10035_v33, %v9964_v25  ;;  %v4665_v4 = vadd.f32 %v9931_v6, %v4664_v1 }
0x1575   : > { %v4808_v17 = vadd.f32 %v4804_v28, %v4800_v27  ;;  %v4710_v15 = vadd.f32 %v9934_v45, %v4709_v44  ;;  %v4763_v42 = vor.u32 1.1754944e-38, %v4762_v52  ;;  %v4730_v14 = vand.u32 2147483647, %v9924_v31 }
0x1576   : > { %v4724_v41 = vmul.f32 %v9988_v11, %v4723_v36  ;;  %v4768_v47 = vsub.f32 1.0, %v4767_v23  ;;  %vm4772_vm7 = vweird.f32 %v10035_v33  ;;  %v4777_v46 = vand.u32 2147483648, %v9964_v25 }
0x1577   : > { %6068 = vtanh.f32 %v4808_v17  ;;  %v4498_v56 = vpop.f32.mrf.mxu2  ;;  %v4714_v55 = vsel %vm10065_vm10, %v9934_v45, %v4710_v15  ;;  %v4760_v45 = vand.u32 2147483647, %v9919_v60  ;;  %vm4731_vm8 = vcmp.eq.f32.partialorder %v4730_v14, 8.507059e+37  ;;  %vm4773_vm5 = vmor %vm4771_vm6, %vm4772_vm7 }
0x1578   : > { %v4548_v59 = vadd.f32 %v4547_v7, %v4498_v56  ;;  %6070 = vrcp.f32 %v10031_v21  ;;  %v4719_v24 = vsel %vm4716_vm14, %v4718_v9, %v4714_v55  ;;  %v4725_v28 = vadd.f32 %v9988_v11, %v4724_v41 }
0x1579   : > { %v4802_v1 = vmul.f32 %v4719_v24, %v9709_v39  ;;  %vm4761_vm4 = vcmp.eq.f32.partialorder %v4760_v45, 8.507059e+37  ;;  %v4672_v7 = vand.u32 2147483648, %v9891_v63  ;;  %v4778_v29 = vor.u32 1.1754944e-38, %v4777_v46 }
0x157a   : > { %v6067_v16 = vpop.eup %6066  ;;  %v4566_v22 = vadd.f32 %v4548_v59, %v6765_v32  ;;  %v4659_v32 = vsel %vm10020_vm2, %v4658_v8, %v4654_v34  ;;  %vm10090_vm2 = vmor %vm4756_vm15, %vm4757_vm13  ;;  %v4769_v34 = vmul.f32 %v10035_v33, %v4768_v47  ;;  %v4729_v39 = vsel %vm10104_vm3, %v9988_v11, %v4725_v28 }
0x157b   : > { %v4805_v30 = vmul.f32 %v6067_v16, %v4644_v3  ;;  %v4759_v60 = vsel %vm10090_vm2, %v9982_v0, %v4755_v2  ;;  %v4670_v0 = vand.u32 2147483647, %v9891_v63  ;;  %v4669_v11 = vsel %vm10119_vm9, %v9931_v6, %v4665_v4 }
0x157c   : > { %6072 = vtanh.f32 %v4566_v22  ;;  %v4770_v31 = vadd.f32 %v10035_v33, %v4769_v34  ;;  %v4775_v59 = vand.u32 2147483647, %v9964_v25  ;;  %v4673_v36 = vor.u32 1.1754944e-38, %v4672_v7 }
0x157d   : > { %v6069_v12 = vpop.eup %6068  ;;  %v4809_v10 = vadd.f32 %v4805_v30, %v4801_v62  ;;  %v4734_v63 = vsel %vm4731_vm8, %v4733_v5, %v4729_v39  ;;  %vm4671_vm10 = vcmp.eq.f32.partialorder %v4670_v0, 8.507059e+37  ;;  %v4792_v30 = vand.u32 2147483648, %v10031_v21 }
0x157e   : > { %v4816_v61 = vmul.f32 %v6069_v12, %v4749_v37  ;;  %v10078_v8 = vpop.eup %6070  ;;  %v4774_v15 = vsel %vm4773_vm5, %v10035_v33, %v4770_v31  ;;  %v4674_v35 = vsel %vm4671_vm10, %v4673_v36, %v4669_v11  ;;  %v4803_v6 = vmul.f32 %v4734_v63, %v9732_v49 }
0x157f   : > { %6074 = vtanh.f32 %v4809_v10  ;;  %v4500_v51 = vpop.f32.mrf.mxu2  ;;  %v4782_v54 = vmul.f32 %v10078_v8, %v10031_v21  ;;  %vm4776_vm12 = vcmp.eq.f32.partialorder %v4775_v59, 8.507059e+37  ;;  %vm4787_vm11 = vweird.f32 %v10078_v8 }
0x1580   : > { %4820 = vst [vmem:[%s6949_s26 + $0xe0] sm:$0xff] %v4816_v61  ;;  %v4550_v18 = vadd.f32 %v4549_v58, %v4500_v51  ;;  %v4779_v22 = vsel %vm4776_vm12, %v4778_v29, %v4774_v15  ;;  %vm4786_vm13 = vweird.f32 %v10031_v21  ;;  %v4790_v49 = vand.u32 2147483647, %v10031_v21 }
0x1581   : > { %v4783_v57 = vsub.f32 1.0, %v4782_v54  ;;  %vm4788_vm14 = vmor %vm4786_vm13, %vm4787_vm11  ;;  %v4793_v53 = vor.u32 1.1754944e-38, %v4792_v30 }
0x1582   : > { %v6073_v3 = vpop.eup %6072  ;;  %v4567_v43 = vadd.f32 %v4550_v18, %v6953_v40  ;;  %v4764_v40 = vsel %vm4761_vm4, %v4763_v42, %v4759_v60  ;;  %vm4791_vm15 = vcmp.eq.f32.partialorder %v4790_v49, 8.507059e+37 }
0x1583   : > { %v4806_v44 = vmul.f32 %v6073_v3, %v4659_v32  ;;  %v4784_v16 = vmul.f32 %v10078_v8, %v4783_v57 }
0x1584   : > { %6076 = vtanh.f32 %v4567_v43 }
0x1585   : > { %v6075_v13 = vpop.eup %6074  ;;  %v4810_v19 = vadd.f32 %v4806_v44, %v4802_v1  ;;  %v4785_v62 = vadd.f32 %v10078_v8, %v4784_v16 }
0x1586   : > { %v4817_v56 = vmul.f32 %v6075_v13, %v4764_v40 }
0x1587   : > { %6078 = vtanh.f32 %v4810_v19  ;;  %v4789_v20 = vsel %vm4788_vm14, %v10078_v8, %v4785_v62 }
0x1588   : > { %4821 = vst [vmem:[%s6949_s26 + $0xe8] sm:$0xff] %v4817_v56  ;;  %v4794_v32 = vsel %vm4791_vm15, %v4793_v53, %v4789_v20 }
0x158a   : > { %v6077_v26 = vpop.eup %6076 }
0x158b   : > { %v4807_v23 = vmul.f32 %v6077_v26, %v4674_v35 }
0x158d   : > { %v6079_v25 = vpop.eup %6078  ;;  %v4811_v38 = vadd.f32 %v4807_v23, %v4803_v6 }
0x158e   : > { %v4818_v33 = vmul.f32 %v6079_v25, %v4779_v22 }
0x158f   : > { %6080 = vtanh.f32 %v4811_v38 }
0x1590   : > { %4822 = vst [vmem:[%s6949_s26 + $0xf0] sm:$0xff] %v4818_v33 }
0x1595   : > { %v6081_v9 = vpop.eup %6080 }
0x1596   : > { %v4819_v12 = vmul.f32 %v6081_v9, %v4794_v32 }
0x1598   : > { %4823 = vst [vmem:[%s6949_s26 + $0xf8] sm:$0xff] %v4819_v12 }
0x1599   : > { %6203 = shalt.err (!%p6200_p5)
}
0x159a   : > { %s6241_s28 = smov 128   ;;  %s6242_s26 = smov 256  }
0x159b   : > { %s6243_s22 = smov 8  }
0x159c   : > { %5364 = dma.vmem_to_hbm [thread:$0]  (%p6332_p6), %s4837_s13, 4096, %s4839_s23, %s4825_s24, %s6241_s28, %s6242_s26, %s6243_s22  }
0x159d PF: > { %s4853_s29 = sand.u32 1, %s6226_s30   ;;  %p5367_p7 = pnand %p4909_p9, %p6336_p8 }
0x159e   : > { %s4854_s25 = scalar_lea.sflag [#allocation4], %s4853_s29 }
0x159f   : > { %p5368_p10 = pneg %p5367_p7 }
0x15a1   : > { %6221 = dma.done.wait (%p5368_p10), %s4854_s25, 4096  }
0x15a2   : > { %6223 = vsyncadd (%p5368_p10), %s4854_s25, 4294963200  ;;  %p19_p11 = scmp.ge.s32.totalorder %s6317_s15, 4   ;;  %s10776_s30 = smov %s6230_s10 }
0x15a3   : > { %s10777_s10 = smov %s6234_s11  ;;  %s10778_s11 = smov %s6330_s18 }
0x15a4   : > { %s10779_s12 = smov %s6317_s15  ;;  %21 = sbr.rel (!%p19_p11) target bundleno = 3 (0x3), region = 134 }
0x15a9   :  { %4860 = vsyncpa [#allocation4], 1 }
0x15aa   :  { %4862 = vsyncpa [#allocation4 + $0x1], 1 }

</bundles_post_ra>
